<compile_context>
chip_gen: v5e
topology: v5e:2x2
jax: 0.10.0
libtpu: 0.0.40
codegen_flags: <defaults>
</compile_context>

<pallas_src>
import math
import jax
import jax.numpy as jnp
from jax.experimental import pallas as pl
from jax.experimental.pallas import tpu as pltpu

# ----------------------- small synthetic FLAVA-like hyper-params --------------
D      = 32                      # hidden size
H      = 4                       # attention heads
DH     = D // H                  # head dim
MLP    = 4 * D                   # feed-forward dim
L      = 2                       # transformer layers per encoder
PATCH  = 8
IMG_C  = 3
IMG_HW = 16
S_IMG  = 1 + (IMG_HW // PATCH) ** 2   # CLS + 4 patches = 5
N_TXT  = 4                       # number of texts in text_list
S_TXT  = 8                       # stand-in for FLAVA max_length=77 (kept small)
VOCAB  = 100
PROJ   = 16                      # shared projection dim
NEG_INF = -1e9
_ATTN_SCALE = 1.0 / math.sqrt(DH)


# ------------------------------- kernel helpers --------------------------------
def _ln(v, w, b, eps=1e-12):
    mu = jnp.mean(v, axis=-1, keepdims=True)
    var = jnp.mean(jnp.square(v - mu), axis=-1, keepdims=True)
    return (v - mu) * jax.lax.rsqrt(var + eps) * w + b


def _softmax_lastdim(s, approx):
    s = s - jnp.max(s, axis=-1, keepdims=True)
    p = jnp.exp(s)
    denom = jnp.sum(p, axis=-1, keepdims=True)
    if approx:
        return p * pl.reciprocal(denom, approx=True)   # EUP slot, off the VALU
    return p / denom


def _encoder_layer(h, mask, l,
                   ln1w_ref, ln1b_ref, wqkv_ref, bqkv_ref, wo_ref, bo_ref,
                   ln2w_ref, ln2b_ref, f1w_ref, f1b_ref, f2w_ref, f2b_ref,
                   cat_scr):
    """One pre-LN transformer layer.  h: (B, S, D); mask: (B, 1, S) additive or None.

    All weight refs are (L, ...) stacks, statically indexed at layer `l`
    (weights VMEM-resident for the whole kernel; loop fully unrolled).
    """
    b, s, d = h.shape

    # ---- fused self-attention: one QKV matmul, one output projection
    y = _ln(h, ln1w_ref[l], ln1b_ref[l])
    qkv = jnp.dot(y.reshape(b * s, d), wqkv_ref[l],
                  preferred_element_type=jnp.float32) + bqkv_ref[l]      # (B*S, 3D)
    qkv = qkv.reshape(b, s, 3 * d)

    for hh in range(H):                                                   # static unroll
        qh = qkv[:, :, hh * DH:(hh + 1) * DH]
        kh = qkv[:, :, d + hh * DH: d + (hh + 1) * DH]
        vh = qkv[:, :, 2 * d + hh * DH: 2 * d + (hh + 1) * DH]
        sc = jnp.einsum('bqd,bkd->bqk', qh, kh,
                        preferred_element_type=jnp.float32) * _ATTN_SCALE  # (B,S,S)
        if mask is not None:
            sc = sc + mask
        p = _softmax_lastdim(sc, approx=True)
        oh = jnp.einsum('bqk,bkd->bqd', p, vh,
                        preferred_element_type=jnp.float32)               # (B,S,DH)
        cat_scr[:, :, hh * DH:(hh + 1) * DH] = oh                         # concat heads

    attn = jnp.dot(cat_scr[...].reshape(b * s, d), wo_ref[l],
                   preferred_element_type=jnp.float32) + bo_ref[l]        # (B*S, D)
    h = h + attn.reshape(b, s, d)

    # ---- MLP
    y2 = _ln(h, ln2w_ref[l], ln2b_ref[l]).reshape(b * s, d)
    m = jnp.dot(y2, f1w_ref[l], preferred_element_type=jnp.float32) + f1b_ref[l]
    m = jax.nn.gelu(m, approximate=True)
    m = jnp.dot(m, f2w_ref[l], preferred_element_type=jnp.float32) + f2b_ref[l]
    return h + m.reshape(b, s, d)


# --------------------------- single fused kernel --------------------------------
def flava_clip_kernel(
        # -------- image tower inputs
        patches_ref, pw_ref, pb_ref, cls_ref, ipos_ref,
        iln1w_ref, iln1b_ref, iwqkv_ref, ibqkv_ref, iwo_ref, ibo_ref,
        iln2w_ref, iln2b_ref, if1w_ref, if1b_ref, if2w_ref, if2b_ref,
        ilnfw_ref, ilnfb_ref, iprojw_ref, iprojb_ref,
        # -------- text tower inputs
        tok_ref, tpos_ref, elnw_ref, elnb_ref, mask_ref,
        tln1w_ref, tln1b_ref, twqkv_ref, tbqkv_ref, two_ref, tbo_ref,
        tln2w_ref, tln2b_ref, tf1w_ref, tf1b_ref, tf2w_ref, tf2b_ref,
        tlnfw_ref, tlnfb_ref, tprojw_ref, tprojb_ref,
        # -------- contrastive head
        scale_ref,
        # -------- output
        o_ref,
        # -------- scratch
        x_scr, icat_scr, tcat_scr, pooled_scr):
    """Whole dual-encoder forward in one launch.  Output: softmax probs (1, N_TXT)."""

    # ===================== image tower (ViT-style) ======================
    pe = jnp.dot(patches_ref[...], pw_ref[...],
                 preferred_element_type=jnp.float32) + pb_ref[...]        # (NP, D)
    x_scr[0:1, :] = cls_ref[...]
    x_scr[1:S_IMG, :] = pe
    h_img = (x_scr[...] + ipos_ref[...])[None]                            # (1, S_IMG, D)

    for l in range(L):                                                    # static unroll
        h_img = _encoder_layer(h_img, None, l,
                               iln1w_ref, iln1b_ref, iwqkv_ref, ibqkv_ref,
                               iwo_ref, ibo_ref, iln2w_ref, iln2b_ref,
                               if1w_ref, if1b_ref, if2w_ref, if2b_ref,
                               icat_scr)

    hf_img = _ln(h_img, ilnfw_ref[...], ilnfb_ref[...])                   # (1, S_IMG, D)
    img_pooled = hf_img[0, 0:1, :]                                        # CLS -> (1, D)
    img_emb = jnp.dot(img_pooled, iprojw_ref[...],
                      preferred_element_type=jnp.float32) + iprojb_ref[...]  # (1, PROJ)

    # ===================== text tower (BERT-style) ======================
    x_txt = tok_ref[...] + tpos_ref[...]                                  # (N, S, D)
    h_txt = _ln(x_txt, elnw_ref[...], elnb_ref[...])
    mask = mask_ref[...]                                                  # (N, 1, S)

    for l in range(L):                                                    # static unroll
        h_txt = _encoder_layer(h_txt, mask, l,
                               tln1w_ref, tln1b_ref, twqkv_ref, tbqkv_ref,
                               two_ref, tbo_ref, tln2w_ref, tln2b_ref,
                               tf1w_ref, tf1b_ref, tf2w_ref, tf2b_ref,
                               tcat_scr)

    hf_txt = _ln(h_txt, tlnfw_ref[...], tlnfb_ref[...])                   # (N, S, D)
    tcat_scr[...] = hf_txt
    for i in range(N_TXT):                                                # CLS pooling
        pooled_scr[i:i + 1, :] = tcat_scr[i, 0:1, :]
    txt_emb = jnp.dot(pooled_scr[...], tprojw_ref[...],
                      preferred_element_type=jnp.float32) + tprojb_ref[...]  # (N, PROJ)

    # ============ contrastive logits_per_image + softmax(dim=1) ==========
    img_n = img_emb * jax.lax.rsqrt(jnp.sum(img_emb * img_emb, -1, keepdims=True) + 1e-12)
    txt_n = txt_emb * jax.lax.rsqrt(jnp.sum(txt_emb * txt_emb, -1, keepdims=True) + 1e-12)
    logits = jax.lax.dot_general(img_n, txt_n, (((1,), (1,)), ((), ())),
                                 preferred_element_type=jnp.float32)      # (1, N)
    logits = logits * scale_ref[0]
    o_ref[...] = _softmax_lastdim(logits, approx=False)                   # exact final softmax


# ------------------------------- wrapper ----------------------------------------
_VMEM = pl.BlockSpec(memory_space=pltpu.MemorySpace.VMEM)
_SMEM = pl.BlockSpec(memory_space=pltpu.MemorySpace.SMEM)


def flava_clip_pallas(patches, tok, mask, params):
    ilp = params["img_layers"]
    tlp = params["txt_layers"]
    return pl.pallas_call(
        flava_clip_kernel,
        out_shape=jax.ShapeDtypeStruct((1, N_TXT), jnp.float32),
        in_specs=[_VMEM] * 42 + [_SMEM],
        out_specs=_VMEM,
        scratch_shapes=[pltpu.VMEM((S_IMG, D), jnp.float32),              # patch+CLS slab
                        pltpu.VMEM((1, S_IMG, D), jnp.float32),           # image head concat
                        pltpu.VMEM((N_TXT, S_TXT, D), jnp.float32),       # text head concat
                        pltpu.VMEM((N_TXT, D), jnp.float32)],             # text CLS pooled
    )(
        # image tower
        patches, params["img_patch_w"], params["img_patch_b"],
        params["img_cls"], params["img_pos"],
        ilp["ln1_w"], ilp["ln1_b"], ilp["wqkv"], ilp["bqkv"], ilp["wo"], ilp["bo"],
        ilp["ln2_w"], ilp["ln2_b"], ilp["fc1_w"], ilp["fc1_b"], ilp["fc2_w"], ilp["fc2_b"],
        params["img_ln_w"], params["img_ln_b"],
        params["img_proj_w"], params["img_proj_b"],
        # text tower
        tok, params["txt_pos"], params["txt_emb_ln_w"], params["txt_emb_ln_b"], mask,
        tlp["ln1_w"], tlp["ln1_b"], tlp["wqkv"], tlp["bqkv"], tlp["wo"], tlp["bo"],
        tlp["ln2_w"], tlp["ln2_b"], tlp["fc1_w"], tlp["fc1_b"], tlp["fc2_w"], tlp["fc2_b"],
        params["txt_ln_w"], params["txt_ln_b"],
        params["txt_proj_w"], params["txt_proj_b"],
        # contrastive head
        params["logit_scale"],
    )


# ------------------------------- parameters ------------------------------------
def _nrm(key, shape):
    return 0.02 * jax.random.normal(key, shape, jnp.float32)


def init_encoder_params(key):
    ks = jax.random.split(key, 4)
    return dict(
        ln1_w=jnp.ones((L, 1, D), jnp.float32), ln1_b=jnp.zeros((L, 1, D), jnp.float32),
        wqkv=_nrm(ks[0], (L, D, 3 * D)), bqkv=jnp.zeros((L, 1, 3 * D), jnp.float32),
        wo=_nrm(ks[1], (L, D, D)), bo=jnp.zeros((L, 1, D), jnp.float32),
        ln2_w=jnp.ones((L, 1, D), jnp.float32), ln2_b=jnp.zeros((L, 1, D), jnp.float32),
        fc1_w=_nrm(ks[2], (L, D, MLP)), fc1_b=jnp.zeros((L, 1, MLP), jnp.float32),
        fc2_w=_nrm(ks[3], (L, MLP, D)), fc2_b=jnp.zeros((L, 1, D), jnp.float32),
    )


def init_params(key):
    ks = jax.random.split(key, 10)
    return dict(
        # image tower (ViT-style)
        img_patch_w=_nrm(ks[0], (IMG_C * PATCH * PATCH, D)),   # conv weight flattened
        img_patch_b=jnp.zeros((1, D), jnp.float32),
        img_cls=_nrm(ks[1], (1, D)),
        img_pos=_nrm(ks[2], (S_IMG, D)),
        img_layers=init_encoder_params(ks[3]),
        img_ln_w=jnp.ones((1, D), jnp.float32), img_ln_b=jnp.zeros((1, D), jnp.float32),
        img_proj_w=_nrm(ks[4], (D, PROJ)), img_proj_b=jnp.zeros((1, PROJ), jnp.float32),
        # text tower (BERT-style)
        tok_emb=_nrm(ks[5], (VOCAB, D)),
        txt_pos=_nrm(ks[6], (S_TXT, D)),
        txt_emb_ln_w=jnp.ones((1, D), jnp.float32), txt_emb_ln_b=jnp.zeros((1, D), jnp.float32),
        txt_layers=init_encoder_params(ks[7]),
        txt_ln_w=jnp.ones((1, D), jnp.float32), txt_ln_b=jnp.zeros((1, D), jnp.float32),
        txt_proj_w=_nrm(ks[8], (D, PROJ)), txt_proj_b=jnp.zeros((1, PROJ), jnp.float32),
        # contrastive head
        logit_scale=jnp.array([1.0 / 0.07], jnp.float32),
    )


# ------------------------------- forward ---------------------------------------
def flava_clip_forward(image, token_ids, token_lens, params):
    """image: (1, C, H, W) NCHW float32; token_ids: (N_TXT, S_TXT) int32.

    Returns softmax(logits_per_image, dim=1): shape (1, N_TXT).
    """
    # ---- glue: unfold image patches, gather token embeddings, build padding mask
    b, c, hh, ww = image.shape
    nph, npw = hh // PATCH, ww // PATCH
    patches = image.reshape(b, c, nph, PATCH, npw, PATCH)
    patches = patches.transpose(0, 2, 4, 1, 3, 5).reshape(b * nph * npw, c * PATCH * PATCH)

    tok = jnp.take(params["tok_emb"], token_ids, axis=0)                  # (N, S, D)
    pos_ids = jnp.arange(S_TXT)[None, :]
    txt_mask = jnp.where(pos_ids < token_lens[:, None], 0.0, NEG_INF)
    txt_mask = txt_mask.astype(jnp.float32)[:, None, :]                   # (N, 1, S)

    # ---- everything else (both towers + contrastive head) in ONE kernel launch
    return flava_clip_pallas(patches, tok, txt_mask, params)              # (1, N_TXT)


# ------------------------------- main -------------------------------------------
if __name__ == "__main__":
    key = jax.random.PRNGKey(0)
    k_img, k_tok = jax.random.split(key)

    image = jax.random.normal(k_img, (1, IMG_C, IMG_HW, IMG_HW), jnp.float32)     # NCHW
    token_ids = jax.random.randint(k_tok, (N_TXT, S_TXT), 0, VOCAB, jnp.int32)
    token_lens = jnp.array([8, 6, 5, 7], jnp.int32)                               # per-text lengths

    params = init_params(jax.random.PRNGKey(42))

    fwd = jax.jit(flava_clip_forward)
    probs = fwd(image, token_ids, token_lens, params)
    probs = jax.block_until_ready(probs)

    assert probs.shape == (1, N_TXT)
    assert bool(jnp.all(jnp.isfinite(probs)))
    assert abs(float(jnp.sum(probs)) - 1.0) < 1e-4
    print("KERNEL_OK")
</pallas_src>

<mosaic_0001>
module attributes {stable_mosaic.version = 11 : i64} {
  func.func @flava_clip_kernel(%arg0: memref<4x192xf32, #tpu.memory_space<vmem>>, %arg1: memref<192x32xf32, #tpu.memory_space<vmem>>, %arg2: memref<1x32xf32, #tpu.memory_space<vmem>>, %arg3: memref<1x32xf32, #tpu.memory_space<vmem>>, %arg4: memref<5x32xf32, #tpu.memory_space<vmem>>, %arg5: memref<2x1x32xf32, #tpu.memory_space<vmem>>, %arg6: memref<2x1x32xf32, #tpu.memory_space<vmem>>, %arg7: memref<2x32x96xf32, #tpu.memory_space<vmem>>, %arg8: memref<2x1x96xf32, #tpu.memory_space<vmem>>, %arg9: memref<2x32x32xf32, #tpu.memory_space<vmem>>, %arg10: memref<2x1x32xf32, #tpu.memory_space<vmem>>, %arg11: memref<2x1x32xf32, #tpu.memory_space<vmem>>, %arg12: memref<2x1x32xf32, #tpu.memory_space<vmem>>, %arg13: memref<2x32x128xf32, #tpu.memory_space<vmem>>, %arg14: memref<2x1x128xf32, #tpu.memory_space<vmem>>, %arg15: memref<2x128x32xf32, #tpu.memory_space<vmem>>, %arg16: memref<2x1x32xf32, #tpu.memory_space<vmem>>, %arg17: memref<1x32xf32, #tpu.memory_space<vmem>>, %arg18: memref<1x32xf32, #tpu.memory_space<vmem>>, %arg19: memref<32x16xf32, #tpu.memory_space<vmem>>, %arg20: memref<1x16xf32, #tpu.memory_space<vmem>>, %arg21: memref<4x8x32xf32, #tpu.memory_space<vmem>>, %arg22: memref<8x32xf32, #tpu.memory_space<vmem>>, %arg23: memref<1x32xf32, #tpu.memory_space<vmem>>, %arg24: memref<1x32xf32, #tpu.memory_space<vmem>>, %arg25: memref<4x1x8xf32, #tpu.memory_space<vmem>>, %arg26: memref<2x1x32xf32, #tpu.memory_space<vmem>>, %arg27: memref<2x1x32xf32, #tpu.memory_space<vmem>>, %arg28: memref<2x32x96xf32, #tpu.memory_space<vmem>>, %arg29: memref<2x1x96xf32, #tpu.memory_space<vmem>>, %arg30: memref<2x32x32xf32, #tpu.memory_space<vmem>>, %arg31: memref<2x1x32xf32, #tpu.memory_space<vmem>>, %arg32: memref<2x1x32xf32, #tpu.memory_space<vmem>>, %arg33: memref<2x1x32xf32, #tpu.memory_space<vmem>>, %arg34: memref<2x32x128xf32, #tpu.memory_space<vmem>>, %arg35: memref<2x1x128xf32, #tpu.memory_space<vmem>>, %arg36: memref<2x128x32xf32, #tpu.memory_space<vmem>>, %arg37: memref<2x1x32xf32, #tpu.memory_space<vmem>>, %arg38: memref<1x32xf32, #tpu.memory_space<vmem>>, %arg39: memref<1x32xf32, #tpu.memory_space<vmem>>, %arg40: memref<32x16xf32, #tpu.memory_space<vmem>>, %arg41: memref<1x16xf32, #tpu.memory_space<vmem>>, %arg42: memref<1xf32, #tpu.memory_space<smem>>, %arg43: memref<1x4xf32, #tpu.memory_space<vmem>>, %arg44: memref<5x32xf32, #tpu.memory_space<vmem>>, %arg45: memref<1x5x32xf32, #tpu.memory_space<vmem>>, %arg46: memref<4x8x32xf32, #tpu.memory_space<vmem>>, %arg47: memref<4x32xf32, #tpu.memory_space<vmem>>) attributes {dimension_semantics = [], scalar_prefetch = 0 : i64, scratch_operands = 4 : i64, tpu.core_type = #tpu.core_type<tc>} {
    %c0 = arith.constant 0 : index
    %c0_0 = arith.constant 0 : index
    %0 = vector.load %arg0[%c0, %c0_0] : memref<4x192xf32, #tpu.memory_space<vmem>>, vector<4x192xf32>
    %c0_1 = arith.constant 0 : index
    %c0_2 = arith.constant 0 : index
    %1 = vector.load %arg1[%c0_1, %c0_2] : memref<192x32xf32, #tpu.memory_space<vmem>>, vector<192x32xf32>
    %cst = arith.constant dense<0.000000e+00> : vector<4x32xf32>
    %2 = tpu.matmul %0, %1, %cst {dimension_numbers = #tpu.dot_dimension_numbers<[1], [0], [0], [1], [0, 0, 1, 1], [], []>} : vector<4x192xf32>, vector<192x32xf32>, vector<4x32xf32> -> vector<4x32xf32>
    %c0_3 = arith.constant 0 : index
    %c0_4 = arith.constant 0 : index
    %3 = vector.load %arg2[%c0_3, %c0_4] : memref<1x32xf32, #tpu.memory_space<vmem>>, vector<1x32xf32>
    %4 = vector.broadcast %3 : vector<1x32xf32> to vector<4x32xf32>
    %5 = arith.addf %2, %4 : vector<4x32xf32>
    %c0_5 = arith.constant 0 : index
    %c0_6 = arith.constant 0 : index
    %6 = vector.load %arg3[%c0_5, %c0_6] : memref<1x32xf32, #tpu.memory_space<vmem>>, vector<1x32xf32>
    %c0_7 = arith.constant 0 : index
    %c0_8 = arith.constant 0 : index
    %7 = vector.load %arg44[%c0_7, %c0_8] : memref<5x32xf32, #tpu.memory_space<vmem>>, vector<1x32xf32>
    tpu.vector_store %arg44[%c0_7, %c0_8], %6 {strides = array<i32>} : memref<5x32xf32, #tpu.memory_space<vmem>>, vector<1x32xf32>,
    %c1 = arith.constant 1 : index
    %c0_9 = arith.constant 0 : index
    %8 = vector.load %arg44[%c1, %c0_9] : memref<5x32xf32, #tpu.memory_space<vmem>>, vector<4x32xf32>
    tpu.vector_store %arg44[%c1, %c0_9], %5 {strides = array<i32>} : memref<5x32xf32, #tpu.memory_space<vmem>>, vector<4x32xf32>,
    %c0_10 = arith.constant 0 : index
    %c0_11 = arith.constant 0 : index
    %9 = vector.load %arg44[%c0_10, %c0_11] : memref<5x32xf32, #tpu.memory_space<vmem>>, vector<5x32xf32>
    %c0_12 = arith.constant 0 : index
    %c0_13 = arith.constant 0 : index
    %10 = vector.load %arg4[%c0_12, %c0_13] : memref<5x32xf32, #tpu.memory_space<vmem>>, vector<5x32xf32>
    %11 = arith.addf %9, %10 : vector<5x32xf32>
    %12 = vector.shape_cast %11 : vector<5x32xf32> to vector<1x5x32xf32>
    %c0_14 = arith.constant 0 : index
    %c0_15 = arith.constant 0 : index
    %c0_16 = arith.constant 0 : index
    %13 = vector.load %arg5[%c0_14, %c0_15, %c0_16] : memref<2x1x32xf32, #tpu.memory_space<vmem>>, vector<1x1x32xf32>
    %14 = vector.shape_cast %13 : vector<1x1x32xf32> to vector<1x32xf32>
    %c0_17 = arith.constant 0 : index
    %c0_18 = arith.constant 0 : index
    %c0_19 = arith.constant 0 : index
    %15 = vector.load %arg6[%c0_17, %c0_18, %c0_19] : memref<2x1x32xf32, #tpu.memory_space<vmem>>, vector<1x1x32xf32>
    %16 = vector.shape_cast %15 : vector<1x1x32xf32> to vector<1x32xf32>
    %cst_20 = arith.constant dense<0.000000e+00> : vector<1x5xf32>
    %17 = vector.multi_reduction <add>, %12, %cst_20 [2] : vector<1x5x32xf32> to vector<1x5xf32>
    %18 = vector.shape_cast %17 : vector<1x5xf32> to vector<1x5x1xf32>
    %cst_21 = arith.constant 3.200000e+01 : f32
    %19 = vector.broadcast %cst_21 : f32 to vector<1x5x1xf32>
    %20 = arith.divf %18, %19 : vector<1x5x1xf32>
    %21 = vector.broadcast %20 : vector<1x5x1xf32> to vector<1x5x32xf32>
    %22 = arith.subf %12, %21 : vector<1x5x32xf32>
    %23 = arith.mulf %22, %22 : vector<1x5x32xf32>
    %cst_22 = arith.constant dense<0.000000e+00> : vector<1x5xf32>
    %24 = vector.multi_reduction <add>, %23, %cst_22 [2] : vector<1x5x32xf32> to vector<1x5xf32>
    %25 = vector.shape_cast %24 : vector<1x5xf32> to vector<1x5x1xf32>
    %cst_23 = arith.constant 3.200000e+01 : f32
    %26 = vector.broadcast %cst_23 : f32 to vector<1x5x1xf32>
    %27 = arith.divf %25, %26 : vector<1x5x1xf32>
    %28 = vector.broadcast %20 : vector<1x5x1xf32> to vector<1x5x32xf32>
    %29 = arith.subf %12, %28 : vector<1x5x32xf32>
    %cst_24 = arith.constant 9.99999996E-13 : f32
    %30 = vector.broadcast %cst_24 : f32 to vector<1x5x1xf32>
    %31 = arith.addf %27, %30 : vector<1x5x1xf32>
    %32 = math.rsqrt %31 : vector<1x5x1xf32>
    %33 = vector.broadcast %32 : vector<1x5x1xf32> to vector<1x5x32xf32>
    %34 = arith.mulf %29, %33 : vector<1x5x32xf32>
    %35 = vector.shape_cast %14 : vector<1x32xf32> to vector<1x1x32xf32>
    %36 = vector.broadcast %35 : vector<1x1x32xf32> to vector<1x5x32xf32>
    %37 = arith.mulf %34, %36 : vector<1x5x32xf32>
    %38 = vector.shape_cast %16 : vector<1x32xf32> to vector<1x1x32xf32>
    %39 = vector.broadcast %38 : vector<1x1x32xf32> to vector<1x5x32xf32>
    %40 = arith.addf %37, %39 : vector<1x5x32xf32>
    %41 = vector.shape_cast %40 : vector<1x5x32xf32> to vector<5x32xf32>
    %c0_25 = arith.constant 0 : index
    %c0_26 = arith.constant 0 : index
    %c0_27 = arith.constant 0 : index
    %42 = vector.load %arg7[%c0_25, %c0_26, %c0_27] : memref<2x32x96xf32, #tpu.memory_space<vmem>>, vector<1x32x96xf32>
    %43 = vector.shape_cast %42 : vector<1x32x96xf32> to vector<32x96xf32>
    %cst_28 = arith.constant dense<0.000000e+00> : vector<5x96xf32>
    %44 = tpu.matmul %41, %43, %cst_28 {dimension_numbers = #tpu.dot_dimension_numbers<[1], [0], [0], [1], [0, 0, 1, 1], [], []>} : vector<5x32xf32>, vector<32x96xf32>, vector<5x96xf32> -> vector<5x96xf32>
    %c0_29 = arith.constant 0 : index
    %c0_30 = arith.constant 0 : index
    %c0_31 = arith.constant 0 : index
    %45 = vector.load %arg8[%c0_29, %c0_30, %c0_31] : memref<2x1x96xf32, #tpu.memory_space<vmem>>, vector<1x1x96xf32>
    %46 = vector.shape_cast %45 : vector<1x1x96xf32> to vector<1x96xf32>
    %47 = vector.broadcast %46 : vector<1x96xf32> to vector<5x96xf32>
    %48 = arith.addf %44, %47 : vector<5x96xf32>
    %49 = vector.shape_cast %48 : vector<5x96xf32> to vector<1x5x96xf32>
    %50 = vector.extract_strided_slice %49 {offsets = [0, 0, 0], sizes = [1, 5, 8], strides = [1, 1, 1]} : vector<1x5x96xf32> to vector<1x5x8xf32>
    %51 = vector.extract_strided_slice %49 {offsets = [0, 0, 32], sizes = [1, 5, 8], strides = [1, 1, 1]} : vector<1x5x96xf32> to vector<1x5x8xf32>
    %52 = vector.extract_strided_slice %49 {offsets = [0, 0, 64], sizes = [1, 5, 8], strides = [1, 1, 1]} : vector<1x5x96xf32> to vector<1x5x8xf32>
    "tpu.trace_start"() <{level = 10 : i32, message = "bqd,bkd->bqk"}> : () -> ()
    %cst_32 = arith.constant dense<0.000000e+00> : vector<1x5x5xf32>
    %53 = tpu.matmul %50, %51, %cst_32 {dimension_numbers = #tpu.dot_dimension_numbers<[2], [2], [1], [1], [0, 0, 0, 1, 1, 1], [0], [0]>} : vector<1x5x8xf32>, vector<1x5x8xf32>, vector<1x5x5xf32> -> vector<1x5x5xf32>
    "tpu.trace_stop"() : () -> ()
    %cst_33 = arith.constant 0.353553385 : f32
    %54 = vector.broadcast %cst_33 : f32 to vector<1x5x5xf32>
    %55 = arith.mulf %53, %54 : vector<1x5x5xf32>
    %cst_34 = arith.constant dense<0xFF800000> : vector<1x5xf32>
    %56 = vector.multi_reduction <maximumf>, %55, %cst_34 [2] : vector<1x5x5xf32> to vector<1x5xf32>
    %57 = vector.shape_cast %56 : vector<1x5xf32> to vector<1x5x1xf32>
    %58 = vector.broadcast %57 : vector<1x5x1xf32> to vector<1x5x5xf32>
    %59 = arith.subf %55, %58 : vector<1x5x5xf32>
    %60 = math.exp %59 : vector<1x5x5xf32>
    %cst_35 = arith.constant dense<0.000000e+00> : vector<1x5xf32>
    %61 = vector.multi_reduction <add>, %60, %cst_35 [2] : vector<1x5x5xf32> to vector<1x5xf32>
    %62 = vector.shape_cast %61 : vector<1x5xf32> to vector<1x5x1xf32>
    %63 = tpu.reciprocal %62 {approx = true} : vector<1x5x1xf32> -> vector<1x5x1xf32>
    %64 = vector.broadcast %63 : vector<1x5x1xf32> to vector<1x5x5xf32>
    %65 = arith.mulf %60, %64 : vector<1x5x5xf32>
    "tpu.trace_start"() <{level = 10 : i32, message = "bqk,bkd->bqd"}> : () -> ()
    %cst_36 = arith.constant dense<0.000000e+00> : vector<1x5x8xf32>
    %66 = tpu.matmul %65, %52, %cst_36 {dimension_numbers = #tpu.dot_dimension_numbers<[2], [1], [1], [2], [0, 0, 0, 1, 1, 2], [0], [0]>} : vector<1x5x5xf32>, vector<1x5x8xf32>, vector<1x5x8xf32> -> vector<1x5x8xf32>
    "tpu.trace_stop"() : () -> ()
    %c0_37 = arith.constant 0 : index
    %c0_38 = arith.constant 0 : index
    %c0_39 = arith.constant 0 : index
    %67 = vector.load %arg45[%c0_37, %c0_38, %c0_39] : memref<1x5x32xf32, #tpu.memory_space<vmem>>, vector<1x5x8xf32>
    tpu.vector_store %arg45[%c0_37, %c0_38, %c0_39], %66 {strides = array<i32>} : memref<1x5x32xf32, #tpu.memory_space<vmem>>, vector<1x5x8xf32>,
    %68 = vector.extract_strided_slice %49 {offsets = [0, 0, 8], sizes = [1, 5, 8], strides = [1, 1, 1]} : vector<1x5x96xf32> to vector<1x5x8xf32>
    %69 = vector.extract_strided_slice %49 {offsets = [0, 0, 40], sizes = [1, 5, 8], strides = [1, 1, 1]} : vector<1x5x96xf32> to vector<1x5x8xf32>
    %70 = vector.extract_strided_slice %49 {offsets = [0, 0, 72], sizes = [1, 5, 8], strides = [1, 1, 1]} : vector<1x5x96xf32> to vector<1x5x8xf32>
    "tpu.trace_start"() <{level = 10 : i32, message = "bqd,bkd->bqk"}> : () -> ()
    %cst_40 = arith.constant dense<0.000000e+00> : vector<1x5x5xf32>
    %71 = tpu.matmul %68, %69, %cst_40 {dimension_numbers = #tpu.dot_dimension_numbers<[2], [2], [1], [1], [0, 0, 0, 1, 1, 1], [0], [0]>} : vector<1x5x8xf32>, vector<1x5x8xf32>, vector<1x5x5xf32> -> vector<1x5x5xf32>
    "tpu.trace_stop"() : () -> ()
    %cst_41 = arith.constant 0.353553385 : f32
    %72 = vector.broadcast %cst_41 : f32 to vector<1x5x5xf32>
    %73 = arith.mulf %71, %72 : vector<1x5x5xf32>
    %cst_42 = arith.constant dense<0xFF800000> : vector<1x5xf32>
    %74 = vector.multi_reduction <maximumf>, %73, %cst_42 [2] : vector<1x5x5xf32> to vector<1x5xf32>
    %75 = vector.shape_cast %74 : vector<1x5xf32> to vector<1x5x1xf32>
    %76 = vector.broadcast %75 : vector<1x5x1xf32> to vector<1x5x5xf32>
    %77 = arith.subf %73, %76 : vector<1x5x5xf32>
    %78 = math.exp %77 : vector<1x5x5xf32>
    %cst_43 = arith.constant dense<0.000000e+00> : vector<1x5xf32>
    %79 = vector.multi_reduction <add>, %78, %cst_43 [2] : vector<1x5x5xf32> to vector<1x5xf32>
    %80 = vector.shape_cast %79 : vector<1x5xf32> to vector<1x5x1xf32>
    %81 = tpu.reciprocal %80 {approx = true} : vector<1x5x1xf32> -> vector<1x5x1xf32>
    %82 = vector.broadcast %81 : vector<1x5x1xf32> to vector<1x5x5xf32>
    %83 = arith.mulf %78, %82 : vector<1x5x5xf32>
    "tpu.trace_start"() <{level = 10 : i32, message = "bqk,bkd->bqd"}> : () -> ()
    %cst_44 = arith.constant dense<0.000000e+00> : vector<1x5x8xf32>
    %84 = tpu.matmul %83, %70, %cst_44 {dimension_numbers = #tpu.dot_dimension_numbers<[2], [1], [1], [2], [0, 0, 0, 1, 1, 2], [0], [0]>} : vector<1x5x5xf32>, vector<1x5x8xf32>, vector<1x5x8xf32> -> vector<1x5x8xf32>
    "tpu.trace_stop"() : () -> ()
    %c0_45 = arith.constant 0 : index
    %c0_46 = arith.constant 0 : index
    %c8 = arith.constant 8 : index
    %85 = vector.load %arg45[%c0_45, %c0_46, %c8] : memref<1x5x32xf32, #tpu.memory_space<vmem>>, vector<1x5x8xf32>
    tpu.vector_store %arg45[%c0_45, %c0_46, %c8], %84 {strides = array<i32>} : memref<1x5x32xf32, #tpu.memory_space<vmem>>, vector<1x5x8xf32>,
    %86 = vector.extract_strided_slice %49 {offsets = [0, 0, 16], sizes = [1, 5, 8], strides = [1, 1, 1]} : vector<1x5x96xf32> to vector<1x5x8xf32>
    %87 = vector.extract_strided_slice %49 {offsets = [0, 0, 48], sizes = [1, 5, 8], strides = [1, 1, 1]} : vector<1x5x96xf32> to vector<1x5x8xf32>
    %88 = vector.extract_strided_slice %49 {offsets = [0, 0, 80], sizes = [1, 5, 8], strides = [1, 1, 1]} : vector<1x5x96xf32> to vector<1x5x8xf32>
    "tpu.trace_start"() <{level = 10 : i32, message = "bqd,bkd->bqk"}> : () -> ()
    %cst_47 = arith.constant dense<0.000000e+00> : vector<1x5x5xf32>
    %89 = tpu.matmul %86, %87, %cst_47 {dimension_numbers = #tpu.dot_dimension_numbers<[2], [2], [1], [1], [0, 0, 0, 1, 1, 1], [0], [0]>} : vector<1x5x8xf32>, vector<1x5x8xf32>, vector<1x5x5xf32> -> vector<1x5x5xf32>
    "tpu.trace_stop"() : () -> ()
    %cst_48 = arith.constant 0.353553385 : f32
    %90 = vector.broadcast %cst_48 : f32 to vector<1x5x5xf32>
    %91 = arith.mulf %89, %90 : vector<1x5x5xf32>
    %cst_49 = arith.constant dense<0xFF800000> : vector<1x5xf32>
    %92 = vector.multi_reduction <maximumf>, %91, %cst_49 [2] : vector<1x5x5xf32> to vector<1x5xf32>
    %93 = vector.shape_cast %92 : vector<1x5xf32> to vector<1x5x1xf32>
    %94 = vector.broadcast %93 : vector<1x5x1xf32> to vector<1x5x5xf32>
    %95 = arith.subf %91, %94 : vector<1x5x5xf32>
    %96 = math.exp %95 : vector<1x5x5xf32>
    %cst_50 = arith.constant dense<0.000000e+00> : vector<1x5xf32>
    %97 = vector.multi_reduction <add>, %96, %cst_50 [2] : vector<1x5x5xf32> to vector<1x5xf32>
    %98 = vector.shape_cast %97 : vector<1x5xf32> to vector<1x5x1xf32>
    %99 = tpu.reciprocal %98 {approx = true} : vector<1x5x1xf32> -> vector<1x5x1xf32>
    %100 = vector.broadcast %99 : vector<1x5x1xf32> to vector<1x5x5xf32>
    %101 = arith.mulf %96, %100 : vector<1x5x5xf32>
    "tpu.trace_start"() <{level = 10 : i32, message = "bqk,bkd->bqd"}> : () -> ()
    %cst_51 = arith.constant dense<0.000000e+00> : vector<1x5x8xf32>
    %102 = tpu.matmul %101, %88, %cst_51 {dimension_numbers = #tpu.dot_dimension_numbers<[2], [1], [1], [2], [0, 0, 0, 1, 1, 2], [0], [0]>} : vector<1x5x5xf32>, vector<1x5x8xf32>, vector<1x5x8xf32> -> vector<1x5x8xf32>
    "tpu.trace_stop"() : () -> ()
    %c0_52 = arith.constant 0 : index
    %c0_53 = arith.constant 0 : index
    %c16 = arith.constant 16 : index
    %103 = vector.load %arg45[%c0_52, %c0_53, %c16] : memref<1x5x32xf32, #tpu.memory_space<vmem>>, vector<1x5x8xf32>
    tpu.vector_store %arg45[%c0_52, %c0_53, %c16], %102 {strides = array<i32>} : memref<1x5x32xf32, #tpu.memory_space<vmem>>, vector<1x5x8xf32>,
    %104 = vector.extract_strided_slice %49 {offsets = [0, 0, 24], sizes = [1, 5, 8], strides = [1, 1, 1]} : vector<1x5x96xf32> to vector<1x5x8xf32>
    %105 = vector.extract_strided_slice %49 {offsets = [0, 0, 56], sizes = [1, 5, 8], strides = [1, 1, 1]} : vector<1x5x96xf32> to vector<1x5x8xf32>
    %106 = vector.extract_strided_slice %49 {offsets = [0, 0, 88], sizes = [1, 5, 8], strides = [1, 1, 1]} : vector<1x5x96xf32> to vector<1x5x8xf32>
    "tpu.trace_start"() <{level = 10 : i32, message = "bqd,bkd->bqk"}> : () -> ()
    %cst_54 = arith.constant dense<0.000000e+00> : vector<1x5x5xf32>
    %107 = tpu.matmul %104, %105, %cst_54 {dimension_numbers = #tpu.dot_dimension_numbers<[2], [2], [1], [1], [0, 0, 0, 1, 1, 1], [0], [0]>} : vector<1x5x8xf32>, vector<1x5x8xf32>, vector<1x5x5xf32> -> vector<1x5x5xf32>
    "tpu.trace_stop"() : () -> ()
    %cst_55 = arith.constant 0.353553385 : f32
    %108 = vector.broadcast %cst_55 : f32 to vector<1x5x5xf32>
    %109 = arith.mulf %107, %108 : vector<1x5x5xf32>
    %cst_56 = arith.constant dense<0xFF800000> : vector<1x5xf32>
    %110 = vector.multi_reduction <maximumf>, %109, %cst_56 [2] : vector<1x5x5xf32> to vector<1x5xf32>
    %111 = vector.shape_cast %110 : vector<1x5xf32> to vector<1x5x1xf32>
    %112 = vector.broadcast %111 : vector<1x5x1xf32> to vector<1x5x5xf32>
    %113 = arith.subf %109, %112 : vector<1x5x5xf32>
    %114 = math.exp %113 : vector<1x5x5xf32>
    %cst_57 = arith.constant dense<0.000000e+00> : vector<1x5xf32>
    %115 = vector.multi_reduction <add>, %114, %cst_57 [2] : vector<1x5x5xf32> to vector<1x5xf32>
    %116 = vector.shape_cast %115 : vector<1x5xf32> to vector<1x5x1xf32>
    %117 = tpu.reciprocal %116 {approx = true} : vector<1x5x1xf32> -> vector<1x5x1xf32>
    %118 = vector.broadcast %117 : vector<1x5x1xf32> to vector<1x5x5xf32>
    %119 = arith.mulf %114, %118 : vector<1x5x5xf32>
    "tpu.trace_start"() <{level = 10 : i32, message = "bqk,bkd->bqd"}> : () -> ()
    %cst_58 = arith.constant dense<0.000000e+00> : vector<1x5x8xf32>
    %120 = tpu.matmul %119, %106, %cst_58 {dimension_numbers = #tpu.dot_dimension_numbers<[2], [1], [1], [2], [0, 0, 0, 1, 1, 2], [0], [0]>} : vector<1x5x5xf32>, vector<1x5x8xf32>, vector<1x5x8xf32> -> vector<1x5x8xf32>
    "tpu.trace_stop"() : () -> ()
    %c0_59 = arith.constant 0 : index
    %c0_60 = arith.constant 0 : index
    %c24 = arith.constant 24 : index
    %121 = vector.load %arg45[%c0_59, %c0_60, %c24] : memref<1x5x32xf32, #tpu.memory_space<vmem>>, vector<1x5x8xf32>
    tpu.vector_store %arg45[%c0_59, %c0_60, %c24], %120 {strides = array<i32>} : memref<1x5x32xf32, #tpu.memory_space<vmem>>, vector<1x5x8xf32>,
    %c0_61 = arith.constant 0 : index
    %c0_62 = arith.constant 0 : index
    %c0_63 = arith.constant 0 : index
    %122 = vector.load %arg45[%c0_61, %c0_62, %c0_63] : memref<1x5x32xf32, #tpu.memory_space<vmem>>, vector<1x5x32xf32>
    %123 = vector.shape_cast %122 : vector<1x5x32xf32> to vector<5x32xf32>
    %c0_64 = arith.constant 0 : index
    %c0_65 = arith.constant 0 : index
    %c0_66 = arith.constant 0 : index
    %124 = vector.load %arg9[%c0_64, %c0_65, %c0_66] : memref<2x32x32xf32, #tpu.memory_space<vmem>>, vector<1x32x32xf32>
    %125 = vector.shape_cast %124 : vector<1x32x32xf32> to vector<32x32xf32>
    %cst_67 = arith.constant dense<0.000000e+00> : vector<5x32xf32>
    %126 = tpu.matmul %123, %125, %cst_67 {dimension_numbers = #tpu.dot_dimension_numbers<[1], [0], [0], [1], [0, 0, 1, 1], [], []>} : vector<5x32xf32>, vector<32x32xf32>, vector<5x32xf32> -> vector<5x32xf32>
    %c0_68 = arith.constant 0 : index
    %c0_69 = arith.constant 0 : index
    %c0_70 = arith.constant 0 : index
    %127 = vector.load %arg10[%c0_68, %c0_69, %c0_70] : memref<2x1x32xf32, #tpu.memory_space<vmem>>, vector<1x1x32xf32>
    %128 = vector.shape_cast %127 : vector<1x1x32xf32> to vector<1x32xf32>
    %129 = vector.broadcast %128 : vector<1x32xf32> to vector<5x32xf32>
    %130 = arith.addf %126, %129 : vector<5x32xf32>
    %131 = vector.shape_cast %130 : vector<5x32xf32> to vector<1x5x32xf32>
    %132 = arith.addf %12, %131 : vector<1x5x32xf32>
    %c0_71 = arith.constant 0 : index
    %c0_72 = arith.constant 0 : index
    %c0_73 = arith.constant 0 : index
    %133 = vector.load %arg11[%c0_71, %c0_72, %c0_73] : memref<2x1x32xf32, #tpu.memory_space<vmem>>, vector<1x1x32xf32>
    %134 = vector.shape_cast %133 : vector<1x1x32xf32> to vector<1x32xf32>
    %c0_74 = arith.constant 0 : index
    %c0_75 = arith.constant 0 : index
    %c0_76 = arith.constant 0 : index
    %135 = vector.load %arg12[%c0_74, %c0_75, %c0_76] : memref<2x1x32xf32, #tpu.memory_space<vmem>>, vector<1x1x32xf32>
    %136 = vector.shape_cast %135 : vector<1x1x32xf32> to vector<1x32xf32>
    %cst_77 = arith.constant dense<0.000000e+00> : vector<1x5xf32>
    %137 = vector.multi_reduction <add>, %132, %cst_77 [2] : vector<1x5x32xf32> to vector<1x5xf32>
    %138 = vector.shape_cast %137 : vector<1x5xf32> to vector<1x5x1xf32>
    %cst_78 = arith.constant 3.200000e+01 : f32
    %139 = vector.broadcast %cst_78 : f32 to vector<1x5x1xf32>
    %140 = arith.divf %138, %139 : vector<1x5x1xf32>
    %141 = vector.broadcast %140 : vector<1x5x1xf32> to vector<1x5x32xf32>
    %142 = arith.subf %132, %141 : vector<1x5x32xf32>
    %143 = arith.mulf %142, %142 : vector<1x5x32xf32>
    %cst_79 = arith.constant dense<0.000000e+00> : vector<1x5xf32>
    %144 = vector.multi_reduction <add>, %143, %cst_79 [2] : vector<1x5x32xf32> to vector<1x5xf32>
    %145 = vector.shape_cast %144 : vector<1x5xf32> to vector<1x5x1xf32>
    %cst_80 = arith.constant 3.200000e+01 : f32
    %146 = vector.broadcast %cst_80 : f32 to vector<1x5x1xf32>
    %147 = arith.divf %145, %146 : vector<1x5x1xf32>
    %148 = vector.broadcast %140 : vector<1x5x1xf32> to vector<1x5x32xf32>
    %149 = arith.subf %132, %148 : vector<1x5x32xf32>
    %cst_81 = arith.constant 9.99999996E-13 : f32
    %150 = vector.broadcast %cst_81 : f32 to vector<1x5x1xf32>
    %151 = arith.addf %147, %150 : vector<1x5x1xf32>
    %152 = math.rsqrt %151 : vector<1x5x1xf32>
    %153 = vector.broadcast %152 : vector<1x5x1xf32> to vector<1x5x32xf32>
    %154 = arith.mulf %149, %153 : vector<1x5x32xf32>
    %155 = vector.shape_cast %134 : vector<1x32xf32> to vector<1x1x32xf32>
    %156 = vector.broadcast %155 : vector<1x1x32xf32> to vector<1x5x32xf32>
    %157 = arith.mulf %154, %156 : vector<1x5x32xf32>
    %158 = vector.shape_cast %136 : vector<1x32xf32> to vector<1x1x32xf32>
    %159 = vector.broadcast %158 : vector<1x1x32xf32> to vector<1x5x32xf32>
    %160 = arith.addf %157, %159 : vector<1x5x32xf32>
    %161 = vector.shape_cast %160 : vector<1x5x32xf32> to vector<5x32xf32>
    %c0_82 = arith.constant 0 : index
    %c0_83 = arith.constant 0 : index
    %c0_84 = arith.constant 0 : index
    %162 = vector.load %arg13[%c0_82, %c0_83, %c0_84] : memref<2x32x128xf32, #tpu.memory_space<vmem>>, vector<1x32x128xf32>
    %163 = vector.shape_cast %162 : vector<1x32x128xf32> to vector<32x128xf32>
    %cst_85 = arith.constant dense<0.000000e+00> : vector<5x128xf32>
    %164 = tpu.matmul %161, %163, %cst_85 {dimension_numbers = #tpu.dot_dimension_numbers<[1], [0], [0], [1], [0, 0, 1, 1], [], []>} : vector<5x32xf32>, vector<32x128xf32>, vector<5x128xf32> -> vector<5x128xf32>
    %c0_86 = arith.constant 0 : index
    %c0_87 = arith.constant 0 : index
    %c0_88 = arith.constant 0 : index
    %165 = vector.load %arg14[%c0_86, %c0_87, %c0_88] : memref<2x1x128xf32, #tpu.memory_space<vmem>>, vector<1x1x128xf32>
    %166 = vector.shape_cast %165 : vector<1x1x128xf32> to vector<1x128xf32>
    %167 = vector.broadcast %166 : vector<1x128xf32> to vector<5x128xf32>
    %168 = arith.addf %164, %167 : vector<5x128xf32>
    %169 = arith.mulf %168, %168 : vector<5x128xf32>
    %170 = arith.mulf %168, %169 : vector<5x128xf32>
    %cst_89 = arith.constant 4.471500e-02 : f32
    %171 = vector.broadcast %cst_89 : f32 to vector<5x128xf32>
    %172 = arith.mulf %171, %170 : vector<5x128xf32>
    %173 = arith.addf %168, %172 : vector<5x128xf32>
    %cst_90 = arith.constant 0.797884583 : f32
    %174 = vector.broadcast %cst_90 : f32 to vector<5x128xf32>
    %175 = arith.mulf %174, %173 : vector<5x128xf32>
    %176 = math.tanh %175 : vector<5x128xf32>
    %cst_91 = arith.constant 1.000000e+00 : f32
    %177 = vector.broadcast %cst_91 : f32 to vector<5x128xf32>
    %178 = arith.addf %177, %176 : vector<5x128xf32>
    %cst_92 = arith.constant 5.000000e-01 : f32
    %179 = vector.broadcast %cst_92 : f32 to vector<5x128xf32>
    %180 = arith.mulf %179, %178 : vector<5x128xf32>
    %181 = arith.mulf %168, %180 : vector<5x128xf32>
    %c0_93 = arith.constant 0 : index
    %c0_94 = arith.constant 0 : index
    %c0_95 = arith.constant 0 : index
    %182 = vector.load %arg15[%c0_93, %c0_94, %c0_95] : memref<2x128x32xf32, #tpu.memory_space<vmem>>, vector<1x128x32xf32>
    %183 = vector.shape_cast %182 : vector<1x128x32xf32> to vector<128x32xf32>
    %cst_96 = arith.constant dense<0.000000e+00> : vector<5x32xf32>
    %184 = tpu.matmul %181, %183, %cst_96 {dimension_numbers = #tpu.dot_dimension_numbers<[1], [0], [0], [1], [0, 0, 1, 1], [], []>} : vector<5x128xf32>, vector<128x32xf32>, vector<5x32xf32> -> vector<5x32xf32>
    %c0_97 = arith.constant 0 : index
    %c0_98 = arith.constant 0 : index
    %c0_99 = arith.constant 0 : index
    %185 = vector.load %arg16[%c0_97, %c0_98, %c0_99] : memref<2x1x32xf32, #tpu.memory_space<vmem>>, vector<1x1x32xf32>
    %186 = vector.shape_cast %185 : vector<1x1x32xf32> to vector<1x32xf32>
    %187 = vector.broadcast %186 : vector<1x32xf32> to vector<5x32xf32>
    %188 = arith.addf %184, %187 : vector<5x32xf32>
    %189 = vector.shape_cast %188 : vector<5x32xf32> to vector<1x5x32xf32>
    %190 = arith.addf %132, %189 : vector<1x5x32xf32>
    %c1_100 = arith.constant 1 : index
    %c0_101 = arith.constant 0 : index
    %c0_102 = arith.constant 0 : index
    %191 = vector.load %arg5[%c1_100, %c0_101, %c0_102] : memref<2x1x32xf32, #tpu.memory_space<vmem>>, vector<1x1x32xf32>
    %192 = vector.shape_cast %191 : vector<1x1x32xf32> to vector<1x32xf32>
    %c1_103 = arith.constant 1 : index
    %c0_104 = arith.constant 0 : index
    %c0_105 = arith.constant 0 : index
    %193 = vector.load %arg6[%c1_103, %c0_104, %c0_105] : memref<2x1x32xf32, #tpu.memory_space<vmem>>, vector<1x1x32xf32>
    %194 = vector.shape_cast %193 : vector<1x1x32xf32> to vector<1x32xf32>
    %cst_106 = arith.constant dense<0.000000e+00> : vector<1x5xf32>
    %195 = vector.multi_reduction <add>, %190, %cst_106 [2] : vector<1x5x32xf32> to vector<1x5xf32>
    %196 = vector.shape_cast %195 : vector<1x5xf32> to vector<1x5x1xf32>
    %cst_107 = arith.constant 3.200000e+01 : f32
    %197 = vector.broadcast %cst_107 : f32 to vector<1x5x1xf32>
    %198 = arith.divf %196, %197 : vector<1x5x1xf32>
    %199 = vector.broadcast %198 : vector<1x5x1xf32> to vector<1x5x32xf32>
    %200 = arith.subf %190, %199 : vector<1x5x32xf32>
    %201 = arith.mulf %200, %200 : vector<1x5x32xf32>
    %cst_108 = arith.constant dense<0.000000e+00> : vector<1x5xf32>
    %202 = vector.multi_reduction <add>, %201, %cst_108 [2] : vector<1x5x32xf32> to vector<1x5xf32>
    %203 = vector.shape_cast %202 : vector<1x5xf32> to vector<1x5x1xf32>
    %cst_109 = arith.constant 3.200000e+01 : f32
    %204 = vector.broadcast %cst_109 : f32 to vector<1x5x1xf32>
    %205 = arith.divf %203, %204 : vector<1x5x1xf32>
    %206 = vector.broadcast %198 : vector<1x5x1xf32> to vector<1x5x32xf32>
    %207 = arith.subf %190, %206 : vector<1x5x32xf32>
    %cst_110 = arith.constant 9.99999996E-13 : f32
    %208 = vector.broadcast %cst_110 : f32 to vector<1x5x1xf32>
    %209 = arith.addf %205, %208 : vector<1x5x1xf32>
    %210 = math.rsqrt %209 : vector<1x5x1xf32>
    %211 = vector.broadcast %210 : vector<1x5x1xf32> to vector<1x5x32xf32>
    %212 = arith.mulf %207, %211 : vector<1x5x32xf32>
    %213 = vector.shape_cast %192 : vector<1x32xf32> to vector<1x1x32xf32>
    %214 = vector.broadcast %213 : vector<1x1x32xf32> to vector<1x5x32xf32>
    %215 = arith.mulf %212, %214 : vector<1x5x32xf32>
    %216 = vector.shape_cast %194 : vector<1x32xf32> to vector<1x1x32xf32>
    %217 = vector.broadcast %216 : vector<1x1x32xf32> to vector<1x5x32xf32>
    %218 = arith.addf %215, %217 : vector<1x5x32xf32>
    %219 = vector.shape_cast %218 : vector<1x5x32xf32> to vector<5x32xf32>
    %c1_111 = arith.constant 1 : index
    %c0_112 = arith.constant 0 : index
    %c0_113 = arith.constant 0 : index
    %220 = vector.load %arg7[%c1_111, %c0_112, %c0_113] : memref<2x32x96xf32, #tpu.memory_space<vmem>>, vector<1x32x96xf32>
    %221 = vector.shape_cast %220 : vector<1x32x96xf32> to vector<32x96xf32>
    %cst_114 = arith.constant dense<0.000000e+00> : vector<5x96xf32>
    %222 = tpu.matmul %219, %221, %cst_114 {dimension_numbers = #tpu.dot_dimension_numbers<[1], [0], [0], [1], [0, 0, 1, 1], [], []>} : vector<5x32xf32>, vector<32x96xf32>, vector<5x96xf32> -> vector<5x96xf32>
    %c1_115 = arith.constant 1 : index
    %c0_116 = arith.constant 0 : index
    %c0_117 = arith.constant 0 : index
    %223 = vector.load %arg8[%c1_115, %c0_116, %c0_117] : memref<2x1x96xf32, #tpu.memory_space<vmem>>, vector<1x1x96xf32>
    %224 = vector.shape_cast %223 : vector<1x1x96xf32> to vector<1x96xf32>
    %225 = vector.broadcast %224 : vector<1x96xf32> to vector<5x96xf32>
    %226 = arith.addf %222, %225 : vector<5x96xf32>
    %227 = vector.shape_cast %226 : vector<5x96xf32> to vector<1x5x96xf32>
    %228 = vector.extract_strided_slice %227 {offsets = [0, 0, 0], sizes = [1, 5, 8], strides = [1, 1, 1]} : vector<1x5x96xf32> to vector<1x5x8xf32>
    %229 = vector.extract_strided_slice %227 {offsets = [0, 0, 32], sizes = [1, 5, 8], strides = [1, 1, 1]} : vector<1x5x96xf32> to vector<1x5x8xf32>
    %230 = vector.extract_strided_slice %227 {offsets = [0, 0, 64], sizes = [1, 5, 8], strides = [1, 1, 1]} : vector<1x5x96xf32> to vector<1x5x8xf32>
    "tpu.trace_start"() <{level = 10 : i32, message = "bqd,bkd->bqk"}> : () -> ()
    %cst_118 = arith.constant dense<0.000000e+00> : vector<1x5x5xf32>
    %231 = tpu.matmul %228, %229, %cst_118 {dimension_numbers = #tpu.dot_dimension_numbers<[2], [2], [1], [1], [0, 0, 0, 1, 1, 1], [0], [0]>} : vector<1x5x8xf32>, vector<1x5x8xf32>, vector<1x5x5xf32> -> vector<1x5x5xf32>
    "tpu.trace_stop"() : () -> ()
    %cst_119 = arith.constant 0.353553385 : f32
    %232 = vector.broadcast %cst_119 : f32 to vector<1x5x5xf32>
    %233 = arith.mulf %231, %232 : vector<1x5x5xf32>
    %cst_120 = arith.constant dense<0xFF800000> : vector<1x5xf32>
    %234 = vector.multi_reduction <maximumf>, %233, %cst_120 [2] : vector<1x5x5xf32> to vector<1x5xf32>
    %235 = vector.shape_cast %234 : vector<1x5xf32> to vector<1x5x1xf32>
    %236 = vector.broadcast %235 : vector<1x5x1xf32> to vector<1x5x5xf32>
    %237 = arith.subf %233, %236 : vector<1x5x5xf32>
    %238 = math.exp %237 : vector<1x5x5xf32>
    %cst_121 = arith.constant dense<0.000000e+00> : vector<1x5xf32>
    %239 = vector.multi_reduction <add>, %238, %cst_121 [2] : vector<1x5x5xf32> to vector<1x5xf32>
    %240 = vector.shape_cast %239 : vector<1x5xf32> to vector<1x5x1xf32>
    %241 = tpu.reciprocal %240 {approx = true} : vector<1x5x1xf32> -> vector<1x5x1xf32>
    %242 = vector.broadcast %241 : vector<1x5x1xf32> to vector<1x5x5xf32>
    %243 = arith.mulf %238, %242 : vector<1x5x5xf32>
    "tpu.trace_start"() <{level = 10 : i32, message = "bqk,bkd->bqd"}> : () -> ()
    %cst_122 = arith.constant dense<0.000000e+00> : vector<1x5x8xf32>
    %244 = tpu.matmul %243, %230, %cst_122 {dimension_numbers = #tpu.dot_dimension_numbers<[2], [1], [1], [2], [0, 0, 0, 1, 1, 2], [0], [0]>} : vector<1x5x5xf32>, vector<1x5x8xf32>, vector<1x5x8xf32> -> vector<1x5x8xf32>
    "tpu.trace_stop"() : () -> ()
    %c0_123 = arith.constant 0 : index
    %c0_124 = arith.constant 0 : index
    %c0_125 = arith.constant 0 : index
    %245 = vector.load %arg45[%c0_123, %c0_124, %c0_125] : memref<1x5x32xf32, #tpu.memory_space<vmem>>, vector<1x5x8xf32>
    tpu.vector_store %arg45[%c0_123, %c0_124, %c0_125], %244 {strides = array<i32>} : memref<1x5x32xf32, #tpu.memory_space<vmem>>, vector<1x5x8xf32>,
    %246 = vector.extract_strided_slice %227 {offsets = [0, 0, 8], sizes = [1, 5, 8], strides = [1, 1, 1]} : vector<1x5x96xf32> to vector<1x5x8xf32>
    %247 = vector.extract_strided_slice %227 {offsets = [0, 0, 40], sizes = [1, 5, 8], strides = [1, 1, 1]} : vector<1x5x96xf32> to vector<1x5x8xf32>
    %248 = vector.extract_strided_slice %227 {offsets = [0, 0, 72], sizes = [1, 5, 8], strides = [1, 1, 1]} : vector<1x5x96xf32> to vector<1x5x8xf32>
    "tpu.trace_start"() <{level = 10 : i32, message = "bqd,bkd->bqk"}> : () -> ()
    %cst_126 = arith.constant dense<0.000000e+00> : vector<1x5x5xf32>
    %249 = tpu.matmul %246, %247, %cst_126 {dimension_numbers = #tpu.dot_dimension_numbers<[2], [2], [1], [1], [0, 0, 0, 1, 1, 1], [0], [0]>} : vector<1x5x8xf32>, vector<1x5x8xf32>, vector<1x5x5xf32> -> vector<1x5x5xf32>
    "tpu.trace_stop"() : () -> ()
    %cst_127 = arith.constant 0.353553385 : f32
    %250 = vector.broadcast %cst_127 : f32 to vector<1x5x5xf32>
    %251 = arith.mulf %249, %250 : vector<1x5x5xf32>
    %cst_128 = arith.constant dense<0xFF800000> : vector<1x5xf32>
    %252 = vector.multi_reduction <maximumf>, %251, %cst_128 [2] : vector<1x5x5xf32> to vector<1x5xf32>
    %253 = vector.shape_cast %252 : vector<1x5xf32> to vector<1x5x1xf32>
    %254 = vector.broadcast %253 : vector<1x5x1xf32> to vector<1x5x5xf32>
    %255 = arith.subf %251, %254 : vector<1x5x5xf32>
    %256 = math.exp %255 : vector<1x5x5xf32>
    %cst_129 = arith.constant dense<0.000000e+00> : vector<1x5xf32>
    %257 = vector.multi_reduction <add>, %256, %cst_129 [2] : vector<1x5x5xf32> to vector<1x5xf32>
    %258 = vector.shape_cast %257 : vector<1x5xf32> to vector<1x5x1xf32>
    %259 = tpu.reciprocal %258 {approx = true} : vector<1x5x1xf32> -> vector<1x5x1xf32>
    %260 = vector.broadcast %259 : vector<1x5x1xf32> to vector<1x5x5xf32>
    %261 = arith.mulf %256, %260 : vector<1x5x5xf32>
    "tpu.trace_start"() <{level = 10 : i32, message = "bqk,bkd->bqd"}> : () -> ()
    %cst_130 = arith.constant dense<0.000000e+00> : vector<1x5x8xf32>
    %262 = tpu.matmul %261, %248, %cst_130 {dimension_numbers = #tpu.dot_dimension_numbers<[2], [1], [1], [2], [0, 0, 0, 1, 1, 2], [0], [0]>} : vector<1x5x5xf32>, vector<1x5x8xf32>, vector<1x5x8xf32> -> vector<1x5x8xf32>
    "tpu.trace_stop"() : () -> ()
    %c0_131 = arith.constant 0 : index
    %c0_132 = arith.constant 0 : index
    %c8_133 = arith.constant 8 : index
    %263 = vector.load %arg45[%c0_131, %c0_132, %c8_133] : memref<1x5x32xf32, #tpu.memory_space<vmem>>, vector<1x5x8xf32>
    tpu.vector_store %arg45[%c0_131, %c0_132, %c8_133], %262 {strides = array<i32>} : memref<1x5x32xf32, #tpu.memory_space<vmem>>, vector<1x5x8xf32>,
    %264 = vector.extract_strided_slice %227 {offsets = [0, 0, 16], sizes = [1, 5, 8], strides = [1, 1, 1]} : vector<1x5x96xf32> to vector<1x5x8xf32>
    %265 = vector.extract_strided_slice %227 {offsets = [0, 0, 48], sizes = [1, 5, 8], strides = [1, 1, 1]} : vector<1x5x96xf32> to vector<1x5x8xf32>
    %266 = vector.extract_strided_slice %227 {offsets = [0, 0, 80], sizes = [1, 5, 8], strides = [1, 1, 1]} : vector<1x5x96xf32> to vector<1x5x8xf32>
    "tpu.trace_start"() <{level = 10 : i32, message = "bqd,bkd->bqk"}> : () -> ()
    %cst_134 = arith.constant dense<0.000000e+00> : vector<1x5x5xf32>
    %267 = tpu.matmul %264, %265, %cst_134 {dimension_numbers = #tpu.dot_dimension_numbers<[2], [2], [1], [1], [0, 0, 0, 1, 1, 1], [0], [0]>} : vector<1x5x8xf32>, vector<1x5x8xf32>, vector<1x5x5xf32> -> vector<1x5x5xf32>
    "tpu.trace_stop"() : () -> ()
    %cst_135 = arith.constant 0.353553385 : f32
    %268 = vector.broadcast %cst_135 : f32 to vector<1x5x5xf32>
    %269 = arith.mulf %267, %268 : vector<1x5x5xf32>
    %cst_136 = arith.constant dense<0xFF800000> : vector<1x5xf32>
    %270 = vector.multi_reduction <maximumf>, %269, %cst_136 [2] : vector<1x5x5xf32> to vector<1x5xf32>
    %271 = vector.shape_cast %270 : vector<1x5xf32> to vector<1x5x1xf32>
    %272 = vector.broadcast %271 : vector<1x5x1xf32> to vector<1x5x5xf32>
    %273 = arith.subf %269, %272 : vector<1x5x5xf32>
    %274 = math.exp %273 : vector<1x5x5xf32>
    %cst_137 = arith.constant dense<0.000000e+00> : vector<1x5xf32>
    %275 = vector.multi_reduction <add>, %274, %cst_137 [2] : vector<1x5x5xf32> to vector<1x5xf32>
    %276 = vector.shape_cast %275 : vector<1x5xf32> to vector<1x5x1xf32>
    %277 = tpu.reciprocal %276 {approx = true} : vector<1x5x1xf32> -> vector<1x5x1xf32>
    %278 = vector.broadcast %277 : vector<1x5x1xf32> to vector<1x5x5xf32>
    %279 = arith.mulf %274, %278 : vector<1x5x5xf32>
    "tpu.trace_start"() <{level = 10 : i32, message = "bqk,bkd->bqd"}> : () -> ()
    %cst_138 = arith.constant dense<0.000000e+00> : vector<1x5x8xf32>
    %280 = tpu.matmul %279, %266, %cst_138 {dimension_numbers = #tpu.dot_dimension_numbers<[2], [1], [1], [2], [0, 0, 0, 1, 1, 2], [0], [0]>} : vector<1x5x5xf32>, vector<1x5x8xf32>, vector<1x5x8xf32> -> vector<1x5x8xf32>
    "tpu.trace_stop"() : () -> ()
    %c0_139 = arith.constant 0 : index
    %c0_140 = arith.constant 0 : index
    %c16_141 = arith.constant 16 : index
    %281 = vector.load %arg45[%c0_139, %c0_140, %c16_141] : memref<1x5x32xf32, #tpu.memory_space<vmem>>, vector<1x5x8xf32>
    tpu.vector_store %arg45[%c0_139, %c0_140, %c16_141], %280 {strides = array<i32>} : memref<1x5x32xf32, #tpu.memory_space<vmem>>, vector<1x5x8xf32>,
    %282 = vector.extract_strided_slice %227 {offsets = [0, 0, 24], sizes = [1, 5, 8], strides = [1, 1, 1]} : vector<1x5x96xf32> to vector<1x5x8xf32>
    %283 = vector.extract_strided_slice %227 {offsets = [0, 0, 56], sizes = [1, 5, 8], strides = [1, 1, 1]} : vector<1x5x96xf32> to vector<1x5x8xf32>
    %284 = vector.extract_strided_slice %227 {offsets = [0, 0, 88], sizes = [1, 5, 8], strides = [1, 1, 1]} : vector<1x5x96xf32> to vector<1x5x8xf32>
    "tpu.trace_start"() <{level = 10 : i32, message = "bqd,bkd->bqk"}> : () -> ()
    %cst_142 = arith.constant dense<0.000000e+00> : vector<1x5x5xf32>
    %285 = tpu.matmul %282, %283, %cst_142 {dimension_numbers = #tpu.dot_dimension_numbers<[2], [2], [1], [1], [0, 0, 0, 1, 1, 1], [0], [0]>} : vector<1x5x8xf32>, vector<1x5x8xf32>, vector<1x5x5xf32> -> vector<1x5x5xf32>
    "tpu.trace_stop"() : () -> ()
    %cst_143 = arith.constant 0.353553385 : f32
    %286 = vector.broadcast %cst_143 : f32 to vector<1x5x5xf32>
    %287 = arith.mulf %285, %286 : vector<1x5x5xf32>
    %cst_144 = arith.constant dense<0xFF800000> : vector<1x5xf32>
    %288 = vector.multi_reduction <maximumf>, %287, %cst_144 [2] : vector<1x5x5xf32> to vector<1x5xf32>
    %289 = vector.shape_cast %288 : vector<1x5xf32> to vector<1x5x1xf32>
    %290 = vector.broadcast %289 : vector<1x5x1xf32> to vector<1x5x5xf32>
    %291 = arith.subf %287, %290 : vector<1x5x5xf32>
    %292 = math.exp %291 : vector<1x5x5xf32>
    %cst_145 = arith.constant dense<0.000000e+00> : vector<1x5xf32>
    %293 = vector.multi_reduction <add>, %292, %cst_145 [2] : vector<1x5x5xf32> to vector<1x5xf32>
    %294 = vector.shape_cast %293 : vector<1x5xf32> to vector<1x5x1xf32>
    %295 = tpu.reciprocal %294 {approx = true} : vector<1x5x1xf32> -> vector<1x5x1xf32>
    %296 = vector.broadcast %295 : vector<1x5x1xf32> to vector<1x5x5xf32>
    %297 = arith.mulf %292, %296 : vector<1x5x5xf32>
    "tpu.trace_start"() <{level = 10 : i32, message = "bqk,bkd->bqd"}> : () -> ()
    %cst_146 = arith.constant dense<0.000000e+00> : vector<1x5x8xf32>
    %298 = tpu.matmul %297, %284, %cst_146 {dimension_numbers = #tpu.dot_dimension_numbers<[2], [1], [1], [2], [0, 0, 0, 1, 1, 2], [0], [0]>} : vector<1x5x5xf32>, vector<1x5x8xf32>, vector<1x5x8xf32> -> vector<1x5x8xf32>
    "tpu.trace_stop"() : () -> ()
    %c0_147 = arith.constant 0 : index
    %c0_148 = arith.constant 0 : index
    %c24_149 = arith.constant 24 : index
    %299 = vector.load %arg45[%c0_147, %c0_148, %c24_149] : memref<1x5x32xf32, #tpu.memory_space<vmem>>, vector<1x5x8xf32>
    tpu.vector_store %arg45[%c0_147, %c0_148, %c24_149], %298 {strides = array<i32>} : memref<1x5x32xf32, #tpu.memory_space<vmem>>, vector<1x5x8xf32>,
    %c0_150 = arith.constant 0 : index
    %c0_151 = arith.constant 0 : index
    %c0_152 = arith.constant 0 : index
    %300 = vector.load %arg45[%c0_150, %c0_151, %c0_152] : memref<1x5x32xf32, #tpu.memory_space<vmem>>, vector<1x5x32xf32>
    %301 = vector.shape_cast %300 : vector<1x5x32xf32> to vector<5x32xf32>
    %c1_153 = arith.constant 1 : index
    %c0_154 = arith.constant 0 : index
    %c0_155 = arith.constant 0 : index
    %302 = vector.load %arg9[%c1_153, %c0_154, %c0_155] : memref<2x32x32xf32, #tpu.memory_space<vmem>>, vector<1x32x32xf32>
    %303 = vector.shape_cast %302 : vector<1x32x32xf32> to vector<32x32xf32>
    %cst_156 = arith.constant dense<0.000000e+00> : vector<5x32xf32>
    %304 = tpu.matmul %301, %303, %cst_156 {dimension_numbers = #tpu.dot_dimension_numbers<[1], [0], [0], [1], [0, 0, 1, 1], [], []>} : vector<5x32xf32>, vector<32x32xf32>, vector<5x32xf32> -> vector<5x32xf32>
    %c1_157 = arith.constant 1 : index
    %c0_158 = arith.constant 0 : index
    %c0_159 = arith.constant 0 : index
    %305 = vector.load %arg10[%c1_157, %c0_158, %c0_159] : memref<2x1x32xf32, #tpu.memory_space<vmem>>, vector<1x1x32xf32>
    %306 = vector.shape_cast %305 : vector<1x1x32xf32> to vector<1x32xf32>
    %307 = vector.broadcast %306 : vector<1x32xf32> to vector<5x32xf32>
    %308 = arith.addf %304, %307 : vector<5x32xf32>
    %309 = vector.shape_cast %308 : vector<5x32xf32> to vector<1x5x32xf32>
    %310 = arith.addf %190, %309 : vector<1x5x32xf32>
    %c1_160 = arith.constant 1 : index
    %c0_161 = arith.constant 0 : index
    %c0_162 = arith.constant 0 : index
    %311 = vector.load %arg11[%c1_160, %c0_161, %c0_162] : memref<2x1x32xf32, #tpu.memory_space<vmem>>, vector<1x1x32xf32>
    %312 = vector.shape_cast %311 : vector<1x1x32xf32> to vector<1x32xf32>
    %c1_163 = arith.constant 1 : index
    %c0_164 = arith.constant 0 : index
    %c0_165 = arith.constant 0 : index
    %313 = vector.load %arg12[%c1_163, %c0_164, %c0_165] : memref<2x1x32xf32, #tpu.memory_space<vmem>>, vector<1x1x32xf32>
    %314 = vector.shape_cast %313 : vector<1x1x32xf32> to vector<1x32xf32>
    %cst_166 = arith.constant dense<0.000000e+00> : vector<1x5xf32>
    %315 = vector.multi_reduction <add>, %310, %cst_166 [2] : vector<1x5x32xf32> to vector<1x5xf32>
    %316 = vector.shape_cast %315 : vector<1x5xf32> to vector<1x5x1xf32>
    %cst_167 = arith.constant 3.200000e+01 : f32
    %317 = vector.broadcast %cst_167 : f32 to vector<1x5x1xf32>
    %318 = arith.divf %316, %317 : vector<1x5x1xf32>
    %319 = vector.broadcast %318 : vector<1x5x1xf32> to vector<1x5x32xf32>
    %320 = arith.subf %310, %319 : vector<1x5x32xf32>
    %321 = arith.mulf %320, %320 : vector<1x5x32xf32>
    %cst_168 = arith.constant dense<0.000000e+00> : vector<1x5xf32>
    %322 = vector.multi_reduction <add>, %321, %cst_168 [2] : vector<1x5x32xf32> to vector<1x5xf32>
    %323 = vector.shape_cast %322 : vector<1x5xf32> to vector<1x5x1xf32>
    %cst_169 = arith.constant 3.200000e+01 : f32
    %324 = vector.broadcast %cst_169 : f32 to vector<1x5x1xf32>
    %325 = arith.divf %323, %324 : vector<1x5x1xf32>
    %326 = vector.broadcast %318 : vector<1x5x1xf32> to vector<1x5x32xf32>
    %327 = arith.subf %310, %326 : vector<1x5x32xf32>
    %cst_170 = arith.constant 9.99999996E-13 : f32
    %328 = vector.broadcast %cst_170 : f32 to vector<1x5x1xf32>
    %329 = arith.addf %325, %328 : vector<1x5x1xf32>
    %330 = math.rsqrt %329 : vector<1x5x1xf32>
    %331 = vector.broadcast %330 : vector<1x5x1xf32> to vector<1x5x32xf32>
    %332 = arith.mulf %327, %331 : vector<1x5x32xf32>
    %333 = vector.shape_cast %312 : vector<1x32xf32> to vector<1x1x32xf32>
    %334 = vector.broadcast %333 : vector<1x1x32xf32> to vector<1x5x32xf32>
    %335 = arith.mulf %332, %334 : vector<1x5x32xf32>
    %336 = vector.shape_cast %314 : vector<1x32xf32> to vector<1x1x32xf32>
    %337 = vector.broadcast %336 : vector<1x1x32xf32> to vector<1x5x32xf32>
    %338 = arith.addf %335, %337 : vector<1x5x32xf32>
    %339 = vector.shape_cast %338 : vector<1x5x32xf32> to vector<5x32xf32>
    %c1_171 = arith.constant 1 : index
    %c0_172 = arith.constant 0 : index
    %c0_173 = arith.constant 0 : index
    %340 = vector.load %arg13[%c1_171, %c0_172, %c0_173] : memref<2x32x128xf32, #tpu.memory_space<vmem>>, vector<1x32x128xf32>
    %341 = vector.shape_cast %340 : vector<1x32x128xf32> to vector<32x128xf32>
    %cst_174 = arith.constant dense<0.000000e+00> : vector<5x128xf32>
    %342 = tpu.matmul %339, %341, %cst_174 {dimension_numbers = #tpu.dot_dimension_numbers<[1], [0], [0], [1], [0, 0, 1, 1], [], []>} : vector<5x32xf32>, vector<32x128xf32>, vector<5x128xf32> -> vector<5x128xf32>
    %c1_175 = arith.constant 1 : index
    %c0_176 = arith.constant 0 : index
    %c0_177 = arith.constant 0 : index
    %343 = vector.load %arg14[%c1_175, %c0_176, %c0_177] : memref<2x1x128xf32, #tpu.memory_space<vmem>>, vector<1x1x128xf32>
    %344 = vector.shape_cast %343 : vector<1x1x128xf32> to vector<1x128xf32>
    %345 = vector.broadcast %344 : vector<1x128xf32> to vector<5x128xf32>
    %346 = arith.addf %342, %345 : vector<5x128xf32>
    %347 = arith.mulf %346, %346 : vector<5x128xf32>
    %348 = arith.mulf %346, %347 : vector<5x128xf32>
    %cst_178 = arith.constant 4.471500e-02 : f32
    %349 = vector.broadcast %cst_178 : f32 to vector<5x128xf32>
    %350 = arith.mulf %349, %348 : vector<5x128xf32>
    %351 = arith.addf %346, %350 : vector<5x128xf32>
    %cst_179 = arith.constant 0.797884583 : f32
    %352 = vector.broadcast %cst_179 : f32 to vector<5x128xf32>
    %353 = arith.mulf %352, %351 : vector<5x128xf32>
    %354 = math.tanh %353 : vector<5x128xf32>
    %cst_180 = arith.constant 1.000000e+00 : f32
    %355 = vector.broadcast %cst_180 : f32 to vector<5x128xf32>
    %356 = arith.addf %355, %354 : vector<5x128xf32>
    %cst_181 = arith.constant 5.000000e-01 : f32
    %357 = vector.broadcast %cst_181 : f32 to vector<5x128xf32>
    %358 = arith.mulf %357, %356 : vector<5x128xf32>
    %359 = arith.mulf %346, %358 : vector<5x128xf32>
    %c1_182 = arith.constant 1 : index
    %c0_183 = arith.constant 0 : index
    %c0_184 = arith.constant 0 : index
    %360 = vector.load %arg15[%c1_182, %c0_183, %c0_184] : memref<2x128x32xf32, #tpu.memory_space<vmem>>, vector<1x128x32xf32>
    %361 = vector.shape_cast %360 : vector<1x128x32xf32> to vector<128x32xf32>
    %cst_185 = arith.constant dense<0.000000e+00> : vector<5x32xf32>
    %362 = tpu.matmul %359, %361, %cst_185 {dimension_numbers = #tpu.dot_dimension_numbers<[1], [0], [0], [1], [0, 0, 1, 1], [], []>} : vector<5x128xf32>, vector<128x32xf32>, vector<5x32xf32> -> vector<5x32xf32>
    %c1_186 = arith.constant 1 : index
    %c0_187 = arith.constant 0 : index
    %c0_188 = arith.constant 0 : index
    %363 = vector.load %arg16[%c1_186, %c0_187, %c0_188] : memref<2x1x32xf32, #tpu.memory_space<vmem>>, vector<1x1x32xf32>
    %364 = vector.shape_cast %363 : vector<1x1x32xf32> to vector<1x32xf32>
    %365 = vector.broadcast %364 : vector<1x32xf32> to vector<5x32xf32>
    %366 = arith.addf %362, %365 : vector<5x32xf32>
    %367 = vector.shape_cast %366 : vector<5x32xf32> to vector<1x5x32xf32>
    %368 = arith.addf %310, %367 : vector<1x5x32xf32>
    %c0_189 = arith.constant 0 : index
    %c0_190 = arith.constant 0 : index
    %369 = vector.load %arg17[%c0_189, %c0_190] : memref<1x32xf32, #tpu.memory_space<vmem>>, vector<1x32xf32>
    %c0_191 = arith.constant 0 : index
    %c0_192 = arith.constant 0 : index
    %370 = vector.load %arg18[%c0_191, %c0_192] : memref<1x32xf32, #tpu.memory_space<vmem>>, vector<1x32xf32>
    %cst_193 = arith.constant dense<0.000000e+00> : vector<1x5xf32>
    %371 = vector.multi_reduction <add>, %368, %cst_193 [2] : vector<1x5x32xf32> to vector<1x5xf32>
    %372 = vector.shape_cast %371 : vector<1x5xf32> to vector<1x5x1xf32>
    %cst_194 = arith.constant 3.200000e+01 : f32
    %373 = vector.broadcast %cst_194 : f32 to vector<1x5x1xf32>
    %374 = arith.divf %372, %373 : vector<1x5x1xf32>
    %375 = vector.broadcast %374 : vector<1x5x1xf32> to vector<1x5x32xf32>
    %376 = arith.subf %368, %375 : vector<1x5x32xf32>
    %377 = arith.mulf %376, %376 : vector<1x5x32xf32>
    %cst_195 = arith.constant dense<0.000000e+00> : vector<1x5xf32>
    %378 = vector.multi_reduction <add>, %377, %cst_195 [2] : vector<1x5x32xf32> to vector<1x5xf32>
    %379 = vector.shape_cast %378 : vector<1x5xf32> to vector<1x5x1xf32>
    %cst_196 = arith.constant 3.200000e+01 : f32
    %380 = vector.broadcast %cst_196 : f32 to vector<1x5x1xf32>
    %381 = arith.divf %379, %380 : vector<1x5x1xf32>
    %382 = vector.broadcast %374 : vector<1x5x1xf32> to vector<1x5x32xf32>
    %383 = arith.subf %368, %382 : vector<1x5x32xf32>
    %cst_197 = arith.constant 9.99999996E-13 : f32
    %384 = vector.broadcast %cst_197 : f32 to vector<1x5x1xf32>
    %385 = arith.addf %381, %384 : vector<1x5x1xf32>
    %386 = math.rsqrt %385 : vector<1x5x1xf32>
    %387 = vector.broadcast %386 : vector<1x5x1xf32> to vector<1x5x32xf32>
    %388 = arith.mulf %383, %387 : vector<1x5x32xf32>
    %389 = vector.shape_cast %369 : vector<1x32xf32> to vector<1x1x32xf32>
    %390 = vector.broadcast %389 : vector<1x1x32xf32> to vector<1x5x32xf32>
    %391 = arith.mulf %388, %390 : vector<1x5x32xf32>
    %392 = vector.shape_cast %370 : vector<1x32xf32> to vector<1x1x32xf32>
    %393 = vector.broadcast %392 : vector<1x1x32xf32> to vector<1x5x32xf32>
    %394 = arith.addf %391, %393 : vector<1x5x32xf32>
    %395 = vector.extract_strided_slice %394 {offsets = [0, 0, 0], sizes = [1, 1, 32], strides = [1, 1, 1]} : vector<1x5x32xf32> to vector<1x1x32xf32>
    %396 = vector.shape_cast %395 : vector<1x1x32xf32> to vector<1x32xf32>
    %c0_198 = arith.constant 0 : index
    %c0_199 = arith.constant 0 : index
    %397 = vector.load %arg19[%c0_198, %c0_199] : memref<32x16xf32, #tpu.memory_space<vmem>>, vector<32x16xf32>
    %cst_200 = arith.constant dense<0.000000e+00> : vector<1x16xf32>
    %398 = tpu.matmul %396, %397, %cst_200 {dimension_numbers = #tpu.dot_dimension_numbers<[1], [0], [0], [1], [0, 0, 1, 1], [], []>} : vector<1x32xf32>, vector<32x16xf32>, vector<1x16xf32> -> vector<1x16xf32>
    %c0_201 = arith.constant 0 : index
    %c0_202 = arith.constant 0 : index
    %399 = vector.load %arg20[%c0_201, %c0_202] : memref<1x16xf32, #tpu.memory_space<vmem>>, vector<1x16xf32>
    %400 = arith.addf %398, %399 : vector<1x16xf32>
    %c0_203 = arith.constant 0 : index
    %c0_204 = arith.constant 0 : index
    %c0_205 = arith.constant 0 : index
    %401 = vector.load %arg21[%c0_203, %c0_204, %c0_205] : memref<4x8x32xf32, #tpu.memory_space<vmem>>, vector<4x8x32xf32>
    %c0_206 = arith.constant 0 : index
    %c0_207 = arith.constant 0 : index
    %402 = vector.load %arg22[%c0_206, %c0_207] : memref<8x32xf32, #tpu.memory_space<vmem>>, vector<8x32xf32>
    %403 = vector.shape_cast %402 : vector<8x32xf32> to vector<1x8x32xf32>
    %404 = vector.broadcast %403 : vector<1x8x32xf32> to vector<4x8x32xf32>
    %405 = arith.addf %401, %404 : vector<4x8x32xf32>
    %c0_208 = arith.constant 0 : index
    %c0_209 = arith.constant 0 : index
    %406 = vector.load %arg23[%c0_208, %c0_209] : memref<1x32xf32, #tpu.memory_space<vmem>>, vector<1x32xf32>
    %c0_210 = arith.constant 0 : index
    %c0_211 = arith.constant 0 : index
    %407 = vector.load %arg24[%c0_210, %c0_211] : memref<1x32xf32, #tpu.memory_space<vmem>>, vector<1x32xf32>
    %cst_212 = arith.constant dense<0.000000e+00> : vector<4x8xf32>
    %408 = vector.multi_reduction <add>, %405, %cst_212 [2] : vector<4x8x32xf32> to vector<4x8xf32>
    %409 = vector.shape_cast %408 : vector<4x8xf32> to vector<4x8x1xf32>
    %cst_213 = arith.constant 3.200000e+01 : f32
    %410 = vector.broadcast %cst_213 : f32 to vector<4x8x1xf32>
    %411 = arith.divf %409, %410 : vector<4x8x1xf32>
    %412 = vector.broadcast %411 : vector<4x8x1xf32> to vector<4x8x32xf32>
    %413 = arith.subf %405, %412 : vector<4x8x32xf32>
    %414 = arith.mulf %413, %413 : vector<4x8x32xf32>
    %cst_214 = arith.constant dense<0.000000e+00> : vector<4x8xf32>
    %415 = vector.multi_reduction <add>, %414, %cst_214 [2] : vector<4x8x32xf32> to vector<4x8xf32>
    %416 = vector.shape_cast %415 : vector<4x8xf32> to vector<4x8x1xf32>
    %cst_215 = arith.constant 3.200000e+01 : f32
    %417 = vector.broadcast %cst_215 : f32 to vector<4x8x1xf32>
    %418 = arith.divf %416, %417 : vector<4x8x1xf32>
    %419 = vector.broadcast %411 : vector<4x8x1xf32> to vector<4x8x32xf32>
    %420 = arith.subf %405, %419 : vector<4x8x32xf32>
    %cst_216 = arith.constant 9.99999996E-13 : f32
    %421 = vector.broadcast %cst_216 : f32 to vector<4x8x1xf32>
    %422 = arith.addf %418, %421 : vector<4x8x1xf32>
    %423 = math.rsqrt %422 : vector<4x8x1xf32>
    %424 = vector.broadcast %423 : vector<4x8x1xf32> to vector<4x8x32xf32>
    %425 = arith.mulf %420, %424 : vector<4x8x32xf32>
    %426 = vector.shape_cast %406 : vector<1x32xf32> to vector<1x1x32xf32>
    %427 = vector.broadcast %426 : vector<1x1x32xf32> to vector<4x8x32xf32>
    %428 = arith.mulf %425, %427 : vector<4x8x32xf32>
    %429 = vector.shape_cast %407 : vector<1x32xf32> to vector<1x1x32xf32>
    %430 = vector.broadcast %429 : vector<1x1x32xf32> to vector<4x8x32xf32>
    %431 = arith.addf %428, %430 : vector<4x8x32xf32>
    %c0_217 = arith.constant 0 : index
    %c0_218 = arith.constant 0 : index
    %c0_219 = arith.constant 0 : index
    %432 = vector.load %arg25[%c0_217, %c0_218, %c0_219] : memref<4x1x8xf32, #tpu.memory_space<vmem>>, vector<4x1x8xf32>
    %c0_220 = arith.constant 0 : index
    %c0_221 = arith.constant 0 : index
    %c0_222 = arith.constant 0 : index
    %433 = vector.load %arg26[%c0_220, %c0_221, %c0_222] : memref<2x1x32xf32, #tpu.memory_space<vmem>>, vector<1x1x32xf32>
    %434 = vector.shape_cast %433 : vector<1x1x32xf32> to vector<1x32xf32>
    %c0_223 = arith.constant 0 : index
    %c0_224 = arith.constant 0 : index
    %c0_225 = arith.constant 0 : index
    %435 = vector.load %arg27[%c0_223, %c0_224, %c0_225] : memref<2x1x32xf32, #tpu.memory_space<vmem>>, vector<1x1x32xf32>
    %436 = vector.shape_cast %435 : vector<1x1x32xf32> to vector<1x32xf32>
    %cst_226 = arith.constant dense<0.000000e+00> : vector<4x8xf32>
    %437 = vector.multi_reduction <add>, %431, %cst_226 [2] : vector<4x8x32xf32> to vector<4x8xf32>
    %438 = vector.shape_cast %437 : vector<4x8xf32> to vector<4x8x1xf32>
    %cst_227 = arith.constant 3.200000e+01 : f32
    %439 = vector.broadcast %cst_227 : f32 to vector<4x8x1xf32>
    %440 = arith.divf %438, %439 : vector<4x8x1xf32>
    %441 = vector.broadcast %440 : vector<4x8x1xf32> to vector<4x8x32xf32>
    %442 = arith.subf %431, %441 : vector<4x8x32xf32>
    %443 = arith.mulf %442, %442 : vector<4x8x32xf32>
    %cst_228 = arith.constant dense<0.000000e+00> : vector<4x8xf32>
    %444 = vector.multi_reduction <add>, %443, %cst_228 [2] : vector<4x8x32xf32> to vector<4x8xf32>
    %445 = vector.shape_cast %444 : vector<4x8xf32> to vector<4x8x1xf32>
    %cst_229 = arith.constant 3.200000e+01 : f32
    %446 = vector.broadcast %cst_229 : f32 to vector<4x8x1xf32>
    %447 = arith.divf %445, %446 : vector<4x8x1xf32>
    %448 = vector.broadcast %440 : vector<4x8x1xf32> to vector<4x8x32xf32>
    %449 = arith.subf %431, %448 : vector<4x8x32xf32>
    %cst_230 = arith.constant 9.99999996E-13 : f32
    %450 = vector.broadcast %cst_230 : f32 to vector<4x8x1xf32>
    %451 = arith.addf %447, %450 : vector<4x8x1xf32>
    %452 = math.rsqrt %451 : vector<4x8x1xf32>
    %453 = vector.broadcast %452 : vector<4x8x1xf32> to vector<4x8x32xf32>
    %454 = arith.mulf %449, %453 : vector<4x8x32xf32>
    %455 = vector.shape_cast %434 : vector<1x32xf32> to vector<1x1x32xf32>
    %456 = vector.broadcast %455 : vector<1x1x32xf32> to vector<4x8x32xf32>
    %457 = arith.mulf %454, %456 : vector<4x8x32xf32>
    %458 = vector.shape_cast %436 : vector<1x32xf32> to vector<1x1x32xf32>
    %459 = vector.broadcast %458 : vector<1x1x32xf32> to vector<4x8x32xf32>
    %460 = arith.addf %457, %459 : vector<4x8x32xf32>
    %461 = vector.shape_cast %460 : vector<4x8x32xf32> to vector<32x32xf32>
    %c0_231 = arith.constant 0 : index
    %c0_232 = arith.constant 0 : index
    %c0_233 = arith.constant 0 : index
    %462 = vector.load %arg28[%c0_231, %c0_232, %c0_233] : memref<2x32x96xf32, #tpu.memory_space<vmem>>, vector<1x32x96xf32>
    %463 = vector.shape_cast %462 : vector<1x32x96xf32> to vector<32x96xf32>
    %cst_234 = arith.constant dense<0.000000e+00> : vector<32x96xf32>
    %464 = tpu.matmul %461, %463, %cst_234 {dimension_numbers = #tpu.dot_dimension_numbers<[1], [0], [0], [1], [0, 0, 1, 1], [], []>} : vector<32x32xf32>, vector<32x96xf32>, vector<32x96xf32> -> vector<32x96xf32>
    %c0_235 = arith.constant 0 : index
    %c0_236 = arith.constant 0 : index
    %c0_237 = arith.constant 0 : index
    %465 = vector.load %arg29[%c0_235, %c0_236, %c0_237] : memref<2x1x96xf32, #tpu.memory_space<vmem>>, vector<1x1x96xf32>
    %466 = vector.shape_cast %465 : vector<1x1x96xf32> to vector<1x96xf32>
    %467 = vector.broadcast %466 : vector<1x96xf32> to vector<32x96xf32>
    %468 = arith.addf %464, %467 : vector<32x96xf32>
    %469 = vector.shape_cast %468 : vector<32x96xf32> to vector<4x8x96xf32>
    %470 = vector.extract_strided_slice %469 {offsets = [0, 0, 0], sizes = [4, 8, 8], strides = [1, 1, 1]} : vector<4x8x96xf32> to vector<4x8x8xf32>
    %471 = vector.extract_strided_slice %469 {offsets = [0, 0, 32], sizes = [4, 8, 8], strides = [1, 1, 1]} : vector<4x8x96xf32> to vector<4x8x8xf32>
    %472 = vector.extract_strided_slice %469 {offsets = [0, 0, 64], sizes = [4, 8, 8], strides = [1, 1, 1]} : vector<4x8x96xf32> to vector<4x8x8xf32>
    "tpu.trace_start"() <{level = 10 : i32, message = "bqd,bkd->bqk"}> : () -> ()
    %cst_238 = arith.constant dense<0.000000e+00> : vector<4x8x8xf32>
    %473 = tpu.matmul %470, %471, %cst_238 {dimension_numbers = #tpu.dot_dimension_numbers<[2], [2], [1], [1], [0, 0, 0, 1, 1, 1], [0], [0]>} : vector<4x8x8xf32>, vector<4x8x8xf32>, vector<4x8x8xf32> -> vector<4x8x8xf32>
    "tpu.trace_stop"() : () -> ()
    %cst_239 = arith.constant 0.353553385 : f32
    %474 = vector.broadcast %cst_239 : f32 to vector<4x8x8xf32>
    %475 = arith.mulf %473, %474 : vector<4x8x8xf32>
    %476 = vector.broadcast %432 : vector<4x1x8xf32> to vector<4x8x8xf32>
    %477 = arith.addf %475, %476 : vector<4x8x8xf32>
    %cst_240 = arith.constant dense<0xFF800000> : vector<4x8xf32>
    %478 = vector.multi_reduction <maximumf>, %477, %cst_240 [2] : vector<4x8x8xf32> to vector<4x8xf32>
    %479 = vector.shape_cast %478 : vector<4x8xf32> to vector<4x8x1xf32>
    %480 = vector.broadcast %479 : vector<4x8x1xf32> to vector<4x8x8xf32>
    %481 = arith.subf %477, %480 : vector<4x8x8xf32>
    %482 = math.exp %481 : vector<4x8x8xf32>
    %cst_241 = arith.constant dense<0.000000e+00> : vector<4x8xf32>
    %483 = vector.multi_reduction <add>, %482, %cst_241 [2] : vector<4x8x8xf32> to vector<4x8xf32>
    %484 = vector.shape_cast %483 : vector<4x8xf32> to vector<4x8x1xf32>
    %485 = tpu.reciprocal %484 {approx = true} : vector<4x8x1xf32> -> vector<4x8x1xf32>
    %486 = vector.broadcast %485 : vector<4x8x1xf32> to vector<4x8x8xf32>
    %487 = arith.mulf %482, %486 : vector<4x8x8xf32>
    "tpu.trace_start"() <{level = 10 : i32, message = "bqk,bkd->bqd"}> : () -> ()
    %cst_242 = arith.constant dense<0.000000e+00> : vector<4x8x8xf32>
    %488 = tpu.matmul %487, %472, %cst_242 {dimension_numbers = #tpu.dot_dimension_numbers<[2], [1], [1], [2], [0, 0, 0, 1, 1, 2], [0], [0]>} : vector<4x8x8xf32>, vector<4x8x8xf32>, vector<4x8x8xf32> -> vector<4x8x8xf32>
    "tpu.trace_stop"() : () -> ()
    %c0_243 = arith.constant 0 : index
    %c0_244 = arith.constant 0 : index
    %c0_245 = arith.constant 0 : index
    %489 = vector.load %arg46[%c0_243, %c0_244, %c0_245] : memref<4x8x32xf32, #tpu.memory_space<vmem>>, vector<4x8x8xf32>
    tpu.vector_store %arg46[%c0_243, %c0_244, %c0_245], %488 {strides = array<i32>} : memref<4x8x32xf32, #tpu.memory_space<vmem>>, vector<4x8x8xf32>,
    %490 = vector.extract_strided_slice %469 {offsets = [0, 0, 8], sizes = [4, 8, 8], strides = [1, 1, 1]} : vector<4x8x96xf32> to vector<4x8x8xf32>
    %491 = vector.extract_strided_slice %469 {offsets = [0, 0, 40], sizes = [4, 8, 8], strides = [1, 1, 1]} : vector<4x8x96xf32> to vector<4x8x8xf32>
    %492 = vector.extract_strided_slice %469 {offsets = [0, 0, 72], sizes = [4, 8, 8], strides = [1, 1, 1]} : vector<4x8x96xf32> to vector<4x8x8xf32>
    "tpu.trace_start"() <{level = 10 : i32, message = "bqd,bkd->bqk"}> : () -> ()
    %cst_246 = arith.constant dense<0.000000e+00> : vector<4x8x8xf32>
    %493 = tpu.matmul %490, %491, %cst_246 {dimension_numbers = #tpu.dot_dimension_numbers<[2], [2], [1], [1], [0, 0, 0, 1, 1, 1], [0], [0]>} : vector<4x8x8xf32>, vector<4x8x8xf32>, vector<4x8x8xf32> -> vector<4x8x8xf32>
    "tpu.trace_stop"() : () -> ()
    %cst_247 = arith.constant 0.353553385 : f32
    %494 = vector.broadcast %cst_247 : f32 to vector<4x8x8xf32>
    %495 = arith.mulf %493, %494 : vector<4x8x8xf32>
    %496 = vector.broadcast %432 : vector<4x1x8xf32> to vector<4x8x8xf32>
    %497 = arith.addf %495, %496 : vector<4x8x8xf32>
    %cst_248 = arith.constant dense<0xFF800000> : vector<4x8xf32>
    %498 = vector.multi_reduction <maximumf>, %497, %cst_248 [2] : vector<4x8x8xf32> to vector<4x8xf32>
    %499 = vector.shape_cast %498 : vector<4x8xf32> to vector<4x8x1xf32>
    %500 = vector.broadcast %499 : vector<4x8x1xf32> to vector<4x8x8xf32>
    %501 = arith.subf %497, %500 : vector<4x8x8xf32>
    %502 = math.exp %501 : vector<4x8x8xf32>
    %cst_249 = arith.constant dense<0.000000e+00> : vector<4x8xf32>
    %503 = vector.multi_reduction <add>, %502, %cst_249 [2] : vector<4x8x8xf32> to vector<4x8xf32>
    %504 = vector.shape_cast %503 : vector<4x8xf32> to vector<4x8x1xf32>
    %505 = tpu.reciprocal %504 {approx = true} : vector<4x8x1xf32> -> vector<4x8x1xf32>
    %506 = vector.broadcast %505 : vector<4x8x1xf32> to vector<4x8x8xf32>
    %507 = arith.mulf %502, %506 : vector<4x8x8xf32>
    "tpu.trace_start"() <{level = 10 : i32, message = "bqk,bkd->bqd"}> : () -> ()
    %cst_250 = arith.constant dense<0.000000e+00> : vector<4x8x8xf32>
    %508 = tpu.matmul %507, %492, %cst_250 {dimension_numbers = #tpu.dot_dimension_numbers<[2], [1], [1], [2], [0, 0, 0, 1, 1, 2], [0], [0]>} : vector<4x8x8xf32>, vector<4x8x8xf32>, vector<4x8x8xf32> -> vector<4x8x8xf32>
    "tpu.trace_stop"() : () -> ()
    %c0_251 = arith.constant 0 : index
    %c0_252 = arith.constant 0 : index
    %c8_253 = arith.constant 8 : index
    %509 = vector.load %arg46[%c0_251, %c0_252, %c8_253] : memref<4x8x32xf32, #tpu.memory_space<vmem>>, vector<4x8x8xf32>
    tpu.vector_store %arg46[%c0_251, %c0_252, %c8_253], %508 {strides = array<i32>} : memref<4x8x32xf32, #tpu.memory_space<vmem>>, vector<4x8x8xf32>,
    %510 = vector.extract_strided_slice %469 {offsets = [0, 0, 16], sizes = [4, 8, 8], strides = [1, 1, 1]} : vector<4x8x96xf32> to vector<4x8x8xf32>
    %511 = vector.extract_strided_slice %469 {offsets = [0, 0, 48], sizes = [4, 8, 8], strides = [1, 1, 1]} : vector<4x8x96xf32> to vector<4x8x8xf32>
    %512 = vector.extract_strided_slice %469 {offsets = [0, 0, 80], sizes = [4, 8, 8], strides = [1, 1, 1]} : vector<4x8x96xf32> to vector<4x8x8xf32>
    "tpu.trace_start"() <{level = 10 : i32, message = "bqd,bkd->bqk"}> : () -> ()
    %cst_254 = arith.constant dense<0.000000e+00> : vector<4x8x8xf32>
    %513 = tpu.matmul %510, %511, %cst_254 {dimension_numbers = #tpu.dot_dimension_numbers<[2], [2], [1], [1], [0, 0, 0, 1, 1, 1], [0], [0]>} : vector<4x8x8xf32>, vector<4x8x8xf32>, vector<4x8x8xf32> -> vector<4x8x8xf32>
    "tpu.trace_stop"() : () -> ()
    %cst_255 = arith.constant 0.353553385 : f32
    %514 = vector.broadcast %cst_255 : f32 to vector<4x8x8xf32>
    %515 = arith.mulf %513, %514 : vector<4x8x8xf32>
    %516 = vector.broadcast %432 : vector<4x1x8xf32> to vector<4x8x8xf32>
    %517 = arith.addf %515, %516 : vector<4x8x8xf32>
    %cst_256 = arith.constant dense<0xFF800000> : vector<4x8xf32>
    %518 = vector.multi_reduction <maximumf>, %517, %cst_256 [2] : vector<4x8x8xf32> to vector<4x8xf32>
    %519 = vector.shape_cast %518 : vector<4x8xf32> to vector<4x8x1xf32>
    %520 = vector.broadcast %519 : vector<4x8x1xf32> to vector<4x8x8xf32>
    %521 = arith.subf %517, %520 : vector<4x8x8xf32>
    %522 = math.exp %521 : vector<4x8x8xf32>
    %cst_257 = arith.constant dense<0.000000e+00> : vector<4x8xf32>
    %523 = vector.multi_reduction <add>, %522, %cst_257 [2] : vector<4x8x8xf32> to vector<4x8xf32>
    %524 = vector.shape_cast %523 : vector<4x8xf32> to vector<4x8x1xf32>
    %525 = tpu.reciprocal %524 {approx = true} : vector<4x8x1xf32> -> vector<4x8x1xf32>
    %526 = vector.broadcast %525 : vector<4x8x1xf32> to vector<4x8x8xf32>
    %527 = arith.mulf %522, %526 : vector<4x8x8xf32>
    "tpu.trace_start"() <{level = 10 : i32, message = "bqk,bkd->bqd"}> : () -> ()
    %cst_258 = arith.constant dense<0.000000e+00> : vector<4x8x8xf32>
    %528 = tpu.matmul %527, %512, %cst_258 {dimension_numbers = #tpu.dot_dimension_numbers<[2], [1], [1], [2], [0, 0, 0, 1, 1, 2], [0], [0]>} : vector<4x8x8xf32>, vector<4x8x8xf32>, vector<4x8x8xf32> -> vector<4x8x8xf32>
    "tpu.trace_stop"() : () -> ()
    %c0_259 = arith.constant 0 : index
    %c0_260 = arith.constant 0 : index
    %c16_261 = arith.constant 16 : index
    %529 = vector.load %arg46[%c0_259, %c0_260, %c16_261] : memref<4x8x32xf32, #tpu.memory_space<vmem>>, vector<4x8x8xf32>
    tpu.vector_store %arg46[%c0_259, %c0_260, %c16_261], %528 {strides = array<i32>} : memref<4x8x32xf32, #tpu.memory_space<vmem>>, vector<4x8x8xf32>,
    %530 = vector.extract_strided_slice %469 {offsets = [0, 0, 24], sizes = [4, 8, 8], strides = [1, 1, 1]} : vector<4x8x96xf32> to vector<4x8x8xf32>
    %531 = vector.extract_strided_slice %469 {offsets = [0, 0, 56], sizes = [4, 8, 8], strides = [1, 1, 1]} : vector<4x8x96xf32> to vector<4x8x8xf32>
    %532 = vector.extract_strided_slice %469 {offsets = [0, 0, 88], sizes = [4, 8, 8], strides = [1, 1, 1]} : vector<4x8x96xf32> to vector<4x8x8xf32>
    "tpu.trace_start"() <{level = 10 : i32, message = "bqd,bkd->bqk"}> : () -> ()
    %cst_262 = arith.constant dense<0.000000e+00> : vector<4x8x8xf32>
    %533 = tpu.matmul %530, %531, %cst_262 {dimension_numbers = #tpu.dot_dimension_numbers<[2], [2], [1], [1], [0, 0, 0, 1, 1, 1], [0], [0]>} : vector<4x8x8xf32>, vector<4x8x8xf32>, vector<4x8x8xf32> -> vector<4x8x8xf32>
    "tpu.trace_stop"() : () -> ()
    %cst_263 = arith.constant 0.353553385 : f32
    %534 = vector.broadcast %cst_263 : f32 to vector<4x8x8xf32>
    %535 = arith.mulf %533, %534 : vector<4x8x8xf32>
    %536 = vector.broadcast %432 : vector<4x1x8xf32> to vector<4x8x8xf32>
    %537 = arith.addf %535, %536 : vector<4x8x8xf32>
    %cst_264 = arith.constant dense<0xFF800000> : vector<4x8xf32>
    %538 = vector.multi_reduction <maximumf>, %537, %cst_264 [2] : vector<4x8x8xf32> to vector<4x8xf32>
    %539 = vector.shape_cast %538 : vector<4x8xf32> to vector<4x8x1xf32>
    %540 = vector.broadcast %539 : vector<4x8x1xf32> to vector<4x8x8xf32>
    %541 = arith.subf %537, %540 : vector<4x8x8xf32>
    %542 = math.exp %541 : vector<4x8x8xf32>
    %cst_265 = arith.constant dense<0.000000e+00> : vector<4x8xf32>
    %543 = vector.multi_reduction <add>, %542, %cst_265 [2] : vector<4x8x8xf32> to vector<4x8xf32>
    %544 = vector.shape_cast %543 : vector<4x8xf32> to vector<4x8x1xf32>
    %545 = tpu.reciprocal %544 {approx = true} : vector<4x8x1xf32> -> vector<4x8x1xf32>
    %546 = vector.broadcast %545 : vector<4x8x1xf32> to vector<4x8x8xf32>
    %547 = arith.mulf %542, %546 : vector<4x8x8xf32>
    "tpu.trace_start"() <{level = 10 : i32, message = "bqk,bkd->bqd"}> : () -> ()
    %cst_266 = arith.constant dense<0.000000e+00> : vector<4x8x8xf32>
    %548 = tpu.matmul %547, %532, %cst_266 {dimension_numbers = #tpu.dot_dimension_numbers<[2], [1], [1], [2], [0, 0, 0, 1, 1, 2], [0], [0]>} : vector<4x8x8xf32>, vector<4x8x8xf32>, vector<4x8x8xf32> -> vector<4x8x8xf32>
    "tpu.trace_stop"() : () -> ()
    %c0_267 = arith.constant 0 : index
    %c0_268 = arith.constant 0 : index
    %c24_269 = arith.constant 24 : index
    %549 = vector.load %arg46[%c0_267, %c0_268, %c24_269] : memref<4x8x32xf32, #tpu.memory_space<vmem>>, vector<4x8x8xf32>
    tpu.vector_store %arg46[%c0_267, %c0_268, %c24_269], %548 {strides = array<i32>} : memref<4x8x32xf32, #tpu.memory_space<vmem>>, vector<4x8x8xf32>,
    %c0_270 = arith.constant 0 : index
    %c0_271 = arith.constant 0 : index
    %c0_272 = arith.constant 0 : index
    %550 = vector.load %arg46[%c0_270, %c0_271, %c0_272] : memref<4x8x32xf32, #tpu.memory_space<vmem>>, vector<4x8x32xf32>
    %551 = vector.shape_cast %550 : vector<4x8x32xf32> to vector<32x32xf32>
    %c0_273 = arith.constant 0 : index
    %c0_274 = arith.constant 0 : index
    %c0_275 = arith.constant 0 : index
    %552 = vector.load %arg30[%c0_273, %c0_274, %c0_275] : memref<2x32x32xf32, #tpu.memory_space<vmem>>, vector<1x32x32xf32>
    %553 = vector.shape_cast %552 : vector<1x32x32xf32> to vector<32x32xf32>
    %cst_276 = arith.constant dense<0.000000e+00> : vector<32x32xf32>
    %554 = tpu.matmul %551, %553, %cst_276 {dimension_numbers = #tpu.dot_dimension_numbers<[1], [0], [0], [1], [0, 0, 1, 1], [], []>} : vector<32x32xf32>, vector<32x32xf32>, vector<32x32xf32> -> vector<32x32xf32>
    %c0_277 = arith.constant 0 : index
    %c0_278 = arith.constant 0 : index
    %c0_279 = arith.constant 0 : index
    %555 = vector.load %arg31[%c0_277, %c0_278, %c0_279] : memref<2x1x32xf32, #tpu.memory_space<vmem>>, vector<1x1x32xf32>
    %556 = vector.shape_cast %555 : vector<1x1x32xf32> to vector<1x32xf32>
    %557 = vector.broadcast %556 : vector<1x32xf32> to vector<32x32xf32>
    %558 = arith.addf %554, %557 : vector<32x32xf32>
    %559 = vector.shape_cast %558 : vector<32x32xf32> to vector<4x8x32xf32>
    %560 = arith.addf %431, %559 : vector<4x8x32xf32>
    %c0_280 = arith.constant 0 : index
    %c0_281 = arith.constant 0 : index
    %c0_282 = arith.constant 0 : index
    %561 = vector.load %arg32[%c0_280, %c0_281, %c0_282] : memref<2x1x32xf32, #tpu.memory_space<vmem>>, vector<1x1x32xf32>
    %562 = vector.shape_cast %561 : vector<1x1x32xf32> to vector<1x32xf32>
    %c0_283 = arith.constant 0 : index
    %c0_284 = arith.constant 0 : index
    %c0_285 = arith.constant 0 : index
    %563 = vector.load %arg33[%c0_283, %c0_284, %c0_285] : memref<2x1x32xf32, #tpu.memory_space<vmem>>, vector<1x1x32xf32>
    %564 = vector.shape_cast %563 : vector<1x1x32xf32> to vector<1x32xf32>
    %cst_286 = arith.constant dense<0.000000e+00> : vector<4x8xf32>
    %565 = vector.multi_reduction <add>, %560, %cst_286 [2] : vector<4x8x32xf32> to vector<4x8xf32>
    %566 = vector.shape_cast %565 : vector<4x8xf32> to vector<4x8x1xf32>
    %cst_287 = arith.constant 3.200000e+01 : f32
    %567 = vector.broadcast %cst_287 : f32 to vector<4x8x1xf32>
    %568 = arith.divf %566, %567 : vector<4x8x1xf32>
    %569 = vector.broadcast %568 : vector<4x8x1xf32> to vector<4x8x32xf32>
    %570 = arith.subf %560, %569 : vector<4x8x32xf32>
    %571 = arith.mulf %570, %570 : vector<4x8x32xf32>
    %cst_288 = arith.constant dense<0.000000e+00> : vector<4x8xf32>
    %572 = vector.multi_reduction <add>, %571, %cst_288 [2] : vector<4x8x32xf32> to vector<4x8xf32>
    %573 = vector.shape_cast %572 : vector<4x8xf32> to vector<4x8x1xf32>
    %cst_289 = arith.constant 3.200000e+01 : f32
    %574 = vector.broadcast %cst_289 : f32 to vector<4x8x1xf32>
    %575 = arith.divf %573, %574 : vector<4x8x1xf32>
    %576 = vector.broadcast %568 : vector<4x8x1xf32> to vector<4x8x32xf32>
    %577 = arith.subf %560, %576 : vector<4x8x32xf32>
    %cst_290 = arith.constant 9.99999996E-13 : f32
    %578 = vector.broadcast %cst_290 : f32 to vector<4x8x1xf32>
    %579 = arith.addf %575, %578 : vector<4x8x1xf32>
    %580 = math.rsqrt %579 : vector<4x8x1xf32>
    %581 = vector.broadcast %580 : vector<4x8x1xf32> to vector<4x8x32xf32>
    %582 = arith.mulf %577, %581 : vector<4x8x32xf32>
    %583 = vector.shape_cast %562 : vector<1x32xf32> to vector<1x1x32xf32>
    %584 = vector.broadcast %583 : vector<1x1x32xf32> to vector<4x8x32xf32>
    %585 = arith.mulf %582, %584 : vector<4x8x32xf32>
    %586 = vector.shape_cast %564 : vector<1x32xf32> to vector<1x1x32xf32>
    %587 = vector.broadcast %586 : vector<1x1x32xf32> to vector<4x8x32xf32>
    %588 = arith.addf %585, %587 : vector<4x8x32xf32>
    %589 = vector.shape_cast %588 : vector<4x8x32xf32> to vector<32x32xf32>
    %c0_291 = arith.constant 0 : index
    %c0_292 = arith.constant 0 : index
    %c0_293 = arith.constant 0 : index
    %590 = vector.load %arg34[%c0_291, %c0_292, %c0_293] : memref<2x32x128xf32, #tpu.memory_space<vmem>>, vector<1x32x128xf32>
    %591 = vector.shape_cast %590 : vector<1x32x128xf32> to vector<32x128xf32>
    %cst_294 = arith.constant dense<0.000000e+00> : vector<32x128xf32>
    %592 = tpu.matmul %589, %591, %cst_294 {dimension_numbers = #tpu.dot_dimension_numbers<[1], [0], [0], [1], [0, 0, 1, 1], [], []>} : vector<32x32xf32>, vector<32x128xf32>, vector<32x128xf32> -> vector<32x128xf32>
    %c0_295 = arith.constant 0 : index
    %c0_296 = arith.constant 0 : index
    %c0_297 = arith.constant 0 : index
    %593 = vector.load %arg35[%c0_295, %c0_296, %c0_297] : memref<2x1x128xf32, #tpu.memory_space<vmem>>, vector<1x1x128xf32>
    %594 = vector.shape_cast %593 : vector<1x1x128xf32> to vector<1x128xf32>
    %595 = vector.broadcast %594 : vector<1x128xf32> to vector<32x128xf32>
    %596 = arith.addf %592, %595 : vector<32x128xf32>
    %597 = arith.mulf %596, %596 : vector<32x128xf32>
    %598 = arith.mulf %596, %597 : vector<32x128xf32>
    %cst_298 = arith.constant 4.471500e-02 : f32
    %599 = vector.broadcast %cst_298 : f32 to vector<32x128xf32>
    %600 = arith.mulf %599, %598 : vector<32x128xf32>
    %601 = arith.addf %596, %600 : vector<32x128xf32>
    %cst_299 = arith.constant 0.797884583 : f32
    %602 = vector.broadcast %cst_299 : f32 to vector<32x128xf32>
    %603 = arith.mulf %602, %601 : vector<32x128xf32>
    %604 = math.tanh %603 : vector<32x128xf32>
    %cst_300 = arith.constant 1.000000e+00 : f32
    %605 = vector.broadcast %cst_300 : f32 to vector<32x128xf32>
    %606 = arith.addf %605, %604 : vector<32x128xf32>
    %cst_301 = arith.constant 5.000000e-01 : f32
    %607 = vector.broadcast %cst_301 : f32 to vector<32x128xf32>
    %608 = arith.mulf %607, %606 : vector<32x128xf32>
    %609 = arith.mulf %596, %608 : vector<32x128xf32>
    %c0_302 = arith.constant 0 : index
    %c0_303 = arith.constant 0 : index
    %c0_304 = arith.constant 0 : index
    %610 = vector.load %arg36[%c0_302, %c0_303, %c0_304] : memref<2x128x32xf32, #tpu.memory_space<vmem>>, vector<1x128x32xf32>
    %611 = vector.shape_cast %610 : vector<1x128x32xf32> to vector<128x32xf32>
    %cst_305 = arith.constant dense<0.000000e+00> : vector<32x32xf32>
    %612 = tpu.matmul %609, %611, %cst_305 {dimension_numbers = #tpu.dot_dimension_numbers<[1], [0], [0], [1], [0, 0, 1, 1], [], []>} : vector<32x128xf32>, vector<128x32xf32>, vector<32x32xf32> -> vector<32x32xf32>
    %c0_306 = arith.constant 0 : index
    %c0_307 = arith.constant 0 : index
    %c0_308 = arith.constant 0 : index
    %613 = vector.load %arg37[%c0_306, %c0_307, %c0_308] : memref<2x1x32xf32, #tpu.memory_space<vmem>>, vector<1x1x32xf32>
    %614 = vector.shape_cast %613 : vector<1x1x32xf32> to vector<1x32xf32>
    %615 = vector.broadcast %614 : vector<1x32xf32> to vector<32x32xf32>
    %616 = arith.addf %612, %615 : vector<32x32xf32>
    %617 = vector.shape_cast %616 : vector<32x32xf32> to vector<4x8x32xf32>
    %618 = arith.addf %560, %617 : vector<4x8x32xf32>
    %c1_309 = arith.constant 1 : index
    %c0_310 = arith.constant 0 : index
    %c0_311 = arith.constant 0 : index
    %619 = vector.load %arg26[%c1_309, %c0_310, %c0_311] : memref<2x1x32xf32, #tpu.memory_space<vmem>>, vector<1x1x32xf32>
    %620 = vector.shape_cast %619 : vector<1x1x32xf32> to vector<1x32xf32>
    %c1_312 = arith.constant 1 : index
    %c0_313 = arith.constant 0 : index
    %c0_314 = arith.constant 0 : index
    %621 = vector.load %arg27[%c1_312, %c0_313, %c0_314] : memref<2x1x32xf32, #tpu.memory_space<vmem>>, vector<1x1x32xf32>
    %622 = vector.shape_cast %621 : vector<1x1x32xf32> to vector<1x32xf32>
    %cst_315 = arith.constant dense<0.000000e+00> : vector<4x8xf32>
    %623 = vector.multi_reduction <add>, %618, %cst_315 [2] : vector<4x8x32xf32> to vector<4x8xf32>
    %624 = vector.shape_cast %623 : vector<4x8xf32> to vector<4x8x1xf32>
    %cst_316 = arith.constant 3.200000e+01 : f32
    %625 = vector.broadcast %cst_316 : f32 to vector<4x8x1xf32>
    %626 = arith.divf %624, %625 : vector<4x8x1xf32>
    %627 = vector.broadcast %626 : vector<4x8x1xf32> to vector<4x8x32xf32>
    %628 = arith.subf %618, %627 : vector<4x8x32xf32>
    %629 = arith.mulf %628, %628 : vector<4x8x32xf32>
    %cst_317 = arith.constant dense<0.000000e+00> : vector<4x8xf32>
    %630 = vector.multi_reduction <add>, %629, %cst_317 [2] : vector<4x8x32xf32> to vector<4x8xf32>
    %631 = vector.shape_cast %630 : vector<4x8xf32> to vector<4x8x1xf32>
    %cst_318 = arith.constant 3.200000e+01 : f32
    %632 = vector.broadcast %cst_318 : f32 to vector<4x8x1xf32>
    %633 = arith.divf %631, %632 : vector<4x8x1xf32>
    %634 = vector.broadcast %626 : vector<4x8x1xf32> to vector<4x8x32xf32>
    %635 = arith.subf %618, %634 : vector<4x8x32xf32>
    %cst_319 = arith.constant 9.99999996E-13 : f32
    %636 = vector.broadcast %cst_319 : f32 to vector<4x8x1xf32>
    %637 = arith.addf %633, %636 : vector<4x8x1xf32>
    %638 = math.rsqrt %637 : vector<4x8x1xf32>
    %639 = vector.broadcast %638 : vector<4x8x1xf32> to vector<4x8x32xf32>
    %640 = arith.mulf %635, %639 : vector<4x8x32xf32>
    %641 = vector.shape_cast %620 : vector<1x32xf32> to vector<1x1x32xf32>
    %642 = vector.broadcast %641 : vector<1x1x32xf32> to vector<4x8x32xf32>
    %643 = arith.mulf %640, %642 : vector<4x8x32xf32>
    %644 = vector.shape_cast %622 : vector<1x32xf32> to vector<1x1x32xf32>
    %645 = vector.broadcast %644 : vector<1x1x32xf32> to vector<4x8x32xf32>
    %646 = arith.addf %643, %645 : vector<4x8x32xf32>
    %647 = vector.shape_cast %646 : vector<4x8x32xf32> to vector<32x32xf32>
    %c1_320 = arith.constant 1 : index
    %c0_321 = arith.constant 0 : index
    %c0_322 = arith.constant 0 : index
    %648 = vector.load %arg28[%c1_320, %c0_321, %c0_322] : memref<2x32x96xf32, #tpu.memory_space<vmem>>, vector<1x32x96xf32>
    %649 = vector.shape_cast %648 : vector<1x32x96xf32> to vector<32x96xf32>
    %cst_323 = arith.constant dense<0.000000e+00> : vector<32x96xf32>
    %650 = tpu.matmul %647, %649, %cst_323 {dimension_numbers = #tpu.dot_dimension_numbers<[1], [0], [0], [1], [0, 0, 1, 1], [], []>} : vector<32x32xf32>, vector<32x96xf32>, vector<32x96xf32> -> vector<32x96xf32>
    %c1_324 = arith.constant 1 : index
    %c0_325 = arith.constant 0 : index
    %c0_326 = arith.constant 0 : index
    %651 = vector.load %arg29[%c1_324, %c0_325, %c0_326] : memref<2x1x96xf32, #tpu.memory_space<vmem>>, vector<1x1x96xf32>
    %652 = vector.shape_cast %651 : vector<1x1x96xf32> to vector<1x96xf32>
    %653 = vector.broadcast %652 : vector<1x96xf32> to vector<32x96xf32>
    %654 = arith.addf %650, %653 : vector<32x96xf32>
    %655 = vector.shape_cast %654 : vector<32x96xf32> to vector<4x8x96xf32>
    %656 = vector.extract_strided_slice %655 {offsets = [0, 0, 0], sizes = [4, 8, 8], strides = [1, 1, 1]} : vector<4x8x96xf32> to vector<4x8x8xf32>
    %657 = vector.extract_strided_slice %655 {offsets = [0, 0, 32], sizes = [4, 8, 8], strides = [1, 1, 1]} : vector<4x8x96xf32> to vector<4x8x8xf32>
    %658 = vector.extract_strided_slice %655 {offsets = [0, 0, 64], sizes = [4, 8, 8], strides = [1, 1, 1]} : vector<4x8x96xf32> to vector<4x8x8xf32>
    "tpu.trace_start"() <{level = 10 : i32, message = "bqd,bkd->bqk"}> : () -> ()
    %cst_327 = arith.constant dense<0.000000e+00> : vector<4x8x8xf32>
    %659 = tpu.matmul %656, %657, %cst_327 {dimension_numbers = #tpu.dot_dimension_numbers<[2], [2], [1], [1], [0, 0, 0, 1, 1, 1], [0], [0]>} : vector<4x8x8xf32>, vector<4x8x8xf32>, vector<4x8x8xf32> -> vector<4x8x8xf32>
    "tpu.trace_stop"() : () -> ()
    %cst_328 = arith.constant 0.353553385 : f32
    %660 = vector.broadcast %cst_328 : f32 to vector<4x8x8xf32>
    %661 = arith.mulf %659, %660 : vector<4x8x8xf32>
    %662 = vector.broadcast %432 : vector<4x1x8xf32> to vector<4x8x8xf32>
    %663 = arith.addf %661, %662 : vector<4x8x8xf32>
    %cst_329 = arith.constant dense<0xFF800000> : vector<4x8xf32>
    %664 = vector.multi_reduction <maximumf>, %663, %cst_329 [2] : vector<4x8x8xf32> to vector<4x8xf32>
    %665 = vector.shape_cast %664 : vector<4x8xf32> to vector<4x8x1xf32>
    %666 = vector.broadcast %665 : vector<4x8x1xf32> to vector<4x8x8xf32>
    %667 = arith.subf %663, %666 : vector<4x8x8xf32>
    %668 = math.exp %667 : vector<4x8x8xf32>
    %cst_330 = arith.constant dense<0.000000e+00> : vector<4x8xf32>
    %669 = vector.multi_reduction <add>, %668, %cst_330 [2] : vector<4x8x8xf32> to vector<4x8xf32>
    %670 = vector.shape_cast %669 : vector<4x8xf32> to vector<4x8x1xf32>
    %671 = tpu.reciprocal %670 {approx = true} : vector<4x8x1xf32> -> vector<4x8x1xf32>
    %672 = vector.broadcast %671 : vector<4x8x1xf32> to vector<4x8x8xf32>
    %673 = arith.mulf %668, %672 : vector<4x8x8xf32>
    "tpu.trace_start"() <{level = 10 : i32, message = "bqk,bkd->bqd"}> : () -> ()
    %cst_331 = arith.constant dense<0.000000e+00> : vector<4x8x8xf32>
    %674 = tpu.matmul %673, %658, %cst_331 {dimension_numbers = #tpu.dot_dimension_numbers<[2], [1], [1], [2], [0, 0, 0, 1, 1, 2], [0], [0]>} : vector<4x8x8xf32>, vector<4x8x8xf32>, vector<4x8x8xf32> -> vector<4x8x8xf32>
    "tpu.trace_stop"() : () -> ()
    %c0_332 = arith.constant 0 : index
    %c0_333 = arith.constant 0 : index
    %c0_334 = arith.constant 0 : index
    %675 = vector.load %arg46[%c0_332, %c0_333, %c0_334] : memref<4x8x32xf32, #tpu.memory_space<vmem>>, vector<4x8x8xf32>
    tpu.vector_store %arg46[%c0_332, %c0_333, %c0_334], %674 {strides = array<i32>} : memref<4x8x32xf32, #tpu.memory_space<vmem>>, vector<4x8x8xf32>,
    %676 = vector.extract_strided_slice %655 {offsets = [0, 0, 8], sizes = [4, 8, 8], strides = [1, 1, 1]} : vector<4x8x96xf32> to vector<4x8x8xf32>
    %677 = vector.extract_strided_slice %655 {offsets = [0, 0, 40], sizes = [4, 8, 8], strides = [1, 1, 1]} : vector<4x8x96xf32> to vector<4x8x8xf32>
    %678 = vector.extract_strided_slice %655 {offsets = [0, 0, 72], sizes = [4, 8, 8], strides = [1, 1, 1]} : vector<4x8x96xf32> to vector<4x8x8xf32>
    "tpu.trace_start"() <{level = 10 : i32, message = "bqd,bkd->bqk"}> : () -> ()
    %cst_335 = arith.constant dense<0.000000e+00> : vector<4x8x8xf32>
    %679 = tpu.matmul %676, %677, %cst_335 {dimension_numbers = #tpu.dot_dimension_numbers<[2], [2], [1], [1], [0, 0, 0, 1, 1, 1], [0], [0]>} : vector<4x8x8xf32>, vector<4x8x8xf32>, vector<4x8x8xf32> -> vector<4x8x8xf32>
    "tpu.trace_stop"() : () -> ()
    %cst_336 = arith.constant 0.353553385 : f32
    %680 = vector.broadcast %cst_336 : f32 to vector<4x8x8xf32>
    %681 = arith.mulf %679, %680 : vector<4x8x8xf32>
    %682 = vector.broadcast %432 : vector<4x1x8xf32> to vector<4x8x8xf32>
    %683 = arith.addf %681, %682 : vector<4x8x8xf32>
    %cst_337 = arith.constant dense<0xFF800000> : vector<4x8xf32>
    %684 = vector.multi_reduction <maximumf>, %683, %cst_337 [2] : vector<4x8x8xf32> to vector<4x8xf32>
    %685 = vector.shape_cast %684 : vector<4x8xf32> to vector<4x8x1xf32>
    %686 = vector.broadcast %685 : vector<4x8x1xf32> to vector<4x8x8xf32>
    %687 = arith.subf %683, %686 : vector<4x8x8xf32>
    %688 = math.exp %687 : vector<4x8x8xf32>
    %cst_338 = arith.constant dense<0.000000e+00> : vector<4x8xf32>
    %689 = vector.multi_reduction <add>, %688, %cst_338 [2] : vector<4x8x8xf32> to vector<4x8xf32>
    %690 = vector.shape_cast %689 : vector<4x8xf32> to vector<4x8x1xf32>
    %691 = tpu.reciprocal %690 {approx = true} : vector<4x8x1xf32> -> vector<4x8x1xf32>
    %692 = vector.broadcast %691 : vector<4x8x1xf32> to vector<4x8x8xf32>
    %693 = arith.mulf %688, %692 : vector<4x8x8xf32>
    "tpu.trace_start"() <{level = 10 : i32, message = "bqk,bkd->bqd"}> : () -> ()
    %cst_339 = arith.constant dense<0.000000e+00> : vector<4x8x8xf32>
    %694 = tpu.matmul %693, %678, %cst_339 {dimension_numbers = #tpu.dot_dimension_numbers<[2], [1], [1], [2], [0, 0, 0, 1, 1, 2], [0], [0]>} : vector<4x8x8xf32>, vector<4x8x8xf32>, vector<4x8x8xf32> -> vector<4x8x8xf32>
    "tpu.trace_stop"() : () -> ()
    %c0_340 = arith.constant 0 : index
    %c0_341 = arith.constant 0 : index
    %c8_342 = arith.constant 8 : index
    %695 = vector.load %arg46[%c0_340, %c0_341, %c8_342] : memref<4x8x32xf32, #tpu.memory_space<vmem>>, vector<4x8x8xf32>
    tpu.vector_store %arg46[%c0_340, %c0_341, %c8_342], %694 {strides = array<i32>} : memref<4x8x32xf32, #tpu.memory_space<vmem>>, vector<4x8x8xf32>,
    %696 = vector.extract_strided_slice %655 {offsets = [0, 0, 16], sizes = [4, 8, 8], strides = [1, 1, 1]} : vector<4x8x96xf32> to vector<4x8x8xf32>
    %697 = vector.extract_strided_slice %655 {offsets = [0, 0, 48], sizes = [4, 8, 8], strides = [1, 1, 1]} : vector<4x8x96xf32> to vector<4x8x8xf32>
    %698 = vector.extract_strided_slice %655 {offsets = [0, 0, 80], sizes = [4, 8, 8], strides = [1, 1, 1]} : vector<4x8x96xf32> to vector<4x8x8xf32>
    "tpu.trace_start"() <{level = 10 : i32, message = "bqd,bkd->bqk"}> : () -> ()
    %cst_343 = arith.constant dense<0.000000e+00> : vector<4x8x8xf32>
    %699 = tpu.matmul %696, %697, %cst_343 {dimension_numbers = #tpu.dot_dimension_numbers<[2], [2], [1], [1], [0, 0, 0, 1, 1, 1], [0], [0]>} : vector<4x8x8xf32>, vector<4x8x8xf32>, vector<4x8x8xf32> -> vector<4x8x8xf32>
    "tpu.trace_stop"() : () -> ()
    %cst_344 = arith.constant 0.353553385 : f32
    %700 = vector.broadcast %cst_344 : f32 to vector<4x8x8xf32>
    %701 = arith.mulf %699, %700 : vector<4x8x8xf32>
    %702 = vector.broadcast %432 : vector<4x1x8xf32> to vector<4x8x8xf32>
    %703 = arith.addf %701, %702 : vector<4x8x8xf32>
    %cst_345 = arith.constant dense<0xFF800000> : vector<4x8xf32>
    %704 = vector.multi_reduction <maximumf>, %703, %cst_345 [2] : vector<4x8x8xf32> to vector<4x8xf32>
    %705 = vector.shape_cast %704 : vector<4x8xf32> to vector<4x8x1xf32>
    %706 = vector.broadcast %705 : vector<4x8x1xf32> to vector<4x8x8xf32>
    %707 = arith.subf %703, %706 : vector<4x8x8xf32>
    %708 = math.exp %707 : vector<4x8x8xf32>
    %cst_346 = arith.constant dense<0.000000e+00> : vector<4x8xf32>
    %709 = vector.multi_reduction <add>, %708, %cst_346 [2] : vector<4x8x8xf32> to vector<4x8xf32>
    %710 = vector.shape_cast %709 : vector<4x8xf32> to vector<4x8x1xf32>
    %711 = tpu.reciprocal %710 {approx = true} : vector<4x8x1xf32> -> vector<4x8x1xf32>
    %712 = vector.broadcast %711 : vector<4x8x1xf32> to vector<4x8x8xf32>
    %713 = arith.mulf %708, %712 : vector<4x8x8xf32>
    "tpu.trace_start"() <{level = 10 : i32, message = "bqk,bkd->bqd"}> : () -> ()
    %cst_347 = arith.constant dense<0.000000e+00> : vector<4x8x8xf32>
    %714 = tpu.matmul %713, %698, %cst_347 {dimension_numbers = #tpu.dot_dimension_numbers<[2], [1], [1], [2], [0, 0, 0, 1, 1, 2], [0], [0]>} : vector<4x8x8xf32>, vector<4x8x8xf32>, vector<4x8x8xf32> -> vector<4x8x8xf32>
    "tpu.trace_stop"() : () -> ()
    %c0_348 = arith.constant 0 : index
    %c0_349 = arith.constant 0 : index
    %c16_350 = arith.constant 16 : index
    %715 = vector.load %arg46[%c0_348, %c0_349, %c16_350] : memref<4x8x32xf32, #tpu.memory_space<vmem>>, vector<4x8x8xf32>
    tpu.vector_store %arg46[%c0_348, %c0_349, %c16_350], %714 {strides = array<i32>} : memref<4x8x32xf32, #tpu.memory_space<vmem>>, vector<4x8x8xf32>,
    %716 = vector.extract_strided_slice %655 {offsets = [0, 0, 24], sizes = [4, 8, 8], strides = [1, 1, 1]} : vector<4x8x96xf32> to vector<4x8x8xf32>
    %717 = vector.extract_strided_slice %655 {offsets = [0, 0, 56], sizes = [4, 8, 8], strides = [1, 1, 1]} : vector<4x8x96xf32> to vector<4x8x8xf32>
    %718 = vector.extract_strided_slice %655 {offsets = [0, 0, 88], sizes = [4, 8, 8], strides = [1, 1, 1]} : vector<4x8x96xf32> to vector<4x8x8xf32>
    "tpu.trace_start"() <{level = 10 : i32, message = "bqd,bkd->bqk"}> : () -> ()
    %cst_351 = arith.constant dense<0.000000e+00> : vector<4x8x8xf32>
    %719 = tpu.matmul %716, %717, %cst_351 {dimension_numbers = #tpu.dot_dimension_numbers<[2], [2], [1], [1], [0, 0, 0, 1, 1, 1], [0], [0]>} : vector<4x8x8xf32>, vector<4x8x8xf32>, vector<4x8x8xf32> -> vector<4x8x8xf32>
    "tpu.trace_stop"() : () -> ()
    %cst_352 = arith.constant 0.353553385 : f32
    %720 = vector.broadcast %cst_352 : f32 to vector<4x8x8xf32>
    %721 = arith.mulf %719, %720 : vector<4x8x8xf32>
    %722 = vector.broadcast %432 : vector<4x1x8xf32> to vector<4x8x8xf32>
    %723 = arith.addf %721, %722 : vector<4x8x8xf32>
    %cst_353 = arith.constant dense<0xFF800000> : vector<4x8xf32>
    %724 = vector.multi_reduction <maximumf>, %723, %cst_353 [2] : vector<4x8x8xf32> to vector<4x8xf32>
    %725 = vector.shape_cast %724 : vector<4x8xf32> to vector<4x8x1xf32>
    %726 = vector.broadcast %725 : vector<4x8x1xf32> to vector<4x8x8xf32>
    %727 = arith.subf %723, %726 : vector<4x8x8xf32>
    %728 = math.exp %727 : vector<4x8x8xf32>
    %cst_354 = arith.constant dense<0.000000e+00> : vector<4x8xf32>
    %729 = vector.multi_reduction <add>, %728, %cst_354 [2] : vector<4x8x8xf32> to vector<4x8xf32>
    %730 = vector.shape_cast %729 : vector<4x8xf32> to vector<4x8x1xf32>
    %731 = tpu.reciprocal %730 {approx = true} : vector<4x8x1xf32> -> vector<4x8x1xf32>
    %732 = vector.broadcast %731 : vector<4x8x1xf32> to vector<4x8x8xf32>
    %733 = arith.mulf %728, %732 : vector<4x8x8xf32>
    "tpu.trace_start"() <{level = 10 : i32, message = "bqk,bkd->bqd"}> : () -> ()
    %cst_355 = arith.constant dense<0.000000e+00> : vector<4x8x8xf32>
    %734 = tpu.matmul %733, %718, %cst_355 {dimension_numbers = #tpu.dot_dimension_numbers<[2], [1], [1], [2], [0, 0, 0, 1, 1, 2], [0], [0]>} : vector<4x8x8xf32>, vector<4x8x8xf32>, vector<4x8x8xf32> -> vector<4x8x8xf32>
    "tpu.trace_stop"() : () -> ()
    %c0_356 = arith.constant 0 : index
    %c0_357 = arith.constant 0 : index
    %c24_358 = arith.constant 24 : index
    %735 = vector.load %arg46[%c0_356, %c0_357, %c24_358] : memref<4x8x32xf32, #tpu.memory_space<vmem>>, vector<4x8x8xf32>
    tpu.vector_store %arg46[%c0_356, %c0_357, %c24_358], %734 {strides = array<i32>} : memref<4x8x32xf32, #tpu.memory_space<vmem>>, vector<4x8x8xf32>,
    %c0_359 = arith.constant 0 : index
    %c0_360 = arith.constant 0 : index
    %c0_361 = arith.constant 0 : index
    %736 = vector.load %arg46[%c0_359, %c0_360, %c0_361] : memref<4x8x32xf32, #tpu.memory_space<vmem>>, vector<4x8x32xf32>
    %737 = vector.shape_cast %736 : vector<4x8x32xf32> to vector<32x32xf32>
    %c1_362 = arith.constant 1 : index
    %c0_363 = arith.constant 0 : index
    %c0_364 = arith.constant 0 : index
    %738 = vector.load %arg30[%c1_362, %c0_363, %c0_364] : memref<2x32x32xf32, #tpu.memory_space<vmem>>, vector<1x32x32xf32>
    %739 = vector.shape_cast %738 : vector<1x32x32xf32> to vector<32x32xf32>
    %cst_365 = arith.constant dense<0.000000e+00> : vector<32x32xf32>
    %740 = tpu.matmul %737, %739, %cst_365 {dimension_numbers = #tpu.dot_dimension_numbers<[1], [0], [0], [1], [0, 0, 1, 1], [], []>} : vector<32x32xf32>, vector<32x32xf32>, vector<32x32xf32> -> vector<32x32xf32>
    %c1_366 = arith.constant 1 : index
    %c0_367 = arith.constant 0 : index
    %c0_368 = arith.constant 0 : index
    %741 = vector.load %arg31[%c1_366, %c0_367, %c0_368] : memref<2x1x32xf32, #tpu.memory_space<vmem>>, vector<1x1x32xf32>
    %742 = vector.shape_cast %741 : vector<1x1x32xf32> to vector<1x32xf32>
    %743 = vector.broadcast %742 : vector<1x32xf32> to vector<32x32xf32>
    %744 = arith.addf %740, %743 : vector<32x32xf32>
    %745 = vector.shape_cast %744 : vector<32x32xf32> to vector<4x8x32xf32>
    %746 = arith.addf %618, %745 : vector<4x8x32xf32>
    %c1_369 = arith.constant 1 : index
    %c0_370 = arith.constant 0 : index
    %c0_371 = arith.constant 0 : index
    %747 = vector.load %arg32[%c1_369, %c0_370, %c0_371] : memref<2x1x32xf32, #tpu.memory_space<vmem>>, vector<1x1x32xf32>
    %748 = vector.shape_cast %747 : vector<1x1x32xf32> to vector<1x32xf32>
    %c1_372 = arith.constant 1 : index
    %c0_373 = arith.constant 0 : index
    %c0_374 = arith.constant 0 : index
    %749 = vector.load %arg33[%c1_372, %c0_373, %c0_374] : memref<2x1x32xf32, #tpu.memory_space<vmem>>, vector<1x1x32xf32>
    %750 = vector.shape_cast %749 : vector<1x1x32xf32> to vector<1x32xf32>
    %cst_375 = arith.constant dense<0.000000e+00> : vector<4x8xf32>
    %751 = vector.multi_reduction <add>, %746, %cst_375 [2] : vector<4x8x32xf32> to vector<4x8xf32>
    %752 = vector.shape_cast %751 : vector<4x8xf32> to vector<4x8x1xf32>
    %cst_376 = arith.constant 3.200000e+01 : f32
    %753 = vector.broadcast %cst_376 : f32 to vector<4x8x1xf32>
    %754 = arith.divf %752, %753 : vector<4x8x1xf32>
    %755 = vector.broadcast %754 : vector<4x8x1xf32> to vector<4x8x32xf32>
    %756 = arith.subf %746, %755 : vector<4x8x32xf32>
    %757 = arith.mulf %756, %756 : vector<4x8x32xf32>
    %cst_377 = arith.constant dense<0.000000e+00> : vector<4x8xf32>
    %758 = vector.multi_reduction <add>, %757, %cst_377 [2] : vector<4x8x32xf32> to vector<4x8xf32>
    %759 = vector.shape_cast %758 : vector<4x8xf32> to vector<4x8x1xf32>
    %cst_378 = arith.constant 3.200000e+01 : f32
    %760 = vector.broadcast %cst_378 : f32 to vector<4x8x1xf32>
    %761 = arith.divf %759, %760 : vector<4x8x1xf32>
    %762 = vector.broadcast %754 : vector<4x8x1xf32> to vector<4x8x32xf32>
    %763 = arith.subf %746, %762 : vector<4x8x32xf32>
    %cst_379 = arith.constant 9.99999996E-13 : f32
    %764 = vector.broadcast %cst_379 : f32 to vector<4x8x1xf32>
    %765 = arith.addf %761, %764 : vector<4x8x1xf32>
    %766 = math.rsqrt %765 : vector<4x8x1xf32>
    %767 = vector.broadcast %766 : vector<4x8x1xf32> to vector<4x8x32xf32>
    %768 = arith.mulf %763, %767 : vector<4x8x32xf32>
    %769 = vector.shape_cast %748 : vector<1x32xf32> to vector<1x1x32xf32>
    %770 = vector.broadcast %769 : vector<1x1x32xf32> to vector<4x8x32xf32>
    %771 = arith.mulf %768, %770 : vector<4x8x32xf32>
    %772 = vector.shape_cast %750 : vector<1x32xf32> to vector<1x1x32xf32>
    %773 = vector.broadcast %772 : vector<1x1x32xf32> to vector<4x8x32xf32>
    %774 = arith.addf %771, %773 : vector<4x8x32xf32>
    %775 = vector.shape_cast %774 : vector<4x8x32xf32> to vector<32x32xf32>
    %c1_380 = arith.constant 1 : index
    %c0_381 = arith.constant 0 : index
    %c0_382 = arith.constant 0 : index
    %776 = vector.load %arg34[%c1_380, %c0_381, %c0_382] : memref<2x32x128xf32, #tpu.memory_space<vmem>>, vector<1x32x128xf32>
    %777 = vector.shape_cast %776 : vector<1x32x128xf32> to vector<32x128xf32>
    %cst_383 = arith.constant dense<0.000000e+00> : vector<32x128xf32>
    %778 = tpu.matmul %775, %777, %cst_383 {dimension_numbers = #tpu.dot_dimension_numbers<[1], [0], [0], [1], [0, 0, 1, 1], [], []>} : vector<32x32xf32>, vector<32x128xf32>, vector<32x128xf32> -> vector<32x128xf32>
    %c1_384 = arith.constant 1 : index
    %c0_385 = arith.constant 0 : index
    %c0_386 = arith.constant 0 : index
    %779 = vector.load %arg35[%c1_384, %c0_385, %c0_386] : memref<2x1x128xf32, #tpu.memory_space<vmem>>, vector<1x1x128xf32>
    %780 = vector.shape_cast %779 : vector<1x1x128xf32> to vector<1x128xf32>
    %781 = vector.broadcast %780 : vector<1x128xf32> to vector<32x128xf32>
    %782 = arith.addf %778, %781 : vector<32x128xf32>
    %783 = arith.mulf %782, %782 : vector<32x128xf32>
    %784 = arith.mulf %782, %783 : vector<32x128xf32>
    %cst_387 = arith.constant 4.471500e-02 : f32
    %785 = vector.broadcast %cst_387 : f32 to vector<32x128xf32>
    %786 = arith.mulf %785, %784 : vector<32x128xf32>
    %787 = arith.addf %782, %786 : vector<32x128xf32>
    %cst_388 = arith.constant 0.797884583 : f32
    %788 = vector.broadcast %cst_388 : f32 to vector<32x128xf32>
    %789 = arith.mulf %788, %787 : vector<32x128xf32>
    %790 = math.tanh %789 : vector<32x128xf32>
    %cst_389 = arith.constant 1.000000e+00 : f32
    %791 = vector.broadcast %cst_389 : f32 to vector<32x128xf32>
    %792 = arith.addf %791, %790 : vector<32x128xf32>
    %cst_390 = arith.constant 5.000000e-01 : f32
    %793 = vector.broadcast %cst_390 : f32 to vector<32x128xf32>
    %794 = arith.mulf %793, %792 : vector<32x128xf32>
    %795 = arith.mulf %782, %794 : vector<32x128xf32>
    %c1_391 = arith.constant 1 : index
    %c0_392 = arith.constant 0 : index
    %c0_393 = arith.constant 0 : index
    %796 = vector.load %arg36[%c1_391, %c0_392, %c0_393] : memref<2x128x32xf32, #tpu.memory_space<vmem>>, vector<1x128x32xf32>
    %797 = vector.shape_cast %796 : vector<1x128x32xf32> to vector<128x32xf32>
    %cst_394 = arith.constant dense<0.000000e+00> : vector<32x32xf32>
    %798 = tpu.matmul %795, %797, %cst_394 {dimension_numbers = #tpu.dot_dimension_numbers<[1], [0], [0], [1], [0, 0, 1, 1], [], []>} : vector<32x128xf32>, vector<128x32xf32>, vector<32x32xf32> -> vector<32x32xf32>
    %c1_395 = arith.constant 1 : index
    %c0_396 = arith.constant 0 : index
    %c0_397 = arith.constant 0 : index
    %799 = vector.load %arg37[%c1_395, %c0_396, %c0_397] : memref<2x1x32xf32, #tpu.memory_space<vmem>>, vector<1x1x32xf32>
    %800 = vector.shape_cast %799 : vector<1x1x32xf32> to vector<1x32xf32>
    %801 = vector.broadcast %800 : vector<1x32xf32> to vector<32x32xf32>
    %802 = arith.addf %798, %801 : vector<32x32xf32>
    %803 = vector.shape_cast %802 : vector<32x32xf32> to vector<4x8x32xf32>
    %804 = arith.addf %746, %803 : vector<4x8x32xf32>
    %c0_398 = arith.constant 0 : index
    %c0_399 = arith.constant 0 : index
    %805 = vector.load %arg38[%c0_398, %c0_399] : memref<1x32xf32, #tpu.memory_space<vmem>>, vector<1x32xf32>
    %c0_400 = arith.constant 0 : index
    %c0_401 = arith.constant 0 : index
    %806 = vector.load %arg39[%c0_400, %c0_401] : memref<1x32xf32, #tpu.memory_space<vmem>>, vector<1x32xf32>
    %cst_402 = arith.constant dense<0.000000e+00> : vector<4x8xf32>
    %807 = vector.multi_reduction <add>, %804, %cst_402 [2] : vector<4x8x32xf32> to vector<4x8xf32>
    %808 = vector.shape_cast %807 : vector<4x8xf32> to vector<4x8x1xf32>
    %cst_403 = arith.constant 3.200000e+01 : f32
    %809 = vector.broadcast %cst_403 : f32 to vector<4x8x1xf32>
    %810 = arith.divf %808, %809 : vector<4x8x1xf32>
    %811 = vector.broadcast %810 : vector<4x8x1xf32> to vector<4x8x32xf32>
    %812 = arith.subf %804, %811 : vector<4x8x32xf32>
    %813 = arith.mulf %812, %812 : vector<4x8x32xf32>
    %cst_404 = arith.constant dense<0.000000e+00> : vector<4x8xf32>
    %814 = vector.multi_reduction <add>, %813, %cst_404 [2] : vector<4x8x32xf32> to vector<4x8xf32>
    %815 = vector.shape_cast %814 : vector<4x8xf32> to vector<4x8x1xf32>
    %cst_405 = arith.constant 3.200000e+01 : f32
    %816 = vector.broadcast %cst_405 : f32 to vector<4x8x1xf32>
    %817 = arith.divf %815, %816 : vector<4x8x1xf32>
    %818 = vector.broadcast %810 : vector<4x8x1xf32> to vector<4x8x32xf32>
    %819 = arith.subf %804, %818 : vector<4x8x32xf32>
    %cst_406 = arith.constant 9.99999996E-13 : f32
    %820 = vector.broadcast %cst_406 : f32 to vector<4x8x1xf32>
    %821 = arith.addf %817, %820 : vector<4x8x1xf32>
    %822 = math.rsqrt %821 : vector<4x8x1xf32>
    %823 = vector.broadcast %822 : vector<4x8x1xf32> to vector<4x8x32xf32>
    %824 = arith.mulf %819, %823 : vector<4x8x32xf32>
    %825 = vector.shape_cast %805 : vector<1x32xf32> to vector<1x1x32xf32>
    %826 = vector.broadcast %825 : vector<1x1x32xf32> to vector<4x8x32xf32>
    %827 = arith.mulf %824, %826 : vector<4x8x32xf32>
    %828 = vector.shape_cast %806 : vector<1x32xf32> to vector<1x1x32xf32>
    %829 = vector.broadcast %828 : vector<1x1x32xf32> to vector<4x8x32xf32>
    %830 = arith.addf %827, %829 : vector<4x8x32xf32>
    %c0_407 = arith.constant 0 : index
    %c0_408 = arith.constant 0 : index
    %c0_409 = arith.constant 0 : index
    %831 = vector.load %arg46[%c0_407, %c0_408, %c0_409] : memref<4x8x32xf32, #tpu.memory_space<vmem>>, vector<4x8x32xf32>
    tpu.vector_store %arg46[%c0_407, %c0_408, %c0_409], %830 {strides = array<i32>} : memref<4x8x32xf32, #tpu.memory_space<vmem>>, vector<4x8x32xf32>,
    %c0_410 = arith.constant 0 : index
    %c0_411 = arith.constant 0 : index
    %c0_412 = arith.constant 0 : index
    %832 = vector.load %arg46[%c0_410, %c0_411, %c0_412] : memref<4x8x32xf32, #tpu.memory_space<vmem>>, vector<1x1x32xf32>
    %833 = vector.shape_cast %832 : vector<1x1x32xf32> to vector<1x32xf32>
    %c0_413 = arith.constant 0 : index
    %c0_414 = arith.constant 0 : index
    %834 = vector.load %arg47[%c0_413, %c0_414] : memref<4x32xf32, #tpu.memory_space<vmem>>, vector<1x32xf32>
    tpu.vector_store %arg47[%c0_413, %c0_414], %833 {strides = array<i32>} : memref<4x32xf32, #tpu.memory_space<vmem>>, vector<1x32xf32>,
    %c1_415 = arith.constant 1 : index
    %c0_416 = arith.constant 0 : index
    %c0_417 = arith.constant 0 : index
    %835 = vector.load %arg46[%c1_415, %c0_416, %c0_417] : memref<4x8x32xf32, #tpu.memory_space<vmem>>, vector<1x1x32xf32>
    %836 = vector.shape_cast %835 : vector<1x1x32xf32> to vector<1x32xf32>
    %c1_418 = arith.constant 1 : index
    %c0_419 = arith.constant 0 : index
    %837 = vector.load %arg47[%c1_418, %c0_419] : memref<4x32xf32, #tpu.memory_space<vmem>>, vector<1x32xf32>
    tpu.vector_store %arg47[%c1_418, %c0_419], %836 {strides = array<i32>} : memref<4x32xf32, #tpu.memory_space<vmem>>, vector<1x32xf32>,
    %c2 = arith.constant 2 : index
    %c0_420 = arith.constant 0 : index
    %c0_421 = arith.constant 0 : index
    %838 = vector.load %arg46[%c2, %c0_420, %c0_421] : memref<4x8x32xf32, #tpu.memory_space<vmem>>, vector<1x1x32xf32>
    %839 = vector.shape_cast %838 : vector<1x1x32xf32> to vector<1x32xf32>
    %c2_422 = arith.constant 2 : index
    %c0_423 = arith.constant 0 : index
    %840 = vector.load %arg47[%c2_422, %c0_423] : memref<4x32xf32, #tpu.memory_space<vmem>>, vector<1x32xf32>
    tpu.vector_store %arg47[%c2_422, %c0_423], %839 {strides = array<i32>} : memref<4x32xf32, #tpu.memory_space<vmem>>, vector<1x32xf32>,
    %c3 = arith.constant 3 : index
    %c0_424 = arith.constant 0 : index
    %c0_425 = arith.constant 0 : index
    %841 = vector.load %arg46[%c3, %c0_424, %c0_425] : memref<4x8x32xf32, #tpu.memory_space<vmem>>, vector<1x1x32xf32>
    %842 = vector.shape_cast %841 : vector<1x1x32xf32> to vector<1x32xf32>
    %c3_426 = arith.constant 3 : index
    %c0_427 = arith.constant 0 : index
    %843 = vector.load %arg47[%c3_426, %c0_427] : memref<4x32xf32, #tpu.memory_space<vmem>>, vector<1x32xf32>
    tpu.vector_store %arg47[%c3_426, %c0_427], %842 {strides = array<i32>} : memref<4x32xf32, #tpu.memory_space<vmem>>, vector<1x32xf32>,
    %c0_428 = arith.constant 0 : index
    %c0_429 = arith.constant 0 : index
    %844 = vector.load %arg47[%c0_428, %c0_429] : memref<4x32xf32, #tpu.memory_space<vmem>>, vector<4x32xf32>
    %c0_430 = arith.constant 0 : index
    %c0_431 = arith.constant 0 : index
    %845 = vector.load %arg40[%c0_430, %c0_431] : memref<32x16xf32, #tpu.memory_space<vmem>>, vector<32x16xf32>
    %cst_432 = arith.constant dense<0.000000e+00> : vector<4x16xf32>
    %846 = tpu.matmul %844, %845, %cst_432 {dimension_numbers = #tpu.dot_dimension_numbers<[1], [0], [0], [1], [0, 0, 1, 1], [], []>} : vector<4x32xf32>, vector<32x16xf32>, vector<4x16xf32> -> vector<4x16xf32>
    %c0_433 = arith.constant 0 : index
    %c0_434 = arith.constant 0 : index
    %847 = vector.load %arg41[%c0_433, %c0_434] : memref<1x16xf32, #tpu.memory_space<vmem>>, vector<1x16xf32>
    %848 = vector.broadcast %847 : vector<1x16xf32> to vector<4x16xf32>
    %849 = arith.addf %846, %848 : vector<4x16xf32>
    %850 = arith.mulf %400, %400 : vector<1x16xf32>
    %cst_435 = arith.constant dense<0.000000e+00> : vector<1xf32>
    %851 = vector.multi_reduction <add>, %850, %cst_435 [1] : vector<1x16xf32> to vector<1xf32>
    %852 = vector.shape_cast %851 : vector<1xf32> to vector<1x1xf32>
    %cst_436 = arith.constant 9.99999996E-13 : f32
    %853 = vector.broadcast %cst_436 : f32 to vector<1x1xf32>
    %854 = arith.addf %852, %853 : vector<1x1xf32>
    %855 = math.rsqrt %854 : vector<1x1xf32>
    %856 = vector.broadcast %855 : vector<1x1xf32> to vector<1x16xf32>
    %857 = arith.mulf %400, %856 : vector<1x16xf32>
    %858 = arith.mulf %849, %849 : vector<4x16xf32>
    %cst_437 = arith.constant dense<0.000000e+00> : vector<4xf32>
    %859 = vector.multi_reduction <add>, %858, %cst_437 [1] : vector<4x16xf32> to vector<4xf32>
    %860 = vector.shape_cast %859 : vector<4xf32> to vector<4x1xf32>
    %cst_438 = arith.constant 9.99999996E-13 : f32
    %861 = vector.broadcast %cst_438 : f32 to vector<4x1xf32>
    %862 = arith.addf %860, %861 : vector<4x1xf32>
    %863 = math.rsqrt %862 : vector<4x1xf32>
    %864 = vector.broadcast %863 : vector<4x1xf32> to vector<4x16xf32>
    %865 = arith.mulf %849, %864 : vector<4x16xf32>
    %cst_439 = arith.constant dense<0.000000e+00> : vector<1x4xf32>
    %866 = tpu.matmul %857, %865, %cst_439 {dimension_numbers = #tpu.dot_dimension_numbers<[1], [1], [0], [0], [0, 0, 1, 0], [], []>} : vector<1x16xf32>, vector<4x16xf32>, vector<1x4xf32> -> vector<1x4xf32>
    %c0_440 = arith.constant 0 : index
    %867 = memref.load %arg42[%c0_440] : memref<1xf32, #tpu.memory_space<smem>>
    %868 = vector.broadcast %867 : f32 to vector<1x4xf32>
    %869 = arith.mulf %866, %868 : vector<1x4xf32>
    %cst_441 = arith.constant dense<0xFF800000> : vector<1xf32>
    %870 = vector.multi_reduction <maximumf>, %869, %cst_441 [1] : vector<1x4xf32> to vector<1xf32>
    %871 = vector.shape_cast %870 : vector<1xf32> to vector<1x1xf32>
    %872 = vector.broadcast %871 : vector<1x1xf32> to vector<1x4xf32>
    %873 = arith.subf %869, %872 : vector<1x4xf32>
    %874 = math.exp %873 : vector<1x4xf32>
    %cst_442 = arith.constant dense<0.000000e+00> : vector<1xf32>
    %875 = vector.multi_reduction <add>, %874, %cst_442 [1] : vector<1x4xf32> to vector<1xf32>
    %876 = vector.shape_cast %875 : vector<1xf32> to vector<1x1xf32>
    %877 = vector.broadcast %876 : vector<1x1xf32> to vector<1x4xf32>
    %878 = arith.divf %874, %877 : vector<1x4xf32>
    %c0_443 = arith.constant 0 : index
    %c0_444 = arith.constant 0 : index
    %879 = vector.load %arg43[%c0_443, %c0_444] : memref<1x4xf32, #tpu.memory_space<vmem>>, vector<1x4xf32>
    tpu.vector_store %arg43[%c0_443, %c0_444], %878 {strides = array<i32>} : memref<1x4xf32, #tpu.memory_space<vmem>>, vector<1x4xf32>,
    return
  }
}

</mosaic_0001>

<bundles_post_ra>
// kernel: flava_clip_forward.1
= control target key start
LH: loop header
LB: loop body
LE: loop exit
PB: predicated region body
PF: predicated region fallthrough
CT: control target
= control target key end

     0   :  { %s5611_s6 = smov 1   ;;  %s5612_s10 = smov 2   ;;  %s7118_s0 = inlined_call_operand.smem [shape: u32[44], index: -1, kind: input, shape index: {}] }
   0x1   :  { %s5678_s5 = sld [smem:[%s7118_s0]]   ;;  %s5613_s14 = smov 3  }
   0x2   :  { %s5683_s9 = sld [smem:[%s7118_s0 + %s5611_s6]]   ;;  %s5614_s18 = smov 4  }
   0x3   :  { %s5688_s13 = sld [smem:[%s7118_s0 + %s5612_s10]]   ;;  %s5615_s22 = smov 5  }
   0x4   :  { %s5693_s17 = sld [smem:[%s7118_s0 + %s5613_s14]]   ;;  %s5616_s26 = smov 6  }
   0x5   :  { %s5698_s21 = sld [smem:[%s7118_s0 + %s5614_s18]]   ;;  %s5617_s30 = smov 7  }
   0x6   :  { %s5703_s25 = sld [smem:[%s7118_s0 + %s5615_s22]]   ;;  %s5618_s4 = smov 8  }
   0x7   :  { %s5708_s29 = sld [smem:[%s7118_s0 + %s5616_s26]]   ;;  %s5619_s10 = smov 9  }
   0x8   :  { %s5713_s3 = sld [smem:[%s7118_s0 + %s5617_s30]]   ;;  %s5620_s15 = smov 10  }
   0x9   :  { %s5718_s8 = sld [smem:[%s7118_s0 + %s5618_s4]]   ;;  %s5621_s20 = smov 11  }
   0xa   :  { %s5723_s14 = sld [smem:[%s7118_s0 + %s5619_s10]]   ;;  %s5622_s26 = smov 12  }
   0xb   :  { %s5728_s19 = sld [smem:[%s7118_s0 + %s5620_s15]]   ;;  %s5623_s1 = smov 13  }
   0xc   :  { %s5733_s24 = sld [smem:[%s7118_s0 + %s5621_s20]]   ;;  %s5624_s7 = smov 14  }
   0xd   :  { %s5738_s30 = sld [smem:[%s7118_s0 + %s5622_s26]]   ;;  %s5625_s15 = smov 15  }
   0xe   :  { %s5743_s6 = sld [smem:[%s7118_s0 + %s5623_s1]]   ;;  %s5626_s22 = smov 16  }
   0xf   :  { %s5748_s12 = sld [smem:[%s7118_s0 + %s5624_s7]]   ;;  %s5627_s28 = smov 17  }
  0x10   :  { %s5753_s20 = sld [smem:[%s7118_s0 + %s5625_s15]]   ;;  %s5628_s7 = smov 18  }
  0x11   :  { %s5758_s27 = sld [smem:[%s7118_s0 + %s5626_s22]]   ;;  %s5629_s15 = smov 19  }
  0x12   :  { %s5763_s4 = sld [smem:[%s7118_s0 + %s5627_s28]]   ;;  %s5630_s22 = smov 20  }
  0x13   :  { %7137 = sst [smem:[#allocation10_spill]] %s5738_s30  ;;  %s5631_s28 = smov 21  }
  0x14   :  { %s5773_s30 = sld [smem:[%s7118_s0 + %s5629_s15]]   ;;  %s5633_s15 = smov 23  }
  0x15   :  { %7138 = sst [smem:[#allocation11_spill]] %s5748_s12 }
  0x16   :  { %s5768_s12 = sld [smem:[%s7118_s0 + %s5628_s7]]   ;;  %s5632_s7 = smov 22  }
  0x17   :  { %7139 = sst [smem:[#allocation12_spill]] %s5758_s27 }
  0x18   :  { %7140 = sst [smem:[#allocation13_spill]] %s5763_s4 }
  0x19   :  { %s5778_s27 = sld [smem:[%s7118_s0 + %s5630_s22]]   ;;  %s5634_s22 = smov 24  }
  0x1a   :  { %7142 = sst [smem:[#allocation15_spill]] %s5773_s30 }
  0x1b   :  { %s5783_s4 = sld [smem:[%s7118_s0 + %s5631_s28]]   ;;  %s5635_s28 = smov 25  }
  0x1c   :  { %7141 = sst [smem:[#allocation14_spill]] %s5768_s12 }
  0x1d   :  { %s5788_s12 = sld [smem:[%s7118_s0 + %s5632_s7]]   ;;  %s5636_s7 = smov 26  }
  0x1e   :  { %s5793_s30 = sld [smem:[%s7118_s0 + %s5633_s15]]   ;;  %s5637_s15 = smov 27  }
  0x1f   :  { %7143 = sst [smem:[#allocation16_spill]] %s5778_s27 }
  0x20   :  { %s5798_s27 = sld [smem:[%s7118_s0 + %s5634_s22]]   ;;  %s5638_s22 = smov 28  }
  0x21   :  { %7144 = sst [smem:[#allocation17_spill]] %s5783_s4 }
  0x22   :  { %s5803_s4 = sld [smem:[%s7118_s0 + %s5635_s28]]   ;;  %s5639_s28 = smov 29  }
  0x23   :  { %7145 = sst [smem:[#allocation18_spill]] %s5788_s12 }
  0x24   :  { %7146 = sst [smem:[#allocation19_spill]] %s5793_s30 }
  0x25   :  { %s5808_s12 = sld [smem:[%s7118_s0 + %s5636_s7]]   ;;  %s5640_s7 = smov 30  }
  0x26   :  { %7147 = sst [smem:[#allocation20_spill]] %s5798_s27 }
  0x27   :  { %s5813_s30 = sld [smem:[%s7118_s0 + %s5637_s15]]   ;;  %s5641_s15 = smov 31  }
  0x28   :  { %7148 = sst [smem:[#allocation21_spill]] %s5803_s4 }
  0x29   :  { %s5818_s27 = sld [smem:[%s7118_s0 + %s5638_s22]]   ;;  %s5642_s22 = smov 32  }
  0x2a   :  { %s5823_s4 = sld [smem:[%s7118_s0 + %s5639_s28]]   ;;  %s5643_s28 = smov 33  }
  0x2b   :  { %7149 = sst [smem:[#allocation22_spill]] %s5808_s12 }
  0x2c   :  { %s5828_s12 = sld [smem:[%s7118_s0 + %s5640_s7]]   ;;  %s5644_s7 = smov 34  }
  0x2d   :  { %7150 = sst [smem:[#allocation23_spill]] %s5813_s30 }
  0x2e   :  { %s5833_s30 = sld [smem:[%s7118_s0 + %s5641_s15]]   ;;  %s5645_s15 = smov 35  }
  0x2f   :  { %7151 = sst [smem:[#allocation24_spill]] %s5818_s27 }
  0x30   :  { %7152 = sst [smem:[#allocation25_spill]] %s5823_s4 }
  0x31   :  { %s5838_s27 = sld [smem:[%s7118_s0 + %s5642_s22]]   ;;  %s5646_s22 = smov 36  }
  0x32   :  { %7153 = sst [smem:[#allocation26_spill]] %s5828_s12 }
  0x33   :  { %s5843_s4 = sld [smem:[%s7118_s0 + %s5643_s28]]   ;;  %s5647_s28 = smov 37  }
  0x34   :  { %7154 = sst [smem:[#allocation27_spill]] %s5833_s30 }
  0x35   :  { %s5848_s12 = sld [smem:[%s7118_s0 + %s5644_s7]]   ;;  %s5648_s7 = smov 38  }
  0x36   :  { %s5853_s30 = sld [smem:[%s7118_s0 + %s5645_s15]]   ;;  %s5649_s15 = smov 39  }
  0x37   :  { %7155 = sst [smem:[#allocation28_spill]] %s5838_s27 }
  0x38   :  { %s5858_s27 = sld [smem:[%s7118_s0 + %s5646_s22]]   ;;  %s5650_s22 = smov 40  }
  0x39   :  { %7156 = sst [smem:[#allocation29_spill]] %s5843_s4 }
  0x3a   :  { %s5863_s4 = sld [smem:[%s7118_s0 + %s5647_s28]]   ;;  %s5651_s28 = smov 41  }
  0x3b   :  { %7157 = sst [smem:[#allocation30_spill]] %s5848_s12 }
  0x3c   :  { %7158 = sst [smem:[#allocation31_spill]] %s5853_s30 }
  0x3d   :  { %s5868_s12 = sld [smem:[%s7118_s0 + %s5648_s7]]   ;;  %s5652_s7 = smov 42  }
  0x3e   :  { %7159 = sst [smem:[#allocation32_spill]] %s5858_s27 }
  0x3f   :  { %s5873_s30 = sld [smem:[%s7118_s0 + %s5649_s15]]   ;;  %s5653_s15 = smov 43  }
  0x40   :  { %7160 = sst [smem:[#allocation33_spill]] %s5863_s4 }
  0x41   :  { %s5878_s27 = sld [smem:[%s7118_s0 + %s5650_s22]]  }
  0x42   :  { %s5883_s4 = sld [smem:[%s7118_s0 + %s5651_s28]]  }
  0x43   :  { %7161 = sst [smem:[#allocation34_spill]] %s5868_s12 }
  0x44   :  { %s5888_s12 = sld [smem:[%s7118_s0 + %s5652_s7]]  }
  0x45   :  { %7162 = sst [smem:[#allocation35_spill]] %s5873_s30 }
  0x46   :  { %s5893_s30 = sld [smem:[%s7118_s0 + %s5653_s15]]  }
  0x47   :  { %v196_v0 = vld [vmem:[%s5683_s9 + $0x78] sm:$0xff]  ;;  %v195_v1 = vld [vmem:[%s5683_s9 + $0x70] sm:$0xff]  ;;  %v194_v2 = vld [vmem:[%s5683_s9 + $0x68] sm:$0xff]  ;;  %vm214_vm0 = vcmask 523264  }
  0x48   :  { %217 = vmatpush.msra.mxu0 %v196_v0  ;;  %v204_v3 = vld [vmem:[%s5683_s9 + $0xb8] sm:$0xff]  ;;  %v193_v4 = vld [vmem:[%s5683_s9 + $0x60] sm:$0xff]  ;;  %v203_v5 = vld [vmem:[%s5683_s9 + $0xb0] sm:$0xff] }
  0x49   :  { %245 = vmatpush.msra.mxu1 %v204_v3  ;;  %v202_v6 = vld [vmem:[%s5683_s9 + $0xa8] sm:$0xff]  ;;  %v192_v7 = vld [vmem:[%s5683_s9 + $0x58] sm:$0xff]  ;;  %v191_v8 = vld [vmem:[%s5683_s9 + $0x50] sm:$0xff] }
  0x4a   :  { %218 = vmatpush.msra.mxu0 %v195_v1  ;;  %v201_v9 = vld [vmem:[%s5683_s9 + $0xa0] sm:$0xff]  ;;  %v190_v11 = vld [vmem:[%s5683_s9 + $0x48] sm:$0xff]  ;;  %v200_v12 = vld [vmem:[%s5683_s9 + $0x98] sm:$0xff] }
  0x4b   :  { %246 = vmatpush.msra.mxu1 %v203_v5  ;;  %v180_v10 = vld [vmem:[%s5678_s5] sm:$0xff]  ;;  %v199_v13 = vld [vmem:[%s5683_s9 + $0x90] sm:$0xff]  ;;  %v198_v15 = vld [vmem:[%s5683_s9 + $0x88] sm:$0xff] }
  0x4c   :  { %219 = vmatpush.msra.mxu0 %v194_v2  ;;  %210 = vst [vmem:[#allocation1] ss:$2 sm:$0xff] %v180_v10  ;;  %v189_v14 = vld [vmem:[%s5683_s9 + $0x40] sm:$0xff]  ;;  %v188_v16 = vld [vmem:[%s5683_s9 + $0x38] sm:$0xff]  ;;  %v187_v17 = vld [vmem:[%s5683_s9 + $0x30] sm:$0xff] }
  0x4d   :  { %247 = vmatpush.msra.mxu1 %v202_v6  ;;  %v197_v18 = vld [vmem:[%s5683_s9 + $0x80] sm:$0xff]  ;;  %v186_v20 = vld [vmem:[%s5683_s9 + $0x28] sm:$0xff]  ;;  %v184_v22 = vld [vmem:[%s5683_s9 + $0x18] sm:$0xff] }
  0x4e   :  { %220 = vmatpush.msra.mxu0 %v193_v4  ;;  %v185_v21 = vld [vmem:[%s5683_s9 + $0x20] sm:$0xff]  ;;  %v183_v23 = vld [vmem:[%s5683_s9 + $0x10] sm:$0xff] }
  0x4f   :  { %248 = vmatpush.msra.mxu1 %v201_v9 }
  0x50   :  { %221 = vmatpush.msra.mxu0 %v192_v7 }
  0x51   :  { %249 = vmatpush.msra.mxu1 %v200_v12 }
  0x52   :  { %222 = vmatpush.msra.mxu0 %v191_v8 }
  0x53   :  { %250 = vmatpush.msra.mxu1 %v199_v13  ;;  %v212_v19 = vld.sshfl [vmem:[#allocation1 + $0x8] sm:$0xff pattern:$0x75316420] }
  0x54   :  { %223 = vmatpush.msra.mxu0 %v190_v11 }
  0x55   :  { %251 = vmatpush.msra.mxu1 %v198_v15 }
  0x56   :  { %224 = vmatpush.msra.mxu0 %v189_v14 }
  0x57   :  { %252 = vmatpush.msra.mxu1 %v197_v18 }
  0x58   :  { %225 = vmatpush.msra.mxu0 %v188_v16  ;;  %4950 = vmatmul.msk.f32.vlgmr.msra.gmra.mxu1 %vm214_vm0, %v212_v19 }
  0x5a   :  { %226 = vmatpush.msra.mxu0 %v187_v17 }
  0x5c   :  { %227 = vmatpush.msra.mxu0 %v186_v20 }
  0x5e   :  { %228 = vmatpush.msra.mxu0 %v185_v21 }
  0x5f   :  { %93 = vsyncpa [#allocation8], 0  ;;  %v182_v24 = vld [vmem:[%s5683_s9 + $0x8] sm:$0xff]  ;;  %v181_v25 = vld [vmem:[%s5683_s9] sm:$0xff]  ;;  %vm258_vm1 = vcmask 253952   ;;  %vm260_vm2 = vcmask 257024  }
  0x60   :  { %229 = vmatpush.msra.mxu0 %v184_v22  ;;  %v211_v26 = vld.sshfl [vmem:[#allocation1] sm:$0xff pattern:$0x75316420]  ;;  %vm267_vm3 = vcmask 258048   ;;  %v5654_v37 = vmov 32.0   ;;  %v308_v49 = vld [vmem:[%s5713_s3 + $0x18] sm:$0xff] }
  0x61   :  { %v257_v27 = vld [vmem:[%s5693_s17] sm:$0x1]  ;;  %5333 = vrcp.f32 %v5654_v37  ;;  %v307_v50 = vld [vmem:[%s5713_s3 + $0x10] sm:$0xff]  ;;  %329 = vmatpush.msra.mxu2 %v308_v49  ;;  %v306_v51 = vld [vmem:[%s5713_s3 + $0x8] sm:$0xff]  ;;  %vm313_vm8 = vcmask 261120   ;;  %s5655_s0 = smov 64  }
  0x62   :  { %230 = vmatpush.msra.mxu0 %v183_v23  ;;  %259 = vst.msk [vmem:[#allocation2] sm:$0x1] %vm258_vm1, %v257_v27  ;;  %v5289_v28 = vld [vmem:[%s5688_s13] ss:$0 sm:$0xff]  ;;  %s5656_s5 = smov 120   ;;  %s5657_s9 = smov 96  }
  0x63   :  { %v263_v33 = vld [vmem:[%s5698_s21] sm:$0x1f]  ;;  %330 = vmatpush.msra.mxu2 %v307_v50  ;;  %s5658_s13 = smov 80   ;;  %s5659_s17 = smov 88   ;;  %vm340_vm9 = vcmask 64512   ;;  %vm384_vm10 = vcmask 1044480  }
  0x64   :  { %231 = vmatpush.msra.mxu0 %v182_v24  ;;  %v305_v52 = vld [vmem:[%s5713_s3] sm:$0xff]  ;;  %vm366_vm11 = vcmask 36864   ;;  %s5660_s21 = smov 56   ;;  %s5661_s22 = smov 112   ;;  %vm380_vm12 = vcmask 39936   ;;  %vm407_vm13 = vcmask 61440  }
  0x65   :  { %331 = vmatpush.msra.mxu2 %v306_v51  ;;  %v5290_v62 = vld [vmem:[%s5703_s25] ss:$0 sm:$0xff]  ;;  %s5662_s23 = smov 72   ;;  %s5663_s26 = smov 104   ;;  %vm480_vm14 = vcmask 127040   ;;  %vm553_vm15 = vcmask 192640  }
  0x66   :  { %232 = vmatpush.msra.mxu0 %v181_v25  ;;  %v5291_v1 = vld [vmem:[%s5708_s29] ss:$0 sm:$0xff]  ;;  %s5664_s28 = smov 8   ;;  %s5665_s1 = smov 48   ;;  %vm626_vm0 = vcmask 258240  }
  0x67   :  { %233 = vmatmul.f32.vlgmr.msra.gmra.mxu0 %v211_v26  ;;  %v5334_v38 = vpop.eup %5333  ;;  %332 = vmatpush.msra.mxu2 %v305_v52  ;;  %v5292_v4 = vld [vmem:[%s5718_s8] ss:$0 sm:$0xff]  ;;  %s5666_s2 = smov 40   ;;  %s5667_s7 = smov 16  }
  0x68   :  { %v272_v39 = vmul.f32 32.0, %v5334_v38  ;;  %vm276_vm4 = vweird.f32 %v5334_v38  ;;  %s5668_s10 = smov 24   ;;  %s7163_s11 = sld [smem:[#allocation10_spill]] }
  0x69   :  { %s7164_s15 = sld [smem:[#allocation11_spill]] }
  0x6a   :  { %v273_v40 = vsub.f32 1.0, %v272_v39  ;;  %s7165_s16 = sld [smem:[#allocation12_spill]] }
  0x6b   :  { %s7175_s18 = sld [smem:[#allocation13_spill]] }
  0x6c   :  { %v274_v41 = vmul.f32 %v5334_v38, %v273_v40 }
  0x6e   :  { %v275_v42 = vadd.f32 %v5334_v38, %v274_v41 }
  0x70   :  { %v5928_v43 = vsel %vm276_vm4, %v5334_v38, %v275_v42 }
  0xd5   :  { %v254_v30 = vpop.f32.mrf.mxu1 }
  0xe4   :  { %v234_v29 = vpop.f32.mrf.mxu0 }
  0xe5   :  { %v235_v31 = vadd.f32 %v5289_v28, %v234_v29 }
  0xe7   :  { %v255_v32 = vadd.f32 %v254_v30, %v235_v31 }
  0xe9   :  { %261 = vst.msk [vmem:[#allocation2 + $0x1] sm:$0xf] %vm260_vm2, %v255_v32 }
  0xf0   :  { %v262_v34 = vld [vmem:[#allocation2] sm:$0x1f] }
  0xf1   :  { %v5924_v35 = vadd.f32 %v263_v33, %v262_v34 }
  0xf3   :  { %v268_v36 = vsel %vm267_vm3, %v5924_v35, 0.0 }
  0xf4   :  { %269 = vadd.xlane.f32.xlu0 %v268_v36 }
 0x167   :  { %v270_v44 = vpop.xlane.xlu0 %269 }
 0x168   :  { %v278_v45 = vmul.f32 %v5928_v43, %v270_v44 }
 0x16a   :  { %v279_v46 = vsub.f32 %v5924_v35, %v278_v45 }
 0x16c   :  { %v280_v47 = vmul.f32 %v279_v46, %v279_v46 }
 0x16e   :  { %v281_v48 = vsel %vm267_vm3, %v280_v47, 0.0 }
 0x16f   :  { %282 = vadd.xlane.f32.xlu0 %v281_v48 }
 0x1e2   :  { %v283_v53 = vpop.xlane.xlu0 %282 }
 0x1e3   :  { %v284_v54 = vmul.f32 %v283_v53, %v5928_v43 }
 0x1e5   :  { %v285_v55 = vadd.f32 1e-12, %v284_v54 }
 0x1e7   :  { %5335 = vrsqrt.f32 %v285_v55  ;;  %vm292_vm6 = vweird.f32 %v285_v55 }
 0x1ed   :  { %v5336_v56 = vpop.eup %5335 }
 0x1ee   :  { %v287_v57 = vmul.f32 %v5336_v56, %v285_v55  ;;  %vm293_vm5 = vweird.f32 %v5336_v56 }
 0x1ef   :  { %vm294_vm7 = vmor %vm292_vm6, %vm293_vm5 }
 0x1f0   :  { %v288_v58 = vmul.f32 %v5336_v56, %v287_v57 }
 0x1f2   :  { %v289_v59 = vmul.f32 0.5, %v288_v58 }
 0x1f4   :  { %v290_v60 = vsub.f32 1.5, %v289_v59 }
 0x1f6   :  { %v291_v61 = vmul.f32 %v5336_v56, %v290_v60 }
 0x1f8   :  { %v295_v63 = vsel %vm294_vm7, %v5336_v56, %v291_v61 }
 0x1f9   :  { %v296_v0 = vmul.f32 %v295_v63, %v279_v46 }
 0x1fb   :  { %v300_v2 = vmul.f32 %v5290_v62, %v296_v0 }
 0x1fd   :  { %v304_v3 = vadd.f32 %v5291_v1, %v300_v2 }
 0x1ff   :  { %4951 = vmatmul.msk.f32.vlgmr.msra.gmra.mxu2 %vm313_vm8, %v304_v3 }
 0x282   :  { %v334_v5 = vpop.f32.mrf.mxu2 }
 0x283   :  { %v5942_v6 = vadd.f32 %v5292_v4, %v334_v5 }
 0x285   :  { %378 = vrot.lane.b32.xlu0 %v5942_v6, %s5655_s0  ;;  %409 = vrot.lane.b32.xlu2 %v5942_v6, %s5656_s5 }
 0x286   :  { %338 = vrot.lane.b32.xlu1 %v5942_v6, %s5657_s9 }
 0x28d   :  { %484 = vrot.lane.b32.xlu0 %v5942_v6, %s5658_s13 }
 0x28e   :  { %411 = vrot.lane.b32.xlu1 %v5942_v6, %s5659_s17 }
 0x2df   :  { %v410_v11 = vpop.permute.xlu2 %409 }
 0x2f7   :  { %v379_v7 = vpop.permute.xlu0 %378 }
 0x2f8   :  { %v339_v8 = vpop.permute.xlu1 %338 }
 0x2f9   :  { %4952 = vmatpush.xpose.msk.msra.mxu3 %vm340_vm9, %v339_v8  ;;  %v630_v8 = vld [vmem:[%s5723_s14 + $0x8] sm:$0xff] }
 0x2fc   :  { %4953 = vmatmul.msk.f32.vlgmr.msra.gmra.mxu3 %vm340_vm9, %v5942_v6 }
 0x2fd   :  { %4954 = vmatpush.msk.msrb.mxu3 %vm384_vm10, %v379_v7  ;;  %v631_v7 = vld [vmem:[%s5723_s14 + $0x10] sm:$0xff] }
 0x2ff   :  { %v485_v9 = vpop.permute.xlu0 %484 }
 0x300   :  { %v412_v10 = vpop.permute.xlu1 %411  ;;  %4960 = vmatpush.xpose.msk.msrb.mxu1 %vm340_vm9, %v485_v9  ;;  %v629_v9 = vld [vmem:[%s5723_s14] sm:$0xff] }
 0x301   :  { %4956 = vmatpush.xpose.msk.msrb.mxu2 %vm340_vm9, %v412_v10 }
 0x304   :  { %4957 = vmatmul.msk.f32.vlgmr.msrb.gmra.mxu2 %vm340_vm9, %v410_v11 }
 0x37f   :  { %v362_v12 = vpop.f32.mrf.mxu3 }
 0x380   :  { %v365_v13 = vmul.f32 0.35355338, %v362_v12  ;;  %v5293_v12 = vld [vmem:[%s5728_s19] ss:$0 sm:$0xff] }
 0x382   :  { %v367_v14 = vsel %vm366_vm11, %v365_v13, -inf }
 0x383   :  { %368 = vmax.xlane.f32.xlu2 %v367_v14 }
 0x387   :  { %v434_v15 = vpop.f32.mrf.mxu2 }
 0x388   :  { %v437_v16 = vmul.f32 0.35355338, %v434_v15 }
 0x38a   :  { %v438_v17 = vsel %vm366_vm11, %v437_v16, -inf }
 0x38b   :  { %439 = vmax.xlane.f32.xlu0 %v438_v17 }
 0x39b   :  { %449 = vrot.lane.b32.xlu2 %v5942_v6, %s5660_s21 }
 0x39f   :  { %482 = vrot.lane.b32.xlu0 %v5942_v6, %s5661_s22 }
 0x3f6   :  { %v369_v18 = vpop.xlane.xlu2 %368 }
 0x3f7   :  { %v370_v19 = vsub.f32 %v365_v13, %v369_v18 }
 0x3f9   :  { %v371_v20 = vmul.f32 1.442695, %v370_v19 }
 0x3fb   :  { %5337 = vpow2.f32 %v371_v20 }
 0x3fe   :  { %v450_v21 = vpop.permute.xlu2 %449  ;;  %v440_v22 = vpop.xlane.xlu0 %439 }
 0x3ff   :  { %v441_v23 = vsub.f32 %v437_v16, %v440_v22  ;;  %4958 = vmatpush.msk.msra.mxu3 %vm384_vm10, %v450_v21  ;;  %v696_v22 = vld [vmem:[%s5743_s6 + $0x18] sm:$0xff] }
 0x401   :  { %v5338_v24 = vpop.eup %5337  ;;  %v442_v25 = vmul.f32 1.442695, %v441_v23  ;;  %v694_v23 = vld [vmem:[%s5743_s6 + $0x8] sm:$0xff] }
 0x402   :  { %v373_v26 = vsel %vm366_vm11, %v5338_v24, 0.0 }
 0x403   :  { %5339 = vpow2.f32 %v442_v25  ;;  %374 = vadd.xlane.f32.xlu1 %v373_v26  ;;  %v748_v25 = vld [vmem:[%s5753_s20 + $0x78] sm:$0xff]  ;;  %v747_v26 = vld [vmem:[%s5753_s20 + $0x70] sm:$0xff] }
 0x404   :  { %753 = vmatpush.msrb.mxu0 %v748_v25 }
 0x406   :  { %754 = vmatpush.msrb.mxu0 %v747_v26 }
 0x409   :  { %v5340_v27 = vpop.eup %5339 }
 0x40a   :  { %v444_v28 = vsel %vm366_vm11, %v5340_v27, 0.0 }
 0x40b   :  { %445 = vadd.xlane.f32.xlu0 %v444_v28 }
 0x411   :  { %v483_v29 = vpop.permute.xlu0 %482 }
 0x412   :  { %4961 = vmatmul.msk.f32.vlgmr.msrb.gmra.mxu1 %vm340_vm9, %v483_v29 }
 0x41c   :  { %557 = vrot.lane.b32.xlu1 %v5942_v6, %s5662_s23 }
 0x41f   :  { %555 = vrot.lane.b32.xlu0 %v5942_v6, %s5663_s26 }
 0x476   :  { %v375_v30 = vpop.xlane.xlu1 %374 }
 0x477   :  { %5341 = vrcp.f32 %v375_v30 }
 0x47d   :  { %v5342_v31 = vpop.eup %5341 }
 0x47e   :  { %v446_v32 = vpop.xlane.xlu0 %445  ;;  %v377_v33 = vmul.f32 %v5342_v31, %v5338_v24  ;;  %v693_v24 = vld [vmem:[%s5743_s6] sm:$0xff] }
 0x47f   :  { %5343 = vrcp.f32 %v446_v32 }
 0x480   :  { %4955 = vmatmul.msk.f32.vlgmr.msrb.gmra.mxu3 %vm380_vm12, %v377_v33 }
 0x485   :  { %v5344_v34 = vpop.eup %5343 }
 0x486   :  { %v448_v36 = vmul.f32 %v5344_v34, %v5340_v27  ;;  %v746_v27 = vld [vmem:[%s5753_s20 + $0x68] sm:$0xff] }
 0x487   :  { %755 = vmatpush.msrb.mxu0 %v746_v27 }
 0x488   :  { %4959 = vmatmul.msk.f32.vlgmr.msra.gmra.mxu3 %vm380_vm12, %v448_v36 }
 0x48e   :  { %v558_v37 = vpop.permute.xlu1 %557 }
 0x48f   :  { %v507_v38 = vpop.f32.mrf.mxu1  ;;  %4964 = vmatpush.xpose.msk.msrb.mxu3 %vm340_vm9, %v558_v37 }
 0x490   :  { %v510_v39 = vmul.f32 0.35355338, %v507_v38  ;;  %v5294_v38 = vld [vmem:[%s5733_s24] ss:$0 sm:$0xff] }
 0x491   :  { %v556_v40 = vpop.permute.xlu0 %555 }
 0x492   :  { %4965 = vmatmul.msk.f32.vlgmr.msrb.gmra.mxu3 %vm340_vm9, %v556_v40  ;;  %v511_v41 = vsel %vm366_vm11, %v510_v39, -inf }
 0x493   :  { %512 = vmax.xlane.f32.xlu2 %v511_v41  ;;  %716 = vmatpush.msra.mxu3 %v696_v22  ;;  %v5295_v41 = vld [vmem:[%s7163_s11] ss:$0 sm:$0xff] }
 0x503   :  { %v404_v42 = vpop.f32.mrf.mxu3 }
 0x504   :  { %408 = vst.msk [vmem:[#allocation3] sm:$0x1f] %vm407_vm13, %v404_v42 }
 0x506   :  { %v513_v44 = vpop.xlane.xlu2 %512 }
 0x507   :  { %v514_v45 = vsub.f32 %v510_v39, %v513_v44 }
 0x509   :  { %v515_v46 = vmul.f32 1.442695, %v514_v45  ;;  %v745_v45 = vld [vmem:[%s5753_s20 + $0x60] sm:$0xff] }
 0x50a   :  { %756 = vmatpush.msrb.mxu0 %v745_v45 }
 0x50b   :  { %5345 = vpow2.f32 %v515_v46  ;;  %v473_v47 = vpop.f32.mrf.mxu3  ;;  %v744_v46 = vld [vmem:[%s5753_s20 + $0x58] sm:$0xff] }
 0x50c   :  { %757 = vmatpush.msrb.mxu0 %v744_v46 }
 0x511   :  { %v5346_v48 = vpop.eup %5345 }
 0x512   :  { %v517_v49 = vsel %vm366_vm11, %v5346_v48, 0.0 }
 0x513   :  { %518 = vadd.xlane.f32.xlu1 %v517_v49  ;;  %v741_v49 = vld [vmem:[%s5753_s20 + $0x40] sm:$0xff] }
 0x515   :  { %v580_v50 = vpop.f32.mrf.mxu3 }
 0x516   :  { %v583_v51 = vmul.f32 0.35355338, %v580_v50  ;;  %v740_v50 = vld [vmem:[%s5753_s20 + $0x38] sm:$0xff] }
 0x518   :  { %v584_v52 = vsel %vm366_vm11, %v583_v51, -inf }
 0x519   :  { %585 = vmax.xlane.f32.xlu0 %v584_v52  ;;  %v738_v52 = vld [vmem:[%s5753_s20 + $0x28] sm:$0xff] }
 0x52c   :  { %477 = vrot.lane.b32.xlu1 %v473_v47, %s5664_s28  ;;  %v743_v47 = vld [vmem:[%s5753_s20 + $0x50] sm:$0xff] }
 0x52d   :  { %522 = vrot.lane.b32.xlu0 %v5942_v6, %s5665_s1  ;;  %758 = vmatpush.msrb.mxu0 %v743_v47 }
 0x586   :  { %v519_v56 = vpop.xlane.xlu1 %518 }
 0x58c   :  { %v586_v53 = vpop.xlane.xlu0 %585 }
 0x58d   :  { %v587_v54 = vsub.f32 %v583_v51, %v586_v53  ;;  %v739_v51 = vld [vmem:[%s5753_s20 + $0x30] sm:$0xff]  ;;  %v737_v53 = vld [vmem:[%s5753_s20 + $0x20] sm:$0xff] }
 0x58f   :  { %v588_v55 = vmul.f32 1.442695, %v587_v54  ;;  %v736_v54 = vld [vmem:[%s5753_s20 + $0x18] sm:$0xff] }
 0x591   :  { %5347 = vpow2.f32 %v588_v55  ;;  %v735_v55 = vld [vmem:[%s5753_s20 + $0x10] sm:$0xff] }
 0x592   :  { %5349 = vrcp.f32 %v519_v56  ;;  %v734_v56 = vld [vmem:[%s5753_s20 + $0x8] sm:$0xff] }
 0x597   :  { %v5348_v57 = vpop.eup %5347 }
 0x598   :  { %v590_v58 = vsel %vm366_vm11, %v5348_v57, 0.0  ;;  %v5350_v59 = vpop.eup %5349 }
 0x599   :  { %591 = vadd.xlane.f32.xlu2 %v590_v58  ;;  %v521_v61 = vmul.f32 %v5350_v59, %v5346_v48  ;;  %v742_v48 = vld [vmem:[%s5753_s20 + $0x48] sm:$0xff]  ;;  %v5296_v58 = vld [vmem:[%s7164_s15] ss:$0 sm:$0xff] }
 0x59a   :  { %759 = vmatpush.msrb.mxu0 %v742_v48 }
 0x59c   :  { %760 = vmatpush.msrb.mxu0 %v741_v49 }
 0x59e   :  { %v478_v60 = vpop.permute.xlu1 %477  ;;  %761 = vmatpush.msrb.mxu0 %v740_v50 }
 0x59f   :  { %481 = vst.msk [vmem:[#allocation3] sm:$0x1f] %vm480_vm14, %v478_v60  ;;  %v523_v62 = vpop.permute.xlu0 %522 }
 0x5a0   :  { %4962 = vmatpush.msk.msra.mxu2 %vm384_vm10, %v523_v62  ;;  %762 = vmatpush.msrb.mxu0 %v739_v51 }
 0x5a1   :  { %4963 = vmatmul.msk.f32.vlgmr.msra.gmra.mxu2 %vm380_vm12, %v521_v61 }
 0x5a2   :  { %763 = vmatpush.msrb.mxu0 %v738_v52 }
 0x5a4   :  { %764 = vmatpush.msrb.mxu0 %v737_v53 }
 0x5a6   :  { %765 = vmatpush.msrb.mxu0 %v736_v54 }
 0x5a8   :  { %766 = vmatpush.msrb.mxu0 %v735_v55 }
 0x5aa   :  { %767 = vmatpush.msrb.mxu0 %v734_v56 }
 0x5b1   :  { %595 = vrot.lane.b32.xlu2 %v5942_v6, %s5666_s2  ;;  %v632_v6 = vld [vmem:[%s5723_s14 + $0x18] sm:$0xff] }
 0x5b2   :  { %652 = vmatpush.msrb.mxu2 %v632_v6  ;;  %v5297_v6 = vld [vmem:[%s7165_s16] ss:$0 sm:$0xff] }
 0x5b4   :  { %653 = vmatpush.msrb.mxu2 %v631_v7 }
 0x5b6   :  { %654 = vmatpush.msrb.mxu2 %v630_v8 }
 0x5b8   :  { %655 = vmatpush.msrb.mxu2 %v629_v9 }
 0x60c   :  { %v592_v63 = vpop.xlane.xlu2 %591 }
 0x60d   :  { %5351 = vrcp.f32 %v592_v63 }
 0x613   :  { %v5352_v0 = vpop.eup %5351 }
 0x614   :  { %v594_v1 = vmul.f32 %v5352_v0, %v5348_v57  ;;  %v596_v2 = vpop.permute.xlu2 %595  ;;  %v733_v57 = vld [vmem:[%s5753_s20] sm:$0xff] }
 0x615   :  { %4966 = vmatpush.msk.msra.mxu1 %vm384_vm10, %v596_v2  ;;  %768 = vmatpush.msrb.mxu0 %v733_v57 }
 0x616   :  { %4967 = vmatmul.msk.f32.vlgmr.msra.gmra.mxu1 %vm380_vm12, %v594_v1 }
 0x624   :  { %v546_v3 = vpop.f32.mrf.mxu2 }
 0x625   :  { %550 = vrot.lane.b32.xlu0 %v546_v3, %s5667_s7 }
 0x693   :  { %v619_v4 = vpop.f32.mrf.mxu1 }
 0x694   :  { %623 = vrot.lane.b32.xlu0 %v619_v4, %s5668_s10 }
 0x697   :  { %v551_v5 = vpop.permute.xlu0 %550 }
 0x698   :  { %554 = vst.msk [vmem:[#allocation3] sm:$0x1f] %vm553_vm15, %v551_v5 }
 0x706   :  { %v624_v10 = vpop.permute.xlu0 %623 }
 0x707   :  { %627 = vst.msk [vmem:[#allocation3] sm:$0x1f] %vm626_vm0, %v624_v10 }
 0x70e   :  { %v628_v11 = vld [vmem:[#allocation3] sm:$0x1f] }
 0x70f   :  { %4968 = vmatmul.msk.f32.vlgmr.msrb.gmra.mxu2 %vm313_vm8, %v628_v11 }
 0x792   :  { %v657_v13 = vpop.f32.mrf.mxu2 }
 0x793   :  { %v658_v14 = vadd.f32 %v5293_v12, %v657_v13 }
 0x795   :  { %v6005_v15 = vadd.f32 %v658_v14, %v5924_v35  ;;  %v695_v35 = vld [vmem:[%s5743_s6 + $0x10] sm:$0xff] }
 0x796   :  { %717 = vmatpush.msra.mxu3 %v695_v35 }
 0x797   :  { %v663_v16 = vsel %vm267_vm3, %v6005_v15, 0.0 }
 0x798   :  { %664 = vadd.xlane.f32.xlu2 %v663_v16  ;;  %718 = vmatpush.msra.mxu3 %v694_v23 }
 0x79a   :  { %719 = vmatpush.msra.mxu3 %v693_v24 }
 0x80b   :  { %v665_v17 = vpop.xlane.xlu2 %664 }
 0x80c   :  { %v666_v18 = vmul.f32 %v665_v17, %v5928_v43  ;;  %v4975_v17 = vld [vmem:[%s5713_s3 + $0x38] sm:$0xff] }
 0x80d   :  { %833 = vmatpush.msrb.mxu1 %v4975_v17 }
 0x80e   :  { %v667_v19 = vsub.f32 %v6005_v15, %v666_v18  ;;  %v4974_v18 = vld [vmem:[%s5713_s3 + $0x30] sm:$0xff] }
 0x80f   :  { %834 = vmatpush.msrb.mxu1 %v4974_v18 }
 0x810   :  { %v668_v20 = vmul.f32 %v667_v19, %v667_v19 }
 0x812   :  { %v669_v21 = vsel %vm267_vm3, %v668_v20, 0.0 }
 0x813   :  { %670 = vadd.xlane.f32.xlu1 %v669_v21 }
 0x886   :  { %v671_v28 = vpop.xlane.xlu1 %670 }
 0x887   :  { %v672_v29 = vmul.f32 %v671_v28, %v5928_v43  ;;  %v5298_v28 = vld [vmem:[%s5703_s25 + $0x1] ss:$0 sm:$0xff]  ;;  %s7166_s25 = sld [smem:[#allocation17_spill]] }
 0x889   :  { %v673_v30 = vadd.f32 1e-12, %v672_v29 }
 0x88b   :  { %5353 = vrsqrt.f32 %v673_v30  ;;  %vm680_vm4 = vweird.f32 %v673_v30 }
 0x891   :  { %v5354_v31 = vpop.eup %5353 }
 0x892   :  { %v675_v32 = vmul.f32 %v5354_v31, %v673_v30  ;;  %vm681_vm2 = vweird.f32 %v5354_v31 }
 0x893   :  { %vm682_vm5 = vmor %vm680_vm4, %vm681_vm2 }
 0x894   :  { %v676_v33 = vmul.f32 %v5354_v31, %v675_v32 }
 0x896   :  { %v677_v34 = vmul.f32 0.5, %v676_v33 }
 0x898   :  { %v678_v36 = vsub.f32 1.5, %v677_v34  ;;  %v5300_v34 = vld [vmem:[%s5718_s8 + $0x1] ss:$0 sm:$0xff]  ;;  %s7169_s8 = sld [smem:[#allocation20_spill]] }
 0x89a   :  { %v679_v37 = vmul.f32 %v5354_v31, %v678_v36 }
 0x89c   :  { %v683_v39 = vsel %vm682_vm5, %v5354_v31, %v679_v37  ;;  %v5299_v31 = vld [vmem:[%s5708_s29 + $0x1] ss:$0 sm:$0xff]  ;;  %s7167_s29 = sld [smem:[#allocation18_spill]] }
 0x89d   :  { %v684_v40 = vmul.f32 %v683_v39, %v667_v19  ;;  %v4973_v19 = vld [vmem:[%s5713_s3 + $0x28] sm:$0xff] }
 0x89e   :  { %835 = vmatpush.msrb.mxu1 %v4973_v19 }
 0x89f   :  { %v688_v42 = vmul.f32 %v5294_v38, %v684_v40 }
 0x8a1   :  { %v692_v44 = vadd.f32 %v5295_v41, %v688_v42 }
 0x8a3   :  { %4969 = vmatmul.msk.f32.vlgmr.msra.gmra.mxu3 %vm313_vm8, %v692_v44 }
 0x926   :  { %v721_v59 = vpop.f32.mrf.mxu3 }
 0x927   :  { %v722_v60 = vadd.f32 %v5296_v58, %v721_v59 }
 0x929   :  { %v724_v61 = vmul.f32 %v722_v60, %v722_v60 }
 0x92b   :  { %v725_v62 = vmul.f32 %v724_v61, %v722_v60 }
 0x92d   :  { %v726_v63 = vmul.f32 0.044715, %v725_v62 }
 0x92f   :  { %v727_v0 = vadd.f32 %v726_v63, %v722_v60 }
 0x931   :  { %v728_v1 = vmul.f32 0.7978846, %v727_v0 }
 0x933   :  { %5355 = vtanh.f32 %v728_v1 }
 0x939   :  { %v5356_v2 = vpop.eup %5355 }
 0x93a   :  { %v730_v3 = vadd.f32 1.0, %v5356_v2 }
 0x93c   :  { %v731_v4 = vmul.f32 0.5, %v730_v3 }
 0x93e   :  { %v732_v5 = vmul.f32 %v731_v4, %v722_v60 }
 0x940   :  { %769 = vmatmul.f32.vlgmr.msrb.gmra.mxu0 %v732_v5 }
 0x9bd   :  { %v770_v7 = vpop.f32.mrf.mxu0 }
 0x9be   :  { %v771_v8 = vadd.f32 %v5297_v6, %v770_v7 }
 0x9c0   :  { %v6039_v9 = vadd.f32 %v771_v8, %v6005_v15  ;;  %v4972_v15 = vld [vmem:[%s5713_s3 + $0x20] sm:$0xff]  ;;  %s7168_s3 = sld [smem:[#allocation19_spill]] }
 0x9c1   :  { %836 = vmatpush.msrb.mxu1 %v4972_v15 }
 0x9c2   :  { %v778_v10 = vsel %vm267_vm3, %v6039_v9, 0.0 }
 0x9c3   :  { %779 = vadd.xlane.f32.xlu0 %v778_v10 }
 0xa36   :  { %v780_v11 = vpop.xlane.xlu0 %779 }
 0xa37   :  { %v781_v12 = vmul.f32 %v780_v11, %v5928_v43 }
 0xa39   :  { %v782_v13 = vsub.f32 %v6039_v9, %v781_v12 }
 0xa3b   :  { %v783_v14 = vmul.f32 %v782_v13, %v782_v13 }
 0xa3d   :  { %v784_v16 = vsel %vm267_vm3, %v783_v14, 0.0 }
 0xa3e   :  { %785 = vadd.xlane.f32.xlu2 %v784_v16 }
 0xab1   :  { %v786_v20 = vpop.xlane.xlu2 %785 }
 0xab2   :  { %v787_v21 = vmul.f32 %v786_v20, %v5928_v43 }
 0xab4   :  { %v788_v22 = vadd.f32 1e-12, %v787_v21 }
 0xab6   :  { %5357 = vrsqrt.f32 %v788_v22  ;;  %vm795_vm7 = vweird.f32 %v788_v22 }
 0xabc   :  { %v5358_v35 = vpop.eup %5357 }
 0xabd   :  { %v790_v23 = vmul.f32 %v5358_v35, %v788_v22  ;;  %vm796_vm6 = vweird.f32 %v5358_v35 }
 0xabe   :  { %vm797_vm2 = vmor %vm795_vm7, %vm796_vm6 }
 0xabf   :  { %v791_v24 = vmul.f32 %v5358_v35, %v790_v23 }
 0xac1   :  { %v792_v25 = vmul.f32 0.5, %v791_v24 }
 0xac3   :  { %v793_v26 = vsub.f32 1.5, %v792_v25 }
 0xac5   :  { %v794_v27 = vmul.f32 %v5358_v35, %v793_v26 }
 0xac7   :  { %v798_v29 = vsel %vm797_vm2, %v5358_v35, %v794_v27 }
 0xac8   :  { %v799_v30 = vmul.f32 %v798_v29, %v782_v13 }
 0xaca   :  { %v803_v32 = vmul.f32 %v5298_v28, %v799_v30 }
 0xacc   :  { %v807_v33 = vadd.f32 %v5299_v31, %v803_v32 }
 0xace   :  { %4977 = vmatmul.msk.f32.vlgmr.msrb.gmra.mxu1 %vm313_vm8, %v807_v33 }
 0xb4b   :  { %v838_v36 = vpop.f32.mrf.mxu1 }
 0xb4c   :  { %v6055_v37 = vadd.f32 %v5300_v34, %v838_v36  ;;  %v4997_v36 = vld [vmem:[%s5723_s14 + $0x38] sm:$0xff] }
 0xb4e   :  { %908 = vrot.lane.b32.xlu0 %v6055_v37, %s5656_s5  ;;  %910 = vrot.lane.b32.xlu2 %v6055_v37, %s5659_s17 }
 0xb4f   :  { %842 = vrot.lane.b32.xlu1 %v6055_v37, %s5657_s9 }
 0xb56   :  { %880 = vrot.lane.b32.xlu2 %v6055_v37, %s5655_s0 }
 0xba8   :  { %v911_v38 = vpop.permute.xlu2 %910 }
 0xba9   :  { %4982 = vmatpush.xpose.msk.msra.mxu1 %vm340_vm9, %v911_v38  ;;  %v4995_v38 = vld [vmem:[%s5723_s14 + $0x28] sm:$0xff] }
 0xbb0   :  { %v881_v39 = vpop.permute.xlu2 %880 }
 0xbb1   :  { %4980 = vmatpush.msk.msrb.mxu3 %vm384_vm10, %v881_v39  ;;  %v4994_v39 = vld [vmem:[%s5723_s14 + $0x20] sm:$0xff] }
 0xbc0   :  { %v909_v40 = vpop.permute.xlu0 %908 }
 0xbc1   :  { %v843_v41 = vpop.permute.xlu1 %842  ;;  %4983 = vmatmul.msk.f32.vlgmr.msra.gmra.mxu1 %vm340_vm9, %v909_v40  ;;  %v1338_v40 = vld [vmem:[%s7166_s25] sm:$0xff] }
 0xbc2   :  { %4978 = vmatpush.xpose.msk.msra.mxu2 %vm340_vm9, %v843_v41  ;;  %v1342_v41 = vld [vmem:[%s7167_s29] sm:$0xff]  ;;  %s7180_s29 = sld [smem:[#allocation30_spill]] }
 0xbc5   :  { %4979 = vmatmul.msk.f32.vlgmr.msra.gmra.mxu2 %vm340_vm9, %v6055_v37 }
 0xc3e   :  { %v933_v42 = vpop.f32.mrf.mxu1 }
 0xc3f   :  { %v936_v44 = vmul.f32 0.35355338, %v933_v42  ;;  %v1343_v42 = vadd.f32 %v1342_v41, %v1338_v40 }
 0xc41   :  { %v937_v45 = vsel %vm366_vm11, %v936_v44, -inf }
 0xc42   :  { %938 = vmax.xlane.f32.xlu0 %v937_v45  ;;  %v1349_v45 = vsel %vm313_vm8, %v1343_v42, 0.0 }
 0xc48   :  { %v865_v46 = vpop.f32.mrf.mxu2 }
 0xc49   :  { %v868_v47 = vmul.f32 0.35355338, %v865_v46 }
 0xc4b   :  { %v869_v48 = vsel %vm366_vm11, %v868_v47, -inf }
 0xc4c   :  { %870 = vmax.xlane.f32.xlu1 %v869_v48 }
 0xc56   :  { %1054 = vrot.lane.b32.xlu0 %v6055_v37, %s5662_s23 }
 0xc65   :  { %948 = vrot.lane.b32.xlu1 %v6055_v37, %s5660_s21 }
 0xc6d   :  { %1052 = vrot.lane.b32.xlu1 %v6055_v37, %s5663_s26 }
 0xcb5   :  { %v939_v49 = vpop.xlane.xlu0 %938 }
 0xcb6   :  { %v940_v50 = vsub.f32 %v936_v44, %v939_v49  ;;  %v1341_v44 = vld [vmem:[%s7166_s25 + $0x18] sm:$0xff] }
 0xcb7   :  { %v1346_v46 = vadd.f32 %v1342_v41, %v1341_v44 }
 0xcb8   :  { %v941_v51 = vmul.f32 1.442695, %v940_v50 }
 0xcba   :  { %5359 = vpow2.f32 %v941_v51  ;;  %v5301_v51 = vld [vmem:[%s5728_s19 + $0x1] ss:$0 sm:$0xff]  ;;  %s7171_s19 = sld [smem:[#allocation22_spill]] }
 0xcbf   :  { %v871_v52 = vpop.xlane.xlu1 %870 }
 0xcc0   :  { %v5360_v53 = vpop.eup %5359  ;;  %v872_v54 = vsub.f32 %v868_v47, %v871_v52  ;;  %v1358_v47 = vsel %vm313_vm8, %v1346_v46, 0.0 }
 0xcc1   :  { %v943_v55 = vsel %vm366_vm11, %v5360_v53, 0.0 }
 0xcc2   :  { %v873_v56 = vmul.f32 1.442695, %v872_v54  ;;  %944 = vadd.xlane.f32.xlu2 %v943_v55  ;;  %v1339_v55 = vld [vmem:[%s7166_s25 + $0x8] sm:$0xff] }
 0xcc4   :  { %5361 = vpow2.f32 %v873_v56 }
 0xcc8   :  { %v1055_v60 = vpop.permute.xlu0 %1054 }
 0xcca   :  { %v5362_v57 = vpop.eup %5361 }
 0xccb   :  { %v875_v58 = vsel %vm366_vm11, %v5362_v57, 0.0 }
 0xccc   :  { %876 = vadd.xlane.f32.xlu0 %v875_v58  ;;  %v1344_v58 = vadd.f32 %v1342_v41, %v1339_v55 }
 0xcd7   :  { %v949_v59 = vpop.permute.xlu1 %948 }
 0xcd8   :  { %4984 = vmatpush.msk.msrb.mxu2 %vm384_vm10, %v949_v59 }
 0xcda   :  { %4990 = vmatpush.xpose.msk.msra.mxu2 %vm340_vm9, %v1055_v60  ;;  %982 = vrot.lane.b32.xlu2 %v6055_v37, %s5658_s13  ;;  %v1352_v60 = vsel %vm313_vm8, %v1344_v58, 0.0 }
 0xcdf   :  { %v1053_v3 = vpop.permute.xlu1 %1052 }
 0xce0   :  { %980 = vrot.lane.b32.xlu0 %v6055_v37, %s5661_s22 }
 0xd35   :  { %v945_v61 = vpop.xlane.xlu2 %944 }
 0xd36   :  { %5363 = vrcp.f32 %v945_v61 }
 0xd3c   :  { %v5364_v62 = vpop.eup %5363 }
 0xd3d   :  { %v947_v63 = vmul.f32 %v5364_v62, %v5360_v53  ;;  %v983_v0 = vpop.permute.xlu2 %982 }
 0xd3e   :  { %4986 = vmatpush.xpose.msk.msra.mxu3 %vm340_vm9, %v983_v0 }
 0xd3f   :  { %v877_v1 = vpop.xlane.xlu0 %876  ;;  %4985 = vmatmul.msk.f32.vlgmr.msrb.gmra.mxu2 %vm380_vm12, %v947_v63 }
 0xd40   :  { %5365 = vrcp.f32 %v877_v1 }
 0xd46   :  { %v5366_v2 = vpop.eup %5365 }
 0xd47   :  { %v879_v4 = vmul.f32 %v5366_v2, %v5362_v57  ;;  %4991 = vmatmul.msk.f32.vlgmr.msra.gmra.mxu2 %vm340_vm9, %v1053_v3 }
 0xd49   :  { %4981 = vmatmul.msk.f32.vlgmr.msrb.gmra.mxu3 %vm380_vm12, %v879_v4 }
 0xd52   :  { %v981_v5 = vpop.permute.xlu0 %980 }
 0xd53   :  { %4987 = vmatmul.msk.f32.vlgmr.msra.gmra.mxu3 %vm340_vm9, %v981_v5 }
 0xdc2   :  { %v972_v6 = vpop.f32.mrf.mxu2 }
 0xdca   :  { %v1077_v7 = vpop.f32.mrf.mxu2 }
 0xdcb   :  { %v1080_v8 = vmul.f32 0.35355338, %v1077_v7 }
 0xdcc   :  { %v904_v10 = vpop.f32.mrf.mxu3 }
 0xdcd   :  { %907 = vst.msk [vmem:[#allocation3] sm:$0x1f] %vm407_vm13, %v904_v10  ;;  %v1081_v11 = vsel %vm366_vm11, %v1080_v8, -inf }
 0xdce   :  { %1082 = vmax.xlane.f32.xlu1 %v1081_v11 }
 0xdd6   :  { %v1005_v12 = vpop.f32.mrf.mxu3 }
 0xdd7   :  { %v1008_v13 = vmul.f32 0.35355338, %v1005_v12 }
 0xdd9   :  { %v1009_v14 = vsel %vm366_vm11, %v1008_v13, -inf }
 0xdda   :  { %1010 = vmax.xlane.f32.xlu2 %v1009_v14 }
 0xde7   :  { %1092 = vrot.lane.b32.xlu1 %v6055_v37, %s5666_s2 }
 0xe41   :  { %v1083_v16 = vpop.xlane.xlu1 %1082 }
 0xe42   :  { %v1084_v17 = vsub.f32 %v1080_v8, %v1083_v16  ;;  %v1340_v8 = vld [vmem:[%s7166_s25 + $0x10] sm:$0xff]  ;;  %s7179_s25 = sld [smem:[#allocation27_spill]] }
 0xe44   :  { %v1085_v18 = vmul.f32 1.442695, %v1084_v17 }
 0xe46   :  { %5367 = vpow2.f32 %v1085_v18 }
 0xe4c   :  { %v5368_v19 = vpop.eup %5367 }
 0xe4d   :  { %v1011_v15 = vpop.xlane.xlu2 %1010  ;;  %v1087_v20 = vsel %vm366_vm11, %v5368_v19, 0.0 }
 0xe4e   :  { %v1012_v21 = vsub.f32 %v1008_v13, %v1011_v15  ;;  %1088 = vadd.xlane.f32.xlu0 %v1087_v20  ;;  %v1345_v13 = vadd.f32 %v1342_v41, %v1340_v8 }
 0xe50   :  { %v1013_v22 = vmul.f32 1.442695, %v1012_v21  ;;  %v1355_v16 = vsel %vm313_vm8, %v1345_v13, 0.0 }
 0xe52   :  { %5369 = vpow2.f32 %v1013_v22 }
 0xe58   :  { %v5370_v35 = vpop.eup %5369 }
 0xe59   :  { %v1015_v23 = vsel %vm366_vm11, %v5370_v35, 0.0  ;;  %v1093_v24 = vpop.permute.xlu1 %1092 }
 0xe5a   :  { %1016 = vadd.xlane.f32.xlu2 %v1015_v23  ;;  %4992 = vmatpush.msk.msrb.mxu3 %vm384_vm10, %v1093_v24 }
 0xe62   :  { %1020 = vrot.lane.b32.xlu0 %v6055_v37, %s5665_s1  ;;  %v4996_v37 = vld [vmem:[%s5723_s14 + $0x30] sm:$0xff]  ;;  %s7170_s14 = sld [smem:[#allocation24_spill]] }
 0xe72   :  { %976 = vrot.lane.b32.xlu2 %v972_v6, %s5664_s28 }
 0xec1   :  { %v1089_v25 = vpop.xlane.xlu0 %1088 }
 0xec2   :  { %5371 = vrcp.f32 %v1089_v25 }
 0xec8   :  { %v5372_v26 = vpop.eup %5371 }
 0xec9   :  { %v1091_v27 = vmul.f32 %v5372_v26, %v5368_v19 }
 0xecb   :  { %4993 = vmatmul.msk.f32.vlgmr.msrb.gmra.mxu3 %vm380_vm12, %v1091_v27 }
 0xecd   :  { %v1017_v28 = vpop.xlane.xlu2 %1016 }
 0xece   :  { %5373 = vrcp.f32 %v1017_v28 }
 0xed4   :  { %v5374_v29 = vpop.eup %5373  ;;  %v1021_v30 = vpop.permute.xlu0 %1020 }
 0xed5   :  { %v1019_v31 = vmul.f32 %v5374_v29, %v5370_v35  ;;  %v977_v32 = vpop.permute.xlu2 %976  ;;  %4988 = vmatpush.msk.msrb.mxu1 %vm384_vm10, %v1021_v30 }
 0xed6   :  { %979 = vst.msk [vmem:[#allocation3] sm:$0x1f] %vm480_vm14, %v977_v32 }
 0xed7   :  { %4989 = vmatmul.msk.f32.vlgmr.msrb.gmra.mxu1 %vm380_vm12, %v1019_v31  ;;  %v6151_v31 = vld [vmem:[%s7168_s3] ss:$0 sm:$0xff]  ;;  %s7181_s3 = sld [smem:[#allocation28_spill]] }
 0xed8   :  { %1150 = vmatpush.msra.mxu1 %v4997_v36  ;;  %v6154_v36 = vld [vmem:[%s7169_s8] ss:$0 sm:$0xff]  ;;  %s7182_s8 = sld [smem:[#allocation29_spill]] }
 0xeda   :  { %1151 = vmatpush.msra.mxu1 %v4996_v37 }
 0xedc   :  { %1152 = vmatpush.msra.mxu1 %v4995_v38 }
 0xede   :  { %1153 = vmatpush.msra.mxu1 %v4994_v39 }
 0xf4e   :  { %v1116_v33 = vpop.f32.mrf.mxu3 }
 0xf4f   :  { %1120 = vrot.lane.b32.xlu1 %v1116_v33, %s5668_s10 }
 0xf54   :  { %v1044_v34 = vpop.f32.mrf.mxu1 }
 0xf55   :  { %1048 = vrot.lane.b32.xlu0 %v1044_v34, %s5667_s7 }
 0xf79   :  { %1350 = vadd.xlane.f32.xlu1 %v1349_v45 }
 0xf81   :  { %1359 = vadd.xlane.f32.xlu1 %v1358_v47 }
 0xfc1   :  { %v1121_v49 = vpop.permute.xlu1 %1120 }
 0xfc7   :  { %v1049_v48 = vpop.permute.xlu0 %1048 }
 0xfc8   :  { %1051 = vst.msk [vmem:[#allocation3] sm:$0x1f] %vm553_vm15, %v1049_v48 }
 0xfc9   :  { %1123 = vst.msk [vmem:[#allocation3] sm:$0x1f] %vm626_vm0, %v1121_v49  ;;  %v5005_v49 = vld [vmem:[%s5743_s6 + $0x38] sm:$0xff] }
 0xfca   :  { %1218 = vmatpush.msrb.mxu2 %v5005_v49  ;;  %v5016_v49 = vld [vmem:[%s5753_s20 + $0xc0] sm:$0xff] }
 0xfd0   :  { %v1124_v50 = vld [vmem:[#allocation3] sm:$0x1f] }
 0xfd1   :  { %4999 = vmatmul.msk.f32.vlgmr.msra.gmra.mxu1 %vm313_vm8, %v1124_v50  ;;  %v5004_v50 = vld [vmem:[%s5743_s6 + $0x30] sm:$0xff] }
 0xfd2   :  { %1219 = vmatpush.msrb.mxu2 %v5004_v50  ;;  %v5015_v50 = vld [vmem:[%s5753_s20 + $0xb8] sm:$0xff] }
 0xfec   :  { %v1351_v56 = vpop.xlane.xlu1 %1350 }
 0xfed   :  { %v1361_v59 = vmul.f32 %v1351_v56, %v5928_v43 }
 0xfef   :  { %v1365_v61 = vsub.f32 %v1343_v42, %v1361_v59 }
 0xff1   :  { %v1369_v63 = vmul.f32 %v1365_v61, %v1365_v61 }
 0xff4   :  { %v1360_v62 = vpop.xlane.xlu1 %1359 }
 0xff5   :  { %v1364_v0 = vmul.f32 %v1360_v62, %v5928_v43 }
 0xff7   :  { %v1368_v1 = vsub.f32 %v1346_v46, %v1364_v0 }
 0xff9   :  { %v1372_v2 = vmul.f32 %v1368_v1, %v1368_v1 }
 0xffb   :  { %v1382_v3 = vsel %vm313_vm8, %v1372_v2, 0.0 }
0x104e   :  { %v1155_v52 = vpop.f32.mrf.mxu1 }
0x104f   :  { %v1156_v53 = vadd.f32 %v5301_v51, %v1155_v52  ;;  %v5003_v51 = vld [vmem:[%s5743_s6 + $0x28] sm:$0xff]  ;;  %v5002_v52 = vld [vmem:[%s5743_s6 + $0x20] sm:$0xff]  ;;  %s7173_s6 = sld [smem:[#allocation25_spill]] }
0x1050   :  { %1220 = vmatpush.msrb.mxu2 %v5003_v51  ;;  %v5014_v51 = vld [vmem:[%s5753_s20 + $0xb0] sm:$0xff] }
0x1051   :  { %v6123_v54 = vadd.f32 %v1156_v53, %v6039_v9  ;;  %v1373_v9 = vsel %vm313_vm8, %v1369_v63, 0.0 }
0x1052   :  { %1221 = vmatpush.msrb.mxu2 %v5002_v52 }
0x1053   :  { %v1163_v57 = vsel %vm267_vm3, %v6123_v54, 0.0 }
0x1054   :  { %1164 = vadd.xlane.f32.xlu0 %v1163_v57 }
0x105c   :  { %1353 = vadd.xlane.f32.xlu0 %v1352_v60 }
0x1064   :  { %1374 = vadd.xlane.f32.xlu0 %v1373_v9 }
0x106c   :  { %1383 = vadd.xlane.f32.xlu0 %v1382_v3 }
0x10c7   :  { %v1165_v4 = vpop.xlane.xlu0 %1164 }
0x10c8   :  { %v1166_v5 = vmul.f32 %v1165_v4, %v5928_v43 }
0x10ca   :  { %v6135_v6 = vsub.f32 %v6123_v54, %v1166_v5 }
0x10cc   :  { %v1168_v7 = vmul.f32 %v6135_v6, %v6135_v6 }
0x10ce   :  { %v1169_v10 = vsel %vm267_vm3, %v1168_v7, 0.0  ;;  %v5304_v7 = vld [vmem:[%s5733_s24 + $0x1] ss:$0 sm:$0xff]  ;;  %s7172_s24 = sld [smem:[#allocation23_spill]] }
0x10cf   :  { %1170 = vadd.xlane.f32.xlu2 %v1169_v10  ;;  %v1354_v11 = vpop.xlane.xlu0 %1353 }
0x10d0   :  { %v1362_v12 = vmul.f32 %v1354_v11, %v5928_v43  ;;  %v5305_v11 = vld [vmem:[%s7163_s11 + $0x1] ss:$0 sm:$0xff]  ;;  %s7176_s11 = sld [smem:[#allocation14_spill]] }
0x10d2   :  { %v6142_v14 = vsub.f32 %v1344_v58, %v1362_v12 }
0x10d4   :  { %v1370_v19 = vmul.f32 %v6142_v14, %v6142_v14 }
0x10d6   :  { %v1376_v20 = vsel %vm313_vm8, %v1370_v19, 0.0 }
0x10d7   :  { %1356 = vadd.xlane.f32.xlu2 %v1355_v16  ;;  %v1375_v17 = vpop.xlane.xlu0 %1374 }
0x10d8   :  { %v1385_v18 = vmul.f32 %v1375_v17, %v5928_v43 }
0x10da   :  { %v1389_v15 = vadd.f32 1e-12, %v1385_v18 }
0x10dc   :  { %5375 = vrsqrt.f32 %v1389_v15  ;;  %vm1399_vm10 = vweird.f32 %v1389_v15 }
0x10df   :  { %1377 = vadd.xlane.f32.xlu2 %v1376_v20  ;;  %v1384_v21 = vpop.xlane.xlu0 %1383 }
0x10e0   :  { %v1388_v22 = vmul.f32 %v1384_v21, %v5928_v43 }
0x10e2   :  { %v5376_v35 = vpop.eup %5375  ;;  %v1392_v23 = vadd.f32 1e-12, %v1388_v22 }
0x10e3   :  { %v1394_v24 = vmul.f32 %v5376_v35, %v1389_v15  ;;  %vm1400_vm11 = vweird.f32 %v5376_v35 }
0x10e4   :  { %5377 = vrsqrt.f32 %v1392_v23  ;;  %vm1401_vm12 = vmor %vm1399_vm10, %vm1400_vm11  ;;  %vm1429_vm13 = vweird.f32 %v1392_v23 }
0x10e5   :  { %v1395_v25 = vmul.f32 %v5376_v35, %v1394_v24 }
0x10e7   :  { %v1396_v26 = vmul.f32 0.5, %v1395_v25 }
0x10e9   :  { %v1397_v27 = vsub.f32 1.5, %v1396_v26 }
0x10ea   :  { %v5378_v28 = vpop.eup %5377 }
0x10eb   :  { %v1398_v29 = vmul.f32 %v5376_v35, %v1397_v27  ;;  %v1424_v30 = vmul.f32 %v5378_v28, %v1392_v23  ;;  %vm1430_vm14 = vweird.f32 %v5378_v28 }
0x10ec   :  { %vm1431_vm15 = vmor %vm1429_vm13, %vm1430_vm14 }
0x10ed   :  { %v1425_v32 = vmul.f32 %v5378_v28, %v1424_v30  ;;  %v1402_v33 = vsel %vm1401_vm12, %v5376_v35, %v1398_v29 }
0x10ee   :  { %v1433_v34 = vmul.f32 %v1402_v33, %v1365_v61 }
0x10ef   :  { %v1426_v37 = vmul.f32 0.5, %v1425_v32 }
0x10f0   :  { %v1440_v38 = vmul.f32 %v6151_v31, %v1433_v34  ;;  %v5023_v34 = vld [vmem:[%s5753_s20 + $0xf8] sm:$0xff] }
0x10f1   :  { %v1427_v39 = vsub.f32 1.5, %v1426_v37  ;;  %v5022_v37 = vld [vmem:[%s5753_s20 + $0xf0] sm:$0xff]  ;;  %1257 = vmatpush.msra.mxu3 %v5023_v34 }
0x10f2   :  { %v6158_v40 = vadd.f32 %v6154_v36, %v1440_v38  ;;  %v5021_v38 = vld [vmem:[%s5753_s20 + $0xe8] sm:$0xff] }
0x10f3   :  { %v1428_v41 = vmul.f32 %v5378_v28, %v1427_v39  ;;  %1258 = vmatpush.msra.mxu3 %v5022_v37  ;;  %v5020_v39 = vld [vmem:[%s5753_s20 + $0xe0] sm:$0xff] }
0x10f4   :  { %v1457_v42 = vsel %vm313_vm8, %v6158_v40, 0.0 }
0x10f5   :  { %1458 = vadd.xlane.f32.xlu2 %v1457_v42  ;;  %v1432_v44 = vsel %vm1431_vm15, %v5378_v28, %v1428_v41  ;;  %1259 = vmatpush.msra.mxu3 %v5021_v38  ;;  %v5019_v41 = vld [vmem:[%s5753_s20 + $0xd8] sm:$0xff] }
0x10f6   :  { %v1436_v45 = vmul.f32 %v1432_v44, %v1368_v1 }
0x10f7   :  { %1260 = vmatpush.msra.mxu3 %v5020_v39  ;;  %v6239_v39 = vld [vmem:[%s7171_s19] ss:$0 sm:$0xff] }
0x10f8   :  { %v1443_v46 = vmul.f32 %v6151_v31, %v1436_v45  ;;  %v5018_v45 = vld [vmem:[%s5753_s20 + $0xd0] sm:$0xff] }
0x10f9   :  { %1261 = vmatpush.msra.mxu3 %v5019_v41 }
0x10fa   :  { %v6164_v47 = vadd.f32 %v6154_v36, %v1443_v46 }
0x10fb   :  { %1262 = vmatpush.msra.mxu3 %v5018_v45 }
0x10fc   :  { %v1466_v48 = vsel %vm313_vm8, %v6164_v47, 0.0 }
0x10fd   :  { %1467 = vadd.xlane.f32.xlu2 %v1466_v48  ;;  %v5017_v48 = vld [vmem:[%s5753_s20 + $0xc8] sm:$0xff] }
0x10fe   :  { %1263 = vmatpush.msra.mxu3 %v5017_v48 }
0x1100   :  { %1264 = vmatpush.msra.mxu3 %v5016_v49 }
0x1102   :  { %1265 = vmatpush.msra.mxu3 %v5015_v50 }
0x1104   :  { %1266 = vmatpush.msra.mxu3 %v5014_v51 }
0x1142   :  { %v1171_v53 = vpop.xlane.xlu2 %1170 }
0x1143   :  { %v1172_v55 = vmul.f32 %v1171_v53, %v5928_v43  ;;  %v5013_v53 = vld [vmem:[%s5753_s20 + $0xa8] sm:$0xff] }
0x1144   :  { %1267 = vmatpush.msra.mxu3 %v5013_v53 }
0x1145   :  { %v1173_v56 = vadd.f32 1e-12, %v1172_v55 }
0x1147   :  { %5379 = vrsqrt.f32 %v1173_v56  ;;  %vm1180_vm4 = vweird.f32 %v1173_v56 }
0x114a   :  { %v1357_v57 = vpop.xlane.xlu2 %1356 }
0x114b   :  { %v1363_v58 = vmul.f32 %v1357_v57, %v5928_v43 }
0x114d   :  { %v5380_v59 = vpop.eup %5379  ;;  %v6174_v60 = vsub.f32 %v1345_v13, %v1363_v58  ;;  %v5011_v58 = vld [vmem:[%s5753_s20 + $0x98] sm:$0xff] }
0x114e   :  { %v1175_v61 = vmul.f32 %v5380_v59, %v1173_v56  ;;  %vm1181_vm0 = vweird.f32 %v5380_v59  ;;  %v5012_v56 = vld [vmem:[%s5753_s20 + $0xa0] sm:$0xff] }
0x114f   :  { %v1371_v62 = vmul.f32 %v6174_v60, %v6174_v60  ;;  %vm1182_vm5 = vmor %vm1180_vm4, %vm1181_vm0  ;;  %1268 = vmatpush.msra.mxu3 %v5012_v56 }
0x1150   :  { %v1176_v63 = vmul.f32 %v5380_v59, %v1175_v61  ;;  %v5010_v61 = vld [vmem:[%s5753_s20 + $0x90] sm:$0xff] }
0x1151   :  { %v1379_v0 = vsel %vm313_vm8, %v1371_v62, 0.0  ;;  %1269 = vmatpush.msra.mxu3 %v5011_v58 }
0x1152   :  { %v1177_v9 = vmul.f32 0.5, %v1176_v63  ;;  %1380 = vadd.xlane.f32.xlu1 %v1379_v0  ;;  %v1378_v1 = vpop.xlane.xlu2 %1377  ;;  %v5009_v63 = vld [vmem:[%s5753_s20 + $0x88] sm:$0xff] }
0x1153   :  { %v1386_v2 = vmul.f32 %v1378_v1, %v5928_v43  ;;  %1270 = vmatpush.msra.mxu3 %v5010_v61 }
0x1154   :  { %v1178_v3 = vsub.f32 1.5, %v1177_v9  ;;  %v5008_v9 = vld [vmem:[%s5753_s20 + $0x80] sm:$0xff]  ;;  %s7174_s20 = sld [smem:[#allocation15_spill]] }
0x1155   :  { %v1390_v4 = vadd.f32 1e-12, %v1386_v2  ;;  %1271 = vmatpush.msra.mxu3 %v5009_v63 }
0x1156   :  { %v1179_v5 = vmul.f32 %v5380_v59, %v1178_v3 }
0x1157   :  { %5381 = vrsqrt.f32 %v1390_v4  ;;  %vm1409_vm6 = vweird.f32 %v1390_v4  ;;  %1272 = vmatpush.msra.mxu3 %v5008_v9 }
0x1158   :  { %v1183_v8 = vsel %vm1182_vm5, %v5380_v59, %v1179_v5 }
0x1159   :  { %v1184_v10 = vmul.f32 %v1183_v8, %v6135_v6 }
0x115b   :  { %v1188_v12 = vmul.f32 %v5304_v7, %v1184_v10  ;;  %v1562_v7 = vld [vmem:[%s7170_s14 + $0x18] sm:$0xff] }
0x115c   :  { %1591 = vmatpush.msrb.mxu1 %v1562_v7 }
0x115d   :  { %v5382_v13 = vpop.eup %5381  ;;  %v1192_v16 = vadd.f32 %v5305_v11, %v1188_v12  ;;  %v1561_v11 = vld [vmem:[%s7170_s14 + $0x10] sm:$0xff] }
0x115e   :  { %v1404_v17 = vmul.f32 %v5382_v13, %v1390_v4  ;;  %vm1410_vm7 = vweird.f32 %v5382_v13  ;;  %v5306_v4 = vld [vmem:[%s7164_s15 + $0x1] ss:$0 sm:$0xff]  ;;  %1592 = vmatpush.msrb.mxu1 %v1561_v11  ;;  %s7177_s15 = sld [smem:[#allocation21_spill]] }
0x115f   :  { %5007 = vmatmul.msk.f32.vlgmr.msrb.gmra.mxu2 %vm313_vm8, %v1192_v16  ;;  %vm1411_vm2 = vmor %vm1409_vm6, %vm1410_vm7  ;;  %v1560_v16 = vld [vmem:[%s7170_s14 + $0x8] sm:$0xff] }
0x1160   :  { %v1405_v18 = vmul.f32 %v5382_v13, %v1404_v17  ;;  %1593 = vmatpush.msrb.mxu1 %v1560_v16 }
0x1162   :  { %v1406_v19 = vmul.f32 0.5, %v1405_v18 }
0x1164   :  { %v1407_v15 = vsub.f32 1.5, %v1406_v19 }
0x1166   :  { %v1408_v20 = vmul.f32 %v5382_v13, %v1407_v15 }
0x1168   :  { %v1459_v21 = vpop.xlane.xlu2 %1458  ;;  %v1412_v22 = vsel %vm1411_vm2, %v5382_v13, %v1408_v20 }
0x1169   :  { %v1434_v35 = vmul.f32 %v1412_v22, %v6142_v14  ;;  %v1469_v6 = vmul.f32 %v1459_v21, %v5928_v43 }
0x116b   :  { %v1441_v23 = vmul.f32 %v6151_v31, %v1434_v35  ;;  %v6191_v25 = vsub.f32 %v6158_v40, %v1469_v6 }
0x116d   :  { %v6188_v24 = vadd.f32 %v6154_v36, %v1441_v23  ;;  %v1477_v28 = vmul.f32 %v6191_v25, %v6191_v25 }
0x116f   :  { %v1460_v26 = vsel %vm313_vm8, %v6188_v24, 0.0  ;;  %v1481_v30 = vsel %vm313_vm8, %v1477_v28, 0.0 }
0x1170   :  { %1461 = vadd.xlane.f32.xlu1 %v1460_v26  ;;  %v1468_v27 = vpop.xlane.xlu2 %1467 }
0x1171   :  { %v1472_v14 = vmul.f32 %v1468_v27, %v5928_v43 }
0x1173   :  { %v6199_v29 = vsub.f32 %v6164_v47, %v1472_v14 }
0x1175   :  { %v1480_v32 = vmul.f32 %v6199_v29, %v6199_v29 }
0x1177   :  { %v1490_v33 = vsel %vm313_vm8, %v1480_v32, 0.0 }
0x1178   :  { %1482 = vadd.xlane.f32.xlu1 %v1481_v30 }
0x1180   :  { %1491 = vadd.xlane.f32.xlu1 %v1490_v33 }
0x11c5   :  { %v1381_v42 = vpop.xlane.xlu1 %1380 }
0x11c6   :  { %v1387_v44 = vmul.f32 %v1381_v42, %v5928_v43 }
0x11c8   :  { %v1391_v46 = vadd.f32 1e-12, %v1387_v44  ;;  %v6243_v44 = vld [vmem:[%s7172_s24] ss:$0 sm:$0xff] }
0x11ca   :  { %5383 = vrsqrt.f32 %v1391_v46  ;;  %vm1419_vm11 = vweird.f32 %v1391_v46 }
0x11d0   :  { %v5384_v52 = vpop.eup %5383 }
0x11d1   :  { %v1414_v55 = vmul.f32 %v5384_v52, %v1391_v46  ;;  %vm1420_vm10 = vweird.f32 %v5384_v52 }
0x11d2   :  { %vm1421_vm12 = vmor %vm1419_vm11, %vm1420_vm10 }
0x11d3   :  { %v1415_v57 = vmul.f32 %v5384_v52, %v1414_v55 }
0x11d5   :  { %v1416_v59 = vmul.f32 0.5, %v1415_v57 }
0x11d7   :  { %v1417_v62 = vsub.f32 1.5, %v1416_v59 }
0x11d9   :  { %v1418_v0 = vmul.f32 %v5384_v52, %v1417_v62 }
0x11db   :  { %v1422_v1 = vsel %vm1421_vm12, %v5384_v52, %v1418_v0 }
0x11dc   :  { %v1435_v2 = vmul.f32 %v1422_v1, %v6174_v60 }
0x11de   :  { %v1442_v3 = vmul.f32 %v6151_v31, %v1435_v2  ;;  %v5309_v2 = vld [vmem:[%s7165_s16 + $0x1] ss:$0 sm:$0xff]  ;;  %s7178_s16 = sld [smem:[#allocation26_spill]] }
0x11e0   :  { %v6226_v5 = vadd.f32 %v6154_v36, %v1442_v3  ;;  %v1559_v36 = vld [vmem:[%s7170_s14] sm:$0xff] }
0x11e1   :  { %1594 = vmatpush.msrb.mxu1 %v1559_v36 }
0x11e2   :  { %v1223_v8 = vpop.f32.mrf.mxu2  ;;  %v1463_v10 = vsel %vm313_vm8, %v6226_v5, 0.0 }
0x11e3   :  { %v1224_v12 = vadd.f32 %v5306_v4, %v1223_v8  ;;  %1464 = vadd.xlane.f32.xlu0 %v1463_v10  ;;  %v1462_v13 = vpop.xlane.xlu1 %1461  ;;  %v6262_v8 = vld [vmem:[%s7173_s6] ss:$0 sm:$0xff] }
0x11e4   :  { %v1470_v60 = vmul.f32 %v1462_v13, %v5928_v43 }
0x11e5   :  { %v1226_v31 = vmul.f32 %v1224_v12, %v1224_v12 }
0x11e6   :  { %v1474_v17 = vsub.f32 %v6188_v24, %v1470_v60 }
0x11e7   :  { %v1227_v18 = vmul.f32 %v1226_v31, %v1224_v12 }
0x11e8   :  { %v1478_v19 = vmul.f32 %v1474_v17, %v1474_v17 }
0x11e9   :  { %v1228_v15 = vmul.f32 0.044715, %v1227_v18 }
0x11ea   :  { %v1484_v20 = vsel %vm313_vm8, %v1478_v19, 0.0 }
0x11eb   :  { %v1229_v21 = vadd.f32 %v1228_v15, %v1224_v12  ;;  %1485 = vadd.xlane.f32.xlu0 %v1484_v20  ;;  %v1483_v22 = vpop.xlane.xlu1 %1482 }
0x11ec   :  { %v1493_v35 = vmul.f32 %v1483_v22, %v5928_v43 }
0x11ed   :  { %v1230_v6 = vmul.f32 0.7978846, %v1229_v21 }
0x11ee   :  { %v1497_v23 = vadd.f32 1e-12, %v1493_v35  ;;  %v1313_v35 = vld [vmem:[%s7174_s20 + $0x18] sm:$0xff] }
0x11ef   :  { %5385 = vtanh.f32 %v1230_v6  ;;  %v1312_v6 = vld [vmem:[%s7174_s20 + $0x10] sm:$0xff]  ;;  %1330 = vmatpush.msra.mxu0 %v1313_v35 }
0x11f0   :  { %5387 = vrsqrt.f32 %v1497_v23  ;;  %vm1507_vm14 = vweird.f32 %v1497_v23 }
0x11f1   :  { %1331 = vmatpush.msra.mxu0 %v1312_v6 }
0x11f3   :  { %v1492_v13 = vpop.xlane.xlu1 %1491 }
0x11f4   :  { %v1496_v60 = vmul.f32 %v1492_v13, %v5928_v43 }
0x11f5   :  { %v5386_v26 = vpop.eup %5385 }
0x11f6   :  { %v5388_v27 = vpop.eup %5387  ;;  %v1232_v14 = vadd.f32 1.0, %v5386_v26  ;;  %v1500_v16 = vadd.f32 1e-12, %v1496_v60 }
0x11f7   :  { %v1502_v28 = vmul.f32 %v5388_v27, %v1497_v23  ;;  %vm1508_vm13 = vweird.f32 %v5388_v27 }
0x11f8   :  { %v1233_v30 = vmul.f32 0.5, %v1232_v14  ;;  %vm1509_vm15 = vmor %vm1507_vm14, %vm1508_vm13  ;;  %vm1537_vm6 = vweird.f32 %v1500_v16 }
0x11f9   :  { %v1503_v32 = vmul.f32 %v5388_v27, %v1502_v28 }
0x11fa   :  { %v1234_v33 = vmul.f32 %v1233_v30, %v1224_v12 }
0x11fb   :  { %v1504_v34 = vmul.f32 0.5, %v1503_v32 }
0x11fc   :  { %1273 = vmatmul.f32.vlgmr.msra.gmra.mxu3 %v1234_v33 }
0x11fd   :  { %v1505_v37 = vsub.f32 1.5, %v1504_v34 }
0x11ff   :  { %v1506_v38 = vmul.f32 %v5388_v27, %v1505_v37 }
0x1201   :  { %v1510_v41 = vsel %vm1509_vm15, %v5388_v27, %v1506_v38  ;;  %v1311_v27 = vld [vmem:[%s7174_s20 + $0x8] sm:$0xff]  ;;  %vm2172_vm15 = vcmask 130112  }
0x1202   :  { %v1541_v42 = vmul.f32 %v1510_v41, %v6191_v25  ;;  %1332 = vmatpush.msra.mxu0 %v1311_v27 }
0x1204   :  { %v1548_v45 = vmul.f32 %v6239_v39, %v1541_v42 }
0x1206   :  { %v1555_v46 = vadd.f32 %v6243_v44, %v1548_v45 }
0x1208   :  { %5026 = vmatmul.msk.f32.vlgmr.msrb.gmra.mxu1 %vm313_vm8, %v1555_v46 }
0x1256   :  { %v1465_v48 = vpop.xlane.xlu0 %1464 }
0x1257   :  { %v1471_v49 = vmul.f32 %v1465_v48, %v5928_v43 }
0x1259   :  { %v6250_v50 = vsub.f32 %v6226_v5, %v1471_v49 }
0x125b   :  { %v1479_v51 = vmul.f32 %v6250_v50, %v6250_v50 }
0x125d   :  { %v1487_v52 = vsel %vm313_vm8, %v1479_v51, 0.0 }
0x125e   :  { %1488 = vadd.xlane.f32.xlu2 %v1487_v52  ;;  %v1486_v25 = vpop.xlane.xlu0 %1485 }
0x125f   :  { %v1494_v53 = vmul.f32 %v1486_v25, %v5928_v43 }
0x1261   :  { %v1498_v55 = vadd.f32 1e-12, %v1494_v53 }
0x1263   :  { %5389 = vrsqrt.f32 %v1498_v55  ;;  %vm1517_vm4 = vweird.f32 %v1498_v55 }
0x1264   :  { %5391 = vrsqrt.f32 %v1500_v16 }
0x1269   :  { %v5390_v56 = vpop.eup %5389 }
0x126a   :  { %v1512_v57 = vmul.f32 %v5390_v56, %v1498_v55  ;;  %vm1518_vm0 = vweird.f32 %v5390_v56  ;;  %v5392_v31 = vpop.eup %5391 }
0x126b   :  { %vm1519_vm5 = vmor %vm1517_vm4, %vm1518_vm0  ;;  %v1532_v18 = vmul.f32 %v5392_v31, %v1500_v16  ;;  %vm1538_vm7 = vweird.f32 %v5392_v31  ;;  %v6309_v16 = vld [vmem:[%s7177_s15] ss:$0 sm:$0xff]  ;;  %vm2461_vm0 = vcmask 195712   ;;  %vm2750_vm4 = vcmask 261312  }
0x126c   :  { %v1513_v58 = vmul.f32 %v5390_v56, %v1512_v57  ;;  %vm1539_vm10 = vmor %vm1537_vm6, %vm1538_vm7 }
0x126d   :  { %v1533_v19 = vmul.f32 %v5392_v31, %v1532_v18 }
0x126e   :  { %v1514_v59 = vmul.f32 0.5, %v1513_v58 }
0x126f   :  { %v1534_v20 = vmul.f32 0.5, %v1533_v19  ;;  %v6325_v19 = vld [vmem:[%s7177_s15 + $0x1] ss:$0 sm:$0xff] }
0x1270   :  { %v1515_v61 = vsub.f32 1.5, %v1514_v59 }
0x1271   :  { %v1535_v23 = vsub.f32 1.5, %v1534_v20 }
0x1272   :  { %v1516_v62 = vmul.f32 %v5390_v56, %v1515_v61 }
0x1273   :  { %v1536_v28 = vmul.f32 %v5392_v31, %v1535_v23 }
0x1274   :  { %v1520_v63 = vsel %vm1519_vm5, %v5390_v56, %v1516_v62 }
0x1275   :  { %v1542_v0 = vmul.f32 %v1520_v63, %v1474_v17  ;;  %v1540_v34 = vsel %vm1539_vm10, %v5392_v31, %v1536_v28 }
0x1276   :  { %v1544_v41 = vmul.f32 %v1540_v34, %v6199_v29 }
0x1277   :  { %v1549_v9 = vmul.f32 %v6239_v39, %v1542_v0 }
0x1278   :  { %v1551_v42 = vmul.f32 %v6239_v39, %v1544_v41 }
0x1279   :  { %v1556_v1 = vadd.f32 %v6243_v44, %v1549_v9 }
0x127a   :  { %v1558_v45 = vadd.f32 %v6243_v44, %v1551_v42 }
0x127b   :  { %5027 = vmatmul.msk.f32.gmra.mxu1 %vm313_vm8, %v1556_v1 }
0x127f   :  { %v1274_v3 = vpop.f32.mrf.mxu3 }
0x1280   :  { %v1275_v4 = vadd.f32 %v5309_v2, %v1274_v3  ;;  %v5311_v3 = vld [vmem:[%s7175_s18] ss:$0 sm:$0xff]  ;;  %s7184_s18 = sld [smem:[#allocation31_spill]] }
0x1282   :  { %v1277_v7 = vadd.f32 %v1275_v4, %v6123_v54 }
0x1284   :  { %v1280_v10 = vsel %vm267_vm3, %v1277_v7, 0.0 }
0x1285   :  { %1281 = vadd.xlane.f32.xlu0 %v1280_v10  ;;  %v1596_v11 = vpop.f32.mrf.mxu1 }
0x1286   :  { %v6266_v12 = vadd.f32 %v6262_v8, %v1596_v11 }
0x1288   :  { %1609 = vrot.lane.b32.xlu1 %v6266_v12, %s5657_s9 }
0x12d1   :  { %v1489_v54 = vpop.xlane.xlu2 %1488 }
0x12d2   :  { %v1495_v17 = vmul.f32 %v1489_v54, %v5928_v43 }
0x12d4   :  { %v1499_v36 = vadd.f32 1e-12, %v1495_v17 }
0x12d6   :  { %5393 = vrsqrt.f32 %v1499_v36  ;;  %vm1527_vm11 = vweird.f32 %v1499_v36 }
0x12dc   :  { %v5394_v15 = vpop.eup %5393 }
0x12dd   :  { %v1522_v21 = vmul.f32 %v5394_v15, %v1499_v36  ;;  %vm1528_vm2 = vweird.f32 %v5394_v15 }
0x12de   :  { %vm1529_vm12 = vmor %vm1527_vm11, %vm1528_vm2 }
0x12df   :  { %v1523_v22 = vmul.f32 %v5394_v15, %v1522_v21 }
0x12e1   :  { %v1524_v26 = vmul.f32 0.5, %v1523_v22 }
0x12e3   :  { %v1525_v14 = vsub.f32 1.5, %v1524_v26  ;;  %v6336_v26 = vld [vmem:[%s7177_s15 + $0x2] ss:$0 sm:$0xff] }
0x12e5   :  { %v1526_v30 = vmul.f32 %v5394_v15, %v1525_v14 }
0x12e7   :  { %v1530_v32 = vsel %vm1529_vm12, %v5394_v15, %v1526_v30 }
0x12e8   :  { %v1543_v33 = vmul.f32 %v1530_v32, %v6250_v50 }
0x12ea   :  { %v1550_v37 = vmul.f32 %v6239_v39, %v1543_v33 }
0x12ec   :  { %v1557_v38 = vadd.f32 %v6243_v44, %v1550_v37  ;;  %v1310_v44 = vld [vmem:[%s7174_s20] sm:$0xff]  ;;  %s7183_s20 = sld [smem:[#allocation32_spill]] }
0x12ed   :  { %1333 = vmatpush.msra.mxu0 %v1310_v44  ;;  %v6342_v37 = vld [vmem:[%s7177_s15 + $0x3] ss:$0 sm:$0xff] }
0x12ee   :  { %5028 = vmatmul.msk.f32.gmra.mxu1 %vm313_vm8, %v1557_v38 }
0x12f6   :  { %5029 = vmatmul.msk.f32.gmra.mxu1 %vm313_vm8, %v1558_v45 }
0x12f8   :  { %v1282_v46 = vpop.xlane.xlu0 %1281  ;;  %v1599_v48 = vpop.f32.mrf.mxu1 }
0x12f9   :  { %v1283_v49 = vmul.f32 %v1282_v46, %v5928_v43  ;;  %v6285_v50 = vadd.f32 %v6262_v8, %v1599_v48 }
0x12fa   :  { %v1610_v51 = vpop.permute.xlu1 %1609 }
0x12fb   :  { %v1284_v52 = vsub.f32 %v1277_v7, %v1283_v49  ;;  %1636 = vrot.lane.b32.xlu0 %v6285_v50, %s5657_s9  ;;  %5030 = vmatpush.xpose.msk.msra.mxu2 %vm340_vm9, %v1610_v51  ;;  %v5244_v35 = vpack.i.bf16 %v6266_v12, %v6285_v50 }
0x12fd   :  { %v1285_v29 = vmul.f32 %v1284_v52, %v1284_v52 }
0x12fe   :  { %5031 = vmatmul.msk.f32.vlgmr.msra.gmra.mxu2 %vm340_vm9, %v6266_v12 }
0x12ff   :  { %v1286_v39 = vsel %vm267_vm3, %v1285_v29, 0.0 }
0x1300   :  { %1287 = vadd.xlane.f32.xlu2 %v1286_v39 }
0x136b   :  { %v1602_v25 = vpop.f32.mrf.mxu1 }
0x136c   :  { %v6295_v53 = vadd.f32 %v6262_v8, %v1602_v25 }
0x136d   :  { %v1637_v55 = vpop.permute.xlu0 %1636 }
0x136e   :  { %1663 = vrot.lane.b32.xlu2 %v6295_v53, %s5657_s9  ;;  %5032 = vmatpush.xpose.msk.msrb.mxu0 %vm340_vm9, %v1637_v55 }
0x1373   :  { %v1288_v56 = vpop.xlane.xlu2 %1287  ;;  %v1605_v57 = vpop.f32.mrf.mxu1 }
0x1374   :  { %v1289_v58 = vmul.f32 %v1288_v56, %v5928_v43  ;;  %v6302_v59 = vadd.f32 %v6262_v8, %v1605_v57  ;;  %v5312_v8 = vld [vmem:[%s7176_s11] ss:$0 sm:$0xff]  ;;  %s7185_s11 = sld [smem:[#allocation33_spill]] }
0x1376   :  { %v1290_v61 = vadd.f32 1e-12, %v1289_v58  ;;  %1690 = vrot.lane.b32.xlu0 %v6302_v59, %s5657_s9 }
0x1378   :  { %5395 = vrsqrt.f32 %v1290_v61  ;;  %vm1297_vm13 = vweird.f32 %v1290_v61 }
0x137e   :  { %v5396_v62 = vpop.eup %5395 }
0x137f   :  { %v1292_v63 = vmul.f32 %v5396_v62, %v1290_v61  ;;  %vm1298_vm3 = vweird.f32 %v5396_v62 }
0x1380   :  { %vm1299_vm14 = vmor %vm1297_vm13, %vm1298_vm3 }
0x1381   :  { %v1293_v0 = vmul.f32 %v5396_v62, %v1292_v63  ;;  %v1632_v10 = vpop.f32.mrf.mxu2 }
0x1382   :  { %v1716_v13 = vmul.f32 0.35355338, %v1632_v10 }
0x1383   :  { %v1294_v9 = vmul.f32 0.5, %v1293_v0 }
0x1384   :  { %v1732_v54 = vadd.f32 %v6309_v16, %v1716_v13 }
0x1385   :  { %v1295_v1 = vsub.f32 1.5, %v1294_v9 }
0x1386   :  { %v1736_v31 = vsel %vm340_vm9, %v1732_v54, -inf }
0x1387   :  { %v1296_v2 = vmul.f32 %v5396_v62, %v1295_v1 }
0x1389   :  { %v1300_v4 = vsel %vm1299_vm14, %v5396_v62, %v1296_v2 }
0x138a   :  { %v1301_v7 = vmul.f32 %v1300_v4, %v1284_v52 }
0x138c   :  { %v1305_v11 = vmul.f32 %v5311_v3, %v1301_v7 }
0x138e   :  { %v1309_v60 = vadd.f32 %v5312_v8, %v1305_v11 }
0x1390   :  { %5025 = vmatmul.msk.f32.vlgmr.msra.gmra.mxu0 %vm313_vm8, %v1309_v60 }
0x1397   :  { %1737 = vmax.xlane.f32.xlu2 %v1736_v31 }
0x1398   :  { %5033 = vmatmul.msk.f32.vlgmr.msrb.gmra.mxu0 %vm340_vm9, %v6285_v50 }
0x13c8   :  { %v1664_v17 = vpop.permute.xlu2 %1663 }
0x13c9   :  { %5034 = vmatpush.xpose.msk.msrb.mxu2 %vm340_vm9, %v1664_v17 }
0x13cc   :  { %5035 = vmatmul.msk.f32.vlgmr.msrb.gmra.mxu2 %vm340_vm9, %v6295_v53 }
0x13e8   :  { %v1691_v36 = vpop.permute.xlu0 %1690 }
0x13e9   :  { %5036 = vmatpush.xpose.msk.msra.mxu0 %vm340_vm9, %v1691_v36 }
0x13ec   :  { %5037 = vmatmul.msk.f32.vlgmr.msra.gmra.mxu0 %vm340_vm9, %v6302_v59 }
0x140a   :  { %v1738_v6 = vpop.xlane.xlu2 %1737 }
0x140b   :  { %v1748_v23 = vsub.f32 %v1732_v54, %v1738_v6 }
0x140d   :  { %v6322_v18 = vpop.f32.mrf.mxu0  ;;  %v1752_v27 = vmul.f32 1.442695, %v1748_v23 }
0x140f   :  { %5397 = vpow2.f32 %v1752_v27 }
0x1415   :  { %v1659_v15 = vpop.f32.mrf.mxu0  ;;  %v5398_v33 = vpop.eup %5397 }
0x1416   :  { %v1717_v20 = vmul.f32 0.35355338, %v1659_v15  ;;  %v1760_v34 = vsel %vm340_vm9, %v5398_v33, 0.0 }
0x1418   :  { %v6328_v21 = vadd.f32 %v6325_v19, %v1717_v20 }
0x141a   :  { %v1739_v22 = vsel %vm340_vm9, %v6328_v21, -inf }
0x141b   :  { %1740 = vmax.xlane.f32.xlu1 %v1739_v22 }
0x1434   :  { %5245 = vrot.lane.b32.xlu1 %v5244_v35, %s5655_s0 }
0x144f   :  { %v1686_v14 = vpop.f32.mrf.mxu2 }
0x1450   :  { %v1718_v28 = vmul.f32 0.35355338, %v1686_v14 }
0x1452   :  { %v1734_v30 = vadd.f32 %v6336_v26, %v1718_v28 }
0x1454   :  { %v1742_v32 = vsel %vm340_vm9, %v1734_v30, -inf }
0x1455   :  { %1743 = vmax.xlane.f32.xlu0 %v1742_v32 }
0x145d   :  { %1761 = vadd.xlane.f32.xlu0 %v1760_v34 }
0x1469   :  { %v1713_v38 = vpop.f32.mrf.mxu0 }
0x146a   :  { %v1719_v41 = vmul.f32 0.35355338, %v1713_v38 }
0x146c   :  { %v1735_v42 = vadd.f32 %v6342_v37, %v1719_v41 }
0x146e   :  { %v1745_v45 = vsel %vm340_vm9, %v1735_v42, -inf }
0x146f   :  { %1746 = vmax.xlane.f32.xlu1 %v1745_v45 }
0x1471   :  { %1890 = vrot.lane.b32.xlu0 %v6266_v12, %s5659_s17 }
0x1479   :  { %1918 = vrot.lane.b32.xlu0 %v6285_v50, %s5659_s17 }
0x1481   :  { %1916 = vrot.lane.b32.xlu0 %v6285_v50, %s5656_s5 }
0x1488   :  { %1832 = vrot.lane.b32.xlu1 %v6295_v53, %s5655_s0 }
0x1489   :  { %1858 = vrot.lane.b32.xlu0 %v6302_v59, %s5655_s0 }
0x148e   :  { %v1741_v46 = vpop.xlane.xlu1 %1740 }
0x148f   :  { %v1749_v7 = vsub.f32 %v6328_v21, %v1741_v46 }
0x1491   :  { %1972 = vrot.lane.b32.xlu0 %v6302_v59, %s5656_s5  ;;  %v1754_v8 = vmul.f32 1.442695, %v1749_v7 }
0x14a6   :  { %v5246_v48 = vpop.permute.xlu1 %5245 }
0x14a7   :  { %v5248_v49 = vunpack.i.h.bf16 %v5246_v48  ;;  %v5247_v51 = vunpack.i.l.bf16 %v5246_v48 }
0x14a9   :  { %1801 = vmatpush.msra.mxu2 %v5248_v49  ;;  %1827 = vmatpush.msrb.mxu0 %v5247_v51 }
0x14c8   :  { %v1744_v52 = vpop.xlane.xlu0 %1743 }
0x14c9   :  { %v1750_v29 = vsub.f32 %v1734_v30, %v1744_v52 }
0x14cb   :  { %v1756_v39 = vmul.f32 1.442695, %v1750_v29 }
0x14cd   :  { %5399 = vpow2.f32 %v1756_v39 }
0x14d0   :  { %v1762_v44 = vpop.xlane.xlu0 %1761 }
0x14d1   :  { %5401 = vrcp.f32 %v1762_v44 }
0x14d3   :  { %v5400_v25 = vpop.eup %5399 }
0x14d4   :  { %v1766_v55 = vsel %vm340_vm9, %v5400_v25, 0.0 }
0x14d5   :  { %1767 = vadd.xlane.f32.xlu2 %v1766_v55 }
0x14d7   :  { %v5402_v56 = vpop.eup %5401 }
0x14d8   :  { %v1776_v57 = vmul.f32 %v5402_v56, %v5398_v33 }
0x14da   :  { %5038 = vmatmul.msk.f32.vlgmr.msra.gmra.mxu2 %vm340_vm9, %v1776_v57 }
0x14e2   :  { %v1747_v58 = vpop.xlane.xlu1 %1746 }
0x14e3   :  { %v1751_v61 = vsub.f32 %v1735_v42, %v1747_v58  ;;  %v1891_v62 = vpop.permute.xlu0 %1890 }
0x14e4   :  { %5042 = vmatpush.xpose.msk.msra.mxu0 %vm340_vm9, %v1891_v62 }
0x14e5   :  { %v1758_v63 = vmul.f32 1.442695, %v1751_v61 }
0x14e7   :  { %5403 = vpow2.f32 %v1758_v63 }
0x14e8   :  { %5405 = vpow2.f32 %v1754_v8 }
0x14eb   :  { %v1919_v0 = vpop.permute.xlu0 %1918 }
0x14ec   :  { %5044 = vmatpush.xpose.msk.msra.mxu1 %vm340_vm9, %v1919_v0  ;;  %v6407_v0 = vpack.i.bf16 %v6285_v50, %v6266_v12 }
0x14ed   :  { %v5404_v9 = vpop.eup %5403  ;;  %1888 = vrot.lane.b32.xlu2 %v6266_v12, %s5656_s5 }
0x14ee   :  { %v1769_v1 = vsel %vm340_vm9, %v5404_v9, 0.0  ;;  %v5406_v10 = vpop.eup %5405 }
0x14ef   :  { %1770 = vadd.xlane.f32.xlu1 %v1769_v1  ;;  %v1763_v11 = vsel %vm340_vm9, %v5406_v10, 0.0 }
0x14f3   :  { %v1917_v2 = vpop.permute.xlu0 %1916 }
0x14f4   :  { %5045 = vmatmul.msk.f32.vlgmr.msra.gmra.mxu1 %vm340_vm9, %v1917_v2 }
0x14fa   :  { %v1833_v3 = vpop.permute.xlu1 %1832 }
0x14fb   :  { %v1859_v4 = vpop.permute.xlu0 %1858  ;;  %1853 = vmatpush.msrb.mxu2 %v1833_v3 }
0x14fc   :  { %1879 = vmatpush.msrb.mxu3 %v1859_v4 }
0x1503   :  { %v1973_v33 = vpop.permute.xlu0 %1972 }
0x1516   :  { %1764 = vadd.xlane.f32.xlu2 %v1763_v11 }
0x152e   :  { %1946 = vrot.lane.b32.xlu2 %v6295_v53, %s5659_s17 }
0x1536   :  { %1944 = vrot.lane.b32.xlu2 %v6295_v53, %s5656_s5 }
0x153e   :  { %1974 = vrot.lane.b32.xlu2 %v6302_v59, %s5659_s17 }
0x1548   :  { %v1768_v13 = vpop.xlane.xlu2 %1767 }
0x1549   :  { %5407 = vrcp.f32 %v1768_v13 }
0x154f   :  { %v5408_v60 = vpop.eup %5407 }
0x1550   :  { %v1778_v54 = vmul.f32 %v5408_v60, %v5400_v25  ;;  %v1889_v6 = vpop.permute.xlu2 %1888 }
0x1552   :  { %5040 = vmatmul.msk.f32.vlgmr.msrb.gmra.mxu2 %vm340_vm9, %v1778_v54 }
0x155d   :  { %v1803_v31 = vpop.f32.mrf.mxu2 }
0x155e   :  { %1884 = vst.msk [vmem:[#allocation4] sm:$0xff] %vm340_vm9, %v1803_v31 }
0x1562   :  { %v1771_v17 = vpop.xlane.xlu1 %1770 }
0x1563   :  { %5409 = vrcp.f32 %v1771_v17 }
0x1569   :  { %v5410_v36 = vpop.eup %5409 }
0x156a   :  { %v1779_v15 = vmul.f32 %v5410_v36, %v5404_v9 }
0x156c   :  { %5041 = vmatmul.msk.f32.vlgmr.msrb.gmra.mxu3 %vm340_vm9, %v1779_v15 }
0x1571   :  { %v1941_v20 = vpop.f32.mrf.mxu1 }
0x1572   :  { %v2001_v21 = vmul.f32 0.35355338, %v1941_v20 }
0x1574   :  { %v2005_v22 = vadd.f32 %v6325_v19, %v2001_v21 }
0x1576   :  { %v2011_v35 = vsel %vm340_vm9, %v2005_v22, -inf }
0x1577   :  { %2012 = vmax.xlane.f32.xlu0 %v2011_v35 }
0x1589   :  { %v1765_v23 = vpop.xlane.xlu2 %1764 }
0x158a   :  { %5411 = vrcp.f32 %v1765_v23 }
0x158b   :  { %2179 = vrot.lane.b32.xlu0 %v6266_v12, %s5658_s13 }
0x1590   :  { %v5412_v27 = vpop.eup %5411 }
0x1591   :  { %v1777_v14 = vmul.f32 %v5412_v27, %v5406_v10  ;;  %v1947_v28 = vpop.permute.xlu2 %1946 }
0x1592   :  { %5046 = vmatpush.xpose.msk.msra.mxu2 %vm340_vm9, %v1947_v28 }
0x1593   :  { %2207 = vrot.lane.b32.xlu0 %v6285_v50, %s5658_s13  ;;  %5039 = vmatmul.msk.f32.vlgmr.msrb.gmra.mxu0 %vm340_vm9, %v1777_v14 }
0x1599   :  { %v1945_v30 = vpop.permute.xlu2 %1944 }
0x159a   :  { %5047 = vmatmul.msk.f32.vlgmr.msra.gmra.mxu2 %vm340_vm9, %v1945_v30 }
0x159b   :  { %2205 = vrot.lane.b32.xlu0 %v6285_v50, %s5661_s22  ;;  %5043 = vmatmul.msk.f32.vlgmr.msra.gmra.mxu0 %vm340_vm9, %v1889_v6 }
0x15a1   :  { %v1975_v32 = vpop.permute.xlu2 %1974 }
0x15a2   :  { %5048 = vmatpush.xpose.msk.msra.mxu3 %vm340_vm9, %v1975_v32 }
0x15a3   :  { %2235 = vrot.lane.b32.xlu0 %v6295_v53, %s5658_s13 }
0x15a5   :  { %5049 = vmatmul.msk.f32.vlgmr.msra.gmra.mxu3 %vm340_vm9, %v1973_v33 }
0x15ab   :  { %2130 = vrot.lane.b32.xlu0 %v6302_v59, %s5660_s21 }
0x15b3   :  { %2261 = vrot.lane.b32.xlu0 %v6302_v59, %s5661_s22 }
0x15d5   :  { %v1855_v34 = vpop.f32.mrf.mxu2 }
0x15d6   :  { %1886 = vst.msk [vmem:[#allocation4 + $0x10] sm:$0xff] %vm340_vm9, %v1855_v34 }
0x15ea   :  { %v2013_v41 = vpop.xlane.xlu0 %2012 }
0x15eb   :  { %v2021_v52 = vsub.f32 %v2005_v22, %v2013_v41 }
0x15ed   :  { %v2026_v44 = vmul.f32 1.442695, %v2021_v52 }
0x15ef   :  { %v1881_v38 = vpop.f32.mrf.mxu3  ;;  %5413 = vpow2.f32 %v2026_v44 }
0x15f0   :  { %1887 = vst.msk [vmem:[#allocation4 + $0x18] sm:$0xff] %vm340_vm9, %v1881_v38 }
0x15f5   :  { %v5414_v62 = vpop.eup %5413 }
0x15f6   :  { %v2035_v63 = vsel %vm340_vm9, %v5414_v62, 0.0 }
0x15fd   :  { %v2180_v42 = vpop.permute.xlu0 %2179 }
0x1605   :  { %v2208_v45 = vpop.permute.xlu0 %2207 }
0x160d   :  { %v2206_v46 = vpop.permute.xlu0 %2205 }
0x1610   :  { %v1829_v48 = vpop.f32.mrf.mxu0 }
0x1611   :  { %1885 = vst.msk [vmem:[#allocation4 + $0x8] sm:$0xff] %vm340_vm9, %v1829_v48 }
0x1615   :  { %v2236_v49 = vpop.permute.xlu0 %2235 }
0x1618   :  { %v1913_v51 = vpop.f32.mrf.mxu0 }
0x1619   :  { %v2000_v29 = vmul.f32 0.35355338, %v1913_v51 }
0x161b   :  { %v2004_v39 = vadd.f32 %v6309_v16, %v2000_v29 }
0x161d   :  { %v2131_v25 = vpop.permute.xlu0 %2130  ;;  %v1969_v55 = vpop.f32.mrf.mxu2  ;;  %v2008_v56 = vsel %vm340_vm9, %v2004_v39, -inf }
0x161e   :  { %v2002_v57 = vmul.f32 0.35355338, %v1969_v55  ;;  %2151 = vmatpush.msrb.mxu3 %v2131_v25  ;;  %2009 = vmax.xlane.f32.xlu2 %v2008_v56 }
0x1620   :  { %v2006_v58 = vadd.f32 %v6336_v26, %v2002_v57 }
0x1622   :  { %v2014_v61 = vsel %vm340_vm9, %v2006_v58, -inf }
0x1623   :  { %2015 = vmax.xlane.f32.xlu1 %v2014_v61 }
0x1625   :  { %v2262_v56 = vpop.permute.xlu0 %2261 }
0x1628   :  { %v1997_v11 = vpop.f32.mrf.mxu3 }
0x1629   :  { %v2003_v54 = vmul.f32 0.35355338, %v1997_v11 }
0x162b   :  { %2036 = vadd.xlane.f32.xlu1 %v2035_v63  ;;  %v2007_v15 = vadd.f32 %v6342_v37, %v2003_v54 }
0x162d   :  { %v2017_v20 = vsel %vm340_vm9, %v2007_v15, -inf }
0x1636   :  { %5250 = vrot.lane.b32.xlu2 %v6407_v0, %s5660_s21 }
0x163e   :  { %2104 = vrot.lane.b32.xlu2 %v6295_v53, %s5660_s21 }
0x1691   :  { %v2010_v9 = vpop.xlane.xlu2 %2009 }
0x1692   :  { %v2020_v21 = vsub.f32 %v2004_v39, %v2010_v9 }
0x1694   :  { %v2024_v22 = vmul.f32 1.442695, %v2020_v21 }
0x1696   :  { %v2016_v1 = vpop.xlane.xlu1 %2015 }
0x1697   :  { %v2022_v2 = vsub.f32 %v2006_v58, %v2016_v1 }
0x1699   :  { %v2028_v3 = vmul.f32 1.442695, %v2022_v2  ;;  %v5251_v4 = vpop.permute.xlu2 %5250 }
0x169a   :  { %v5253_v7 = vunpack.i.h.bf16 %v5251_v4  ;;  %v5252_v8 = vunpack.i.l.bf16 %v5251_v4 }
0x169b   :  { %5415 = vpow2.f32 %v2028_v3 }
0x169c   :  { %2073 = vmatpush.msrb.mxu0 %v5252_v8  ;;  %2099 = vmatpush.msrb.mxu1 %v5253_v7 }
0x169e   :  { %5054 = vmatpush.xpose.msk.msra.mxu0 %vm340_vm9, %v2180_v42  ;;  %5056 = vmatpush.xpose.msk.msra.mxu1 %vm340_vm9, %v2208_v45  ;;  %v2037_v10 = vpop.xlane.xlu1 %2036 }
0x169f   :  { %5417 = vrcp.f32 %v2037_v10 }
0x16a0   :  { %5419 = vpow2.f32 %v2024_v22 }
0x16a1   :  { %v5416_v13 = vpop.eup %5415  ;;  %v2105_v60 = vpop.permute.xlu2 %2104 }
0x16a2   :  { %2125 = vmatpush.msrb.mxu2 %v2105_v60  ;;  %v2038_v31 = vsel %vm340_vm9, %v5416_v13, 0.0 }
0x16a3   :  { %2039 = vadd.xlane.f32.xlu1 %v2038_v31 }
0x16a4   :  { %5058 = vmatpush.xpose.msk.msra.mxu2 %vm340_vm9, %v2236_v49 }
0x16a5   :  { %v5418_v17 = vpop.eup %5417 }
0x16a6   :  { %v2049_v36 = vmul.f32 %v5418_v17, %v5414_v62  ;;  %v5420_v35 = vpop.eup %5419 }
0x16a7   :  { %v2032_v6 = vsel %vm340_vm9, %v5420_v35, 0.0 }
0x16a8   :  { %5051 = vmatmul.msk.f32.vlgmr.msrb.gmra.mxu1 %vm340_vm9, %v2049_v36 }
0x16ab   :  { %2018 = vmax.xlane.f32.xlu1 %v2017_v20 }
0x16b0   :  { %5057 = vmatmul.msk.f32.vlgmr.msra.gmra.mxu1 %vm340_vm9, %v2206_v46 }
0x16c4   :  { %2177 = vrot.lane.b32.xlu1 %v6266_v12, %s5661_s22 }
0x16ee   :  { %2033 = vadd.xlane.f32.xlu1 %v2032_v6 }
0x1707   :  { %2233 = vrot.lane.b32.xlu1 %v6295_v53, %s5661_s22 }
0x170f   :  { %2263 = vrot.lane.b32.xlu1 %v6302_v59, %s5658_s13 }
0x1716   :  { %v2040_v23 = vpop.xlane.xlu1 %2039 }
0x1717   :  { %5421 = vrcp.f32 %v2040_v23 }
0x171d   :  { %v5422_v27 = vpop.eup %5421 }
0x171e   :  { %v2050_v14 = vmul.f32 %v5422_v27, %v5416_v13  ;;  %v2019_v28 = vpop.xlane.xlu1 %2018 }
0x171f   :  { %v2023_v30 = vsub.f32 %v2007_v15, %v2019_v28 }
0x1720   :  { %5052 = vmatmul.msk.f32.vlgmr.msrb.gmra.mxu2 %vm340_vm9, %v2050_v14 }
0x1721   :  { %v2030_v32 = vmul.f32 1.442695, %v2023_v30 }
0x1723   :  { %5423 = vpow2.f32 %v2030_v32 }
0x1725   :  { %v6429_v33 = vpop.f32.mrf.mxu1 }
0x1729   :  { %v5424_v34 = vpop.eup %5423 }
0x172a   :  { %v2041_v38 = vsel %vm340_vm9, %v5424_v34, 0.0 }
0x172b   :  { %2042 = vadd.xlane.f32.xlu2 %v2041_v38 }
0x172d   :  { %v2230_v41 = vpop.f32.mrf.mxu1 }
0x172e   :  { %v2290_v42 = vmul.f32 0.35355338, %v2230_v41 }
0x1730   :  { %v2294_v45 = vadd.f32 %v6325_v19, %v2290_v42 }
0x1732   :  { %v2300_v46 = vsel %vm340_vm9, %v2294_v45, -inf }
0x1733   :  { %2301 = vmax.xlane.f32.xlu0 %v2300_v46 }
0x1736   :  { %v2178_v48 = vpop.permute.xlu1 %2177 }
0x1747   :  { %2468 = vrot.lane.b32.xlu0 %v6266_v12, %s5662_s23 }
0x174f   :  { %2496 = vrot.lane.b32.xlu0 %v6285_v50, %s5662_s23 }
0x1757   :  { %2393 = vrot.lane.b32.xlu0 %v6295_v53, %s5665_s1 }
0x175f   :  { %2524 = vrot.lane.b32.xlu0 %v6295_v53, %s5662_s23 }
0x1761   :  { %v2034_v49 = vpop.xlane.xlu1 %2033 }
0x1762   :  { %5425 = vrcp.f32 %v2034_v49 }
0x1767   :  { %2522 = vrot.lane.b32.xlu0 %v6295_v53, %s5663_s26 }
0x1768   :  { %v5426_v51 = vpop.eup %5425 }
0x1769   :  { %v2048_v52 = vmul.f32 %v5426_v51, %v5420_v35 }
0x176b   :  { %5050 = vmatmul.msk.f32.vlgmr.msrb.gmra.mxu0 %vm340_vm9, %v2048_v52 }
0x176f   :  { %2419 = vrot.lane.b32.xlu0 %v6302_v59, %s5665_s1 }
0x1773   :  { %5055 = vmatmul.msk.f32.vlgmr.msra.gmra.mxu0 %vm340_vm9, %v2178_v48 }
0x1777   :  { %2552 = vrot.lane.b32.xlu0 %v6302_v59, %s5662_s23 }
0x1779   :  { %v2234_v29 = vpop.permute.xlu1 %2233 }
0x177a   :  { %5059 = vmatmul.msk.f32.vlgmr.msra.gmra.mxu2 %vm340_vm9, %v2234_v29 }
0x1781   :  { %v2264_v39 = vpop.permute.xlu1 %2263 }
0x1782   :  { %5060 = vmatpush.xpose.msk.msra.mxu3 %vm340_vm9, %v2264_v39 }
0x179e   :  { %v2043_v44 = vpop.xlane.xlu2 %2042 }
0x179f   :  { %5427 = vrcp.f32 %v2043_v44 }
0x17a3   :  { %v6461_v10 = vpop.f32.mrf.mxu2 }
0x17a5   :  { %v5428_v25 = vpop.eup %5427 }
0x17a6   :  { %v2051_v55 = vmul.f32 %v5428_v25, %v5424_v34  ;;  %v2302_v57 = vpop.xlane.xlu0 %2301 }
0x17a7   :  { %v2310_v13 = vsub.f32 %v2294_v45, %v2302_v57 }
0x17a8   :  { %5053 = vmatmul.msk.f32.vlgmr.msrb.gmra.mxu3 %vm340_vm9, %v2051_v55 }
0x17a9   :  { %v2315_v60 = vmul.f32 1.442695, %v2310_v13 }
0x17ab   :  { %5429 = vpow2.f32 %v2315_v60 }
0x17b0   :  { %5061 = vmatmul.msk.f32.vlgmr.msra.gmra.mxu3 %vm340_vm9, %v2262_v56 }
0x17b1   :  { %v5430_v15 = vpop.eup %5429 }
0x17b2   :  { %v2324_v20 = vsel %vm340_vm9, %v5430_v15, 0.0 }
0x17b9   :  { %v2469_v58 = vpop.permute.xlu0 %2468 }
0x17c1   :  { %v2497_v61 = vpop.permute.xlu0 %2496 }
0x17c9   :  { %v2394_v62 = vpop.permute.xlu0 %2393 }
0x17ca   :  { %2414 = vmatpush.msrb.mxu2 %v2394_v62 }
0x17d1   :  { %v2525_v63 = vpop.permute.xlu0 %2524 }
0x17d2   :  { %5070 = vmatpush.xpose.msk.msra.mxu2 %vm340_vm9, %v2525_v63 }
0x17d9   :  { %v6455_v9 = vpop.permute.xlu0 %2522 }
0x17e1   :  { %v2420_v1 = vpop.permute.xlu0 %2419 }
0x17e2   :  { %2440 = vmatpush.msrb.mxu3 %v2420_v1 }
0x17e8   :  { %v6457_v2 = vpop.f32.mrf.mxu0 }
0x17e9   :  { %v2553_v3 = vpop.permute.xlu0 %2552 }
0x17ea   :  { %5072 = vmatpush.xpose.msk.msra.mxu3 %vm340_vm9, %v2553_v3 }
0x17f0   :  { %v2202_v4 = vpop.f32.mrf.mxu0 }
0x17f1   :  { %v2289_v7 = vmul.f32 0.35355338, %v2202_v4 }
0x17f3   :  { %v2293_v8 = vadd.f32 %v6309_v16, %v2289_v7 }
0x17f5   :  { %v2297_v11 = vsel %vm340_vm9, %v2293_v8, -inf }
0x17f6   :  { %2298 = vmax.xlane.f32.xlu1 %v2297_v11 }
0x17fd   :  { %v2258_v54 = vpop.f32.mrf.mxu2 }
0x17fe   :  { %v2291_v31 = vmul.f32 0.35355338, %v2258_v54 }
0x1800   :  { %v2295_v17 = vadd.f32 %v6336_v26, %v2291_v31 }
0x1802   :  { %v2303_v36 = vsel %vm340_vm9, %v2295_v17, -inf }
0x1803   :  { %2304 = vmax.xlane.f32.xlu2 %v2303_v36 }
0x180b   :  { %2325 = vadd.xlane.f32.xlu2 %v2324_v20 }
0x180f   :  { %5255 = vrot.lane.b32.xlu1 %v6407_v0, %s5665_s1 }
0x1823   :  { %2466 = vrot.lane.b32.xlu2 %v6266_v12, %s5663_s26 }
0x182b   :  { %v6471_v21 = vpop.f32.mrf.mxu3 }
0x1833   :  { %v2286_v22 = vpop.f32.mrf.mxu3 }
0x1834   :  { %v2292_v35 = vmul.f32 0.35355338, %v2286_v22 }
0x1836   :  { %v2296_v6 = vadd.f32 %v6342_v37, %v2292_v35 }
0x1838   :  { %v2306_v23 = vsel %vm340_vm9, %v2296_v6, -inf }
0x184c   :  { %2307 = vmax.xlane.f32.xlu2 %v2306_v23 }
0x1869   :  { %v2299_v27 = vpop.xlane.xlu1 %2298 }
0x186a   :  { %v2309_v14 = vsub.f32 %v2293_v8, %v2299_v27 }
0x186c   :  { %v2313_v28 = vmul.f32 1.442695, %v2309_v14 }
0x186e   :  { %5431 = vpow2.f32 %v2313_v28 }
0x1874   :  { %v5432_v30 = vpop.eup %5431 }
0x1875   :  { %v2321_v32 = vsel %vm340_vm9, %v5432_v30, 0.0 }
0x1876   :  { %v2305_v34 = vpop.xlane.xlu2 %2304  ;;  %2322 = vadd.xlane.f32.xlu2 %v2321_v32 }
0x1877   :  { %v2311_v38 = vsub.f32 %v2295_v17, %v2305_v34 }
0x1879   :  { %v2317_v12 = vmul.f32 1.442695, %v2311_v38 }
0x187b   :  { %5433 = vpow2.f32 %v2317_v12 }
0x187e   :  { %v2326_v41 = vpop.xlane.xlu2 %2325 }
0x187f   :  { %5435 = vrcp.f32 %v2326_v41 }
0x1881   :  { %v5434_v42 = vpop.eup %5433  ;;  %v5256_v45 = vpop.permute.xlu1 %5255 }
0x1882   :  { %v5258_v46 = vunpack.i.h.bf16 %v5256_v45  ;;  %v5257_v48 = vunpack.i.l.bf16 %v5256_v45  ;;  %v2327_v49 = vsel %vm340_vm9, %v5434_v42, 0.0 }
0x1883   :  { %2328 = vadd.xlane.f32.xlu1 %v2327_v49 }
0x1884   :  { %2362 = vmatpush.msrb.mxu0 %v5257_v48  ;;  %2388 = vmatpush.msrb.mxu1 %v5258_v46 }
0x1885   :  { %v5436_v51 = vpop.eup %5435 }
0x1886   :  { %5066 = vmatpush.xpose.msk.msra.mxu0 %vm340_vm9, %v2469_v58  ;;  %5068 = vmatpush.xpose.msk.msra.mxu1 %vm340_vm9, %v2497_v61  ;;  %v2338_v52 = vmul.f32 %v5436_v51, %v5430_v15  ;;  %v2467_v29 = vpop.permute.xlu2 %2466 }
0x1888   :  { %5063 = vmatmul.msk.f32.vlgmr.msrb.gmra.mxu1 %vm340_vm9, %v2338_v52 }
0x188e   :  { %2494 = vrot.lane.b32.xlu2 %v6285_v50, %s5663_s26 }
0x189c   :  { %2550 = vrot.lane.b32.xlu1 %v6302_v59, %s5663_s26 }
0x18bf   :  { %v2308_v39 = vpop.xlane.xlu2 %2307 }
0x18c0   :  { %v2312_v44 = vsub.f32 %v2296_v6, %v2308_v39 }
0x18c2   :  { %v2319_v25 = vmul.f32 1.442695, %v2312_v44 }
0x18c4   :  { %5437 = vpow2.f32 %v2319_v25 }
0x18ca   :  { %v5438_v55 = vpop.eup %5437 }
0x18cb   :  { %v2330_v56 = vsel %vm340_vm9, %v5438_v55, 0.0 }
0x18cc   :  { %2331 = vadd.xlane.f32.xlu2 %v2330_v56 }
0x18e9   :  { %v2323_v57 = vpop.xlane.xlu2 %2322 }
0x18ea   :  { %5439 = vrcp.f32 %v2323_v57 }
0x18f0   :  { %v5440_v58 = vpop.eup %5439 }
0x18f1   :  { %v2337_v61 = vmul.f32 %v5440_v58, %v5432_v30  ;;  %v2495_v62 = vpop.permute.xlu2 %2494 }
0x18f2   :  { %5069 = vmatmul.msk.f32.vlgmr.msra.gmra.mxu1 %vm340_vm9, %v2495_v62 }
0x18f3   :  { %5062 = vmatmul.msk.f32.vlgmr.msrb.gmra.mxu0 %vm340_vm9, %v2337_v61 }
0x18f6   :  { %v2329_v50 = vpop.xlane.xlu1 %2328 }
0x18f7   :  { %5441 = vrcp.f32 %v2329_v50 }
0x18fb   :  { %5067 = vmatmul.msk.f32.vlgmr.msra.gmra.mxu0 %vm340_vm9, %v2467_v29 }
0x18fd   :  { %v5442_v63 = vpop.eup %5441 }
0x18fe   :  { %v2339_v1 = vmul.f32 %v5442_v63, %v5434_v42 }
0x1900   :  { %5064 = vmatmul.msk.f32.vlgmr.msrb.gmra.mxu2 %vm340_vm9, %v2339_v1 }
0x1905   :  { %v6493_v11 = vpop.f32.mrf.mxu1 }
0x1908   :  { %5071 = vmatmul.msk.f32.vlgmr.msra.gmra.mxu2 %vm340_vm9, %v6455_v9 }
0x190e   :  { %v2551_v8 = vpop.permute.xlu1 %2550 }
0x193f   :  { %v2332_v3 = vpop.xlane.xlu2 %2331 }
0x1940   :  { %5443 = vrcp.f32 %v2332_v3 }
0x1946   :  { %v5444_v4 = vpop.eup %5443 }
0x1947   :  { %v2340_v7 = vmul.f32 %v5444_v4, %v5438_v55 }
0x1949   :  { %5065 = vmatmul.msk.f32.vlgmr.msrb.gmra.mxu3 %vm340_vm9, %v2340_v7 }
0x1951   :  { %5073 = vmatmul.msk.f32.vlgmr.msra.gmra.mxu3 %vm340_vm9, %v2551_v8 }
0x196f   :  { %v2519_v13 = vpop.f32.mrf.mxu1 }
0x1970   :  { %v2579_v60 = vmul.f32 0.35355338, %v2519_v13  ;;  %v2364_v54 = vpop.f32.mrf.mxu0 }
0x1972   :  { %v2583_v31 = vadd.f32 %v6325_v19, %v2579_v60 }
0x1974   :  { %v2589_v17 = vsel %vm340_vm9, %v2583_v31, -inf }
0x1975   :  { %2590 = vmax.xlane.f32.xlu2 %v2589_v17 }
0x1978   :  { %v2491_v9 = vpop.f32.mrf.mxu0 }
0x1979   :  { %v2578_v36 = vmul.f32 0.35355338, %v2491_v9 }
0x197b   :  { %v2582_v15 = vadd.f32 %v6309_v16, %v2578_v36 }
0x197d   :  { %v2586_v20 = vsel %vm340_vm9, %v2582_v15, -inf }
0x197e   :  { %2587 = vmax.xlane.f32.xlu0 %v2586_v20  ;;  %v2761_v20 = vld [vmem:[%s7178_s16 + $0x10] sm:$0xff] }
0x1983   :  { %v2416_v22 = vpop.f32.mrf.mxu2 }
0x198b   :  { %v2547_v35 = vpop.f32.mrf.mxu2 }
0x198c   :  { %v2580_v6 = vmul.f32 0.35355338, %v2547_v35  ;;  %v2759_v35 = vld [vmem:[%s7178_s16] sm:$0xff] }
0x198e   :  { %v2584_v23 = vadd.f32 %v6336_v26, %v2580_v6 }
0x1990   :  { %v2592_v27 = vsel %vm340_vm9, %v2584_v23, -inf }
0x1991   :  { %2593 = vmax.xlane.f32.xlu2 %v2592_v27 }
0x19cc   :  { %v2442_v14 = vpop.f32.mrf.mxu3 }
0x19d4   :  { %v2575_v19 = vpop.f32.mrf.mxu3 }
0x19d5   :  { %v2581_v28 = vmul.f32 0.35355338, %v2575_v19 }
0x19d7   :  { %v2585_v30 = vadd.f32 %v6342_v37, %v2581_v28 }
0x19d9   :  { %v2595_v32 = vsel %vm340_vm9, %v2585_v30, -inf }
0x19da   :  { %2596 = vmax.xlane.f32.xlu1 %v2595_v32 }
0x19e8   :  { %v2591_v16 = vpop.xlane.xlu2 %2590 }
0x19e9   :  { %v2599_v34 = vsub.f32 %v2583_v31, %v2591_v16 }
0x19eb   :  { %v2604_v38 = vmul.f32 1.442695, %v2599_v34 }
0x19ed   :  { %5445 = vpow2.f32 %v2604_v38 }
0x19f1   :  { %v2588_v12 = vpop.xlane.xlu0 %2587 }
0x19f2   :  { %v2598_v41 = vsub.f32 %v2582_v15, %v2588_v12  ;;  %v2762_v15 = vld [vmem:[%s7178_s16 + $0x18] sm:$0xff]  ;;  %v5317_v12 = vld [vmem:[%s7179_s25] ss:$0 sm:$0xff] }
0x19f3   :  { %v5446_v42 = vpop.eup %5445 }
0x19f4   :  { %v2602_v45 = vmul.f32 1.442695, %v2598_v41  ;;  %v2613_v26 = vsel %vm340_vm9, %v5446_v42, 0.0 }
0x19f5   :  { %2614 = vadd.xlane.f32.xlu2 %v2613_v26 }
0x19f6   :  { %5447 = vpow2.f32 %v2602_v45 }
0x19fc   :  { %v5448_v46 = vpop.eup %5447 }
0x19fd   :  { %v2610_v48 = vsel %vm340_vm9, %v5448_v46, 0.0 }
0x19fe   :  { %2611 = vadd.xlane.f32.xlu2 %v2610_v48 }
0x1a04   :  { %v2594_v37 = vpop.xlane.xlu2 %2593 }
0x1a05   :  { %v2600_v49 = vsub.f32 %v2584_v23, %v2594_v37 }
0x1a07   :  { %v2606_v51 = vmul.f32 1.442695, %v2600_v49 }
0x1a09   :  { %5449 = vpow2.f32 %v2606_v51 }
0x1a0f   :  { %v5450_v52 = vpop.eup %5449 }
0x1a10   :  { %v2616_v29 = vsel %vm340_vm9, %v5450_v52, 0.0 }
0x1a11   :  { %2617 = vadd.xlane.f32.xlu0 %v2616_v29 }
0x1a16   :  { %5260 = vrot.lane.b32.xlu2 %v6407_v0, %s5666_s2 }
0x1a1e   :  { %2708 = vrot.lane.b32.xlu2 %v6302_v59, %s5666_s2 }
0x1a25   :  { %2682 = vrot.lane.b32.xlu0 %v6295_v53, %s5666_s2 }
0x1a2d   :  { %2449 = vrot.lane.b32.xlu0 %v2364_v54, %s5667_s7 }
0x1a35   :  { %2162 = vrot.lane.b32.xlu0 %v6429_v33, %s5664_s28 }
0x1a4d   :  { %v2597_v39 = vpop.xlane.xlu1 %2596 }
0x1a4e   :  { %v2601_v44 = vsub.f32 %v2585_v30, %v2597_v39 }
0x1a50   :  { %v2608_v25 = vmul.f32 1.442695, %v2601_v44 }
0x1a52   :  { %5451 = vpow2.f32 %v2608_v25 }
0x1a58   :  { %v5452_v55 = vpop.eup %5451 }
0x1a59   :  { %v2619_v56 = vsel %vm340_vm9, %v5452_v55, 0.0 }
0x1a5a   :  { %2620 = vadd.xlane.f32.xlu1 %v2619_v56 }
0x1a68   :  { %v2615_v0 = vpop.xlane.xlu2 %2614 }
0x1a69   :  { %5453 = vrcp.f32 %v2615_v0 }
0x1a6f   :  { %v5454_v53 = vpop.eup %5453 }
0x1a70   :  { %v2627_v62 = vmul.f32 %v5454_v53, %v5446_v42 }
0x1a71   :  { %v2612_v57 = vpop.xlane.xlu2 %2611 }
0x1a72   :  { %5455 = vrcp.f32 %v2612_v57 }
0x1a73   :  { %2160 = vrot.lane.b32.xlu1 %v6457_v2, %s5664_s28 }
0x1a78   :  { %v5456_v59 = vpop.eup %5455 }
0x1a79   :  { %v5261_v58 = vpop.permute.xlu2 %5260  ;;  %v2626_v50 = vmul.f32 %v5456_v59, %v5448_v46 }
0x1a7a   :  { %v5263_v61 = vunpack.i.h.bf16 %v5261_v58  ;;  %v5262_v33 = vunpack.i.l.bf16 %v5261_v58 }
0x1a7b   :  { %2453 = vrot.lane.b32.xlu1 %v2416_v22, %s5667_s7  ;;  %v2760_v22 = vld [vmem:[%s7178_s16 + $0x8] sm:$0xff] }
0x1a7c   :  { %2651 = vmatpush.msrb.mxu0 %v5262_v33  ;;  %2677 = vmatpush.msrb.mxu1 %v5263_v61 }
0x1a7d   :  { %5074 = vmatmul.msk.f32.vlgmr.msrb.gmra.mxu0 %vm340_vm9, %v2626_v50  ;;  %5075 = vmatmul.msk.f32.vlgmr.msrb.gmra.mxu1 %vm340_vm9, %v2627_v62 }
0x1a7e   :  { %2791 = vmatpush.msra.mxu0 %v2762_v15 }
0x1a80   :  { %2792 = vmatpush.msra.mxu0 %v2761_v20 }
0x1a81   :  { %v2709_v63 = vpop.permute.xlu2 %2708 }
0x1a82   :  { %2729 = vmatpush.msrb.mxu3 %v2709_v63  ;;  %2793 = vmatpush.msra.mxu0 %v2760_v22 }
0x1a83   :  { %2455 = vrot.lane.b32.xlu1 %v2442_v14, %s5667_s7 }
0x1a84   :  { %v2618_v2 = vpop.xlane.xlu0 %2617  ;;  %2794 = vmatpush.msra.mxu0 %v2759_v35 }
0x1a85   :  { %5457 = vrcp.f32 %v2618_v2 }
0x1a8b   :  { %v5458_v1 = vpop.eup %5457 }
0x1a8c   :  { %v2628_v3 = vmul.f32 %v5458_v1, %v5450_v52  ;;  %v2919_v1 = vld [vmem:[%s7180_s29 + $0x18] sm:$0xff] }
0x1a97   :  { %v2683_v4 = vpop.permute.xlu0 %2682 }
0x1a98   :  { %2703 = vmatpush.msrb.mxu2 %v2683_v4  ;;  %v2917_v4 = vld [vmem:[%s7180_s29 + $0x8] sm:$0xff] }
0x1a99   :  { %5076 = vmatmul.msk.f32.vlgmr.msrb.gmra.mxu2 %vm340_vm9, %v2628_v3  ;;  %v2918_v3 = vld [vmem:[%s7180_s29 + $0x10] sm:$0xff] }
0x1a9a   :  { %2948 = vmatpush.msra.mxu2 %v2919_v1 }
0x1a9c   :  { %2949 = vmatpush.msra.mxu2 %v2918_v3  ;;  %v3012_v3 = vld [vmem:[%s7183_s20 + $0x58] sm:$0xff] }
0x1a9e   :  { %2950 = vmatpush.msra.mxu2 %v2917_v4 }
0x1a9f   :  { %v2450_v7 = vpop.permute.xlu0 %2449 }
0x1aa7   :  { %v2163_v8 = vpop.permute.xlu0 %2162 }
0x1aa8   :  { %2174 = vst.msk [vmem:[#allocation4 + $0x8] sm:$0xff] %vm2172_vm15, %v2163_v8  ;;  %v2916_v8 = vld [vmem:[%s7180_s29] sm:$0xff] }
0x1aa9   :  { %2951 = vmatpush.msra.mxu2 %v2916_v8 }
0x1acd   :  { %v2621_v13 = vpop.xlane.xlu1 %2620 }
0x1ace   :  { %5459 = vrcp.f32 %v2621_v13 }
0x1ad4   :  { %v5460_v60 = vpop.eup %5459 }
0x1ad5   :  { %v2629_v54 = vmul.f32 %v5460_v60, %v5452_v55 }
0x1ad7   :  { %5077 = vmatmul.msk.f32.vlgmr.msrb.gmra.mxu3 %vm340_vm9, %v2629_v54 }
0x1ae5   :  { %v2161_v31 = vpop.permute.xlu1 %2160 }
0x1ae6   :  { %2173 = vst.msk [vmem:[#allocation4] sm:$0xff] %vm2172_vm15, %v2161_v31 }
0x1ae7   :  { %2462 = vst.msk [vmem:[#allocation4] sm:$0xff] %vm2461_vm0, %v2450_v7 }
0x1aed   :  { %v2454_v23 = vpop.permute.xlu1 %2453 }
0x1af5   :  { %v2456_v28 = vpop.permute.xlu1 %2455 }
0x1afa   :  { %v2653_v17 = vpop.f32.mrf.mxu0  ;;  %v2679_v9 = vpop.f32.mrf.mxu1 }
0x1afb   :  { %2740 = vrot.lane.b32.xlu0 %v2679_v9, %s5668_s10  ;;  %2738 = vrot.lane.b32.xlu2 %v2653_v17, %s5668_s10 }
0x1b03   :  { %2451 = vrot.lane.b32.xlu2 %v6493_v11, %s5667_s7 }
0x1b0b   :  { %2164 = vrot.lane.b32.xlu2 %v6461_v10, %s5664_s28 }
0x1b13   :  { %2166 = vrot.lane.b32.xlu2 %v6471_v21, %s5664_s28 }
0x1b1c   :  { %v2705_v36 = vpop.f32.mrf.mxu2 }
0x1b1d   :  { %2742 = vrot.lane.b32.xlu0 %v2705_v36, %s5668_s10 }
0x1b55   :  { %v2739_v6 = vpop.permute.xlu2 %2738 }
0x1b56   :  { %2751 = vst.msk [vmem:[#allocation4] sm:$0xff] %vm2750_vm4, %v2739_v6 }
0x1b5a   :  { %v2731_v11 = vpop.f32.mrf.mxu3 }
0x1b5b   :  { %2744 = vrot.lane.b32.xlu0 %v2731_v11, %s5668_s10 }
0x1b5d   :  { %v2452_v10 = vpop.permute.xlu2 %2451  ;;  %v2755_v21 = vld [vmem:[#allocation4] sm:$0xff] }
0x1b5e   :  { %2463 = vst.msk [vmem:[#allocation4 + $0x8] sm:$0xff] %vm2461_vm0, %v2452_v10  ;;  %5078 = vmatmul.msk.f32.vlgmr.msra.gmra.mxu0 %vm313_vm8, %v2755_v21  ;;  %v6601_v10 = vld [vmem:[%s7181_s3] ss:$0 sm:$0xff] }
0x1b65   :  { %v2165_v27 = vpop.permute.xlu2 %2164 }
0x1b66   :  { %2175 = vst.msk [vmem:[#allocation4 + $0x10] sm:$0xff] %vm2172_vm15, %v2165_v27  ;;  %v6604_v27 = vld [vmem:[%s7182_s8] ss:$0 sm:$0xff] }
0x1b67   :  { %2464 = vst.msk [vmem:[#allocation4 + $0x10] sm:$0xff] %vm2461_vm0, %v2454_v23 }
0x1b6d   :  { %v2167_v14 = vpop.permute.xlu2 %2166  ;;  %v2741_v19 = vpop.permute.xlu0 %2740 }
0x1b6e   :  { %2176 = vst.msk [vmem:[#allocation4 + $0x18] sm:$0xff] %vm2172_vm15, %v2167_v14 }
0x1b6f   :  { %2465 = vst.msk [vmem:[#allocation4 + $0x18] sm:$0xff] %vm2461_vm0, %v2456_v28 }
0x1b70   :  { %2752 = vst.msk [vmem:[#allocation4 + $0x8] sm:$0xff] %vm2750_vm4, %v2741_v19 }
0x1b77   :  { %v2756_v30 = vld [vmem:[#allocation4 + $0x8] sm:$0xff] }
0x1b78   :  { %5079 = vmatmul.msk.f32.gmra.mxu0 %vm313_vm8, %v2756_v30 }
0x1b8f   :  { %v2743_v32 = vpop.permute.xlu0 %2742 }
0x1b90   :  { %2753 = vst.msk [vmem:[#allocation4 + $0x10] sm:$0xff] %vm2750_vm4, %v2743_v32 }
0x1b97   :  { %v2757_v16 = vld [vmem:[#allocation4 + $0x10] sm:$0xff] }
0x1b98   :  { %5080 = vmatmul.msk.f32.gmra.mxu0 %vm313_vm8, %v2757_v16 }
0x1bcd   :  { %v2745_v34 = vpop.permute.xlu0 %2744 }
0x1bce   :  { %2754 = vst.msk [vmem:[#allocation4 + $0x18] sm:$0xff] %vm2750_vm4, %v2745_v34 }
0x1bd5   :  { %v2758_v38 = vld [vmem:[#allocation4 + $0x18] sm:$0xff] }
0x1bd6   :  { %5081 = vmatmul.msk.f32.gmra.mxu0 %vm313_vm8, %v2758_v38 }
0x1bdb   :  { %v2796_v41 = vpop.f32.mrf.mxu0 }
0x1bdc   :  { %v2797_v42 = vadd.f32 %v5317_v12, %v2796_v41 }
0x1bde   :  { %v6556_v45 = vadd.f32 %v2797_v42, %v6158_v40 }
0x1be0   :  { %v2814_v26 = vsel %vm313_vm8, %v6556_v45, 0.0 }
0x1be1   :  { %2815 = vadd.xlane.f32.xlu2 %v2814_v26 }
0x1bf5   :  { %v2799_v46 = vpop.f32.mrf.mxu0 }
0x1bf6   :  { %v2800_v48 = vadd.f32 %v5317_v12, %v2799_v46 }
0x1bf8   :  { %v6561_v37 = vadd.f32 %v2800_v48, %v6188_v24 }
0x1bfa   :  { %v2817_v49 = vsel %vm313_vm8, %v6561_v37, 0.0 }
0x1bfb   :  { %2818 = vadd.xlane.f32.xlu1 %v2817_v49 }
0x1c15   :  { %v2802_v51 = vpop.f32.mrf.mxu0 }
0x1c16   :  { %v2803_v52 = vadd.f32 %v5317_v12, %v2802_v51 }
0x1c18   :  { %v6566_v29 = vadd.f32 %v2803_v52, %v6226_v5 }
0x1c1a   :  { %v2820_v40 = vsel %vm313_vm8, %v6566_v29, 0.0 }
0x1c1b   :  { %2821 = vadd.xlane.f32.xlu0 %v2820_v40 }
0x1c53   :  { %v2805_v39 = vpop.f32.mrf.mxu0 }
0x1c54   :  { %v2806_v44 = vadd.f32 %v5317_v12, %v2805_v39  ;;  %v2816_v25 = vpop.xlane.xlu2 %2815 }
0x1c55   :  { %v2826_v55 = vmul.f32 %v2816_v25, %v5928_v43 }
0x1c56   :  { %v6572_v24 = vadd.f32 %v2806_v44, %v6164_v47 }
0x1c57   :  { %v2830_v56 = vsub.f32 %v6556_v45, %v2826_v55 }
0x1c58   :  { %v2823_v0 = vsel %vm313_vm8, %v6572_v24, 0.0 }
0x1c59   :  { %2824 = vadd.xlane.f32.xlu1 %v2823_v0  ;;  %v2834_v5 = vmul.f32 %v2830_v56, %v2830_v56 }
0x1c5b   :  { %v2838_v57 = vsel %vm313_vm8, %v2834_v5, 0.0 }
0x1c5c   :  { %2839 = vadd.xlane.f32.xlu2 %v2838_v57 }
0x1c6e   :  { %v2819_v53 = vpop.xlane.xlu1 %2818 }
0x1c6f   :  { %v2827_v59 = vmul.f32 %v2819_v53, %v5928_v43 }
0x1c71   :  { %v2831_v58 = vsub.f32 %v6561_v37, %v2827_v59 }
0x1c73   :  { %v2835_v47 = vmul.f32 %v2831_v58, %v2831_v58 }
0x1c75   :  { %v2841_v61 = vsel %vm313_vm8, %v2835_v47, 0.0  ;;  %v3015_v47 = vld [vmem:[%s7183_s20 + $0x70] sm:$0xff] }
0x1c76   :  { %2842 = vadd.xlane.f32.xlu2 %v2841_v61  ;;  %v3014_v61 = vld [vmem:[%s7183_s20 + $0x68] sm:$0xff] }
0x1c8e   :  { %v2822_v33 = vpop.xlane.xlu0 %2821 }
0x1c8f   :  { %v2828_v62 = vmul.f32 %v2822_v33, %v5928_v43 }
0x1c91   :  { %v6583_v50 = vsub.f32 %v6566_v29, %v2828_v62 }
0x1c93   :  { %v2836_v63 = vmul.f32 %v6583_v50, %v6583_v50 }
0x1c95   :  { %v2844_v2 = vsel %vm313_vm8, %v2836_v63, 0.0 }
0x1c96   :  { %2845 = vadd.xlane.f32.xlu0 %v2844_v2 }
0x1ccc   :  { %v2825_v7 = vpop.xlane.xlu1 %2824 }
0x1ccd   :  { %v2829_v13 = vmul.f32 %v2825_v7, %v5928_v43  ;;  %v3011_v7 = vld [vmem:[%s7183_s20 + $0x50] sm:$0xff] }
0x1ccf   :  { %v6594_v60 = vsub.f32 %v6572_v24, %v2829_v13  ;;  %v2840_v54 = vpop.xlane.xlu2 %2839  ;;  %v3010_v13 = vld [vmem:[%s7183_s20 + $0x48] sm:$0xff] }
0x1cd0   :  { %v2850_v31 = vmul.f32 %v2840_v54, %v5928_v43 }
0x1cd1   :  { %v2837_v17 = vmul.f32 %v6594_v60, %v6594_v60 }
0x1cd2   :  { %v2854_v9 = vadd.f32 1e-12, %v2850_v31  ;;  %v3009_v31 = vld [vmem:[%s7183_s20 + $0x40] sm:$0xff] }
0x1cd3   :  { %v2847_v36 = vsel %vm313_vm8, %v2837_v17, 0.0 }
0x1cd4   :  { %5461 = vrsqrt.f32 %v2854_v9  ;;  %2848 = vadd.xlane.f32.xlu1 %v2847_v36  ;;  %vm2864_vm6 = vweird.f32 %v2854_v9  ;;  %v3007_v36 = vld [vmem:[%s7183_s20 + $0x30] sm:$0xff] }
0x1cda   :  { %v5462_v15 = vpop.eup %5461 }
0x1cdb   :  { %v2859_v20 = vmul.f32 %v5462_v15, %v2854_v9  ;;  %vm2865_vm5 = vweird.f32 %v5462_v15  ;;  %v3008_v9 = vld [vmem:[%s7183_s20 + $0x38] sm:$0xff] }
0x1cdc   :  { %vm2866_vm7 = vmor %vm2864_vm6, %vm2865_vm5 }
0x1cdd   :  { %v2860_v22 = vmul.f32 %v5462_v15, %v2859_v20  ;;  %v3006_v20 = vld [vmem:[%s7183_s20 + $0x28] sm:$0xff] }
0x1cdf   :  { %v2861_v35 = vmul.f32 0.5, %v2860_v22 }
0x1ce1   :  { %v2862_v6 = vsub.f32 1.5, %v2861_v35  ;;  %v3005_v35 = vld [vmem:[%s7183_s20 + $0x20] sm:$0xff] }
0x1ce3   :  { %v2863_v11 = vmul.f32 %v5462_v15, %v2862_v6 }
0x1ce5   :  { %v2867_v21 = vsel %vm2866_vm7, %v5462_v15, %v2863_v11 }
0x1ce6   :  { %v2898_v23 = vmul.f32 %v2867_v21, %v2830_v56  ;;  %v3004_v21 = vld [vmem:[%s7183_s20 + $0x18] sm:$0xff] }
0x1ce8   :  { %v2905_v14 = vmul.f32 %v6601_v10, %v2898_v23  ;;  %v3003_v23 = vld [vmem:[%s7183_s20 + $0x10] sm:$0xff] }
0x1ce9   :  { %v2843_v19 = vpop.xlane.xlu2 %2842 }
0x1cea   :  { %v2851_v28 = vmul.f32 %v2843_v19, %v5928_v43  ;;  %v2912_v30 = vadd.f32 %v6604_v27, %v2905_v14  ;;  %v3002_v14 = vld [vmem:[%s7183_s20 + $0x8] sm:$0xff]  ;;  %v3001_v19 = vld [vmem:[%s7183_s20] sm:$0xff] }
0x1cec   :  { %v2855_v32 = vadd.f32 1e-12, %v2851_v28  ;;  %5082 = vmatmul.msk.f32.vlgmr.msra.gmra.mxu2 %vm313_vm8, %v2912_v30 }
0x1cee   :  { %5463 = vrsqrt.f32 %v2855_v32  ;;  %vm2874_vm10 = vweird.f32 %v2855_v32 }
0x1cf4   :  { %v5464_v16 = vpop.eup %5463 }
0x1cf5   :  { %v2869_v34 = vmul.f32 %v5464_v16, %v2855_v32  ;;  %vm2875_vm2 = vweird.f32 %v5464_v16 }
0x1cf6   :  { %vm2876_vm11 = vmor %vm2874_vm10, %vm2875_vm2 }
0x1cf7   :  { %v2870_v38 = vmul.f32 %v5464_v16, %v2869_v34 }
0x1cf9   :  { %v2871_v12 = vmul.f32 0.5, %v2870_v38 }
0x1cfb   :  { %v2872_v41 = vsub.f32 1.5, %v2871_v12 }
0x1cfd   :  { %v2873_v42 = vmul.f32 %v5464_v16, %v2872_v41 }
0x1cff   :  { %v2877_v26 = vsel %vm2876_vm11, %v5464_v16, %v2873_v42 }
0x1d00   :  { %v2899_v46 = vmul.f32 %v2877_v26, %v2831_v58  ;;  %v3016_v58 = vld [vmem:[%s7183_s20 + $0x78] sm:$0xff] }
0x1d01   :  { %3021 = vmatpush.msrb.mxu2 %v3016_v58 }
0x1d02   :  { %v2906_v48 = vmul.f32 %v6601_v10, %v2899_v46 }
0x1d03   :  { %3022 = vmatpush.msrb.mxu2 %v3015_v47 }
0x1d04   :  { %v2913_v49 = vadd.f32 %v6604_v27, %v2906_v48 }
0x1d05   :  { %3023 = vmatpush.msrb.mxu2 %v3014_v61 }
0x1d06   :  { %5083 = vmatmul.msk.f32.gmra.mxu2 %vm313_vm8, %v2913_v49 }
0x1d09   :  { %v2846_v51 = vpop.xlane.xlu0 %2845 }
0x1d0a   :  { %v2852_v52 = vmul.f32 %v2846_v51, %v5928_v43 }
0x1d0c   :  { %v2856_v40 = vadd.f32 1e-12, %v2852_v52 }
0x1d0e   :  { %5465 = vrsqrt.f32 %v2856_v40  ;;  %vm2884_vm3 = vweird.f32 %v2856_v40 }
0x1d14   :  { %v5466_v39 = vpop.eup %5465 }
0x1d15   :  { %v2879_v44 = vmul.f32 %v5466_v39, %v2856_v40  ;;  %vm2885_vm12 = vweird.f32 %v5466_v39 }
0x1d16   :  { %vm2886_vm13 = vmor %vm2884_vm3, %vm2885_vm12 }
0x1d17   :  { %v2880_v25 = vmul.f32 %v5466_v39, %v2879_v44 }
0x1d19   :  { %v2881_v55 = vmul.f32 0.5, %v2880_v25 }
0x1d1b   :  { %v2882_v56 = vsub.f32 1.5, %v2881_v55 }
0x1d1d   :  { %v2883_v0 = vmul.f32 %v5466_v39, %v2882_v56 }
0x1d1f   :  { %v2887_v5 = vsel %vm2886_vm13, %v5466_v39, %v2883_v0 }
0x1d20   :  { %v2900_v57 = vmul.f32 %v2887_v5, %v6583_v50  ;;  %v3013_v50 = vld [vmem:[%s7183_s20 + $0x60] sm:$0xff] }
0x1d21   :  { %3024 = vmatpush.msrb.mxu2 %v3013_v50 }
0x1d22   :  { %v2907_v53 = vmul.f32 %v6601_v10, %v2900_v57 }
0x1d23   :  { %3025 = vmatpush.msrb.mxu2 %v3012_v3 }
0x1d24   :  { %v2914_v59 = vadd.f32 %v6604_v27, %v2907_v53 }
0x1d25   :  { %3026 = vmatpush.msrb.mxu2 %v3011_v7 }
0x1d26   :  { %5084 = vmatmul.msk.f32.gmra.mxu2 %vm313_vm8, %v2914_v59 }
0x1d27   :  { %3027 = vmatpush.msrb.mxu2 %v3010_v13 }
0x1d29   :  { %3028 = vmatpush.msrb.mxu2 %v3009_v31 }
0x1d2b   :  { %3029 = vmatpush.msrb.mxu2 %v3008_v9 }
0x1d2d   :  { %3030 = vmatpush.msrb.mxu2 %v3007_v36 }
0x1d2f   :  { %3031 = vmatpush.msrb.mxu2 %v3006_v20 }
0x1d31   :  { %3032 = vmatpush.msrb.mxu2 %v3005_v35 }
0x1d33   :  { %3033 = vmatpush.msrb.mxu2 %v3004_v21 }
0x1d35   :  { %3034 = vmatpush.msrb.mxu2 %v3003_v23 }
0x1d37   :  { %3035 = vmatpush.msrb.mxu2 %v3002_v14 }
0x1d39   :  { %3036 = vmatpush.msrb.mxu2 %v3001_v19 }
0x1d47   :  { %v2849_v33 = vpop.xlane.xlu1 %2848 }
0x1d48   :  { %v2853_v62 = vmul.f32 %v2849_v33, %v5928_v43 }
0x1d4a   :  { %v2857_v63 = vadd.f32 1e-12, %v2853_v62 }
0x1d4c   :  { %5467 = vrsqrt.f32 %v2857_v63  ;;  %vm2894_vm5 = vweird.f32 %v2857_v63 }
0x1d52   :  { %v5468_v2 = vpop.eup %5467 }
0x1d53   :  { %v2889_v1 = vmul.f32 %v5468_v2, %v2857_v63  ;;  %vm2895_vm14 = vweird.f32 %v5468_v2 }
0x1d54   :  { %vm2896_vm6 = vmor %vm2894_vm5, %vm2895_vm14 }
0x1d55   :  { %v2890_v4 = vmul.f32 %v5468_v2, %v2889_v1 }
0x1d57   :  { %v2891_v8 = vmul.f32 0.5, %v2890_v4 }
0x1d59   :  { %v2892_v54 = vsub.f32 1.5, %v2891_v8 }
0x1d5b   :  { %v2893_v17 = vmul.f32 %v5468_v2, %v2892_v54 }
0x1d5d   :  { %v2897_v15 = vsel %vm2896_vm6, %v5468_v2, %v2893_v17  ;;  %v5321_v17 = vld [vmem:[%s7185_s11] ss:$0 sm:$0xff] }
0x1d5e   :  { %v2901_v22 = vmul.f32 %v2897_v15, %v6594_v60  ;;  %v5320_v60 = vld [vmem:[%s7184_s18] ss:$0 sm:$0xff] }
0x1d60   :  { %v2908_v6 = vmul.f32 %v6601_v10, %v2901_v22 }
0x1d62   :  { %v2915_v11 = vadd.f32 %v6604_v27, %v2908_v6 }
0x1d64   :  { %5085 = vmatmul.msk.f32.gmra.mxu2 %vm313_vm8, %v2915_v11 }
0x1d6f   :  { %v2953_v28 = vpop.f32.mrf.mxu2 }
0x1d70   :  { %v2954_v30 = vadd.f32 %v5320_v60, %v2953_v28 }
0x1d72   :  { %v2965_v32 = vmul.f32 %v2954_v30, %v2954_v30 }
0x1d74   :  { %v2969_v16 = vmul.f32 %v2965_v32, %v2954_v30 }
0x1d76   :  { %v2973_v10 = vmul.f32 0.044715, %v2969_v16 }
0x1d78   :  { %v2977_v34 = vadd.f32 %v2973_v10, %v2954_v30 }
0x1d7a   :  { %v2981_v38 = vmul.f32 0.7978846, %v2977_v34 }
0x1d7c   :  { %5469 = vtanh.f32 %v2981_v38 }
0x1d82   :  { %v5470_v27 = vpop.eup %5469 }
0x1d83   :  { %v2989_v12 = vadd.f32 1.0, %v5470_v27 }
0x1d85   :  { %v2993_v41 = vmul.f32 0.5, %v2989_v12 }
0x1d87   :  { %v2997_v42 = vmul.f32 %v2993_v41, %v2954_v30 }
0x1d89   :  { %v2956_v26 = vpop.f32.mrf.mxu2  ;;  %3037 = vmatmul.f32.vlgmr.msrb.gmra.mxu2 %v2997_v42 }
0x1d8a   :  { %v2957_v46 = vadd.f32 %v5320_v60, %v2956_v26 }
0x1d8c   :  { %v2966_v48 = vmul.f32 %v2957_v46, %v2957_v46 }
0x1d8e   :  { %v2970_v49 = vmul.f32 %v2966_v48, %v2957_v46 }
0x1d90   :  { %v2974_v51 = vmul.f32 0.044715, %v2970_v49  ;;  %v5091_v49 = vld [vmem:[%s7170_s14 + $0x38] sm:$0xff] }
0x1d91   :  { %3194 = vmatpush.msra.mxu3 %v5091_v49 }
0x1d92   :  { %v2978_v52 = vadd.f32 %v2974_v51, %v2957_v46  ;;  %v5090_v51 = vld [vmem:[%s7170_s14 + $0x30] sm:$0xff] }
0x1d93   :  { %3195 = vmatpush.msra.mxu3 %v5090_v51 }
0x1d94   :  { %v2982_v40 = vmul.f32 0.7978846, %v2978_v52  ;;  %v5089_v52 = vld [vmem:[%s7170_s14 + $0x28] sm:$0xff] }
0x1d95   :  { %3196 = vmatpush.msra.mxu3 %v5089_v52 }
0x1d96   :  { %5471 = vtanh.f32 %v2982_v40 }
0x1d9c   :  { %v5472_v39 = vpop.eup %5471 }
0x1d9d   :  { %v2990_v44 = vadd.f32 1.0, %v5472_v39  ;;  %v5088_v39 = vld [vmem:[%s7170_s14 + $0x20] sm:$0xff] }
0x1d9e   :  { %3197 = vmatpush.msra.mxu3 %v5088_v39 }
0x1d9f   :  { %v2994_v25 = vmul.f32 0.5, %v2990_v44 }
0x1da1   :  { %v2998_v55 = vmul.f32 %v2994_v25, %v2957_v46 }
0x1da3   :  { %3040 = vmatmul.f32.gmra.mxu2 %v2998_v55 }
0x1da9   :  { %v2959_v56 = vpop.f32.mrf.mxu2 }
0x1daa   :  { %v2960_v0 = vadd.f32 %v5320_v60, %v2959_v56 }
0x1dac   :  { %v2967_v5 = vmul.f32 %v2960_v0, %v2960_v0 }
0x1dae   :  { %v2971_v57 = vmul.f32 %v2967_v5, %v2960_v0 }
0x1db0   :  { %v2975_v53 = vmul.f32 0.044715, %v2971_v57 }
0x1db2   :  { %v2979_v59 = vadd.f32 %v2975_v53, %v2960_v0 }
0x1db4   :  { %v2983_v58 = vmul.f32 0.7978846, %v2979_v59 }
0x1db6   :  { %5473 = vtanh.f32 %v2983_v58 }
0x1dbc   :  { %v5474_v47 = vpop.eup %5473 }
0x1dbd   :  { %v2991_v61 = vadd.f32 1.0, %v5474_v47 }
0x1dbf   :  { %v2995_v33 = vmul.f32 0.5, %v2991_v61 }
0x1dc1   :  { %v2999_v62 = vmul.f32 %v2995_v33, %v2960_v0 }
0x1dc3   :  { %3043 = vmatmul.f32.gmra.mxu2 %v2999_v62  ;;  %v5322_v62 = vld [vmem:[%s7171_s19 + $0x1] ss:$0 sm:$0xff] }
0x1de7   :  { %v2962_v63 = vpop.f32.mrf.mxu2 }
0x1de8   :  { %v2963_v50 = vadd.f32 %v5320_v60, %v2962_v63 }
0x1dea   :  { %v2968_v2 = vmul.f32 %v2963_v50, %v2963_v50 }
0x1dec   :  { %v2972_v1 = vmul.f32 %v2968_v2, %v2963_v50  ;;  %v5323_v2 = vld [vmem:[%s7172_s24 + $0x1] ss:$0 sm:$0xff] }
0x1dee   :  { %v2976_v3 = vmul.f32 0.044715, %v2972_v1 }
0x1df0   :  { %v2980_v4 = vadd.f32 %v2976_v3, %v2963_v50 }
0x1df2   :  { %v2984_v7 = vmul.f32 0.7978846, %v2980_v4 }
0x1df4   :  { %5475 = vtanh.f32 %v2984_v7 }
0x1dfa   :  { %v5476_v8 = vpop.eup %5475 }
0x1dfb   :  { %v2992_v13 = vadd.f32 1.0, %v5476_v8 }
0x1dfd   :  { %v2996_v54 = vmul.f32 0.5, %v2992_v13 }
0x1dff   :  { %v3000_v31 = vmul.f32 %v2996_v54, %v2963_v50 }
0x1e01   :  { %3046 = vmatmul.f32.gmra.mxu2 %v3000_v31 }
0x1e0c   :  { %v3038_v9 = vpop.f32.mrf.mxu2 }
0x1e0d   :  { %v3039_v36 = vadd.f32 %v5321_v17, %v3038_v9 }
0x1e0f   :  { %v6642_v15 = vadd.f32 %v3039_v36, %v6556_v45 }
0x1e11   :  { %v3058_v20 = vsel %vm313_vm8, %v6642_v15, 0.0 }
0x1e12   :  { %3059 = vadd.xlane.f32.xlu2 %v3058_v20 }
0x1e26   :  { %v3041_v22 = vpop.f32.mrf.mxu2 }
0x1e27   :  { %v3042_v35 = vadd.f32 %v5321_v17, %v3041_v22 }
0x1e29   :  { %v6647_v6 = vadd.f32 %v3042_v35, %v6561_v37 }
0x1e2b   :  { %v3061_v11 = vsel %vm313_vm8, %v6647_v6, 0.0 }
0x1e2c   :  { %3062 = vadd.xlane.f32.xlu0 %v3061_v11 }
0x1e46   :  { %v3044_v21 = vpop.f32.mrf.mxu2 }
0x1e47   :  { %v3045_v23 = vadd.f32 %v5321_v17, %v3044_v21 }
0x1e49   :  { %v6652_v14 = vadd.f32 %v3045_v23, %v6566_v29 }
0x1e4b   :  { %v3064_v45 = vsel %vm313_vm8, %v6652_v14, 0.0 }
0x1e4c   :  { %3065 = vadd.xlane.f32.xlu1 %v3064_v45 }
0x1e84   :  { %v3047_v19 = vpop.f32.mrf.mxu2 }
0x1e85   :  { %v3048_v60 = vadd.f32 %v5321_v17, %v3047_v19  ;;  %v3060_v28 = vpop.xlane.xlu2 %3059 }
0x1e86   :  { %v3070_v30 = vmul.f32 %v3060_v28, %v5928_v43 }
0x1e87   :  { %v6658_v37 = vadd.f32 %v3048_v60, %v6572_v24 }
0x1e88   :  { %v3074_v32 = vsub.f32 %v6642_v15, %v3070_v30 }
0x1e89   :  { %v3067_v16 = vsel %vm313_vm8, %v6658_v37, 0.0 }
0x1e8a   :  { %3068 = vadd.xlane.f32.xlu0 %v3067_v16  ;;  %v3078_v29 = vmul.f32 %v3074_v32, %v3074_v32 }
0x1e8c   :  { %v3082_v10 = vsel %vm313_vm8, %v3078_v29, 0.0 }
0x1e8d   :  { %3083 = vadd.xlane.f32.xlu2 %v3082_v10 }
0x1e9f   :  { %v3063_v34 = vpop.xlane.xlu0 %3062 }
0x1ea0   :  { %v3071_v38 = vmul.f32 %v3063_v34, %v5928_v43 }
0x1ea2   :  { %v3075_v27 = vsub.f32 %v6647_v6, %v3071_v38 }
0x1ea4   :  { %v3079_v24 = vmul.f32 %v3075_v27, %v3075_v27 }
0x1ea6   :  { %v3085_v12 = vsel %vm313_vm8, %v3079_v24, 0.0 }
0x1ea7   :  { %3086 = vadd.xlane.f32.xlu1 %v3085_v12 }
0x1ebf   :  { %v3066_v41 = vpop.xlane.xlu1 %3065 }
0x1ec0   :  { %v3072_v42 = vmul.f32 %v3066_v41, %v5928_v43 }
0x1ec2   :  { %v6669_v26 = vsub.f32 %v6652_v14, %v3072_v42 }
0x1ec4   :  { %v3080_v46 = vmul.f32 %v6669_v26, %v6669_v26 }
0x1ec6   :  { %v3088_v48 = vsel %vm313_vm8, %v3080_v46, 0.0 }
0x1ec7   :  { %3089 = vadd.xlane.f32.xlu2 %v3088_v48 }
0x1efd   :  { %v3069_v40 = vpop.xlane.xlu0 %3068 }
0x1efe   :  { %v3073_v44 = vmul.f32 %v3069_v40, %v5928_v43 }
0x1f00   :  { %v6680_v25 = vsub.f32 %v6658_v37, %v3073_v44  ;;  %v3084_v55 = vpop.xlane.xlu2 %3083  ;;  %v5324_v44 = vld [vmem:[%s7173_s6 + $0x1] ss:$0 sm:$0xff] }
0x1f01   :  { %v3094_v56 = vmul.f32 %v3084_v55, %v5928_v43 }
0x1f02   :  { %v3081_v0 = vmul.f32 %v6680_v25, %v6680_v25 }
0x1f03   :  { %v3098_v5 = vadd.f32 1e-12, %v3094_v56 }
0x1f04   :  { %v3091_v57 = vsel %vm313_vm8, %v3081_v0, 0.0 }
0x1f05   :  { %5477 = vrsqrt.f32 %v3098_v5  ;;  %3092 = vadd.xlane.f32.xlu0 %v3091_v57  ;;  %vm3108_vm2 = vweird.f32 %v3098_v5 }
0x1f0b   :  { %v5478_v53 = vpop.eup %5477 }
0x1f0c   :  { %v3103_v59 = vmul.f32 %v5478_v53, %v3098_v5  ;;  %vm3109_vm7 = vweird.f32 %v5478_v53 }
0x1f0d   :  { %vm3110_vm10 = vmor %vm3108_vm2, %vm3109_vm7 }
0x1f0e   :  { %v3104_v58 = vmul.f32 %v5478_v53, %v3103_v59 }
0x1f10   :  { %v3105_v47 = vmul.f32 0.5, %v3104_v58 }
0x1f12   :  { %v3106_v61 = vsub.f32 1.5, %v3105_v47 }
0x1f14   :  { %v3107_v33 = vmul.f32 %v5478_v53, %v3106_v61 }
0x1f16   :  { %v3111_v63 = vsel %vm3110_vm10, %v5478_v53, %v3107_v33 }
0x1f17   :  { %v3142_v50 = vmul.f32 %v3111_v63, %v3074_v32 }
0x1f19   :  { %v3149_v1 = vmul.f32 %v5322_v62, %v3142_v50 }
0x1f1a   :  { %v3087_v3 = vpop.xlane.xlu1 %3086 }
0x1f1b   :  { %v3095_v4 = vmul.f32 %v3087_v3, %v5928_v43  ;;  %v3156_v7 = vadd.f32 %v5323_v2, %v3149_v1  ;;  %v6734_v1 = vld [vmem:[%s7177_s15] ss:$0 sm:$0xff] }
0x1f1d   :  { %v3099_v8 = vadd.f32 1e-12, %v3095_v4  ;;  %5093 = vmatmul.msk.f32.vlgmr.msra.gmra.mxu3 %vm313_vm8, %v3156_v7 }
0x1f1f   :  { %5479 = vrsqrt.f32 %v3099_v8  ;;  %vm3118_vm12 = vweird.f32 %v3099_v8 }
0x1f25   :  { %v5480_v13 = vpop.eup %5479 }
0x1f26   :  { %v3113_v54 = vmul.f32 %v5480_v13, %v3099_v8  ;;  %vm3119_vm11 = vweird.f32 %v5480_v13 }
0x1f27   :  { %vm3120_vm3 = vmor %vm3118_vm12, %vm3119_vm11 }
0x1f28   :  { %v3114_v31 = vmul.f32 %v5480_v13, %v3113_v54 }
0x1f2a   :  { %v3115_v17 = vmul.f32 0.5, %v3114_v31 }
0x1f2c   :  { %v3116_v9 = vsub.f32 1.5, %v3115_v17 }
0x1f2e   :  { %v3117_v36 = vmul.f32 %v5480_v13, %v3116_v9 }
0x1f30   :  { %v3121_v20 = vsel %vm3120_vm3, %v5480_v13, %v3117_v36  ;;  %v6739_v13 = vld [vmem:[%s7177_s15 + $0x1] ss:$0 sm:$0xff]  ;;  %v6746_v36 = vld [vmem:[%s7177_s15 + $0x2] ss:$0 sm:$0xff] }
0x1f31   :  { %v3143_v22 = vmul.f32 %v3121_v20, %v3075_v27 }
0x1f33   :  { %v3150_v35 = vmul.f32 %v5322_v62, %v3143_v22 }
0x1f35   :  { %v3157_v11 = vadd.f32 %v5323_v2, %v3150_v35 }
0x1f37   :  { %5094 = vmatmul.msk.f32.gmra.mxu3 %vm313_vm8, %v3157_v11 }
0x1f3a   :  { %v3090_v21 = vpop.xlane.xlu2 %3089 }
0x1f3b   :  { %v3096_v23 = vmul.f32 %v3090_v21, %v5928_v43 }
0x1f3d   :  { %v3100_v45 = vadd.f32 1e-12, %v3096_v23 }
0x1f3f   :  { %5481 = vrsqrt.f32 %v3100_v45  ;;  %vm3128_vm14 = vweird.f32 %v3100_v45 }
0x1f45   :  { %v5482_v19 = vpop.eup %5481 }
0x1f46   :  { %v3123_v60 = vmul.f32 %v5482_v19, %v3100_v45  ;;  %vm3129_vm13 = vweird.f32 %v5482_v19 }
0x1f47   :  { %vm3130_vm5 = vmor %vm3128_vm14, %vm3129_vm13 }
0x1f48   :  { %v3124_v28 = vmul.f32 %v5482_v19, %v3123_v60  ;;  %v6754_v60 = vld [vmem:[%s7177_s15 + $0x3] ss:$0 sm:$0xff] }
0x1f4a   :  { %v3125_v30 = vmul.f32 0.5, %v3124_v28 }
0x1f4c   :  { %v3126_v32 = vsub.f32 1.5, %v3125_v30 }
0x1f4e   :  { %v3127_v16 = vmul.f32 %v5482_v19, %v3126_v32 }
0x1f50   :  { %v3131_v29 = vsel %vm3130_vm5, %v5482_v19, %v3127_v16 }
0x1f51   :  { %v3144_v10 = vmul.f32 %v3131_v29, %v6669_v26 }
0x1f53   :  { %v3151_v34 = vmul.f32 %v5322_v62, %v3144_v10 }
0x1f55   :  { %v3158_v38 = vadd.f32 %v5323_v2, %v3151_v34 }
0x1f57   :  { %5095 = vmatmul.msk.f32.gmra.mxu3 %vm313_vm8, %v3158_v38 }
0x1f78   :  { %v3093_v27 = vpop.xlane.xlu0 %3092 }
0x1f79   :  { %v3097_v24 = vmul.f32 %v3093_v27, %v5928_v43 }
0x1f7b   :  { %v3101_v12 = vadd.f32 1e-12, %v3097_v24 }
0x1f7d   :  { %5483 = vrsqrt.f32 %v3101_v12  ;;  %vm3138_vm7 = vweird.f32 %v3101_v12 }
0x1f83   :  { %v5484_v41 = vpop.eup %5483 }
0x1f84   :  { %v3133_v42 = vmul.f32 %v5484_v41, %v3101_v12  ;;  %vm3139_vm6 = vweird.f32 %v5484_v41 }
0x1f85   :  { %vm3140_vm2 = vmor %vm3138_vm7, %vm3139_vm6  ;;  %vm4802_vm7 = vcmask 122880  }
0x1f86   :  { %v3134_v46 = vmul.f32 %v5484_v41, %v3133_v42 }
0x1f88   :  { %v3135_v48 = vmul.f32 0.5, %v3134_v46 }
0x1f8a   :  { %v3136_v49 = vsub.f32 1.5, %v3135_v48 }
0x1f8c   :  { %v3137_v51 = vmul.f32 %v5484_v41, %v3136_v49 }
0x1f8e   :  { %v3141_v26 = vsel %vm3140_vm2, %v5484_v41, %v3137_v51 }
0x1f8f   :  { %v3145_v52 = vmul.f32 %v3141_v26, %v6680_v25 }
0x1f91   :  { %v3152_v40 = vmul.f32 %v5322_v62, %v3145_v52 }
0x1f93   :  { %v3159_v39 = vadd.f32 %v5323_v2, %v3152_v40 }
0x1f95   :  { %5096 = vmatmul.msk.f32.gmra.mxu3 %vm313_vm8, %v3159_v39 }
0x1fa0   :  { %v3199_v55 = vpop.f32.mrf.mxu3 }
0x1fa1   :  { %v6698_v56 = vadd.f32 %v5324_v44, %v3199_v55 }
0x1fa3   :  { %3212 = vrot.lane.b32.xlu0 %v6698_v56, %s5657_s9 }
0x1fba   :  { %v3202_v0 = vpop.f32.mrf.mxu3 }
0x1fbb   :  { %v6702_v5 = vadd.f32 %v5324_v44, %v3202_v0 }
0x1fbd   :  { %3239 = vrot.lane.b32.xlu1 %v6702_v5, %s5657_s9 }
0x1fc5   :  { %3479 = vrot.lane.b32.xlu1 %v6698_v56, %s5656_s5 }
0x1fda   :  { %v3205_v25 = vpop.f32.mrf.mxu3 }
0x1fdb   :  { %v6708_v57 = vadd.f32 %v5324_v44, %v3205_v25 }
0x1fdd   :  { %3266 = vrot.lane.b32.xlu2 %v6708_v57, %s5657_s9  ;;  %v5264_v35 = vpack.i.bf16 %v6708_v57, %v6698_v56 }
0x1fe5   :  { %3481 = vrot.lane.b32.xlu2 %v6698_v56, %s5659_s17 }
0x2015   :  { %v3213_v53 = vpop.permute.xlu0 %3212 }
0x2016   :  { %5097 = vmatpush.xpose.msk.msrb.mxu0 %vm340_vm9, %v3213_v53 }
0x2018   :  { %v3208_v59 = vpop.f32.mrf.mxu3 }
0x2019   :  { %v6715_v58 = vadd.f32 %v5324_v44, %v3208_v59  ;;  %5098 = vmatmul.msk.f32.vlgmr.msrb.gmra.mxu0 %vm340_vm9, %v6698_v56 }
0x201b   :  { %3293 = vrot.lane.b32.xlu0 %v6715_v58, %s5657_s9  ;;  %s7188_s9 = sld [smem:[#allocation35_spill]] }
0x2023   :  { %3397 = vrot.lane.b32.xlu0 %v6702_v5, %s5655_s0 }
0x202f   :  { %v3240_v47 = vpop.permute.xlu1 %3239 }
0x2030   :  { %5099 = vmatpush.xpose.msk.msra.mxu1 %vm340_vm9, %v3240_v47 }
0x2033   :  { %5100 = vmatmul.msk.f32.vlgmr.msra.gmra.mxu1 %vm340_vm9, %v6702_v5 }
0x2037   :  { %v3267_v61 = vpop.permute.xlu2 %3266  ;;  %v3480_v11 = vpop.permute.xlu1 %3479 }
0x2038   :  { %5101 = vmatpush.xpose.msk.msrb.mxu3 %vm340_vm9, %v3267_v61 }
0x203b   :  { %5102 = vmatmul.msk.f32.vlgmr.msrb.gmra.mxu3 %vm340_vm9, %v6708_v57 }
0x203f   :  { %v3482_v63 = vpop.permute.xlu2 %3481 }
0x208d   :  { %v3294_v33 = vpop.permute.xlu0 %3293 }
0x208e   :  { %5103 = vmatpush.xpose.msk.msra.mxu0 %vm340_vm9, %v3294_v33 }
0x2091   :  { %5104 = vmatmul.msk.f32.vlgmr.msra.gmra.mxu0 %vm340_vm9, %v6715_v58 }
0x2095   :  { %v3398_v62 = vpop.permute.xlu0 %3397 }
0x2096   :  { %v3235_v50 = vpop.f32.mrf.mxu0  ;;  %3418 = vmatpush.msra.mxu3 %v3398_v62 }
0x2097   :  { %v3319_v2 = vmul.f32 0.35355338, %v3235_v50 }
0x2098   :  { %5109 = vmatpush.xpose.msk.msrb.mxu3 %vm340_vm9, %v3482_v63 }
0x2099   :  { %v3323_v3 = vadd.f32 %v6734_v1, %v3319_v2 }
0x209b   :  { %v3327_v4 = vsel %vm340_vm9, %v3323_v3, -inf }
0x209c   :  { %3328 = vmax.xlane.f32.xlu1 %v3327_v4 }
0x20b0   :  { %v3262_v7 = vpop.f32.mrf.mxu1 }
0x20b1   :  { %v3320_v8 = vmul.f32 0.35355338, %v3262_v7 }
0x20b3   :  { %v3324_v54 = vadd.f32 %v6739_v13, %v3320_v8 }
0x20b5   :  { %v3330_v31 = vsel %vm340_vm9, %v3324_v54, -inf  ;;  %3565 = vrot.lane.b32.xlu1 %v6715_v58, %s5659_s17 }
0x20b6   :  { %3331 = vmax.xlane.f32.xlu2 %v3330_v31 }
0x20be   :  { %v3289_v17 = vpop.f32.mrf.mxu3 }
0x20bf   :  { %v3321_v9 = vmul.f32 0.35355338, %v3289_v17 }
0x20c1   :  { %v3325_v20 = vadd.f32 %v6746_v36, %v3321_v9 }
0x20c3   :  { %v3333_v22 = vsel %vm340_vm9, %v3325_v20, -inf }
0x20c4   :  { %3334 = vmax.xlane.f32.xlu0 %v3333_v22 }
0x20d8   :  { %5265 = vrot.lane.b32.xlu0 %v5264_v35, %s5655_s0 }
0x210e   :  { %v3316_v21 = vpop.f32.mrf.mxu0 }
0x210f   :  { %v3322_v23 = vmul.f32 0.35355338, %v3316_v21  ;;  %v3329_v45 = vpop.xlane.xlu1 %3328 }
0x2110   :  { %v3339_v19 = vsub.f32 %v3323_v3, %v3329_v45 }
0x2111   :  { %v3326_v28 = vadd.f32 %v6754_v60, %v3322_v23 }
0x2112   :  { %v3343_v30 = vmul.f32 1.442695, %v3339_v19 }
0x2113   :  { %v3336_v32 = vsel %vm340_vm9, %v3326_v28, -inf }
0x2114   :  { %5485 = vpow2.f32 %v3343_v30  ;;  %3337 = vmax.xlane.f32.xlu2 %v3336_v32 }
0x211a   :  { %v5486_v16 = vpop.eup %5485 }
0x211b   :  { %v3351_v29 = vsel %vm340_vm9, %v5486_v16, 0.0 }
0x211c   :  { %3352 = vadd.xlane.f32.xlu0 %v3351_v29 }
0x2127   :  { %v3566_v10 = vpop.permute.xlu1 %3565 }
0x2128   :  { %5115 = vmatpush.xpose.msk.msra.mxu2 %vm340_vm9, %v3566_v10 }
0x2129   :  { %v3332_v34 = vpop.xlane.xlu2 %3331 }
0x212a   :  { %v3340_v38 = vsub.f32 %v3324_v54, %v3332_v34 }
0x212c   :  { %v3345_v27 = vmul.f32 1.442695, %v3340_v38  ;;  %3563 = vrot.lane.b32.xlu2 %v6715_v58, %s5656_s5 }
0x212e   :  { %5487 = vpow2.f32 %v3345_v27 }
0x2130   :  { %3449 = vrot.lane.b32.xlu0 %v6715_v58, %s5655_s0  ;;  %s7186_s0 = sld [smem:[#allocation16_spill]] }
0x2134   :  { %v5488_v24 = vpop.eup %5487 }
0x2135   :  { %v3354_v12 = vsel %vm340_vm9, %v5488_v24, 0.0 }
0x2136   :  { %3355 = vadd.xlane.f32.xlu1 %v3354_v12 }
0x2137   :  { %v3335_v41 = vpop.xlane.xlu0 %3334 }
0x2138   :  { %3507 = vrot.lane.b32.xlu0 %v6702_v5, %s5656_s5  ;;  %v3341_v42 = vsub.f32 %v3325_v20, %v3335_v41 }
0x213a   :  { %v3347_v46 = vmul.f32 1.442695, %v3341_v42 }
0x213c   :  { %5489 = vpow2.f32 %v3347_v46 }
0x2140   :  { %3535 = vrot.lane.b32.xlu0 %v6708_v57, %s5656_s5  ;;  %s7187_s5 = sld [smem:[#allocation34_spill]] }
0x2142   :  { %v5490_v26 = vpop.eup %5489 }
0x2143   :  { %v3357_v52 = vsel %vm340_vm9, %v5490_v26, 0.0 }
0x214a   :  { %v5266_v48 = vpop.permute.xlu0 %5265 }
0x214b   :  { %v5268_v49 = vunpack.i.h.bf16 %v5266_v48  ;;  %v5267_v51 = vunpack.i.l.bf16 %v5266_v48  ;;  %v5269_v48 = vpack.i.bf16 %v6715_v58, %v6698_v56 }
0x214d   :  { %3392 = vmatpush.msrb.mxu1 %v5267_v51  ;;  %3444 = vmatpush.msrb.mxu0 %v5268_v49 }
0x2155   :  { %3358 = vadd.xlane.f32.xlu2 %v3357_v52 }
0x216d   :  { %3537 = vrot.lane.b32.xlu2 %v6708_v57, %s5659_s17 }
0x2187   :  { %v3338_v40 = vpop.xlane.xlu2 %3337 }
0x2188   :  { %v3342_v39 = vsub.f32 %v3326_v28, %v3338_v40 }
0x218a   :  { %v3349_v44 = vmul.f32 1.442695, %v3342_v39 }
0x218c   :  { %5491 = vpow2.f32 %v3349_v44 }
0x218f   :  { %v3564_v55 = vpop.permute.xlu2 %3563  ;;  %v3353_v0 = vpop.xlane.xlu0 %3352 }
0x2190   :  { %5493 = vrcp.f32 %v3353_v0  ;;  %5116 = vmatmul.msk.f32.vlgmr.msra.gmra.mxu2 %vm340_vm9, %v3564_v55 }
0x2192   :  { %v5492_v25 = vpop.eup %5491 }
0x2193   :  { %v3360_v53 = vsel %vm340_vm9, %v5492_v25, 0.0 }
0x2194   :  { %3361 = vadd.xlane.f32.xlu1 %v3360_v53 }
0x2196   :  { %v5494_v59 = vpop.eup %5493 }
0x2197   :  { %v3367_v47 = vmul.f32 %v5494_v59, %v5486_v16 }
0x2199   :  { %5105 = vmatmul.msk.f32.vlgmr.msrb.gmra.mxu1 %vm340_vm9, %v3367_v47 }
0x21a2   :  { %v3450_v61 = vpop.permute.xlu0 %3449 }
0x21a3   :  { %3470 = vmatpush.msra.mxu1 %v3450_v61 }
0x21a9   :  { %v3356_v33 = vpop.xlane.xlu1 %3355 }
0x21aa   :  { %5495 = vrcp.f32 %v3356_v33  ;;  %v3508_v54 = vpop.permute.xlu0 %3507 }
0x21ad   :  { %3509 = vrot.lane.b32.xlu1 %v6702_v5, %s5659_s17 }
0x21b0   :  { %v5496_v62 = vpop.eup %5495 }
0x21b1   :  { %v3368_v63 = vmul.f32 %v5496_v62, %v5488_v24 }
0x21b2   :  { %v3536_v35 = vpop.permute.xlu0 %3535 }
0x21b3   :  { %5106 = vmatmul.msk.f32.vlgmr.msra.gmra.mxu3 %vm340_vm9, %v3368_v63 }
0x21bb   :  { %5110 = vmatmul.msk.f32.vlgmr.msrb.gmra.mxu3 %vm340_vm9, %v3480_v11 }
0x21c8   :  { %v3359_v50 = vpop.xlane.xlu2 %3358 }
0x21c9   :  { %5497 = vrcp.f32 %v3359_v50 }
0x21cf   :  { %v5498_v2 = vpop.eup %5497 }
0x21d0   :  { %v3369_v3 = vmul.f32 %v5498_v2, %v5490_v26  ;;  %v3538_v4 = vpop.permute.xlu2 %3537 }
0x21d1   :  { %5113 = vmatpush.xpose.msk.msrb.mxu1 %vm340_vm9, %v3538_v4 }
0x21d2   :  { %5107 = vmatmul.msk.f32.vlgmr.msrb.gmra.mxu0 %vm340_vm9, %v3369_v3 }
0x2207   :  { %v3362_v7 = vpop.xlane.xlu1 %3361 }
0x2208   :  { %5499 = vrcp.f32 %v3362_v7 }
0x220e   :  { %v5500_v8 = vpop.eup %5499 }
0x220f   :  { %v3370_v31 = vmul.f32 %v5500_v8, %v5492_v25 }
0x2211   :  { %5108 = vmatmul.msk.f32.vlgmr.msra.gmra.mxu1 %vm340_vm9, %v3370_v31 }
0x2213   :  { %v3588_v17 = vpop.f32.mrf.mxu2 }
0x2214   :  { %v3594_v9 = vmul.f32 0.35355338, %v3588_v17 }
0x2216   :  { %v3598_v20 = vadd.f32 %v6754_v60, %v3594_v9  ;;  %v3394_v22 = vpop.f32.mrf.mxu1 }
0x2217   :  { %3475 = vst.msk [vmem:[#allocation4] sm:$0xff] %vm340_vm9, %v3394_v22 }
0x2218   :  { %v3608_v11 = vsel %vm340_vm9, %v3598_v20, -inf }
0x2219   :  { %3609 = vmax.xlane.f32.xlu1 %v3608_v11  ;;  %5114 = vmatmul.msk.f32.vlgmr.msrb.gmra.mxu1 %vm340_vm9, %v3536_v35 }
0x221f   :  { %v3510_v21 = vpop.permute.xlu1 %3509 }
0x2220   :  { %5111 = vmatpush.xpose.msk.msra.mxu0 %vm340_vm9, %v3510_v21 }
0x2223   :  { %5112 = vmatmul.msk.f32.vlgmr.msra.gmra.mxu0 %vm340_vm9, %v3508_v54 }
0x2232   :  { %3767 = vrot.lane.b32.xlu1 %v6698_v56, %s5661_s22 }
0x2236   :  { %v3420_v23 = vpop.f32.mrf.mxu3 }
0x2237   :  { %3476 = vst.msk [vmem:[#allocation4 + $0x8] sm:$0xff] %vm340_vm9, %v3420_v23 }
0x223e   :  { %v3504_v45 = vpop.f32.mrf.mxu3 }
0x223f   :  { %v3591_v19 = vmul.f32 0.35355338, %v3504_v45 }
0x2241   :  { %v3595_v28 = vadd.f32 %v6734_v1, %v3591_v19 }
0x2243   :  { %v3599_v30 = vsel %vm340_vm9, %v3595_v28, -inf }
0x2244   :  { %3600 = vmax.xlane.f32.xlu2 %v3599_v30 }
0x224f   :  { %v3446_v32 = vpop.f32.mrf.mxu0 }
0x2250   :  { %3477 = vst.msk [vmem:[#allocation4 + $0x10] sm:$0xff] %vm340_vm9, %v3446_v32 }
0x225c   :  { %3769 = vrot.lane.b32.xlu2 %v6698_v56, %s5658_s13 }
0x228c   :  { %v3610_v52 = vpop.xlane.xlu1 %3609 }
0x228d   :  { %v3614_v40 = vsub.f32 %v3598_v20, %v3610_v52  ;;  %v5274_v52 = vpack.i.bf16 %v6715_v58, %v6702_v5 }
0x228e   :  { %v3472_v16 = vpop.f32.mrf.mxu1 }
0x228f   :  { %3478 = vst.msk [vmem:[#allocation4 + $0x18] sm:$0xff] %vm340_vm9, %v3472_v16  ;;  %v3621_v39 = vmul.f32 1.442695, %v3614_v40 }
0x2296   :  { %v3560_v29 = vpop.f32.mrf.mxu1 }
0x2297   :  { %v3593_v10 = vmul.f32 0.35355338, %v3560_v29 }
0x2299   :  { %v3597_v34 = vadd.f32 %v6746_v36, %v3593_v10 }
0x229b   :  { %v3605_v38 = vsel %vm340_vm9, %v3597_v34, -inf }
0x229c   :  { %3606 = vmax.xlane.f32.xlu2 %v3605_v38 }
0x22a0   :  { %v3532_v27 = vpop.f32.mrf.mxu0 }
0x22a1   :  { %v3592_v24 = vmul.f32 0.35355338, %v3532_v27 }
0x22a3   :  { %v3596_v12 = vadd.f32 %v6739_v13, %v3592_v24 }
0x22a4   :  { %v3768_v8 = vpop.permute.xlu1 %3767 }
0x22a5   :  { %v3602_v41 = vsel %vm340_vm9, %v3596_v12, -inf }
0x22a6   :  { %3603 = vmax.xlane.f32.xlu0 %v3602_v41 }
0x22b4   :  { %3853 = vrot.lane.b32.xlu2 %v6715_v58, %s5658_s13 }
0x22b7   :  { %v3601_v42 = vpop.xlane.xlu2 %3600 }
0x22b8   :  { %v3611_v46 = vsub.f32 %v3595_v28, %v3601_v42 }
0x22ba   :  { %v3615_v49 = vmul.f32 1.442695, %v3611_v46  ;;  %5270 = vrot.lane.b32.xlu0 %v5269_v48, %s5660_s21 }
0x22bc   :  { %5501 = vpow2.f32 %v3615_v49 }
0x22bd   :  { %5503 = vpow2.f32 %v3621_v39 }
0x22bf   :  { %v3770_v0 = vpop.permute.xlu2 %3769 }
0x22c2   :  { %v5502_v51 = vpop.eup %5501 }
0x22c3   :  { %v3623_v26 = vsel %vm340_vm9, %v5502_v51, 0.0  ;;  %v5504_v44 = vpop.eup %5503 }
0x22c4   :  { %3624 = vadd.xlane.f32.xlu1 %v3623_v26  ;;  %v3632_v55 = vsel %vm340_vm9, %v5504_v44, 0.0 }
0x22e4   :  { %3633 = vadd.xlane.f32.xlu0 %v3632_v55 }
0x22f8   :  { %3669 = vrot.lane.b32.xlu0 %v6702_v5, %s5660_s21 }
0x2300   :  { %3851 = vrot.lane.b32.xlu0 %v6715_v58, %s5661_s22 }
0x2308   :  { %3795 = vrot.lane.b32.xlu0 %v6702_v5, %s5661_s22 }
0x230f   :  { %v3607_v25 = vpop.xlane.xlu2 %3606 }
0x2310   :  { %v3613_v53 = vsub.f32 %v3597_v34, %v3607_v25  ;;  %3823 = vrot.lane.b32.xlu0 %v6708_v57, %s5661_s22 }
0x2312   :  { %v3619_v59 = vmul.f32 1.442695, %v3613_v53 }
0x2314   :  { %5505 = vpow2.f32 %v3619_v59 }
0x2317   :  { %v3854_v54 = vpop.permute.xlu2 %3853 }
0x2319   :  { %v3604_v47 = vpop.xlane.xlu0 %3603 }
0x231a   :  { %v5506_v61 = vpop.eup %5505  ;;  %v3612_v33 = vsub.f32 %v3596_v12, %v3604_v47 }
0x231b   :  { %v3629_v62 = vsel %vm340_vm9, %v5506_v61, 0.0 }
0x231c   :  { %v3617_v63 = vmul.f32 1.442695, %v3612_v33  ;;  %3630 = vadd.xlane.f32.xlu1 %v3629_v62 }
0x231e   :  { %5507 = vpow2.f32 %v3617_v63 }
0x2324   :  { %v5508_v50 = vpop.eup %5507 }
0x2325   :  { %v3626_v2 = vsel %vm340_vm9, %v5508_v50, 0.0 }
0x2326   :  { %3627 = vadd.xlane.f32.xlu2 %v3626_v2 }
0x232c   :  { %v5271_v3 = vpop.permute.xlu0 %5270 }
0x232d   :  { %v5273_v4 = vunpack.i.h.bf16 %v5271_v3  ;;  %v5272_v7 = vunpack.i.l.bf16 %v5271_v3 }
0x232f   :  { %3664 = vmatpush.msra.mxu3 %v5272_v7  ;;  %3742 = vmatpush.msrb.mxu2 %v5273_v4 }
0x2331   :  { %5121 = vmatpush.xpose.msk.msrb.mxu3 %vm340_vm9, %v3770_v0  ;;  %5127 = vmatpush.xpose.msk.msra.mxu2 %vm340_vm9, %v3854_v54 }
0x2335   :  { %3797 = vrot.lane.b32.xlu1 %v6702_v5, %s5658_s13 }
0x2337   :  { %v3625_v31 = vpop.xlane.xlu1 %3624 }
0x2338   :  { %5509 = vrcp.f32 %v3625_v31 }
0x233e   :  { %v5510_v17 = vpop.eup %5509  ;;  %3695 = vrot.lane.b32.xlu2 %v6708_v57, %s5660_s21  ;;  %s5601_s21 = scalar_lea.hbm %s5893_s30, 1 }
0x233f   :  { %v3639_v9 = vmul.f32 %v5510_v17, %v5502_v51 }
0x2341   :  { %5117 = vmatmul.msk.f32.vlgmr.msra.gmra.mxu3 %vm340_vm9, %v3639_v9 }
0x2346   :  { %3825 = vrot.lane.b32.xlu2 %v6708_v57, %s5658_s13 }
0x2349   :  { %5122 = vmatmul.msk.f32.vlgmr.msrb.gmra.mxu3 %vm340_vm9, %v3768_v8 }
0x2357   :  { %v3634_v20 = vpop.xlane.xlu0 %3633 }
0x2358   :  { %5511 = vrcp.f32 %v3634_v20 }
0x235e   :  { %v5512_v22 = vpop.eup %5511 }
0x235f   :  { %v3642_v35 = vmul.f32 %v5512_v22, %v5504_v44 }
0x2361   :  { %5120 = vmatmul.msk.f32.vlgmr.msrb.gmra.mxu2 %vm340_vm9, %v3642_v35 }
0x236a   :  { %v3670_v11 = vpop.permute.xlu0 %3669 }
0x236b   :  { %3690 = vmatpush.msrb.mxu0 %v3670_v11 }
0x2372   :  { %v3852_v21 = vpop.permute.xlu0 %3851 }
0x2373   :  { %5128 = vmatmul.msk.f32.vlgmr.msra.gmra.mxu2 %vm340_vm9, %v3852_v21 }
0x237a   :  { %v3796_v29 = vpop.permute.xlu0 %3795 }
0x2382   :  { %v3824_v38 = vpop.permute.xlu0 %3823 }
0x238f   :  { %v3631_v23 = vpop.xlane.xlu1 %3630 }
0x2390   :  { %5513 = vrcp.f32 %v3631_v23 }
0x2396   :  { %v5514_v19 = vpop.eup %5513 }
0x2397   :  { %v3641_v30 = vmul.f32 %v5514_v19, %v5506_v61 }
0x2399   :  { %v3628_v45 = vpop.xlane.xlu2 %3627 }
0x239a   :  { %5515 = vrcp.f32 %v3628_v45 }
0x23a0   :  { %v5516_v28 = vpop.eup %5515 }
0x23a1   :  { %v3640_v32 = vmul.f32 %v5516_v28, %v5508_v50  ;;  %v3696_v16 = vpop.permute.xlu2 %3695 }
0x23a2   :  { %3716 = vmatpush.msra.mxu1 %v3696_v16 }
0x23a3   :  { %5118 = vmatmul.msk.f32.vlgmr.msrb.gmra.mxu0 %vm340_vm9, %v3640_v32  ;;  %5119 = vmatmul.msk.f32.vlgmr.msra.gmra.mxu1 %vm340_vm9, %v3641_v30 }
0x23a7   :  { %v3798_v10 = vpop.permute.xlu1 %3797 }
0x23a8   :  { %5123 = vmatpush.xpose.msk.msra.mxu0 %vm340_vm9, %v3798_v10 }
0x23a9   :  { %v3826_v34 = vpop.permute.xlu2 %3825 }
0x23aa   :  { %5125 = vmatpush.xpose.msk.msrb.mxu1 %vm340_vm9, %v3826_v34 }
0x23ab   :  { %5124 = vmatmul.msk.f32.vlgmr.msra.gmra.mxu0 %vm340_vm9, %v3796_v29 }
0x23ad   :  { %5126 = vmatmul.msk.f32.vlgmr.msrb.gmra.mxu1 %vm340_vm9, %v3824_v38 }
0x23c4   :  { %v6836_v27 = vpop.f32.mrf.mxu3 }
0x23cc   :  { %v3792_v24 = vpop.f32.mrf.mxu3 }
0x23cd   :  { %v3879_v12 = vmul.f32 0.35355338, %v3792_v24 }
0x23cf   :  { %v3883_v41 = vadd.f32 %v6734_v1, %v3879_v12 }
0x23d1   :  { %v3887_v42 = vsel %vm340_vm9, %v3883_v41, -inf }
0x23d2   :  { %3888 = vmax.xlane.f32.xlu1 %v3887_v42 }
0x23e4   :  { %v6840_v46 = vpop.f32.mrf.mxu2 }
0x23f6   :  { %v3876_v48 = vpop.f32.mrf.mxu2 }
0x23f7   :  { %v3882_v49 = vmul.f32 0.35355338, %v3876_v48 }
0x23f9   :  { %v3886_v51 = vadd.f32 %v6754_v60, %v3882_v49 }
0x23fb   :  { %v3896_v26 = vsel %vm340_vm9, %v3886_v51, -inf }
0x23fc   :  { %3897 = vmax.xlane.f32.xlu0 %v3896_v26 }
0x2410   :  { %3931 = vrot.lane.b32.xlu0 %v6698_v56, %s5665_s1 }
0x2418   :  { %5275 = vrot.lane.b32.xlu0 %v5274_v52, %s5665_s1 }
0x2420   :  { %4083 = vrot.lane.b32.xlu0 %v6702_v5, %s5663_s26  ;;  %v6851_v40 = vpop.f32.mrf.mxu0  ;;  %v6853_v39 = vpop.f32.mrf.mxu1 }
0x2428   :  { %4141 = vrot.lane.b32.xlu0 %v6715_v58, %s5662_s23  ;;  %v3820_v44 = vpop.f32.mrf.mxu0 }
0x2429   :  { %v3880_v55 = vmul.f32 0.35355338, %v3820_v44 }
0x242a   :  { %v3848_v0 = vpop.f32.mrf.mxu1 }
0x242b   :  { %v3884_v25 = vadd.f32 %v6739_v13, %v3880_v55  ;;  %v3881_v53 = vmul.f32 0.35355338, %v3848_v0 }
0x242d   :  { %v3885_v59 = vadd.f32 %v6746_v36, %v3881_v53  ;;  %v3890_v47 = vsel %vm340_vm9, %v3884_v25, -inf }
0x242e   :  { %3891 = vmax.xlane.f32.xlu2 %v3890_v47 }
0x242f   :  { %v3893_v61 = vsel %vm340_vm9, %v3885_v59, -inf }
0x2430   :  { %3894 = vmax.xlane.f32.xlu1 %v3893_v61 }
0x2445   :  { %v3889_v33 = vpop.xlane.xlu1 %3888 }
0x2446   :  { %4055 = vrot.lane.b32.xlu2 %v6698_v56, %s5663_s26  ;;  %v3899_v62 = vsub.f32 %v3883_v41, %v3889_v33 }
0x2448   :  { %v3903_v63 = vmul.f32 1.442695, %v3899_v62 }
0x2449   :  { %4057 = vrot.lane.b32.xlu1 %v6698_v56, %s5662_s23 }
0x244a   :  { %5517 = vpow2.f32 %v3903_v63 }
0x244e   :  { %3983 = vrot.lane.b32.xlu2 %v6708_v57, %s5665_s1 }
0x2450   :  { %v5518_v4 = vpop.eup %5517 }
0x2451   :  { %v3911_v7 = vsel %vm340_vm9, %v5518_v4, 0.0 }
0x246f   :  { %v3898_v50 = vpop.xlane.xlu0 %3897 }
0x2470   :  { %v3902_v2 = vsub.f32 %v3886_v51, %v3898_v50 }
0x2472   :  { %v3909_v3 = vmul.f32 1.442695, %v3902_v2 }
0x2474   :  { %5519 = vpow2.f32 %v3909_v3 }
0x2477   :  { %3912 = vadd.xlane.f32.xlu2 %v3911_v7 }
0x247a   :  { %v5520_v8 = vpop.eup %5519 }
0x247b   :  { %v3920_v54 = vsel %vm340_vm9, %v5520_v8, 0.0 }
0x247c   :  { %3921 = vadd.xlane.f32.xlu1 %v3920_v54 }
0x2482   :  { %v3932_v31 = vpop.permute.xlu0 %3931 }
0x2483   :  { %3952 = vmatpush.msra.mxu3 %v3932_v31 }
0x248a   :  { %v5276_v17 = vpop.permute.xlu0 %5275 }
0x248b   :  { %v5278_v9 = vunpack.i.h.bf16 %v5276_v17  ;;  %v5277_v20 = vunpack.i.l.bf16 %v5276_v17 }
0x248d   :  { %3978 = vmatpush.msrb.mxu0 %v5277_v20  ;;  %4030 = vmatpush.msrb.mxu2 %v5278_v9 }
0x2492   :  { %v4084_v22 = vpop.permute.xlu0 %4083 }
0x2495   :  { %4085 = vrot.lane.b32.xlu1 %v6702_v5, %s5662_s23 }
0x249a   :  { %v4142_v35 = vpop.permute.xlu0 %4141 }
0x249b   :  { %5139 = vmatpush.xpose.msk.msra.mxu2 %vm340_vm9, %v4142_v35 }
0x249d   :  { %4139 = vrot.lane.b32.xlu1 %v6715_v58, %s5663_s26 }
0x24a1   :  { %v3892_v11 = vpop.xlane.xlu2 %3891 }
0x24a2   :  { %v3900_v21 = vsub.f32 %v3884_v25, %v3892_v11 }
0x24a3   :  { %v3895_v23 = vpop.xlane.xlu1 %3894 }
0x24a4   :  { %v3905_v45 = vmul.f32 1.442695, %v3900_v21  ;;  %v3901_v19 = vsub.f32 %v3885_v59, %v3895_v23 }
0x24a6   :  { %5521 = vpow2.f32 %v3905_v45  ;;  %v3907_v28 = vmul.f32 1.442695, %v3901_v19 }
0x24a8   :  { %5523 = vpow2.f32 %v3907_v28 }
0x24a9   :  { %v4056_v30 = vpop.permute.xlu2 %4055 }
0x24ac   :  { %v5522_v32 = vpop.eup %5521 }
0x24ad   :  { %v3914_v16 = vsel %vm340_vm9, %v5522_v32, 0.0 }
0x24ae   :  { %v5524_v29 = vpop.eup %5523  ;;  %3915 = vadd.xlane.f32.xlu0 %v3914_v16 }
0x24af   :  { %v3917_v10 = vsel %vm340_vm9, %v5524_v29, 0.0 }
0x24b0   :  { %3918 = vadd.xlane.f32.xlu2 %v3917_v10 }
0x24b1   :  { %v3984_v34 = vpop.permute.xlu2 %3983 }
0x24b2   :  { %4004 = vmatpush.msra.mxu1 %v3984_v34 }
0x24bb   :  { %v4058_v38 = vpop.permute.xlu1 %4057 }
0x24bc   :  { %5133 = vmatpush.xpose.msk.msrb.mxu3 %vm340_vm9, %v4058_v38 }
0x24c2   :  { %4111 = vrot.lane.b32.xlu0 %v6708_v57, %s5663_s26 }
0x24c8   :  { %4113 = vrot.lane.b32.xlu2 %v6708_v57, %s5662_s23 }
0x24ea   :  { %v3913_v24 = vpop.xlane.xlu2 %3912 }
0x24eb   :  { %5525 = vrcp.f32 %v3913_v24 }
0x24ef   :  { %v3922_v12 = vpop.xlane.xlu1 %3921 }
0x24f0   :  { %5527 = vrcp.f32 %v3922_v12 }
0x24f1   :  { %v5526_v41 = vpop.eup %5525 }
0x24f2   :  { %v3927_v42 = vmul.f32 %v5526_v41, %v5518_v4 }
0x24f4   :  { %5129 = vmatmul.msk.f32.vlgmr.msra.gmra.mxu3 %vm340_vm9, %v3927_v42 }
0x24f6   :  { %v5528_v48 = vpop.eup %5527 }
0x24f7   :  { %v3930_v49 = vmul.f32 %v5528_v48, %v5520_v8 }
0x24f9   :  { %5132 = vmatmul.msk.f32.vlgmr.msrb.gmra.mxu2 %vm340_vm9, %v3930_v49 }
0x24fc   :  { %5134 = vmatmul.msk.f32.vlgmr.msrb.gmra.mxu3 %vm340_vm9, %v4056_v30 }
0x2507   :  { %v4086_v51 = vpop.permute.xlu1 %4085 }
0x2508   :  { %5135 = vmatpush.xpose.msk.msra.mxu0 %vm340_vm9, %v4086_v51 }
0x250f   :  { %v4140_v26 = vpop.permute.xlu1 %4139 }
0x2510   :  { %5140 = vmatmul.msk.f32.vlgmr.msra.gmra.mxu2 %vm340_vm9, %v4140_v26 }
0x2521   :  { %v3916_v52 = vpop.xlane.xlu0 %3915 }
0x2522   :  { %5529 = vrcp.f32 %v3916_v52  ;;  %v5284_v52 = vpack.i.bf16 %v6715_v58, %v6708_v57 }
0x2523   :  { %v3919_v44 = vpop.xlane.xlu2 %3918 }
0x2524   :  { %5531 = vrcp.f32 %v3919_v44 }
0x2528   :  { %v5530_v55 = vpop.eup %5529 }
0x2529   :  { %v3928_v0 = vmul.f32 %v5530_v55, %v5522_v32 }
0x252a   :  { %v5532_v25 = vpop.eup %5531 }
0x252b   :  { %v3929_v53 = vmul.f32 %v5532_v25, %v5524_v29  ;;  %5130 = vmatmul.msk.f32.vlgmr.msrb.gmra.mxu0 %vm340_vm9, %v3928_v0  ;;  %v4114_v59 = vpop.permute.xlu2 %4113 }
0x252c   :  { %5137 = vmatpush.xpose.msk.msrb.mxu1 %vm340_vm9, %v4114_v59 }
0x252d   :  { %5131 = vmatmul.msk.f32.vlgmr.msra.gmra.mxu1 %vm340_vm9, %v3929_v53 }
0x2533   :  { %5136 = vmatmul.msk.f32.vlgmr.msra.gmra.mxu0 %vm340_vm9, %v4084_v22 }
0x2534   :  { %v4112_v47 = vpop.permute.xlu0 %4111 }
0x2535   :  { %5138 = vmatmul.msk.f32.vlgmr.msrb.gmra.mxu1 %vm340_vm9, %v4112_v47 }
0x2577   :  { %v3954_v61 = vpop.f32.mrf.mxu3 }
0x257c   :  { %v4032_v2 = vpop.f32.mrf.mxu2 }
0x257f   :  { %v4080_v33 = vpop.f32.mrf.mxu3 }
0x2580   :  { %v4167_v62 = vmul.f32 0.35355338, %v4080_v33 }
0x2582   :  { %v4171_v63 = vadd.f32 %v6734_v1, %v4167_v62 }
0x2584   :  { %v4175_v50 = vsel %vm340_vm9, %v4171_v63, -inf }
0x2585   :  { %4176 = vmax.xlane.f32.xlu1 %v4175_v50 }
0x2593   :  { %v4164_v3 = vpop.f32.mrf.mxu2 }
0x2594   :  { %v4170_v4 = vmul.f32 0.35355338, %v4164_v3 }
0x2596   :  { %v4174_v7 = vadd.f32 %v6754_v60, %v4170_v4  ;;  %v5279_v60 = vpack.i.bf16 %v6702_v5, %v6698_v56 }
0x2598   :  { %v4184_v8 = vsel %vm340_vm9, %v4174_v7, -inf }
0x2599   :  { %4185 = vmax.xlane.f32.xlu1 %v4184_v8 }
0x25a8   :  { %v3980_v54 = vpop.f32.mrf.mxu0 }
0x25aa   :  { %v4006_v31 = vpop.f32.mrf.mxu1 }
0x25b0   :  { %v4108_v17 = vpop.f32.mrf.mxu0 }
0x25b1   :  { %v4168_v9 = vmul.f32 0.35355338, %v4108_v17  ;;  %v5147_v17 = vld [vmem:[%s7178_s16 + $0x30] sm:$0xff] }
0x25b2   :  { %v4136_v20 = vpop.f32.mrf.mxu1 }
0x25b3   :  { %v4172_v22 = vadd.f32 %v6739_v13, %v4168_v9  ;;  %v4169_v35 = vmul.f32 0.35355338, %v4136_v20  ;;  %v5146_v9 = vld [vmem:[%s7178_s16 + $0x28] sm:$0xff] }
0x25b5   :  { %v4173_v1 = vadd.f32 %v6746_v36, %v4169_v35  ;;  %v4178_v11 = vsel %vm340_vm9, %v4172_v22, -inf }
0x25b6   :  { %4179 = vmax.xlane.f32.xlu2 %v4178_v11 }
0x25b7   :  { %v4181_v21 = vsel %vm340_vm9, %v4173_v1, -inf }
0x25b8   :  { %4182 = vmax.xlane.f32.xlu0 %v4181_v21 }
0x25cc   :  { %5280 = vrot.lane.b32.xlu0 %v5279_v60, %s5666_s2 }
0x25d4   :  { %4039 = vrot.lane.b32.xlu0 %v3954_v61, %s5667_s7 }
0x25f8   :  { %v4177_v23 = vpop.xlane.xlu1 %4176 }
0x25f9   :  { %v4187_v45 = vsub.f32 %v4171_v63, %v4177_v23 }
0x25fb   :  { %v4191_v19 = vmul.f32 1.442695, %v4187_v45 }
0x25fd   :  { %5533 = vpow2.f32 %v4191_v19 }
0x2603   :  { %v5534_v13 = vpop.eup %5533 }
0x2604   :  { %v4199_v36 = vsel %vm340_vm9, %v5534_v13, 0.0 }
0x2605   :  { %4200 = vadd.xlane.f32.xlu2 %v4199_v36 }
0x260c   :  { %v4186_v28 = vpop.xlane.xlu1 %4185 }
0x260d   :  { %v4190_v29 = vsub.f32 %v4174_v7, %v4186_v28  ;;  %v5325_v28 = vld [vmem:[%s7179_s25 + $0x1] ss:$0 sm:$0xff] }
0x260f   :  { %v4197_v5 = vmul.f32 1.442695, %v4190_v29 }
0x2629   :  { %v4180_v30 = vpop.xlane.xlu2 %4179 }
0x262a   :  { %v4188_v32 = vsub.f32 %v4172_v22, %v4180_v30 }
0x262b   :  { %v4183_v16 = vpop.xlane.xlu0 %4182 }
0x262c   :  { %v4193_v10 = vmul.f32 1.442695, %v4188_v32  ;;  %v4189_v34 = vsub.f32 %v4173_v1, %v4183_v16 }
0x262e   :  { %5535 = vpow2.f32 %v4193_v10  ;;  %v4195_v56 = vmul.f32 1.442695, %v4189_v34 }
0x2630   :  { %5537 = vpow2.f32 %v4195_v56 }
0x2631   :  { %5539 = vpow2.f32 %v4197_v5 }
0x2634   :  { %v5536_v38 = vpop.eup %5535 }
0x2635   :  { %v4202_v24 = vsel %vm340_vm9, %v5536_v38, 0.0 }
0x2636   :  { %v5538_v12 = vpop.eup %5537  ;;  %4203 = vadd.xlane.f32.xlu1 %v4202_v24 }
0x2637   :  { %v4205_v41 = vsel %vm340_vm9, %v5538_v12, 0.0  ;;  %v5540_v42 = vpop.eup %5539 }
0x2638   :  { %4206 = vadd.xlane.f32.xlu2 %v4205_v41  ;;  %v4208_v48 = vsel %vm340_vm9, %v5540_v42, 0.0 }
0x263e   :  { %v5281_v49 = vpop.permute.xlu0 %5280  ;;  %4209 = vadd.xlane.f32.xlu1 %v4208_v48 }
0x263f   :  { %v5283_v51 = vunpack.i.h.bf16 %v5281_v49  ;;  %v5282_v26 = vunpack.i.l.bf16 %v5281_v49 }
0x2641   :  { %4240 = vmatpush.msra.mxu3 %v5282_v26  ;;  %4266 = vmatpush.msrb.mxu0 %v5283_v51 }
0x2646   :  { %v4040_v3 = vpop.permute.xlu0 %4039 }
0x2650   :  { %5285 = vrot.lane.b32.xlu2 %v5284_v52, %s5666_s2 }
0x2657   :  { %3751 = vrot.lane.b32.xlu1 %v6836_v27, %s5664_s28 }
0x2658   :  { %4041 = vrot.lane.b32.xlu2 %v3980_v54, %s5667_s7 }
0x2660   :  { %4043 = vrot.lane.b32.xlu2 %v4006_v31, %s5667_s7  ;;  %v5148_v31 = vld [vmem:[%s7178_s16 + $0x38] sm:$0xff] }
0x2661   :  { %4381 = vmatpush.msrb.mxu3 %v5148_v31 }
0x2663   :  { %4382 = vmatpush.msrb.mxu3 %v5147_v17 }
0x2665   :  { %4383 = vmatpush.msrb.mxu3 %v5146_v9 }
0x2668   :  { %4045 = vrot.lane.b32.xlu2 %v4032_v2, %s5667_s7 }
0x2678   :  { %v4201_v44 = vpop.xlane.xlu2 %4200 }
0x2679   :  { %5541 = vrcp.f32 %v4201_v44 }
0x267f   :  { %v5542_v55 = vpop.eup %5541 }
0x2680   :  { %v4215_v0 = vmul.f32 %v5542_v55, %v5534_v13 }
0x2682   :  { %5141 = vmatmul.msk.f32.vlgmr.msra.gmra.mxu3 %vm340_vm9, %v4215_v0 }
0x26a9   :  { %v4204_v25 = vpop.xlane.xlu1 %4203 }
0x26aa   :  { %5543 = vrcp.f32 %v4204_v25 }
0x26ab   :  { %v4207_v57 = vpop.xlane.xlu2 %4206 }
0x26ac   :  { %5545 = vrcp.f32 %v4207_v57 }
0x26b0   :  { %v5544_v58 = vpop.eup %5543 }
0x26b1   :  { %v4216_v53 = vmul.f32 %v5544_v58, %v5536_v38  ;;  %v4210_v59 = vpop.xlane.xlu1 %4209 }
0x26b2   :  { %v5546_v27 = vpop.eup %5545  ;;  %5547 = vrcp.f32 %v4210_v59 }
0x26b3   :  { %5142 = vmatmul.msk.f32.vlgmr.msrb.gmra.mxu0 %vm340_vm9, %v4216_v53  ;;  %v5286_v47 = vpop.permute.xlu2 %5285  ;;  %v4217_v62 = vmul.f32 %v5546_v27, %v5538_v12 }
0x26b4   :  { %v5288_v61 = vunpack.i.h.bf16 %v5286_v47  ;;  %v5287_v33 = vunpack.i.l.bf16 %v5286_v47 }
0x26b6   :  { %4292 = vmatpush.msra.mxu1 %v5287_v33  ;;  %4318 = vmatpush.msrb.mxu2 %v5288_v61 }
0x26b7   :  { %5143 = vmatmul.msk.f32.vlgmr.msra.gmra.mxu1 %vm340_vm9, %v4217_v62 }
0x26b8   :  { %v5548_v63 = vpop.eup %5547 }
0x26b9   :  { %v4218_v50 = vmul.f32 %v5548_v63, %v5540_v42 }
0x26bb   :  { %5144 = vmatmul.msk.f32.vlgmr.msrb.gmra.mxu2 %vm340_vm9, %v4218_v50  ;;  %v5159_v50 = vld [vmem:[%s7180_s29 + $0x38] sm:$0xff] }
0x26bc   :  { %4542 = vmatpush.msra.mxu0 %v5159_v50 }
0x26c9   :  { %v3752_v2 = vpop.permute.xlu1 %3751 }
0x26ca   :  { %3763 = vst.msk [vmem:[#allocation4] sm:$0xff] %vm2172_vm15, %v3752_v2  ;;  %v5158_v2 = vld [vmem:[%s7180_s29 + $0x30] sm:$0xff] }
0x26cb   :  { %4051 = vst.msk [vmem:[#allocation4] sm:$0xff] %vm2461_vm0, %v4040_v3  ;;  %4543 = vmatpush.msra.mxu0 %v5158_v2  ;;  %v5157_v3 = vld [vmem:[%s7180_s29 + $0x28] sm:$0xff] }
0x26cd   :  { %4544 = vmatpush.msra.mxu0 %v5157_v3 }
0x2705   :  { %v4242_v4 = vpop.f32.mrf.mxu3 }
0x2706   :  { %4327 = vrot.lane.b32.xlu0 %v4242_v4, %s5668_s10  ;;  %v5156_v4 = vld [vmem:[%s7180_s29 + $0x20] sm:$0xff] }
0x2707   :  { %4545 = vmatpush.msra.mxu0 %v5156_v4 }
0x270e   :  { %3753 = vrot.lane.b32.xlu0 %v6851_v40, %s5664_s28  ;;  %v5145_v40 = vld [vmem:[%s7178_s16 + $0x20] sm:$0xff] }
0x270f   :  { %4384 = vmatpush.msrb.mxu3 %v5145_v40 }
0x2716   :  { %3755 = vrot.lane.b32.xlu0 %v6853_v39, %s5664_s28 }
0x271e   :  { %3757 = vrot.lane.b32.xlu0 %v6840_v46, %s5664_s28  ;;  %v4042_v46 = vpop.permute.xlu2 %4041 }
0x2726   :  { %v4044_v35 = vpop.permute.xlu2 %4043 }
0x272e   :  { %v4046_v21 = vpop.permute.xlu2 %4045 }
0x2730   :  { %v4268_v7 = vpop.f32.mrf.mxu0 }
0x2731   :  { %4329 = vrot.lane.b32.xlu1 %v4268_v7, %s5668_s10 }
0x2734   :  { %v4294_v8 = vpop.f32.mrf.mxu1 }
0x2739   :  { %4331 = vrot.lane.b32.xlu1 %v4294_v8, %s5668_s10 }
0x273e   :  { %v4320_v54 = vpop.f32.mrf.mxu2 }
0x2741   :  { %4333 = vrot.lane.b32.xlu1 %v4320_v54, %s5668_s10 }
0x2778   :  { %v4328_v39 = vpop.permute.xlu0 %4327 }
0x2779   :  { %4339 = vst.msk [vmem:[#allocation4] sm:$0xff] %vm2750_vm4, %v4328_v39 }
0x2780   :  { %v3754_v20 = vpop.permute.xlu0 %3753  ;;  %v4343_v22 = vld [vmem:[#allocation4] sm:$0xff] }
0x2781   :  { %3764 = vst.msk [vmem:[#allocation4 + $0x8] sm:$0xff] %vm2172_vm15, %v3754_v20  ;;  %5150 = vmatmul.msk.f32.vlgmr.msrb.gmra.mxu3 %vm313_vm8, %v4343_v22  ;;  %v7000_v20 = vld [vmem:[%s7181_s3 + $0x1] ss:$0 sm:$0xff] }
0x2782   :  { %4052 = vst.msk [vmem:[#allocation4 + $0x8] sm:$0xff] %vm2461_vm0, %v4042_v46 }
0x2788   :  { %v3756_v1 = vpop.permute.xlu0 %3755 }
0x2789   :  { %3765 = vst.msk [vmem:[#allocation4 + $0x10] sm:$0xff] %vm2172_vm15, %v3756_v1 }
0x278a   :  { %4053 = vst.msk [vmem:[#allocation4 + $0x10] sm:$0xff] %vm2461_vm0, %v4044_v35  ;;  %v7003_v35 = vld [vmem:[%s7182_s8 + $0x1] ss:$0 sm:$0xff] }
0x2790   :  { %v3758_v11 = vpop.permute.xlu0 %3757 }
0x2791   :  { %3766 = vst.msk [vmem:[#allocation4 + $0x18] sm:$0xff] %vm2172_vm15, %v3758_v11 }
0x2792   :  { %4054 = vst.msk [vmem:[#allocation4 + $0x18] sm:$0xff] %vm2461_vm0, %v4046_v21 }
0x27a3   :  { %v4330_v60 = vpop.permute.xlu1 %4329 }
0x27a4   :  { %4340 = vst.msk [vmem:[#allocation4 + $0x8] sm:$0xff] %vm2750_vm4, %v4330_v60 }
0x27ab   :  { %v4332_v23 = vpop.permute.xlu1 %4331  ;;  %v4344_v45 = vld [vmem:[#allocation4 + $0x8] sm:$0xff] }
0x27ac   :  { %4341 = vst.msk [vmem:[#allocation4 + $0x10] sm:$0xff] %vm2750_vm4, %v4332_v23  ;;  %5151 = vmatmul.msk.f32.gmra.mxu3 %vm313_vm8, %v4344_v45 }
0x27b3   :  { %v4334_v19 = vpop.permute.xlu1 %4333  ;;  %v4345_v13 = vld [vmem:[#allocation4 + $0x10] sm:$0xff] }
0x27b4   :  { %4342 = vst.msk [vmem:[#allocation4 + $0x18] sm:$0xff] %vm2750_vm4, %v4334_v19  ;;  %5152 = vmatmul.msk.f32.gmra.mxu3 %vm313_vm8, %v4345_v13 }
0x27bb   :  { %v4346_v36 = vld [vmem:[#allocation4 + $0x18] sm:$0xff] }
0x27bc   :  { %5153 = vmatmul.msk.f32.gmra.mxu3 %vm313_vm8, %v4346_v36 }
0x2804   :  { %v4386_v30 = vpop.f32.mrf.mxu3 }
0x2805   :  { %v4387_v32 = vadd.f32 %v5325_v28, %v4386_v30 }
0x2807   :  { %v6951_v16 = vadd.f32 %v4387_v32, %v6642_v15  ;;  %v5180_v32 = vld [vmem:[%s7183_s20 + $0xf8] sm:$0xff] }
0x2808   :  { %4617 = vmatpush.msrb.mxu1 %v5180_v32 }
0x2809   :  { %v4406_v29 = vsel %vm313_vm8, %v6951_v16, 0.0 }
0x280a   :  { %4407 = vadd.xlane.f32.xlu0 %v4406_v29  ;;  %v5179_v29 = vld [vmem:[%s7183_s20 + $0xf0] sm:$0xff] }
0x280b   :  { %4618 = vmatpush.msrb.mxu1 %v5179_v29 }
0x282f   :  { %v4389_v10 = vpop.f32.mrf.mxu3 }
0x2830   :  { %v4390_v34 = vadd.f32 %v5325_v28, %v4389_v10 }
0x2832   :  { %v6956_v56 = vadd.f32 %v4390_v34, %v6647_v6  ;;  %v5178_v34 = vld [vmem:[%s7183_s20 + $0xe8] sm:$0xff] }
0x2833   :  { %4619 = vmatpush.msrb.mxu1 %v5178_v34 }
0x2834   :  { %v4409_v5 = vsel %vm313_vm8, %v6956_v56, 0.0 }
0x2835   :  { %4410 = vadd.xlane.f32.xlu2 %v4409_v5 }
0x2837   :  { %v4392_v38 = vpop.f32.mrf.mxu3 }
0x2838   :  { %v4393_v24 = vadd.f32 %v5325_v28, %v4392_v38 }
0x283a   :  { %v6961_v12 = vadd.f32 %v4393_v24, %v6652_v14 }
0x283c   :  { %v4412_v15 = vsel %vm313_vm8, %v6961_v12, 0.0 }
0x283d   :  { %4413 = vadd.xlane.f32.xlu1 %v4412_v15 }
0x283f   :  { %v4395_v41 = vpop.f32.mrf.mxu3 }
0x2840   :  { %v4396_v42 = vadd.f32 %v5325_v28, %v4395_v41 }
0x2842   :  { %v6966_v48 = vadd.f32 %v4396_v42, %v6658_v37 }
0x2844   :  { %v4415_v6 = vsel %vm313_vm8, %v6966_v48, 0.0 }
0x2845   :  { %4416 = vadd.xlane.f32.xlu2 %v4415_v6 }
0x287d   :  { %v4408_v49 = vpop.xlane.xlu0 %4407 }
0x287e   :  { %v4418_v51 = vmul.f32 %v4408_v49, %v5928_v43 }
0x2880   :  { %v4422_v26 = vsub.f32 %v6951_v16, %v4418_v51 }
0x2882   :  { %v4426_v14 = vmul.f32 %v4422_v26, %v4422_v26 }
0x2884   :  { %v4430_v52 = vsel %vm313_vm8, %v4426_v14, 0.0 }
0x2885   :  { %4431 = vadd.xlane.f32.xlu0 %v4430_v52 }
0x28a8   :  { %v4411_v44 = vpop.xlane.xlu2 %4410 }
0x28a9   :  { %v4419_v55 = vmul.f32 %v4411_v44, %v5928_v43 }
0x28ab   :  { %v6975_v0 = vsub.f32 %v6956_v56, %v4419_v55 }
0x28ad   :  { %v4427_v37 = vmul.f32 %v6975_v0, %v6975_v0 }
0x28af   :  { %v4433_v25 = vsel %vm313_vm8, %v4427_v37, 0.0 }
0x28b0   :  { %4434 = vadd.xlane.f32.xlu1 %v4433_v25  ;;  %v4414_v57 = vpop.xlane.xlu1 %4413 }
0x28b1   :  { %v4420_v58 = vmul.f32 %v4414_v57, %v5928_v43 }
0x28b3   :  { %v6982_v53 = vsub.f32 %v6961_v12, %v4420_v58 }
0x28b5   :  { %v4428_v59 = vmul.f32 %v6982_v53, %v6982_v53 }
0x28b7   :  { %v4436_v27 = vsel %vm313_vm8, %v4428_v59, 0.0 }
0x28b8   :  { %4437 = vadd.xlane.f32.xlu2 %v4436_v27  ;;  %v4417_v47 = vpop.xlane.xlu2 %4416 }
0x28b9   :  { %v4421_v61 = vmul.f32 %v4417_v47, %v5928_v43 }
0x28bb   :  { %v6989_v33 = vsub.f32 %v6966_v48, %v4421_v61 }
0x28bd   :  { %v4429_v62 = vmul.f32 %v6989_v33, %v6989_v33 }
0x28bf   :  { %v4439_v63 = vsel %vm313_vm8, %v4429_v62, 0.0 }
0x28c0   :  { %4440 = vadd.xlane.f32.xlu0 %v4439_v63 }
0x28f8   :  { %v4432_v7 = vpop.xlane.xlu0 %4431 }
0x28f9   :  { %v4442_v8 = vmul.f32 %v4432_v7, %v5928_v43  ;;  %v5177_v7 = vld [vmem:[%s7183_s20 + $0xe0] sm:$0xff] }
0x28fa   :  { %4620 = vmatpush.msrb.mxu1 %v5177_v7  ;;  %v5329_v7 = vld [vmem:[%s7185_s11 + $0x1] ss:$0 sm:$0xff] }
0x28fb   :  { %v4446_v54 = vadd.f32 1e-12, %v4442_v8  ;;  %v5176_v8 = vld [vmem:[%s7183_s20 + $0xd8] sm:$0xff] }
0x28fc   :  { %4621 = vmatpush.msrb.mxu1 %v5176_v8 }
0x28fd   :  { %5549 = vrsqrt.f32 %v4446_v54  ;;  %vm4456_vm15 = vweird.f32 %v4446_v54 }
0x2903   :  { %v5550_v31 = vpop.eup %5549 }
0x2904   :  { %v4451_v17 = vmul.f32 %v5550_v31, %v4446_v54  ;;  %vm4457_vm9 = vweird.f32 %v5550_v31  ;;  %v5175_v54 = vld [vmem:[%s7183_s20 + $0xd0] sm:$0xff] }
0x2905   :  { %vm4458_vm0 = vmor %vm4456_vm15, %vm4457_vm9  ;;  %4622 = vmatpush.msrb.mxu1 %v5175_v54 }
0x2906   :  { %v4452_v9 = vmul.f32 %v5550_v31, %v4451_v17  ;;  %v5172_v17 = vld [vmem:[%s7183_s20 + $0xb8] sm:$0xff] }
0x2908   :  { %v4453_v40 = vmul.f32 0.5, %v4452_v9  ;;  %v5171_v9 = vld [vmem:[%s7183_s20 + $0xb0] sm:$0xff] }
0x290a   :  { %v4454_v39 = vsub.f32 1.5, %v4453_v40  ;;  %v5170_v40 = vld [vmem:[%s7183_s20 + $0xa8] sm:$0xff] }
0x290c   :  { %v4455_v46 = vmul.f32 %v5550_v31, %v4454_v39  ;;  %v5169_v39 = vld [vmem:[%s7183_s20 + $0xa0] sm:$0xff] }
0x290e   :  { %v4459_v22 = vsel %vm4458_vm0, %v5550_v31, %v4455_v46  ;;  %v5174_v31 = vld [vmem:[%s7183_s20 + $0xc8] sm:$0xff]  ;;  %v5168_v46 = vld [vmem:[%s7183_s20 + $0x98] sm:$0xff] }
0x290f   :  { %v4490_v1 = vmul.f32 %v4459_v22, %v4422_v26  ;;  %4623 = vmatpush.msrb.mxu1 %v5174_v31  ;;  %v5166_v22 = vld [vmem:[%s7183_s20 + $0x88] sm:$0xff] }
0x2911   :  { %v4497_v11 = vmul.f32 %v7000_v20, %v4490_v1  ;;  %v5328_v1 = vld [vmem:[%s7184_s18 + $0x1] ss:$0 sm:$0xff] }
0x2913   :  { %v4504_v21 = vadd.f32 %v7003_v35, %v4497_v11 }
0x2915   :  { %5161 = vmatmul.msk.f32.vlgmr.msra.gmra.mxu0 %vm313_vm8, %v4504_v21 }
0x2923   :  { %v4435_v60 = vpop.xlane.xlu1 %4434 }
0x2924   :  { %v4443_v23 = vmul.f32 %v4435_v60, %v5928_v43 }
0x2926   :  { %v4447_v45 = vadd.f32 1e-12, %v4443_v23 }
0x2928   :  { %5551 = vrsqrt.f32 %v4447_v45  ;;  %vm4466_vm10 = vweird.f32 %v4447_v45 }
0x292b   :  { %v4438_v19 = vpop.xlane.xlu2 %4437 }
0x292c   :  { %v4444_v13 = vmul.f32 %v4438_v19, %v5928_v43 }
0x292e   :  { %v5552_v36 = vpop.eup %5551  ;;  %v4448_v28 = vadd.f32 1e-12, %v4444_v13 }
0x292f   :  { %v4461_v30 = vmul.f32 %v5552_v36, %v4447_v45  ;;  %vm4467_vm4 = vweird.f32 %v5552_v36 }
0x2930   :  { %5553 = vrsqrt.f32 %v4448_v28  ;;  %vm4468_vm11 = vmor %vm4466_vm10, %vm4467_vm4  ;;  %vm4476_vm3 = vweird.f32 %v4448_v28 }
0x2931   :  { %v4462_v10 = vmul.f32 %v5552_v36, %v4461_v30 }
0x2933   :  { %v4463_v5 = vmul.f32 0.5, %v4462_v10  ;;  %v4441_v38 = vpop.xlane.xlu0 %4440 }
0x2934   :  { %v4445_v24 = vmul.f32 %v4441_v38, %v5928_v43 }
0x2935   :  { %v4464_v15 = vsub.f32 1.5, %v4463_v5 }
0x2936   :  { %v5554_v41 = vpop.eup %5553  ;;  %v4449_v42 = vadd.f32 1e-12, %v4445_v24 }
0x2937   :  { %v4465_v6 = vmul.f32 %v5552_v36, %v4464_v15  ;;  %v4471_v49 = vmul.f32 %v5554_v41, %v4448_v28  ;;  %vm4477_vm12 = vweird.f32 %v5554_v41 }
0x2938   :  { %5555 = vrsqrt.f32 %v4449_v42  ;;  %vm4478_vm13 = vmor %vm4476_vm3, %vm4477_vm12  ;;  %vm4486_vm5 = vweird.f32 %v4449_v42 }
0x2939   :  { %v4469_v51 = vsel %vm4468_vm11, %v5552_v36, %v4465_v6  ;;  %v4472_v26 = vmul.f32 %v5554_v41, %v4471_v49 }
0x293a   :  { %v4491_v14 = vmul.f32 %v4469_v51, %v6975_v0 }
0x293b   :  { %v4473_v52 = vmul.f32 0.5, %v4472_v26 }
0x293c   :  { %v4498_v44 = vmul.f32 %v7000_v20, %v4491_v14 }
0x293d   :  { %v4474_v55 = vsub.f32 1.5, %v4473_v52 }
0x293e   :  { %v5556_v37 = vpop.eup %5555  ;;  %v4505_v25 = vadd.f32 %v7003_v35, %v4498_v44 }
0x293f   :  { %v4475_v57 = vmul.f32 %v5554_v41, %v4474_v55  ;;  %v4481_v58 = vmul.f32 %v5556_v37, %v4449_v42  ;;  %vm4487_vm14 = vweird.f32 %v5556_v37 }
0x2940   :  { %5162 = vmatmul.msk.f32.gmra.mxu0 %vm313_vm8, %v4505_v25  ;;  %vm4488_vm6 = vmor %vm4486_vm5, %vm4487_vm14 }
0x2941   :  { %v4479_v59 = vsel %vm4478_vm13, %v5554_v41, %v4475_v57  ;;  %v4482_v27 = vmul.f32 %v5556_v37, %v4481_v58 }
0x2942   :  { %v4492_v47 = vmul.f32 %v4479_v59, %v6982_v53 }
0x2943   :  { %v4483_v0 = vmul.f32 0.5, %v4482_v27 }
0x2944   :  { %v4499_v61 = vmul.f32 %v7000_v20, %v4492_v47 }
0x2945   :  { %v4484_v62 = vsub.f32 1.5, %v4483_v0 }
0x2946   :  { %v4506_v63 = vadd.f32 %v7003_v35, %v4499_v61 }
0x2947   :  { %v4485_v50 = vmul.f32 %v5556_v37, %v4484_v62 }
0x2948   :  { %5163 = vmatmul.msk.f32.gmra.mxu0 %vm313_vm8, %v4506_v63 }
0x2949   :  { %v4489_v2 = vsel %vm4488_vm6, %v5556_v37, %v4485_v50  ;;  %vm4819_vm6 = vcmask 125952  }
0x294a   :  { %v4493_v53 = vmul.f32 %v4489_v2, %v6989_v33  ;;  %v5173_v33 = vld [vmem:[%s7183_s20 + $0xc0] sm:$0xff] }
0x294b   :  { %4624 = vmatpush.msrb.mxu1 %v5173_v33 }
0x294c   :  { %v4500_v3 = vmul.f32 %v7000_v20, %v4493_v53  ;;  %v5167_v20 = vld [vmem:[%s7183_s20 + $0x90] sm:$0xff] }
0x294d   :  { %4625 = vmatpush.msrb.mxu1 %v5172_v17 }
0x294e   :  { %v4507_v4 = vadd.f32 %v7003_v35, %v4500_v3  ;;  %v5165_v35 = vld [vmem:[%s7183_s20 + $0x80] sm:$0xff] }
0x294f   :  { %4626 = vmatpush.msrb.mxu1 %v5171_v9 }
0x2950   :  { %5164 = vmatmul.msk.f32.gmra.mxu0 %vm313_vm8, %v4507_v4 }
0x2951   :  { %4627 = vmatpush.msrb.mxu1 %v5170_v40 }
0x2953   :  { %4628 = vmatpush.msrb.mxu1 %v5169_v39 }
0x2955   :  { %4629 = vmatpush.msrb.mxu1 %v5168_v46 }
0x2957   :  { %4630 = vmatpush.msrb.mxu1 %v5167_v20 }
0x2959   :  { %4631 = vmatpush.msrb.mxu1 %v5166_v22 }
0x295b   :  { %4632 = vmatpush.msrb.mxu1 %v5165_v35 }
0x2992   :  { %v4547_v11 = vpop.f32.mrf.mxu0 }
0x2993   :  { %v4548_v21 = vadd.f32 %v5328_v1, %v4547_v11 }
0x2995   :  { %v4559_v60 = vmul.f32 %v4548_v21, %v4548_v21 }
0x2997   :  { %v4563_v23 = vmul.f32 %v4559_v60, %v4548_v21 }
0x2999   :  { %v4567_v45 = vmul.f32 0.044715, %v4563_v23 }
0x299b   :  { %v4571_v19 = vadd.f32 %v4567_v45, %v4548_v21 }
0x299d   :  { %v4575_v13 = vmul.f32 0.7978846, %v4571_v19 }
0x299f   :  { %5557 = vtanh.f32 %v4575_v13 }
0x29a5   :  { %v5558_v36 = vpop.eup %5557 }
0x29a6   :  { %v4583_v28 = vadd.f32 1.0, %v5558_v36 }
0x29a8   :  { %v4587_v30 = vmul.f32 0.5, %v4583_v28 }
0x29aa   :  { %v4591_v32 = vmul.f32 %v4587_v30, %v4548_v21 }
0x29ac   :  { %4633 = vmatmul.f32.vlgmr.msrb.gmra.mxu1 %v4591_v32 }
0x29bd   :  { %v4550_v29 = vpop.f32.mrf.mxu0 }
0x29be   :  { %v4551_v10 = vadd.f32 %v5328_v1, %v4550_v29 }
0x29c0   :  { %v4560_v34 = vmul.f32 %v4551_v10, %v4551_v10 }
0x29c2   :  { %v4564_v5 = vmul.f32 %v4560_v34, %v4551_v10 }
0x29c4   :  { %v4568_v38 = vmul.f32 0.044715, %v4564_v5 }
0x29c5   :  { %v4553_v24 = vpop.f32.mrf.mxu0 }
0x29c6   :  { %v4572_v15 = vadd.f32 %v4568_v38, %v4551_v10  ;;  %v4554_v41 = vadd.f32 %v5328_v1, %v4553_v24 }
0x29c8   :  { %v4561_v42 = vmul.f32 %v4554_v41, %v4554_v41  ;;  %v4576_v6 = vmul.f32 0.7978846, %v4572_v15 }
0x29ca   :  { %v4565_v49 = vmul.f32 %v4561_v42, %v4554_v41  ;;  %5559 = vtanh.f32 %v4576_v6 }
0x29cc   :  { %v4569_v51 = vmul.f32 0.044715, %v4565_v49 }
0x29cd   :  { %v4556_v26 = vpop.f32.mrf.mxu0 }
0x29ce   :  { %v4573_v14 = vadd.f32 %v4569_v51, %v4554_v41  ;;  %v4557_v52 = vadd.f32 %v5328_v1, %v4556_v26 }
0x29d0   :  { %v5560_v44 = vpop.eup %5559  ;;  %v4562_v55 = vmul.f32 %v4557_v52, %v4557_v52  ;;  %v4577_v37 = vmul.f32 0.7978846, %v4573_v14 }
0x29d1   :  { %v4584_v25 = vadd.f32 1.0, %v5560_v44 }
0x29d2   :  { %v4566_v57 = vmul.f32 %v4562_v55, %v4557_v52  ;;  %5561 = vtanh.f32 %v4577_v37 }
0x29d3   :  { %v4588_v58 = vmul.f32 0.5, %v4584_v25 }
0x29d4   :  { %v4570_v59 = vmul.f32 0.044715, %v4566_v57 }
0x29d5   :  { %v4592_v27 = vmul.f32 %v4588_v58, %v4551_v10  ;;  %v1314_v10 = vld [vmem:[%s7186_s0] sm:$0x1] }
0x29d6   :  { %v4574_v47 = vadd.f32 %v4570_v59, %v4557_v52  ;;  %v7064_v5 = vadd.f32 %v6322_v18, %v1314_v10  ;;  %v7077_v58 = vld [vmem:[%s7187_s5] ss:$0 sm:$0xff] }
0x29d7   :  { %4636 = vmatmul.f32.gmra.mxu1 %v4592_v27  ;;  %v7080_v27 = vld [vmem:[%s7188_s9] ss:$0 sm:$0xff] }
0x29d8   :  { %v5562_v0 = vpop.eup %5561  ;;  %v4578_v61 = vmul.f32 0.7978846, %v4574_v47  ;;  %v4801_v42 = vmul.f32 %v7064_v5, %v7064_v5 }
0x29d9   :  { %v4585_v62 = vadd.f32 1.0, %v5562_v0 }
0x29da   :  { %5563 = vtanh.f32 %v4578_v61  ;;  %v4803_v18 = vsel %vm4802_vm7, %v4801_v42, 0.0 }
0x29db   :  { %v4589_v63 = vmul.f32 0.5, %v4585_v62 }
0x29dd   :  { %v4593_v50 = vmul.f32 %v4589_v63, %v4554_v41 }
0x29df   :  { %4639 = vmatmul.f32.gmra.mxu1 %v4593_v50 }
0x29e0   :  { %v5564_v2 = vpop.eup %5563 }
0x29e1   :  { %v4586_v53 = vadd.f32 1.0, %v5564_v2 }
0x29e3   :  { %v4590_v3 = vmul.f32 0.5, %v4586_v53 }
0x29e5   :  { %v4594_v4 = vmul.f32 %v4590_v3, %v4557_v52 }
0x29e7   :  { %4642 = vmatmul.f32.gmra.mxu1 %v4594_v4 }
0x2a29   :  { %v4634_v8 = vpop.f32.mrf.mxu1 }
0x2a2a   :  { %v4635_v54 = vadd.f32 %v5329_v7, %v4634_v8 }
0x2a2c   :  { %v4646_v31 = vadd.f32 %v4635_v54, %v6951_v16  ;;  %v4773_v54 = vld [vmem:[%s5878_s27 + $0x18] sm:$0xff] }
0x2a2d   :  { %4793 = vmatpush.msra.mxu2 %v4773_v54 }
0x2a2e   :  { %v4652_v33 = vsel %vm313_vm8, %v4646_v31, 0.0 }
0x2a2f   :  { %4653 = vadd.xlane.f32.xlu1 %v4652_v33 }
0x2a54   :  { %v4637_v17 = vpop.f32.mrf.mxu1 }
0x2a55   :  { %v4638_v9 = vadd.f32 %v5329_v7, %v4637_v17  ;;  %v4771_v17 = vld [vmem:[%s5878_s27 + $0x8] sm:$0xff] }
0x2a57   :  { %v4647_v40 = vadd.f32 %v4638_v9, %v6956_v56 }
0x2a59   :  { %v4655_v39 = vsel %vm313_vm8, %v4647_v40, 0.0 }
0x2a5a   :  { %4656 = vadd.xlane.f32.xlu2 %v4655_v39 }
0x2a5c   :  { %v4640_v46 = vpop.f32.mrf.mxu1 }
0x2a5d   :  { %v4641_v20 = vadd.f32 %v5329_v7, %v4640_v46  ;;  %v4770_v46 = vld [vmem:[%s5878_s27] sm:$0xff] }
0x2a5f   :  { %v4648_v22 = vadd.f32 %v4641_v20, %v6961_v12 }
0x2a61   :  { %v4658_v35 = vsel %vm313_vm8, %v4648_v22, 0.0 }
0x2a62   :  { %4659 = vadd.xlane.f32.xlu0 %v4658_v35 }
0x2a64   :  { %v4643_v1 = vpop.f32.mrf.mxu1 }
0x2a65   :  { %v4644_v11 = vadd.f32 %v5329_v7, %v4643_v1 }
0x2a67   :  { %v4649_v16 = vadd.f32 %v4644_v11, %v6966_v48 }
0x2a69   :  { %v4661_v21 = vsel %vm313_vm8, %v4649_v16, 0.0 }
0x2a6a   :  { %4662 = vadd.xlane.f32.xlu1 %v4661_v21 }
0x2aa2   :  { %v4654_v60 = vpop.xlane.xlu1 %4653 }
0x2aa3   :  { %v4664_v56 = vmul.f32 %v4654_v60, %v5928_v43 }
0x2aa5   :  { %v4668_v23 = vsub.f32 %v4646_v31, %v4664_v56  ;;  %v4772_v31 = vld [vmem:[%s5878_s27 + $0x10] sm:$0xff] }
0x2aa6   :  { %4794 = vmatpush.msra.mxu2 %v4772_v31  ;;  %v4863_v31 = vstv %s5888_s12  ;;  %s5669_s12 = smov [#allocation7]  }
0x2aa7   :  { %v4672_v45 = vmul.f32 %v4668_v23, %v4668_v23  ;;  %s4896_s27 = sshll.u32 %s5669_s12, 4  ;;  %s4897_s27 = int_to_ptr.vmem [resolvable:$true] %s4896_s27 }
0x2aa8   :  { %4795 = vmatpush.msra.mxu2 %v4771_v17 }
0x2aa9   :  { %v4676_v19 = vsel %vm313_vm8, %v4672_v45, 0.0 }
0x2aaa   :  { %4677 = vadd.xlane.f32.xlu2 %v4676_v19  ;;  %4796 = vmatpush.msra.mxu2 %v4770_v46 }
0x2acd   :  { %v4657_v12 = vpop.xlane.xlu2 %4656 }
0x2ace   :  { %v4665_v13 = vmul.f32 %v4657_v12, %v5928_v43 }
0x2ad0   :  { %v7052_v36 = vsub.f32 %v4647_v40, %v4665_v13 }
0x2ad2   :  { %v4673_v48 = vmul.f32 %v7052_v36, %v7052_v36 }
0x2ad4   :  { %v4679_v28 = vsel %vm313_vm8, %v4673_v48, 0.0 }
0x2ad5   :  { %v4660_v30 = vpop.xlane.xlu0 %4659  ;;  %4680 = vadd.xlane.f32.xlu0 %v4679_v28 }
0x2ad6   :  { %v4666_v32 = vmul.f32 %v4660_v30, %v5928_v43 }
0x2ad8   :  { %v7058_v29 = vsub.f32 %v4648_v22, %v4666_v32 }
0x2ada   :  { %v4674_v34 = vmul.f32 %v7058_v29, %v7058_v29 }
0x2adc   :  { %v4682_v38 = vsel %vm313_vm8, %v4674_v34, 0.0 }
0x2add   :  { %v4663_v24 = vpop.xlane.xlu1 %4662  ;;  %4683 = vadd.xlane.f32.xlu1 %v4682_v38 }
0x2ade   :  { %v4667_v15 = vmul.f32 %v4663_v24, %v5928_v43 }
0x2ae0   :  { %v7068_v41 = vsub.f32 %v4649_v16, %v4667_v15 }
0x2ae2   :  { %v4675_v6 = vmul.f32 %v7068_v41, %v7068_v41 }
0x2ae4   :  { %v4685_v49 = vsel %vm313_vm8, %v4675_v6, 0.0 }
0x2ae5   :  { %4686 = vadd.xlane.f32.xlu2 %v4685_v49  ;;  %4804 = vadd.xlane.f32.xlu1 %v4803_v18 }
0x2b1d   :  { %v4678_v51 = vpop.xlane.xlu2 %4677 }
0x2b1e   :  { %v4688_v26 = vmul.f32 %v4678_v51, %v5928_v43 }
0x2b20   :  { %v4692_v14 = vadd.f32 1e-12, %v4688_v26  ;;  %v5332_v26 = vld [vmem:[%s5883_s4] ss:$0 sm:$0xff]  ;;  %s4898_s4 = sshll.u32 %s5893_s30, 4  ;;  %s4899_s4 = int_to_ptr.hbm [resolvable:$true] %s4898_s4 }
0x2b21   :  { %s5597_s13 = sshra.s32 %s4899_s4, 4  ;;  %s5598_s13 = int_to_ptr.hbm [resolvable:$true] %s5597_s13 }
0x2b22   :  { %5565 = vrsqrt.f32 %v4692_v14  ;;  %vm4702_vm9 = vweird.f32 %v4692_v14  ;;  %s5599_s17 = scalar_lea.hbm %s5598_s13, 1  ;;  %p5602_p1 = scmp.lt.s32.totalorder %s5598_s13, %s5893_s30 }
0x2b23   :  { %p5600_p0 = scmp.ne.s32.totalorder %s5598_s13, %s5599_s17  ;;  %p5603_p2 = scmp.lt.s32.totalorder %s5601_s21, %s5599_s17 }
0x2b25   :  { %p5604_p3 = por %p5603_p2, %p5602_p1 }
0x2b27   :  { %p5605_p4 = pnand %p5604_p3, %p5600_p0 }
0x2b28   :  { %v5566_v52 = vpop.eup %5565 }
0x2b29   :  { %v4697_v44 = vmul.f32 %v5566_v52, %v4692_v14  ;;  %vm4703_vm2 = vweird.f32 %v5566_v52 }
0x2b2a   :  { %vm4704_vm15 = vmor %vm4702_vm9, %vm4703_vm2 }
0x2b2b   :  { %v4698_v55 = vmul.f32 %v5566_v52, %v4697_v44 }
0x2b2d   :  { %v4699_v37 = vmul.f32 0.5, %v4698_v55 }
0x2b2f   :  { %v4700_v25 = vsub.f32 1.5, %v4699_v37 }
0x2b31   :  { %v4701_v57 = vmul.f32 %v5566_v52, %v4700_v25 }
0x2b33   :  { %v4705_v59 = vsel %vm4704_vm15, %v5566_v52, %v4701_v57 }
0x2b34   :  { %v4736_v47 = vmul.f32 %v4705_v59, %v4668_v23 }
0x2b36   :  { %v4743_v0 = vmul.f32 %v7077_v58, %v4736_v47 }
0x2b38   :  { %v4750_v61 = vadd.f32 %v7080_v27, %v4743_v0 }
0x2b3a   :  { %4754 = vst.msk [vmem:[#allocation4] sm:$0xff] %vm313_vm8, %v4750_v61 }
0x2b41   :  { %v4758_v62 = vld [vmem:[#allocation4] sm:$0x1] }
0x2b42   :  { %4759 = vst.msk [vmem:[#allocation5] sm:$0x1] %vm258_vm1, %v4758_v62 }
0x2b48   :  { %v4681_v63 = vpop.xlane.xlu0 %4680 }
0x2b49   :  { %v4689_v50 = vmul.f32 %v4681_v63, %v5928_v43 }
0x2b4b   :  { %v4693_v2 = vadd.f32 1e-12, %v4689_v50 }
0x2b4d   :  { %5567 = vrsqrt.f32 %v4693_v2  ;;  %vm4712_vm4 = vweird.f32 %v4693_v2 }
0x2b50   :  { %v4684_v53 = vpop.xlane.xlu1 %4683 }
0x2b51   :  { %v4690_v3 = vmul.f32 %v4684_v53, %v5928_v43 }
0x2b53   :  { %v5568_v4 = vpop.eup %5567  ;;  %v4694_v7 = vadd.f32 1e-12, %v4690_v3 }
0x2b54   :  { %v4707_v8 = vmul.f32 %v5568_v4, %v4693_v2  ;;  %vm4713_vm0 = vweird.f32 %v5568_v4 }
0x2b55   :  { %5569 = vrsqrt.f32 %v4694_v7  ;;  %vm4714_vm10 = vmor %vm4712_vm4, %vm4713_vm0  ;;  %vm4722_vm12 = vweird.f32 %v4694_v7  ;;  %vm4835_vm0 = vcmask 130048   ;;  %vm4865_vm4 = vcmask 24576  }
0x2b56   :  { %v4708_v33 = vmul.f32 %v5568_v4, %v4707_v8 }
0x2b58   :  { %v4709_v9 = vmul.f32 0.5, %v4708_v33  ;;  %v4687_v40 = vpop.xlane.xlu2 %4686  ;;  %v4805_v55 = vpop.xlane.xlu1 %4804 }
0x2b59   :  { %v4691_v39 = vmul.f32 %v4687_v40, %v5928_v43  ;;  %v4806_v37 = vadd.f32 1e-12, %v4805_v55 }
0x2b5a   :  { %v4710_v20 = vsub.f32 1.5, %v4709_v9 }
0x2b5b   :  { %v5570_v22 = vpop.eup %5569  ;;  %v4695_v35 = vadd.f32 1e-12, %v4691_v39  ;;  %vm4813_vm2 = vweird.f32 %v4806_v37 }
0x2b5c   :  { %v4711_v1 = vmul.f32 %v5568_v4, %v4710_v20  ;;  %v4717_v11 = vmul.f32 %v5570_v22, %v4694_v7  ;;  %vm4723_vm11 = vweird.f32 %v5570_v22 }
0x2b5d   :  { %5571 = vrsqrt.f32 %v4695_v35  ;;  %vm4724_vm3 = vmor %vm4722_vm12, %vm4723_vm11  ;;  %vm4732_vm14 = vweird.f32 %v4695_v35 }
0x2b5e   :  { %v4715_v16 = vsel %vm4714_vm10, %v5568_v4, %v4711_v1  ;;  %v4718_v21 = vmul.f32 %v5570_v22, %v4717_v11  ;;  %5573 = vrsqrt.f32 %v4806_v37 }
0x2b5f   :  { %v4737_v60 = vmul.f32 %v4715_v16, %v7052_v36 }
0x2b60   :  { %v4719_v56 = vmul.f32 0.5, %v4718_v21 }
0x2b61   :  { %v4744_v23 = vmul.f32 %v7077_v58, %v4737_v60 }
0x2b62   :  { %v4720_v43 = vsub.f32 1.5, %v4719_v56 }
0x2b63   :  { %v5572_v45 = vpop.eup %5571  ;;  %v4751_v19 = vadd.f32 %v7080_v27, %v4744_v23 }
0x2b64   :  { %v4721_v12 = vmul.f32 %v5570_v22, %v4720_v43  ;;  %v4727_v13 = vmul.f32 %v5572_v45, %v4695_v35  ;;  %vm4733_vm13 = vweird.f32 %v5572_v45  ;;  %v5574_v25 = vpop.eup %5573 }
0x2b65   :  { %4755 = vst.msk [vmem:[#allocation4 + $0x8] sm:$0xff] %vm313_vm8, %v4751_v19  ;;  %vm4734_vm5 = vmor %vm4732_vm14, %vm4733_vm13 }
0x2b66   :  { %v4725_v48 = vsel %vm4724_vm3, %v5570_v22, %v4721_v12  ;;  %v4728_v28 = vmul.f32 %v5572_v45, %v4727_v13 }
0x2b67   :  { %v4738_v30 = vmul.f32 %v4725_v48, %v7058_v29 }
0x2b68   :  { %v4729_v32 = vmul.f32 0.5, %v4728_v28 }
0x2b69   :  { %v4745_v36 = vmul.f32 %v7077_v58, %v4738_v30 }
0x2b6a   :  { %v4730_v10 = vsub.f32 1.5, %v4729_v32 }
0x2b6b   :  { %v4752_v34 = vadd.f32 %v7080_v27, %v4745_v36 }
0x2b6c   :  { %v4731_v38 = vmul.f32 %v5572_v45, %v4730_v10  ;;  %v4761_v24 = vld [vmem:[#allocation4 + $0x8] sm:$0x1] }
0x2b6d   :  { %4756 = vst.msk [vmem:[#allocation4 + $0x10] sm:$0xff] %vm313_vm8, %v4752_v34 }
0x2b6e   :  { %v4735_v15 = vsel %vm4734_vm5, %v5572_v45, %v4731_v38  ;;  %4762 = vst.msk [vmem:[#allocation5 + $0x1] sm:$0x1] %vm258_vm1, %v4761_v24 }
0x2b6f   :  { %v4739_v42 = vmul.f32 %v4735_v15, %v7068_v41 }
0x2b71   :  { %v4746_v29 = vmul.f32 %v7077_v58, %v4739_v42  ;;  %v4808_v58 = vmul.f32 %v5574_v25, %v4806_v37 }
0x2b73   :  { %v4753_v6 = vadd.f32 %v7080_v27, %v4746_v29  ;;  %v4809_v27 = vmul.f32 %v5574_v25, %v4808_v58 }
0x2b74   :  { %v4764_v49 = vld [vmem:[#allocation4 + $0x10] sm:$0x1] }
0x2b75   :  { %4757 = vst.msk [vmem:[#allocation4 + $0x18] sm:$0xff] %vm313_vm8, %v4753_v6  ;;  %v4810_v0 = vmul.f32 0.5, %v4809_v27 }
0x2b76   :  { %4765 = vst.msk [vmem:[#allocation5 + $0x2] sm:$0x1] %vm258_vm1, %v4764_v49 }
0x2b77   :  { %v4811_v63 = vsub.f32 1.5, %v4810_v0 }
0x2b79   :  { %v4812_v53 = vmul.f32 %v5574_v25, %v4811_v63 }
0x2b7c   :  { %v4767_v18 = vld [vmem:[#allocation4 + $0x18] sm:$0x1] }
0x2b7d   :  { %4768 = vst.msk [vmem:[#allocation5 + $0x3] sm:$0x1] %vm258_vm1, %v4767_v18 }
0x2b84   :  { %v4769_v51 = vld [vmem:[#allocation5] sm:$0xf] }
0x2b85   :  { %5182 = vmatmul.msk.f32.vlgmr.msra.gmra.mxu2 %vm313_vm8, %v4769_v51  ;;  %vm4814_vm8 = vweird.f32 %v5574_v25 }
0x2b86   :  { %vm4815_vm15 = vmor %vm4813_vm2, %vm4814_vm8 }
0x2b87   :  { %v4816_v7 = vsel %vm4815_vm15, %v5574_v25, %v4812_v53 }
0x2b88   :  { %v4817_v54 = vmul.f32 %v4816_v7, %v7064_v5 }
0x2c08   :  { %v4798_v14 = vpop.f32.mrf.mxu2 }
0x2c09   :  { %v4799_v52 = vadd.f32 %v5332_v26, %v4798_v14 }
0x2c0b   :  { %v4818_v41 = vmul.f32 %v4799_v52, %v4799_v52 }
0x2c0d   :  { %v4820_v44 = vsel %vm4819_vm6, %v4818_v41, 0.0 }
0x2c0e   :  { %4821 = vadd.xlane.f32.xlu0 %v4820_v44 }
0x2c81   :  { %v4822_v57 = vpop.xlane.xlu0 %4821 }
0x2c82   :  { %v4823_v59 = vadd.f32 1e-12, %v4822_v57 }
0x2c84   :  { %5575 = vrsqrt.f32 %v4823_v59  ;;  %vm4830_vm7 = vweird.f32 %v4823_v59 }
0x2c8a   :  { %v5576_v47 = vpop.eup %5575 }
0x2c8b   :  { %v4825_v61 = vmul.f32 %v5576_v47, %v4823_v59  ;;  %vm4831_vm1 = vweird.f32 %v5576_v47 }
0x2c8c   :  { %vm4832_vm9 = vmor %vm4830_vm7, %vm4831_vm1 }
0x2c8d   :  { %v4826_v62 = vmul.f32 %v5576_v47, %v4825_v61 }
0x2c8f   :  { %v4827_v50 = vmul.f32 0.5, %v4826_v62 }
0x2c91   :  { %v4828_v2 = vsub.f32 1.5, %v4827_v50 }
0x2c93   :  { %v4829_v3 = vmul.f32 %v5576_v47, %v4828_v2 }
0x2c95   :  { %v4833_v4 = vsel %vm4832_vm9, %v5576_v47, %v4829_v3 }
0x2c96   :  { %v4834_v8 = vmul.f32 %v4833_v4, %v4799_v52 }
0x2c98   :  { %5183 = vmatpush.xpose.msk.msrb.mxu2 %vm4835_vm0, %v4834_v8 }
0x2c9b   :  { %5184 = vmatmul.msk.f32.vlgmr.msrb.gmra.mxu2 %vm4835_vm0, %v4817_v54 }
0x2d1e   :  { %v4859_v33 = vpop.f32.mrf.mxu2 }
0x2d1f   :  { %v4864_v17 = vmul.f32 %v4863_v31, %v4859_v33 }
0x2d21   :  { %v4866_v9 = vsel %vm4865_vm4, %v4864_v17, -inf }
0x2d22   :  { %4867 = vmax.xlane.f32.xlu2 %v4866_v9 }
0x2d95   :  { %v4868_v40 = vpop.xlane.xlu2 %4867 }
0x2d96   :  { %v4869_v39 = vsub.f32 %v4864_v17, %v4868_v40 }
0x2d98   :  { %v4870_v46 = vmul.f32 1.442695, %v4869_v39 }
0x2d9a   :  { %5577 = vpow2.f32 %v4870_v46 }
0x2da0   :  { %v5578_v20 = vpop.eup %5577 }
0x2da1   :  { %v4872_v22 = vsel %vm4865_vm4, %v5578_v20, 0.0 }
0x2da2   :  { %4873 = vadd.xlane.f32.xlu0 %v4872_v22 }
0x2e15   :  { %v4874_v35 = vpop.xlane.xlu0 %4873 }
0x2e16   :  { %5579 = vrcp.f32 %v4874_v35  ;;  %v4886_v16 = vand.u32 2147483648, %v4874_v35  ;;  %v4884_v60 = vand.u32 2147483647, %v4874_v35  ;;  %vm4880_vm11 = vweird.f32 %v4874_v35 }
0x2e18   :  { %v4887_v23 = vor.u32 1.1754944e-38, %v4886_v16  ;;  %vm4885_vm3 = vcmp.eq.f32.partialorder %v4884_v60, 8.507059e+37 }
0x2e1c   :  { %v5580_v5 = vpop.eup %5579 }
0x2e1d   :  { %v4876_v1 = vmul.f32 %v5580_v5, %v4874_v35  ;;  %vm4881_vm10 = vweird.f32 %v5580_v5 }
0x2e1e   :  { %vm4882_vm12 = vmor %vm4880_vm11, %vm4881_vm10 }
0x2e1f   :  { %v4877_v11 = vsub.f32 1.0, %v4876_v1 }
0x2e21   :  { %v4878_v21 = vmul.f32 %v5580_v5, %v4877_v11 }
0x2e23   :  { %v4879_v56 = vadd.f32 %v5580_v5, %v4878_v21 }
0x2e25   :  { %v4883_v43 = vsel %vm4882_vm12, %v5580_v5, %v4879_v56 }
0x2e26   :  { %v4888_v45 = vsel %vm4885_vm3, %v4887_v23, %v4883_v43 }
0x2e27   :  { %v4889_v19 = vmul.f32 %v5578_v20, %v4888_v45 }
0x2e29   :  { %4890 = vst.msk [vmem:[#allocation7] sm:$0x1] %vm4865_vm4, %v4889_v19 }
0x2e2a   :  { %5608 = shalt.err (!%p5605_p4)
}
0x2e2b   :  { %4901 = dma.vmem_to_hbm [thread:$0]  %s4897_s27, 16, %s4899_s4, [#allocation8]  }
0x2e2c   :  { %5609 = dma.done.wait [#allocation8], 16  }
0x2e2d   :  { %5610 = vsyncadd [#allocation8], 4294967280 }
0x2e2e   :  { %4906 = vsyncpa [#allocation8], 1 }

</bundles_post_ra>
